<compile_context>
chip_gen: v6e
topology: v6e:2x2x1
jax: 0.10.0
libtpu: 0.0.40
codegen_flags: <defaults>
</compile_context>

<pallas_src>
import functools

import jax
import jax.numpy as jnp
from jax.experimental import pallas as pl
from jax.experimental.pallas import tpu as pltpu


# ------------------------------ fused kernel --------------------------------

def _layernorm(x, g, b):
    # x: (T, C) f32; g, b: (1, C) f32. PyTorch LayerNorm: eps=1e-5, biased var.
    mean = jnp.mean(x, axis=-1, keepdims=True)
    var = jnp.mean(jnp.square(x - mean), axis=-1, keepdims=True)
    return (x - mean) * jax.lax.rsqrt(var + 1e-5) * g + b


def _mha(x, wqkv, wp, bp, num_heads, head_size, mask_bias, scale):
    """Multi-head causal attention: stacked QKV matmul, per-head softmax-attn,
    concat, output projection. x: (T, C) f32. Returns (T, C) f32."""
    x16 = x.astype(jnp.bfloat16)
    # One lane-dense matmul for all of Q, K, V across all heads: (T, 3*H*hs).
    qkv = jnp.dot(x16, wqkv, preferred_element_type=jnp.float32)
    hh = num_heads * head_size
    outs = []
    for h in range(num_heads):
        lo, hi = h * head_size, (h + 1) * head_size
        # Pre-scale Q (cheaper than scaling the (T, T) score matrix).
        q = (qkv[:, lo:hi] * scale).astype(jnp.bfloat16)
        k = qkv[:, hh + lo:hh + hi].astype(jnp.bfloat16)
        v = qkv[:, 2 * hh + lo:2 * hh + hi].astype(jnp.bfloat16)
        # s = q @ k.T  (NT matmul, no explicit transpose)
        s = jax.lax.dot_general(q, k, (((1,), (1,)), ((), ())),
                                preferred_element_type=jnp.float32)
        s = s + mask_bias                               # finite causal bias
        m = jnp.max(s, axis=-1, keepdims=True)
        p = jnp.exp(s - m)
        inv = pl.reciprocal(jnp.sum(p, axis=-1, keepdims=True), approx=True)
        o = jnp.dot(p.astype(jnp.bfloat16), v,
                    preferred_element_type=jnp.float32) * inv
        outs.append(o)
    cat = jnp.concatenate(outs, axis=-1)                # (T, H*hs)
    return jnp.dot(cat.astype(jnp.bfloat16), wp,
                   preferred_element_type=jnp.float32) + bp


def _fused_forward_kernel(
        tok_ref, pos_ref,
        sa_wqkv_ref, sa_wp_ref, sa_bp_ref,
        ln1_g_ref, ln1_b_ref, blk_wqkv_ref, blk_wp_ref, blk_bp_ref,
        ln2_g_ref, ln2_b_ref, blk_w1_ref, blk_b1_ref, blk_w2_ref, blk_b2_ref,
        lnf_g_ref, lnf_b_ref, lm_w_ref, lm_b_ref,
        o_ref,
        *, n_layer, sa_heads, sa_head_size, n_head, head_size, scale):
    # ---- embeddings: tok_emb + pos_emb ----
    x = tok_ref[0] + pos_ref[...]                       # (T, C) f32
    T = x.shape[0]

    # Causal additive bias, computed once, reused by every head of every layer.
    row = jax.lax.broadcasted_iota(jnp.int32, (T, T), 0)
    col = jax.lax.broadcasted_iota(jnp.int32, (T, T), 1)
    mask_bias = jnp.where(col <= row, 0.0, -1e30).astype(jnp.float32)

    # ---- sa_heads: MultiHeadAttention(4, n_embd // 4), no residual ----
    x = _mha(x, sa_wqkv_ref[...], sa_wp_ref[...], sa_bp_ref[...],
             sa_heads, sa_head_size, mask_bias, scale)

    # ---- transformer blocks (fully unrolled, weights resident in VMEM) ----
    for l in range(n_layer):
        h = _layernorm(x, ln1_g_ref[l], ln1_b_ref[l])
        x = x + _mha(h, blk_wqkv_ref[l], blk_wp_ref[l], blk_bp_ref[l],
                     n_head, head_size, mask_bias, scale)
        h2 = _layernorm(x, ln2_g_ref[l], ln2_b_ref[l])
        f = jnp.dot(h2.astype(jnp.bfloat16), blk_w1_ref[l],
                    preferred_element_type=jnp.float32) + blk_b1_ref[l]
        f = jnp.maximum(f, 0.0)                          # ReLU
        f = jnp.dot(f.astype(jnp.bfloat16), blk_w2_ref[l],
                    preferred_element_type=jnp.float32) + blk_b2_ref[l]
        x = x + f

    # ---- ln_f + lm_head (vocab padded to 128 lanes -> unmasked stores) ----
    hf = _layernorm(x, lnf_g_ref[...], lnf_b_ref[...])
    logits = jnp.dot(hf.astype(jnp.bfloat16), lm_w_ref[...],
                     preferred_element_type=jnp.float32) + lm_b_ref[...]
    o_ref[0] = logits


# ------------------------------ model wrapper --------------------------------

def bigram_lm_forward(params, idx, *, vocab_size, n_head, sa_heads):
    """Equivalent of BigramLanguageModel.forward(idx, targets=None)."""
    B, T = idx.shape
    C = params["tok_emb"].shape[-1]
    L = params["blk_wqkv"].shape[0]
    v_pad = params["lm_w"].shape[-1]
    scale = float(C) ** -0.5            # PyTorch Head uses n_embd for the scale

    # TODO(synk): embedding gather stays in plain JAX glue (no clean Pallas
    # equivalent for a per-token row gather at these tiny sizes).
    tok = jnp.take(params["tok_emb"], idx, axis=0)      # (B, T, C)
    pos = params["pos_emb"][:T]                         # (T, C)

    kernel = functools.partial(
        _fused_forward_kernel,
        n_layer=L, sa_heads=sa_heads, sa_head_size=C // sa_heads,
        n_head=n_head, head_size=C // n_head, scale=scale)

    def full_spec(a):
        nd = a.ndim
        return pl.BlockSpec(a.shape, lambda b, nd=nd: (0,) * nd)

    weights = [
        params["sa_wqkv"], params["sa_wp"], params["sa_bp"],
        params["ln1_g"], params["ln1_b"], params["blk_wqkv"],
        params["blk_wp"], params["blk_bp"],
        params["ln2_g"], params["ln2_b"], params["blk_w1"], params["blk_b1"],
        params["blk_w2"], params["blk_b2"],
        params["lnf_g"], params["lnf_b"], params["lm_w"], params["lm_b"],
    ]

    logits_pad = pl.pallas_call(
        kernel,
        out_shape=jax.ShapeDtypeStruct((B, T, v_pad), jnp.float32),
        grid=(B,),
        in_specs=[
            pl.BlockSpec((1, T, C), lambda b: (b, 0, 0)),   # tok (per batch)
            pl.BlockSpec((T, C), lambda b: (0, 0)),         # pos (shared)
        ] + [full_spec(w) for w in weights],                # weights (resident)
        out_specs=pl.BlockSpec((1, T, v_pad), lambda b: (b, 0, 0)),
        compiler_params=pltpu.CompilerParams(
            dimension_semantics=("parallel",)),
    )(tok, pos, *weights)

    logits = logits_pad[..., :vocab_size]               # drop padded vocab lanes
    return logits, None                                 # targets=None -> loss=None


# ------------------------------ parameter init --------------------------------

def init_params(key, *, vocab_size, n_embd, block_size, n_layer):
    C = n_embd
    L = n_layer
    v_pad = ((vocab_size + 127) // 128) * 128
    keys = iter(jax.random.split(key, 64))

    def nrm(shape, s=0.02, dtype=jnp.float32):
        return (s * jax.random.normal(next(keys), shape)).astype(dtype)

    # lm head: pad vocab columns to a multiple of 128 with zeros.
    lm_w = jnp.zeros((C, v_pad), jnp.float32)
    lm_w = lm_w.at[:, :vocab_size].set(nrm((C, vocab_size)))

    params = dict(
        tok_emb=nrm((vocab_size, C), 1.0),
        pos_emb=nrm((block_size, C), 1.0),
        # sa_heads: 4 heads of size C//4 -> H*hs == C
        sa_wqkv=nrm((C, 3 * C), dtype=jnp.bfloat16),
        sa_wp=nrm((C, C), dtype=jnp.bfloat16),
        sa_bp=jnp.zeros((1, C), jnp.float32),
        # per-block weights stacked along a leading layer dim
        ln1_g=jnp.ones((L, 1, C), jnp.float32),
        ln1_b=jnp.zeros((L, 1, C), jnp.float32),
        blk_wqkv=nrm((L, C, 3 * C), dtype=jnp.bfloat16),
        blk_wp=nrm((L, C, C), dtype=jnp.bfloat16),
        blk_bp=jnp.zeros((L, 1, C), jnp.float32),
        ln2_g=jnp.ones((L, 1, C), jnp.float32),
        ln2_b=jnp.zeros((L, 1, C), jnp.float32),
        blk_w1=nrm((L, C, 4 * C), dtype=jnp.bfloat16),
        blk_b1=jnp.zeros((L, 1, 4 * C), jnp.float32),
        blk_w2=nrm((L, 4 * C, C), dtype=jnp.bfloat16),
        blk_b2=jnp.zeros((L, 1, C), jnp.float32),
        lnf_g=jnp.ones((1, C), jnp.float32),
        lnf_b=jnp.zeros((1, C), jnp.float32),
        lm_w=lm_w.astype(jnp.bfloat16),
        lm_b=jnp.zeros((1, v_pad), jnp.float32),
    )
    return params


# ----------------------------------- main -------------------------------------

if __name__ == "__main__":
    # Small, structure-faithful hyperparameters (same module topology: 6 layers,
    # 6 heads per block, 4-head sa_heads, 4x FFN expansion).
    vocab_size = 65
    n_embd = 96
    block_size = 32
    n_layer = 6
    n_head = 6
    sa_heads = 4
    B, T = 2, 16

    key = jax.random.PRNGKey(0)
    pkey, ikey = jax.random.split(key)
    params = init_params(pkey, vocab_size=vocab_size, n_embd=n_embd,
                         block_size=block_size, n_layer=n_layer)
    idx = jax.random.randint(ikey, (B, T), 0, vocab_size, dtype=jnp.int32)

    forward = jax.jit(functools.partial(
        bigram_lm_forward, vocab_size=vocab_size,
        n_head=n_head, sa_heads=sa_heads))

    logits, loss = forward(params, idx)
    logits = jax.block_until_ready(logits)

    assert logits.shape == (B, T, vocab_size), logits.shape
    assert logits.dtype == jnp.float32
    assert bool(jnp.all(jnp.isfinite(logits)))
    assert loss is None
    print("KERNEL_OK")
</pallas_src>

<mosaic_0001>
module attributes {stable_mosaic.version = 11 : i64} {
  func.func @_fused_forward_kernel(%arg0: i32, %arg1: memref<1x16x96xf32, #tpu.memory_space<vmem>>, %arg2: memref<16x96xf32, #tpu.memory_space<vmem>>, %arg3: memref<96x288xbf16, #tpu.memory_space<vmem>>, %arg4: memref<96x96xbf16, #tpu.memory_space<vmem>>, %arg5: memref<1x96xf32, #tpu.memory_space<vmem>>, %arg6: memref<6x1x96xf32, #tpu.memory_space<vmem>>, %arg7: memref<6x1x96xf32, #tpu.memory_space<vmem>>, %arg8: memref<6x96x288xbf16, #tpu.memory_space<vmem>>, %arg9: memref<6x96x96xbf16, #tpu.memory_space<vmem>>, %arg10: memref<6x1x96xf32, #tpu.memory_space<vmem>>, %arg11: memref<6x1x96xf32, #tpu.memory_space<vmem>>, %arg12: memref<6x1x96xf32, #tpu.memory_space<vmem>>, %arg13: memref<6x96x384xbf16, #tpu.memory_space<vmem>>, %arg14: memref<6x1x384xf32, #tpu.memory_space<vmem>>, %arg15: memref<6x384x96xbf16, #tpu.memory_space<vmem>>, %arg16: memref<6x1x96xf32, #tpu.memory_space<vmem>>, %arg17: memref<1x96xf32, #tpu.memory_space<vmem>>, %arg18: memref<1x96xf32, #tpu.memory_space<vmem>>, %arg19: memref<96x128xbf16, #tpu.memory_space<vmem>>, %arg20: memref<1x128xf32, #tpu.memory_space<vmem>>, %arg21: memref<1x16x128xf32, #tpu.memory_space<vmem>>) attributes {dimension_semantics = [#tpu.dimension_semantics<parallel>], iteration_bounds = array<i64: 2>, scalar_prefetch = 0 : i64, scratch_operands = 0 : i64, tpu.core_type = #tpu.core_type<tc>, window_params = [{transform_indices = @transform_0, window_bounds = array<i64: 1, 16, 96>}, {pipeline_mode = #tpu.pipeline_mode<synchronous>, transform_indices = @transform_1, window_bounds = array<i64: 16, 96>}, {pipeline_mode = #tpu.pipeline_mode<synchronous>, transform_indices = @transform_2, window_bounds = array<i64: 96, 288>}, {pipeline_mode = #tpu.pipeline_mode<synchronous>, transform_indices = @transform_3, window_bounds = array<i64: 96, 96>}, {pipeline_mode = #tpu.pipeline_mode<synchronous>, transform_indices = @transform_4, window_bounds = array<i64: 1, 96>}, {pipeline_mode = #tpu.pipeline_mode<synchronous>, transform_indices = @transform_5, window_bounds = array<i64: 6, 1, 96>}, {pipeline_mode = #tpu.pipeline_mode<synchronous>, transform_indices = @transform_6, window_bounds = array<i64: 6, 1, 96>}, {pipeline_mode = #tpu.pipeline_mode<synchronous>, transform_indices = @transform_7, window_bounds = array<i64: 6, 96, 288>}, {pipeline_mode = #tpu.pipeline_mode<synchronous>, transform_indices = @transform_8, window_bounds = array<i64: 6, 96, 96>}, {pipeline_mode = #tpu.pipeline_mode<synchronous>, transform_indices = @transform_9, window_bounds = array<i64: 6, 1, 96>}, {pipeline_mode = #tpu.pipeline_mode<synchronous>, transform_indices = @transform_10, window_bounds = array<i64: 6, 1, 96>}, {pipeline_mode = #tpu.pipeline_mode<synchronous>, transform_indices = @transform_11, window_bounds = array<i64: 6, 1, 96>}, {pipeline_mode = #tpu.pipeline_mode<synchronous>, transform_indices = @transform_12, window_bounds = array<i64: 6, 96, 384>}, {pipeline_mode = #tpu.pipeline_mode<synchronous>, transform_indices = @transform_13, window_bounds = array<i64: 6, 1, 384>}, {pipeline_mode = #tpu.pipeline_mode<synchronous>, transform_indices = @transform_14, window_bounds = array<i64: 6, 384, 96>}, {pipeline_mode = #tpu.pipeline_mode<synchronous>, transform_indices = @transform_15, window_bounds = array<i64: 6, 1, 96>}, {pipeline_mode = #tpu.pipeline_mode<synchronous>, transform_indices = @transform_16, window_bounds = array<i64: 1, 96>}, {pipeline_mode = #tpu.pipeline_mode<synchronous>, transform_indices = @transform_17, window_bounds = array<i64: 1, 96>}, {pipeline_mode = #tpu.pipeline_mode<synchronous>, transform_indices = @transform_18, window_bounds = array<i64: 96, 128>}, {pipeline_mode = #tpu.pipeline_mode<synchronous>, transform_indices = @transform_19, window_bounds = array<i64: 1, 128>}, {transform_indices = @transform_20, window_bounds = array<i64: 1, 16, 128>}]} {
    %c0 = arith.constant 0 : index
    %c0_0 = arith.constant 0 : index
    %c0_1 = arith.constant 0 : index
    %0 = vector.load %arg1[%c0, %c0_0, %c0_1] : memref<1x16x96xf32, #tpu.memory_space<vmem>>, vector<1x16x96xf32>
    %1 = vector.shape_cast %0 : vector<1x16x96xf32> to vector<16x96xf32>
    %c0_2 = arith.constant 0 : index
    %c0_3 = arith.constant 0 : index
    %2 = vector.load %arg2[%c0_2, %c0_3] : memref<16x96xf32, #tpu.memory_space<vmem>>, vector<16x96xf32>
    %3 = arith.addf %1, %2 : vector<16x96xf32>
    %4 = tpu.iota {dimensions = array<i32: 0>} : vector<16x16xi32>
    %5 = tpu.iota {dimensions = array<i32: 1>} : vector<16x16xi32>
    %6 = arith.cmpi sle, %5, %4 : vector<16x16xi32>
    %cst = arith.constant 0.000000e+00 : f32
    %cst_4 = arith.constant -1.000000e+30 : f32
    %7 = vector.broadcast %cst : f32 to vector<16x16xf32>
    %8 = vector.broadcast %cst_4 : f32 to vector<16x16xf32>
    %9 = arith.select %6, %7, %8 : vector<16x16xi1>, vector<16x16xf32>
    %c0_5 = arith.constant 0 : index
    %c0_6 = arith.constant 0 : index
    %10 = vector.load %arg3[%c0_5, %c0_6] : memref<96x288xbf16, #tpu.memory_space<vmem>>, vector<96x288xbf16>
    %c0_7 = arith.constant 0 : index
    %c0_8 = arith.constant 0 : index
    %11 = vector.load %arg4[%c0_7, %c0_8] : memref<96x96xbf16, #tpu.memory_space<vmem>>, vector<96x96xbf16>
    %c0_9 = arith.constant 0 : index
    %c0_10 = arith.constant 0 : index
    %12 = vector.load %arg5[%c0_9, %c0_10] : memref<1x96xf32, #tpu.memory_space<vmem>>, vector<1x96xf32>
    %13 = arith.truncf %3 : vector<16x96xf32> to vector<16x96xbf16>
    %cst_11 = arith.constant dense<0.000000e+00> : vector<16x288xf32>
    %14 = tpu.matmul %13, %10, %cst_11 {dimension_numbers = #tpu.dot_dimension_numbers<[1], [0], [0], [1], [0, 0, 1, 1], [], []>} : vector<16x96xbf16>, vector<96x288xbf16>, vector<16x288xf32> -> vector<16x288xf32>
    %15 = vector.extract_strided_slice %14 {offsets = [0, 0], sizes = [16, 24], strides = [1, 1]} : vector<16x288xf32> to vector<16x24xf32>
    %cst_12 = arith.constant 0.102062076 : f32
    %16 = vector.broadcast %cst_12 : f32 to vector<16x24xf32>
    %17 = arith.mulf %15, %16 : vector<16x24xf32>
    %18 = arith.truncf %17 : vector<16x24xf32> to vector<16x24xbf16>
    %19 = vector.extract_strided_slice %14 {offsets = [0, 96], sizes = [16, 24], strides = [1, 1]} : vector<16x288xf32> to vector<16x24xf32>
    %20 = arith.truncf %19 : vector<16x24xf32> to vector<16x24xbf16>
    %21 = vector.extract_strided_slice %14 {offsets = [0, 192], sizes = [16, 24], strides = [1, 1]} : vector<16x288xf32> to vector<16x24xf32>
    %22 = arith.truncf %21 : vector<16x24xf32> to vector<16x24xbf16>
    %cst_13 = arith.constant dense<0.000000e+00> : vector<16x16xf32>
    %23 = tpu.matmul %18, %20, %cst_13 {dimension_numbers = #tpu.dot_dimension_numbers<[1], [1], [0], [0], [0, 0, 1, 0], [], []>} : vector<16x24xbf16>, vector<16x24xbf16>, vector<16x16xf32> -> vector<16x16xf32>
    %24 = arith.addf %23, %9 : vector<16x16xf32>
    %cst_14 = arith.constant dense<0xFF800000> : vector<16xf32>
    %25 = vector.multi_reduction <maximumf>, %24, %cst_14 [1] : vector<16x16xf32> to vector<16xf32>
    %26 = vector.shape_cast %25 : vector<16xf32> to vector<16x1xf32>
    %27 = vector.broadcast %26 : vector<16x1xf32> to vector<16x16xf32>
    %28 = arith.subf %24, %27 : vector<16x16xf32>
    %29 = math.exp %28 : vector<16x16xf32>
    %cst_15 = arith.constant dense<0.000000e+00> : vector<16xf32>
    %30 = vector.multi_reduction <add>, %29, %cst_15 [1] : vector<16x16xf32> to vector<16xf32>
    %31 = vector.shape_cast %30 : vector<16xf32> to vector<16x1xf32>
    %32 = tpu.reciprocal %31 {approx = true} : vector<16x1xf32> -> vector<16x1xf32>
    %33 = arith.truncf %29 : vector<16x16xf32> to vector<16x16xbf16>
    %cst_16 = arith.constant dense<0.000000e+00> : vector<16x24xf32>
    %34 = tpu.matmul %33, %22, %cst_16 {dimension_numbers = #tpu.dot_dimension_numbers<[1], [0], [0], [1], [0, 0, 1, 1], [], []>} : vector<16x16xbf16>, vector<16x24xbf16>, vector<16x24xf32> -> vector<16x24xf32>
    %35 = vector.broadcast %32 : vector<16x1xf32> to vector<16x24xf32>
    %36 = arith.mulf %34, %35 : vector<16x24xf32>
    %37 = vector.extract_strided_slice %14 {offsets = [0, 24], sizes = [16, 24], strides = [1, 1]} : vector<16x288xf32> to vector<16x24xf32>
    %cst_17 = arith.constant 0.102062076 : f32
    %38 = vector.broadcast %cst_17 : f32 to vector<16x24xf32>
    %39 = arith.mulf %37, %38 : vector<16x24xf32>
    %40 = arith.truncf %39 : vector<16x24xf32> to vector<16x24xbf16>
    %41 = vector.extract_strided_slice %14 {offsets = [0, 120], sizes = [16, 24], strides = [1, 1]} : vector<16x288xf32> to vector<16x24xf32>
    %42 = arith.truncf %41 : vector<16x24xf32> to vector<16x24xbf16>
    %43 = vector.extract_strided_slice %14 {offsets = [0, 216], sizes = [16, 24], strides = [1, 1]} : vector<16x288xf32> to vector<16x24xf32>
    %44 = arith.truncf %43 : vector<16x24xf32> to vector<16x24xbf16>
    %cst_18 = arith.constant dense<0.000000e+00> : vector<16x16xf32>
    %45 = tpu.matmul %40, %42, %cst_18 {dimension_numbers = #tpu.dot_dimension_numbers<[1], [1], [0], [0], [0, 0, 1, 0], [], []>} : vector<16x24xbf16>, vector<16x24xbf16>, vector<16x16xf32> -> vector<16x16xf32>
    %46 = arith.addf %45, %9 : vector<16x16xf32>
    %cst_19 = arith.constant dense<0xFF800000> : vector<16xf32>
    %47 = vector.multi_reduction <maximumf>, %46, %cst_19 [1] : vector<16x16xf32> to vector<16xf32>
    %48 = vector.shape_cast %47 : vector<16xf32> to vector<16x1xf32>
    %49 = vector.broadcast %48 : vector<16x1xf32> to vector<16x16xf32>
    %50 = arith.subf %46, %49 : vector<16x16xf32>
    %51 = math.exp %50 : vector<16x16xf32>
    %cst_20 = arith.constant dense<0.000000e+00> : vector<16xf32>
    %52 = vector.multi_reduction <add>, %51, %cst_20 [1] : vector<16x16xf32> to vector<16xf32>
    %53 = vector.shape_cast %52 : vector<16xf32> to vector<16x1xf32>
    %54 = tpu.reciprocal %53 {approx = true} : vector<16x1xf32> -> vector<16x1xf32>
    %55 = arith.truncf %51 : vector<16x16xf32> to vector<16x16xbf16>
    %cst_21 = arith.constant dense<0.000000e+00> : vector<16x24xf32>
    %56 = tpu.matmul %55, %44, %cst_21 {dimension_numbers = #tpu.dot_dimension_numbers<[1], [0], [0], [1], [0, 0, 1, 1], [], []>} : vector<16x16xbf16>, vector<16x24xbf16>, vector<16x24xf32> -> vector<16x24xf32>
    %57 = vector.broadcast %54 : vector<16x1xf32> to vector<16x24xf32>
    %58 = arith.mulf %56, %57 : vector<16x24xf32>
    %59 = vector.extract_strided_slice %14 {offsets = [0, 48], sizes = [16, 24], strides = [1, 1]} : vector<16x288xf32> to vector<16x24xf32>
    %cst_22 = arith.constant 0.102062076 : f32
    %60 = vector.broadcast %cst_22 : f32 to vector<16x24xf32>
    %61 = arith.mulf %59, %60 : vector<16x24xf32>
    %62 = arith.truncf %61 : vector<16x24xf32> to vector<16x24xbf16>
    %63 = vector.extract_strided_slice %14 {offsets = [0, 144], sizes = [16, 24], strides = [1, 1]} : vector<16x288xf32> to vector<16x24xf32>
    %64 = arith.truncf %63 : vector<16x24xf32> to vector<16x24xbf16>
    %65 = vector.extract_strided_slice %14 {offsets = [0, 240], sizes = [16, 24], strides = [1, 1]} : vector<16x288xf32> to vector<16x24xf32>
    %66 = arith.truncf %65 : vector<16x24xf32> to vector<16x24xbf16>
    %cst_23 = arith.constant dense<0.000000e+00> : vector<16x16xf32>
    %67 = tpu.matmul %62, %64, %cst_23 {dimension_numbers = #tpu.dot_dimension_numbers<[1], [1], [0], [0], [0, 0, 1, 0], [], []>} : vector<16x24xbf16>, vector<16x24xbf16>, vector<16x16xf32> -> vector<16x16xf32>
    %68 = arith.addf %67, %9 : vector<16x16xf32>
    %cst_24 = arith.constant dense<0xFF800000> : vector<16xf32>
    %69 = vector.multi_reduction <maximumf>, %68, %cst_24 [1] : vector<16x16xf32> to vector<16xf32>
    %70 = vector.shape_cast %69 : vector<16xf32> to vector<16x1xf32>
    %71 = vector.broadcast %70 : vector<16x1xf32> to vector<16x16xf32>
    %72 = arith.subf %68, %71 : vector<16x16xf32>
    %73 = math.exp %72 : vector<16x16xf32>
    %cst_25 = arith.constant dense<0.000000e+00> : vector<16xf32>
    %74 = vector.multi_reduction <add>, %73, %cst_25 [1] : vector<16x16xf32> to vector<16xf32>
    %75 = vector.shape_cast %74 : vector<16xf32> to vector<16x1xf32>
    %76 = tpu.reciprocal %75 {approx = true} : vector<16x1xf32> -> vector<16x1xf32>
    %77 = arith.truncf %73 : vector<16x16xf32> to vector<16x16xbf16>
    %cst_26 = arith.constant dense<0.000000e+00> : vector<16x24xf32>
    %78 = tpu.matmul %77, %66, %cst_26 {dimension_numbers = #tpu.dot_dimension_numbers<[1], [0], [0], [1], [0, 0, 1, 1], [], []>} : vector<16x16xbf16>, vector<16x24xbf16>, vector<16x24xf32> -> vector<16x24xf32>
    %79 = vector.broadcast %76 : vector<16x1xf32> to vector<16x24xf32>
    %80 = arith.mulf %78, %79 : vector<16x24xf32>
    %81 = vector.extract_strided_slice %14 {offsets = [0, 72], sizes = [16, 24], strides = [1, 1]} : vector<16x288xf32> to vector<16x24xf32>
    %cst_27 = arith.constant 0.102062076 : f32
    %82 = vector.broadcast %cst_27 : f32 to vector<16x24xf32>
    %83 = arith.mulf %81, %82 : vector<16x24xf32>
    %84 = arith.truncf %83 : vector<16x24xf32> to vector<16x24xbf16>
    %85 = vector.extract_strided_slice %14 {offsets = [0, 168], sizes = [16, 24], strides = [1, 1]} : vector<16x288xf32> to vector<16x24xf32>
    %86 = arith.truncf %85 : vector<16x24xf32> to vector<16x24xbf16>
    %87 = vector.extract_strided_slice %14 {offsets = [0, 264], sizes = [16, 24], strides = [1, 1]} : vector<16x288xf32> to vector<16x24xf32>
    %88 = arith.truncf %87 : vector<16x24xf32> to vector<16x24xbf16>
    %cst_28 = arith.constant dense<0.000000e+00> : vector<16x16xf32>
    %89 = tpu.matmul %84, %86, %cst_28 {dimension_numbers = #tpu.dot_dimension_numbers<[1], [1], [0], [0], [0, 0, 1, 0], [], []>} : vector<16x24xbf16>, vector<16x24xbf16>, vector<16x16xf32> -> vector<16x16xf32>
    %90 = arith.addf %89, %9 : vector<16x16xf32>
    %cst_29 = arith.constant dense<0xFF800000> : vector<16xf32>
    %91 = vector.multi_reduction <maximumf>, %90, %cst_29 [1] : vector<16x16xf32> to vector<16xf32>
    %92 = vector.shape_cast %91 : vector<16xf32> to vector<16x1xf32>
    %93 = vector.broadcast %92 : vector<16x1xf32> to vector<16x16xf32>
    %94 = arith.subf %90, %93 : vector<16x16xf32>
    %95 = math.exp %94 : vector<16x16xf32>
    %cst_30 = arith.constant dense<0.000000e+00> : vector<16xf32>
    %96 = vector.multi_reduction <add>, %95, %cst_30 [1] : vector<16x16xf32> to vector<16xf32>
    %97 = vector.shape_cast %96 : vector<16xf32> to vector<16x1xf32>
    %98 = tpu.reciprocal %97 {approx = true} : vector<16x1xf32> -> vector<16x1xf32>
    %99 = arith.truncf %95 : vector<16x16xf32> to vector<16x16xbf16>
    %cst_31 = arith.constant dense<0.000000e+00> : vector<16x24xf32>
    %100 = tpu.matmul %99, %88, %cst_31 {dimension_numbers = #tpu.dot_dimension_numbers<[1], [0], [0], [1], [0, 0, 1, 1], [], []>} : vector<16x16xbf16>, vector<16x24xbf16>, vector<16x24xf32> -> vector<16x24xf32>
    %101 = vector.broadcast %98 : vector<16x1xf32> to vector<16x24xf32>
    %102 = arith.mulf %100, %101 : vector<16x24xf32>
    %103 = tpu.concatenate %36, %58, %80, %102 in 1 : vector<16x24xf32>, vector<16x24xf32>, vector<16x24xf32>, vector<16x24xf32> -> vector<16x96xf32>
    %104 = arith.truncf %103 : vector<16x96xf32> to vector<16x96xbf16>
    %cst_32 = arith.constant dense<0.000000e+00> : vector<16x96xf32>
    %105 = tpu.matmul %104, %11, %cst_32 {dimension_numbers = #tpu.dot_dimension_numbers<[1], [0], [0], [1], [0, 0, 1, 1], [], []>} : vector<16x96xbf16>, vector<96x96xbf16>, vector<16x96xf32> -> vector<16x96xf32>
    %106 = vector.broadcast %12 : vector<1x96xf32> to vector<16x96xf32>
    %107 = arith.addf %105, %106 : vector<16x96xf32>
    %c0_33 = arith.constant 0 : index
    %c0_34 = arith.constant 0 : index
    %c0_35 = arith.constant 0 : index
    %108 = vector.load %arg6[%c0_33, %c0_34, %c0_35] : memref<6x1x96xf32, #tpu.memory_space<vmem>>, vector<1x1x96xf32>
    %109 = vector.shape_cast %108 : vector<1x1x96xf32> to vector<1x96xf32>
    %c0_36 = arith.constant 0 : index
    %c0_37 = arith.constant 0 : index
    %c0_38 = arith.constant 0 : index
    %110 = vector.load %arg7[%c0_36, %c0_37, %c0_38] : memref<6x1x96xf32, #tpu.memory_space<vmem>>, vector<1x1x96xf32>
    %111 = vector.shape_cast %110 : vector<1x1x96xf32> to vector<1x96xf32>
    %cst_39 = arith.constant dense<0.000000e+00> : vector<16xf32>
    %112 = vector.multi_reduction <add>, %107, %cst_39 [1] : vector<16x96xf32> to vector<16xf32>
    %113 = vector.shape_cast %112 : vector<16xf32> to vector<16x1xf32>
    %cst_40 = arith.constant 9.600000e+01 : f32
    %114 = vector.broadcast %cst_40 : f32 to vector<16x1xf32>
    %115 = arith.divf %113, %114 : vector<16x1xf32>
    %116 = vector.broadcast %115 : vector<16x1xf32> to vector<16x96xf32>
    %117 = arith.subf %107, %116 : vector<16x96xf32>
    %118 = arith.mulf %117, %117 : vector<16x96xf32>
    %cst_41 = arith.constant dense<0.000000e+00> : vector<16xf32>
    %119 = vector.multi_reduction <add>, %118, %cst_41 [1] : vector<16x96xf32> to vector<16xf32>
    %120 = vector.shape_cast %119 : vector<16xf32> to vector<16x1xf32>
    %cst_42 = arith.constant 9.600000e+01 : f32
    %121 = vector.broadcast %cst_42 : f32 to vector<16x1xf32>
    %122 = arith.divf %120, %121 : vector<16x1xf32>
    %123 = vector.broadcast %115 : vector<16x1xf32> to vector<16x96xf32>
    %124 = arith.subf %107, %123 : vector<16x96xf32>
    %cst_43 = arith.constant 9.99999974E-6 : f32
    %125 = vector.broadcast %cst_43 : f32 to vector<16x1xf32>
    %126 = arith.addf %122, %125 : vector<16x1xf32>
    %127 = math.rsqrt %126 : vector<16x1xf32>
    %128 = vector.broadcast %127 : vector<16x1xf32> to vector<16x96xf32>
    %129 = arith.mulf %124, %128 : vector<16x96xf32>
    %130 = vector.broadcast %109 : vector<1x96xf32> to vector<16x96xf32>
    %131 = arith.mulf %129, %130 : vector<16x96xf32>
    %132 = vector.broadcast %111 : vector<1x96xf32> to vector<16x96xf32>
    %133 = arith.addf %131, %132 : vector<16x96xf32>
    %c0_44 = arith.constant 0 : index
    %c0_45 = arith.constant 0 : index
    %c0_46 = arith.constant 0 : index
    %134 = vector.load %arg8[%c0_44, %c0_45, %c0_46] : memref<6x96x288xbf16, #tpu.memory_space<vmem>>, vector<1x96x288xbf16>
    %135 = vector.shape_cast %134 : vector<1x96x288xbf16> to vector<96x288xbf16>
    %c0_47 = arith.constant 0 : index
    %c0_48 = arith.constant 0 : index
    %c0_49 = arith.constant 0 : index
    %136 = vector.load %arg9[%c0_47, %c0_48, %c0_49] : memref<6x96x96xbf16, #tpu.memory_space<vmem>>, vector<1x96x96xbf16>
    %137 = vector.shape_cast %136 : vector<1x96x96xbf16> to vector<96x96xbf16>
    %c0_50 = arith.constant 0 : index
    %c0_51 = arith.constant 0 : index
    %c0_52 = arith.constant 0 : index
    %138 = vector.load %arg10[%c0_50, %c0_51, %c0_52] : memref<6x1x96xf32, #tpu.memory_space<vmem>>, vector<1x1x96xf32>
    %139 = vector.shape_cast %138 : vector<1x1x96xf32> to vector<1x96xf32>
    %140 = arith.truncf %133 : vector<16x96xf32> to vector<16x96xbf16>
    %cst_53 = arith.constant dense<0.000000e+00> : vector<16x288xf32>
    %141 = tpu.matmul %140, %135, %cst_53 {dimension_numbers = #tpu.dot_dimension_numbers<[1], [0], [0], [1], [0, 0, 1, 1], [], []>} : vector<16x96xbf16>, vector<96x288xbf16>, vector<16x288xf32> -> vector<16x288xf32>
    %142 = vector.extract_strided_slice %141 {offsets = [0, 0], sizes = [16, 16], strides = [1, 1]} : vector<16x288xf32> to vector<16x16xf32>
    %cst_54 = arith.constant 0.102062076 : f32
    %143 = vector.broadcast %cst_54 : f32 to vector<16x16xf32>
    %144 = arith.mulf %142, %143 : vector<16x16xf32>
    %145 = arith.truncf %144 : vector<16x16xf32> to vector<16x16xbf16>
    %146 = vector.extract_strided_slice %141 {offsets = [0, 96], sizes = [16, 16], strides = [1, 1]} : vector<16x288xf32> to vector<16x16xf32>
    %147 = arith.truncf %146 : vector<16x16xf32> to vector<16x16xbf16>
    %148 = vector.extract_strided_slice %141 {offsets = [0, 192], sizes = [16, 16], strides = [1, 1]} : vector<16x288xf32> to vector<16x16xf32>
    %149 = arith.truncf %148 : vector<16x16xf32> to vector<16x16xbf16>
    %cst_55 = arith.constant dense<0.000000e+00> : vector<16x16xf32>
    %150 = tpu.matmul %145, %147, %cst_55 {dimension_numbers = #tpu.dot_dimension_numbers<[1], [1], [0], [0], [0, 0, 1, 0], [], []>} : vector<16x16xbf16>, vector<16x16xbf16>, vector<16x16xf32> -> vector<16x16xf32>
    %151 = arith.addf %150, %9 : vector<16x16xf32>
    %cst_56 = arith.constant dense<0xFF800000> : vector<16xf32>
    %152 = vector.multi_reduction <maximumf>, %151, %cst_56 [1] : vector<16x16xf32> to vector<16xf32>
    %153 = vector.shape_cast %152 : vector<16xf32> to vector<16x1xf32>
    %154 = vector.broadcast %153 : vector<16x1xf32> to vector<16x16xf32>
    %155 = arith.subf %151, %154 : vector<16x16xf32>
    %156 = math.exp %155 : vector<16x16xf32>
    %cst_57 = arith.constant dense<0.000000e+00> : vector<16xf32>
    %157 = vector.multi_reduction <add>, %156, %cst_57 [1] : vector<16x16xf32> to vector<16xf32>
    %158 = vector.shape_cast %157 : vector<16xf32> to vector<16x1xf32>
    %159 = tpu.reciprocal %158 {approx = true} : vector<16x1xf32> -> vector<16x1xf32>
    %160 = arith.truncf %156 : vector<16x16xf32> to vector<16x16xbf16>
    %cst_58 = arith.constant dense<0.000000e+00> : vector<16x16xf32>
    %161 = tpu.matmul %160, %149, %cst_58 {dimension_numbers = #tpu.dot_dimension_numbers<[1], [0], [0], [1], [0, 0, 1, 1], [], []>} : vector<16x16xbf16>, vector<16x16xbf16>, vector<16x16xf32> -> vector<16x16xf32>
    %162 = vector.broadcast %159 : vector<16x1xf32> to vector<16x16xf32>
    %163 = arith.mulf %161, %162 : vector<16x16xf32>
    %164 = vector.extract_strided_slice %141 {offsets = [0, 16], sizes = [16, 16], strides = [1, 1]} : vector<16x288xf32> to vector<16x16xf32>
    %cst_59 = arith.constant 0.102062076 : f32
    %165 = vector.broadcast %cst_59 : f32 to vector<16x16xf32>
    %166 = arith.mulf %164, %165 : vector<16x16xf32>
    %167 = arith.truncf %166 : vector<16x16xf32> to vector<16x16xbf16>
    %168 = vector.extract_strided_slice %141 {offsets = [0, 112], sizes = [16, 16], strides = [1, 1]} : vector<16x288xf32> to vector<16x16xf32>
    %169 = arith.truncf %168 : vector<16x16xf32> to vector<16x16xbf16>
    %170 = vector.extract_strided_slice %141 {offsets = [0, 208], sizes = [16, 16], strides = [1, 1]} : vector<16x288xf32> to vector<16x16xf32>
    %171 = arith.truncf %170 : vector<16x16xf32> to vector<16x16xbf16>
    %cst_60 = arith.constant dense<0.000000e+00> : vector<16x16xf32>
    %172 = tpu.matmul %167, %169, %cst_60 {dimension_numbers = #tpu.dot_dimension_numbers<[1], [1], [0], [0], [0, 0, 1, 0], [], []>} : vector<16x16xbf16>, vector<16x16xbf16>, vector<16x16xf32> -> vector<16x16xf32>
    %173 = arith.addf %172, %9 : vector<16x16xf32>
    %cst_61 = arith.constant dense<0xFF800000> : vector<16xf32>
    %174 = vector.multi_reduction <maximumf>, %173, %cst_61 [1] : vector<16x16xf32> to vector<16xf32>
    %175 = vector.shape_cast %174 : vector<16xf32> to vector<16x1xf32>
    %176 = vector.broadcast %175 : vector<16x1xf32> to vector<16x16xf32>
    %177 = arith.subf %173, %176 : vector<16x16xf32>
    %178 = math.exp %177 : vector<16x16xf32>
    %cst_62 = arith.constant dense<0.000000e+00> : vector<16xf32>
    %179 = vector.multi_reduction <add>, %178, %cst_62 [1] : vector<16x16xf32> to vector<16xf32>
    %180 = vector.shape_cast %179 : vector<16xf32> to vector<16x1xf32>
    %181 = tpu.reciprocal %180 {approx = true} : vector<16x1xf32> -> vector<16x1xf32>
    %182 = arith.truncf %178 : vector<16x16xf32> to vector<16x16xbf16>
    %cst_63 = arith.constant dense<0.000000e+00> : vector<16x16xf32>
    %183 = tpu.matmul %182, %171, %cst_63 {dimension_numbers = #tpu.dot_dimension_numbers<[1], [0], [0], [1], [0, 0, 1, 1], [], []>} : vector<16x16xbf16>, vector<16x16xbf16>, vector<16x16xf32> -> vector<16x16xf32>
    %184 = vector.broadcast %181 : vector<16x1xf32> to vector<16x16xf32>
    %185 = arith.mulf %183, %184 : vector<16x16xf32>
    %186 = vector.extract_strided_slice %141 {offsets = [0, 32], sizes = [16, 16], strides = [1, 1]} : vector<16x288xf32> to vector<16x16xf32>
    %cst_64 = arith.constant 0.102062076 : f32
    %187 = vector.broadcast %cst_64 : f32 to vector<16x16xf32>
    %188 = arith.mulf %186, %187 : vector<16x16xf32>
    %189 = arith.truncf %188 : vector<16x16xf32> to vector<16x16xbf16>
    %190 = vector.extract_strided_slice %141 {offsets = [0, 128], sizes = [16, 16], strides = [1, 1]} : vector<16x288xf32> to vector<16x16xf32>
    %191 = arith.truncf %190 : vector<16x16xf32> to vector<16x16xbf16>
    %192 = vector.extract_strided_slice %141 {offsets = [0, 224], sizes = [16, 16], strides = [1, 1]} : vector<16x288xf32> to vector<16x16xf32>
    %193 = arith.truncf %192 : vector<16x16xf32> to vector<16x16xbf16>
    %cst_65 = arith.constant dense<0.000000e+00> : vector<16x16xf32>
    %194 = tpu.matmul %189, %191, %cst_65 {dimension_numbers = #tpu.dot_dimension_numbers<[1], [1], [0], [0], [0, 0, 1, 0], [], []>} : vector<16x16xbf16>, vector<16x16xbf16>, vector<16x16xf32> -> vector<16x16xf32>
    %195 = arith.addf %194, %9 : vector<16x16xf32>
    %cst_66 = arith.constant dense<0xFF800000> : vector<16xf32>
    %196 = vector.multi_reduction <maximumf>, %195, %cst_66 [1] : vector<16x16xf32> to vector<16xf32>
    %197 = vector.shape_cast %196 : vector<16xf32> to vector<16x1xf32>
    %198 = vector.broadcast %197 : vector<16x1xf32> to vector<16x16xf32>
    %199 = arith.subf %195, %198 : vector<16x16xf32>
    %200 = math.exp %199 : vector<16x16xf32>
    %cst_67 = arith.constant dense<0.000000e+00> : vector<16xf32>
    %201 = vector.multi_reduction <add>, %200, %cst_67 [1] : vector<16x16xf32> to vector<16xf32>
    %202 = vector.shape_cast %201 : vector<16xf32> to vector<16x1xf32>
    %203 = tpu.reciprocal %202 {approx = true} : vector<16x1xf32> -> vector<16x1xf32>
    %204 = arith.truncf %200 : vector<16x16xf32> to vector<16x16xbf16>
    %cst_68 = arith.constant dense<0.000000e+00> : vector<16x16xf32>
    %205 = tpu.matmul %204, %193, %cst_68 {dimension_numbers = #tpu.dot_dimension_numbers<[1], [0], [0], [1], [0, 0, 1, 1], [], []>} : vector<16x16xbf16>, vector<16x16xbf16>, vector<16x16xf32> -> vector<16x16xf32>
    %206 = vector.broadcast %203 : vector<16x1xf32> to vector<16x16xf32>
    %207 = arith.mulf %205, %206 : vector<16x16xf32>
    %208 = vector.extract_strided_slice %141 {offsets = [0, 48], sizes = [16, 16], strides = [1, 1]} : vector<16x288xf32> to vector<16x16xf32>
    %cst_69 = arith.constant 0.102062076 : f32
    %209 = vector.broadcast %cst_69 : f32 to vector<16x16xf32>
    %210 = arith.mulf %208, %209 : vector<16x16xf32>
    %211 = arith.truncf %210 : vector<16x16xf32> to vector<16x16xbf16>
    %212 = vector.extract_strided_slice %141 {offsets = [0, 144], sizes = [16, 16], strides = [1, 1]} : vector<16x288xf32> to vector<16x16xf32>
    %213 = arith.truncf %212 : vector<16x16xf32> to vector<16x16xbf16>
    %214 = vector.extract_strided_slice %141 {offsets = [0, 240], sizes = [16, 16], strides = [1, 1]} : vector<16x288xf32> to vector<16x16xf32>
    %215 = arith.truncf %214 : vector<16x16xf32> to vector<16x16xbf16>
    %cst_70 = arith.constant dense<0.000000e+00> : vector<16x16xf32>
    %216 = tpu.matmul %211, %213, %cst_70 {dimension_numbers = #tpu.dot_dimension_numbers<[1], [1], [0], [0], [0, 0, 1, 0], [], []>} : vector<16x16xbf16>, vector<16x16xbf16>, vector<16x16xf32> -> vector<16x16xf32>
    %217 = arith.addf %216, %9 : vector<16x16xf32>
    %cst_71 = arith.constant dense<0xFF800000> : vector<16xf32>
    %218 = vector.multi_reduction <maximumf>, %217, %cst_71 [1] : vector<16x16xf32> to vector<16xf32>
    %219 = vector.shape_cast %218 : vector<16xf32> to vector<16x1xf32>
    %220 = vector.broadcast %219 : vector<16x1xf32> to vector<16x16xf32>
    %221 = arith.subf %217, %220 : vector<16x16xf32>
    %222 = math.exp %221 : vector<16x16xf32>
    %cst_72 = arith.constant dense<0.000000e+00> : vector<16xf32>
    %223 = vector.multi_reduction <add>, %222, %cst_72 [1] : vector<16x16xf32> to vector<16xf32>
    %224 = vector.shape_cast %223 : vector<16xf32> to vector<16x1xf32>
    %225 = tpu.reciprocal %224 {approx = true} : vector<16x1xf32> -> vector<16x1xf32>
    %226 = arith.truncf %222 : vector<16x16xf32> to vector<16x16xbf16>
    %cst_73 = arith.constant dense<0.000000e+00> : vector<16x16xf32>
    %227 = tpu.matmul %226, %215, %cst_73 {dimension_numbers = #tpu.dot_dimension_numbers<[1], [0], [0], [1], [0, 0, 1, 1], [], []>} : vector<16x16xbf16>, vector<16x16xbf16>, vector<16x16xf32> -> vector<16x16xf32>
    %228 = vector.broadcast %225 : vector<16x1xf32> to vector<16x16xf32>
    %229 = arith.mulf %227, %228 : vector<16x16xf32>
    %230 = vector.extract_strided_slice %141 {offsets = [0, 64], sizes = [16, 16], strides = [1, 1]} : vector<16x288xf32> to vector<16x16xf32>
    %cst_74 = arith.constant 0.102062076 : f32
    %231 = vector.broadcast %cst_74 : f32 to vector<16x16xf32>
    %232 = arith.mulf %230, %231 : vector<16x16xf32>
    %233 = arith.truncf %232 : vector<16x16xf32> to vector<16x16xbf16>
    %234 = vector.extract_strided_slice %141 {offsets = [0, 160], sizes = [16, 16], strides = [1, 1]} : vector<16x288xf32> to vector<16x16xf32>
    %235 = arith.truncf %234 : vector<16x16xf32> to vector<16x16xbf16>
    %236 = vector.extract_strided_slice %141 {offsets = [0, 256], sizes = [16, 16], strides = [1, 1]} : vector<16x288xf32> to vector<16x16xf32>
    %237 = arith.truncf %236 : vector<16x16xf32> to vector<16x16xbf16>
    %cst_75 = arith.constant dense<0.000000e+00> : vector<16x16xf32>
    %238 = tpu.matmul %233, %235, %cst_75 {dimension_numbers = #tpu.dot_dimension_numbers<[1], [1], [0], [0], [0, 0, 1, 0], [], []>} : vector<16x16xbf16>, vector<16x16xbf16>, vector<16x16xf32> -> vector<16x16xf32>
    %239 = arith.addf %238, %9 : vector<16x16xf32>
    %cst_76 = arith.constant dense<0xFF800000> : vector<16xf32>
    %240 = vector.multi_reduction <maximumf>, %239, %cst_76 [1] : vector<16x16xf32> to vector<16xf32>
    %241 = vector.shape_cast %240 : vector<16xf32> to vector<16x1xf32>
    %242 = vector.broadcast %241 : vector<16x1xf32> to vector<16x16xf32>
    %243 = arith.subf %239, %242 : vector<16x16xf32>
    %244 = math.exp %243 : vector<16x16xf32>
    %cst_77 = arith.constant dense<0.000000e+00> : vector<16xf32>
    %245 = vector.multi_reduction <add>, %244, %cst_77 [1] : vector<16x16xf32> to vector<16xf32>
    %246 = vector.shape_cast %245 : vector<16xf32> to vector<16x1xf32>
    %247 = tpu.reciprocal %246 {approx = true} : vector<16x1xf32> -> vector<16x1xf32>
    %248 = arith.truncf %244 : vector<16x16xf32> to vector<16x16xbf16>
    %cst_78 = arith.constant dense<0.000000e+00> : vector<16x16xf32>
    %249 = tpu.matmul %248, %237, %cst_78 {dimension_numbers = #tpu.dot_dimension_numbers<[1], [0], [0], [1], [0, 0, 1, 1], [], []>} : vector<16x16xbf16>, vector<16x16xbf16>, vector<16x16xf32> -> vector<16x16xf32>
    %250 = vector.broadcast %247 : vector<16x1xf32> to vector<16x16xf32>
    %251 = arith.mulf %249, %250 : vector<16x16xf32>
    %252 = vector.extract_strided_slice %141 {offsets = [0, 80], sizes = [16, 16], strides = [1, 1]} : vector<16x288xf32> to vector<16x16xf32>
    %cst_79 = arith.constant 0.102062076 : f32
    %253 = vector.broadcast %cst_79 : f32 to vector<16x16xf32>
    %254 = arith.mulf %252, %253 : vector<16x16xf32>
    %255 = arith.truncf %254 : vector<16x16xf32> to vector<16x16xbf16>
    %256 = vector.extract_strided_slice %141 {offsets = [0, 176], sizes = [16, 16], strides = [1, 1]} : vector<16x288xf32> to vector<16x16xf32>
    %257 = arith.truncf %256 : vector<16x16xf32> to vector<16x16xbf16>
    %258 = vector.extract_strided_slice %141 {offsets = [0, 272], sizes = [16, 16], strides = [1, 1]} : vector<16x288xf32> to vector<16x16xf32>
    %259 = arith.truncf %258 : vector<16x16xf32> to vector<16x16xbf16>
    %cst_80 = arith.constant dense<0.000000e+00> : vector<16x16xf32>
    %260 = tpu.matmul %255, %257, %cst_80 {dimension_numbers = #tpu.dot_dimension_numbers<[1], [1], [0], [0], [0, 0, 1, 0], [], []>} : vector<16x16xbf16>, vector<16x16xbf16>, vector<16x16xf32> -> vector<16x16xf32>
    %261 = arith.addf %260, %9 : vector<16x16xf32>
    %cst_81 = arith.constant dense<0xFF800000> : vector<16xf32>
    %262 = vector.multi_reduction <maximumf>, %261, %cst_81 [1] : vector<16x16xf32> to vector<16xf32>
    %263 = vector.shape_cast %262 : vector<16xf32> to vector<16x1xf32>
    %264 = vector.broadcast %263 : vector<16x1xf32> to vector<16x16xf32>
    %265 = arith.subf %261, %264 : vector<16x16xf32>
    %266 = math.exp %265 : vector<16x16xf32>
    %cst_82 = arith.constant dense<0.000000e+00> : vector<16xf32>
    %267 = vector.multi_reduction <add>, %266, %cst_82 [1] : vector<16x16xf32> to vector<16xf32>
    %268 = vector.shape_cast %267 : vector<16xf32> to vector<16x1xf32>
    %269 = tpu.reciprocal %268 {approx = true} : vector<16x1xf32> -> vector<16x1xf32>
    %270 = arith.truncf %266 : vector<16x16xf32> to vector<16x16xbf16>
    %cst_83 = arith.constant dense<0.000000e+00> : vector<16x16xf32>
    %271 = tpu.matmul %270, %259, %cst_83 {dimension_numbers = #tpu.dot_dimension_numbers<[1], [0], [0], [1], [0, 0, 1, 1], [], []>} : vector<16x16xbf16>, vector<16x16xbf16>, vector<16x16xf32> -> vector<16x16xf32>
    %272 = vector.broadcast %269 : vector<16x1xf32> to vector<16x16xf32>
    %273 = arith.mulf %271, %272 : vector<16x16xf32>
    %274 = tpu.concatenate %163, %185, %207, %229, %251, %273 in 1 : vector<16x16xf32>, vector<16x16xf32>, vector<16x16xf32>, vector<16x16xf32>, vector<16x16xf32>, vector<16x16xf32> -> vector<16x96xf32>
    %275 = arith.truncf %274 : vector<16x96xf32> to vector<16x96xbf16>
    %cst_84 = arith.constant dense<0.000000e+00> : vector<16x96xf32>
    %276 = tpu.matmul %275, %137, %cst_84 {dimension_numbers = #tpu.dot_dimension_numbers<[1], [0], [0], [1], [0, 0, 1, 1], [], []>} : vector<16x96xbf16>, vector<96x96xbf16>, vector<16x96xf32> -> vector<16x96xf32>
    %277 = vector.broadcast %139 : vector<1x96xf32> to vector<16x96xf32>
    %278 = arith.addf %276, %277 : vector<16x96xf32>
    %279 = arith.addf %107, %278 : vector<16x96xf32>
    %c0_85 = arith.constant 0 : index
    %c0_86 = arith.constant 0 : index
    %c0_87 = arith.constant 0 : index
    %280 = vector.load %arg11[%c0_85, %c0_86, %c0_87] : memref<6x1x96xf32, #tpu.memory_space<vmem>>, vector<1x1x96xf32>
    %281 = vector.shape_cast %280 : vector<1x1x96xf32> to vector<1x96xf32>
    %c0_88 = arith.constant 0 : index
    %c0_89 = arith.constant 0 : index
    %c0_90 = arith.constant 0 : index
    %282 = vector.load %arg12[%c0_88, %c0_89, %c0_90] : memref<6x1x96xf32, #tpu.memory_space<vmem>>, vector<1x1x96xf32>
    %283 = vector.shape_cast %282 : vector<1x1x96xf32> to vector<1x96xf32>
    %cst_91 = arith.constant dense<0.000000e+00> : vector<16xf32>
    %284 = vector.multi_reduction <add>, %279, %cst_91 [1] : vector<16x96xf32> to vector<16xf32>
    %285 = vector.shape_cast %284 : vector<16xf32> to vector<16x1xf32>
    %cst_92 = arith.constant 9.600000e+01 : f32
    %286 = vector.broadcast %cst_92 : f32 to vector<16x1xf32>
    %287 = arith.divf %285, %286 : vector<16x1xf32>
    %288 = vector.broadcast %287 : vector<16x1xf32> to vector<16x96xf32>
    %289 = arith.subf %279, %288 : vector<16x96xf32>
    %290 = arith.mulf %289, %289 : vector<16x96xf32>
    %cst_93 = arith.constant dense<0.000000e+00> : vector<16xf32>
    %291 = vector.multi_reduction <add>, %290, %cst_93 [1] : vector<16x96xf32> to vector<16xf32>
    %292 = vector.shape_cast %291 : vector<16xf32> to vector<16x1xf32>
    %cst_94 = arith.constant 9.600000e+01 : f32
    %293 = vector.broadcast %cst_94 : f32 to vector<16x1xf32>
    %294 = arith.divf %292, %293 : vector<16x1xf32>
    %295 = vector.broadcast %287 : vector<16x1xf32> to vector<16x96xf32>
    %296 = arith.subf %279, %295 : vector<16x96xf32>
    %cst_95 = arith.constant 9.99999974E-6 : f32
    %297 = vector.broadcast %cst_95 : f32 to vector<16x1xf32>
    %298 = arith.addf %294, %297 : vector<16x1xf32>
    %299 = math.rsqrt %298 : vector<16x1xf32>
    %300 = vector.broadcast %299 : vector<16x1xf32> to vector<16x96xf32>
    %301 = arith.mulf %296, %300 : vector<16x96xf32>
    %302 = vector.broadcast %281 : vector<1x96xf32> to vector<16x96xf32>
    %303 = arith.mulf %301, %302 : vector<16x96xf32>
    %304 = vector.broadcast %283 : vector<1x96xf32> to vector<16x96xf32>
    %305 = arith.addf %303, %304 : vector<16x96xf32>
    %306 = arith.truncf %305 : vector<16x96xf32> to vector<16x96xbf16>
    %c0_96 = arith.constant 0 : index
    %c0_97 = arith.constant 0 : index
    %c0_98 = arith.constant 0 : index
    %307 = vector.load %arg13[%c0_96, %c0_97, %c0_98] : memref<6x96x384xbf16, #tpu.memory_space<vmem>>, vector<1x96x384xbf16>
    %308 = vector.shape_cast %307 : vector<1x96x384xbf16> to vector<96x384xbf16>
    %cst_99 = arith.constant dense<0.000000e+00> : vector<16x384xf32>
    %309 = tpu.matmul %306, %308, %cst_99 {dimension_numbers = #tpu.dot_dimension_numbers<[1], [0], [0], [1], [0, 0, 1, 1], [], []>} : vector<16x96xbf16>, vector<96x384xbf16>, vector<16x384xf32> -> vector<16x384xf32>
    %c0_100 = arith.constant 0 : index
    %c0_101 = arith.constant 0 : index
    %c0_102 = arith.constant 0 : index
    %310 = vector.load %arg14[%c0_100, %c0_101, %c0_102] : memref<6x1x384xf32, #tpu.memory_space<vmem>>, vector<1x1x384xf32>
    %311 = vector.shape_cast %310 : vector<1x1x384xf32> to vector<1x384xf32>
    %312 = vector.broadcast %311 : vector<1x384xf32> to vector<16x384xf32>
    %313 = arith.addf %309, %312 : vector<16x384xf32>
    %cst_103 = arith.constant 0.000000e+00 : f32
    %314 = vector.broadcast %cst_103 : f32 to vector<16x384xf32>
    %315 = arith.maximumf %313, %314 : vector<16x384xf32>
    %316 = arith.truncf %315 : vector<16x384xf32> to vector<16x384xbf16>
    %c0_104 = arith.constant 0 : index
    %c0_105 = arith.constant 0 : index
    %c0_106 = arith.constant 0 : index
    %317 = vector.load %arg15[%c0_104, %c0_105, %c0_106] : memref<6x384x96xbf16, #tpu.memory_space<vmem>>, vector<1x384x96xbf16>
    %318 = vector.shape_cast %317 : vector<1x384x96xbf16> to vector<384x96xbf16>
    %cst_107 = arith.constant dense<0.000000e+00> : vector<16x96xf32>
    %319 = tpu.matmul %316, %318, %cst_107 {dimension_numbers = #tpu.dot_dimension_numbers<[1], [0], [0], [1], [0, 0, 1, 1], [], []>} : vector<16x384xbf16>, vector<384x96xbf16>, vector<16x96xf32> -> vector<16x96xf32>
    %c0_108 = arith.constant 0 : index
    %c0_109 = arith.constant 0 : index
    %c0_110 = arith.constant 0 : index
    %320 = vector.load %arg16[%c0_108, %c0_109, %c0_110] : memref<6x1x96xf32, #tpu.memory_space<vmem>>, vector<1x1x96xf32>
    %321 = vector.shape_cast %320 : vector<1x1x96xf32> to vector<1x96xf32>
    %322 = vector.broadcast %321 : vector<1x96xf32> to vector<16x96xf32>
    %323 = arith.addf %319, %322 : vector<16x96xf32>
    %324 = arith.addf %279, %323 : vector<16x96xf32>
    %c1 = arith.constant 1 : index
    %c0_111 = arith.constant 0 : index
    %c0_112 = arith.constant 0 : index
    %325 = vector.load %arg6[%c1, %c0_111, %c0_112] : memref<6x1x96xf32, #tpu.memory_space<vmem>>, vector<1x1x96xf32>
    %326 = vector.shape_cast %325 : vector<1x1x96xf32> to vector<1x96xf32>
    %c1_113 = arith.constant 1 : index
    %c0_114 = arith.constant 0 : index
    %c0_115 = arith.constant 0 : index
    %327 = vector.load %arg7[%c1_113, %c0_114, %c0_115] : memref<6x1x96xf32, #tpu.memory_space<vmem>>, vector<1x1x96xf32>
    %328 = vector.shape_cast %327 : vector<1x1x96xf32> to vector<1x96xf32>
    %cst_116 = arith.constant dense<0.000000e+00> : vector<16xf32>
    %329 = vector.multi_reduction <add>, %324, %cst_116 [1] : vector<16x96xf32> to vector<16xf32>
    %330 = vector.shape_cast %329 : vector<16xf32> to vector<16x1xf32>
    %cst_117 = arith.constant 9.600000e+01 : f32
    %331 = vector.broadcast %cst_117 : f32 to vector<16x1xf32>
    %332 = arith.divf %330, %331 : vector<16x1xf32>
    %333 = vector.broadcast %332 : vector<16x1xf32> to vector<16x96xf32>
    %334 = arith.subf %324, %333 : vector<16x96xf32>
    %335 = arith.mulf %334, %334 : vector<16x96xf32>
    %cst_118 = arith.constant dense<0.000000e+00> : vector<16xf32>
    %336 = vector.multi_reduction <add>, %335, %cst_118 [1] : vector<16x96xf32> to vector<16xf32>
    %337 = vector.shape_cast %336 : vector<16xf32> to vector<16x1xf32>
    %cst_119 = arith.constant 9.600000e+01 : f32
    %338 = vector.broadcast %cst_119 : f32 to vector<16x1xf32>
    %339 = arith.divf %337, %338 : vector<16x1xf32>
    %340 = vector.broadcast %332 : vector<16x1xf32> to vector<16x96xf32>
    %341 = arith.subf %324, %340 : vector<16x96xf32>
    %cst_120 = arith.constant 9.99999974E-6 : f32
    %342 = vector.broadcast %cst_120 : f32 to vector<16x1xf32>
    %343 = arith.addf %339, %342 : vector<16x1xf32>
    %344 = math.rsqrt %343 : vector<16x1xf32>
    %345 = vector.broadcast %344 : vector<16x1xf32> to vector<16x96xf32>
    %346 = arith.mulf %341, %345 : vector<16x96xf32>
    %347 = vector.broadcast %326 : vector<1x96xf32> to vector<16x96xf32>
    %348 = arith.mulf %346, %347 : vector<16x96xf32>
    %349 = vector.broadcast %328 : vector<1x96xf32> to vector<16x96xf32>
    %350 = arith.addf %348, %349 : vector<16x96xf32>
    %c1_121 = arith.constant 1 : index
    %c0_122 = arith.constant 0 : index
    %c0_123 = arith.constant 0 : index
    %351 = vector.load %arg8[%c1_121, %c0_122, %c0_123] : memref<6x96x288xbf16, #tpu.memory_space<vmem>>, vector<1x96x288xbf16>
    %352 = vector.shape_cast %351 : vector<1x96x288xbf16> to vector<96x288xbf16>
    %c1_124 = arith.constant 1 : index
    %c0_125 = arith.constant 0 : index
    %c0_126 = arith.constant 0 : index
    %353 = vector.load %arg9[%c1_124, %c0_125, %c0_126] : memref<6x96x96xbf16, #tpu.memory_space<vmem>>, vector<1x96x96xbf16>
    %354 = vector.shape_cast %353 : vector<1x96x96xbf16> to vector<96x96xbf16>
    %c1_127 = arith.constant 1 : index
    %c0_128 = arith.constant 0 : index
    %c0_129 = arith.constant 0 : index
    %355 = vector.load %arg10[%c1_127, %c0_128, %c0_129] : memref<6x1x96xf32, #tpu.memory_space<vmem>>, vector<1x1x96xf32>
    %356 = vector.shape_cast %355 : vector<1x1x96xf32> to vector<1x96xf32>
    %357 = arith.truncf %350 : vector<16x96xf32> to vector<16x96xbf16>
    %cst_130 = arith.constant dense<0.000000e+00> : vector<16x288xf32>
    %358 = tpu.matmul %357, %352, %cst_130 {dimension_numbers = #tpu.dot_dimension_numbers<[1], [0], [0], [1], [0, 0, 1, 1], [], []>} : vector<16x96xbf16>, vector<96x288xbf16>, vector<16x288xf32> -> vector<16x288xf32>
    %359 = vector.extract_strided_slice %358 {offsets = [0, 0], sizes = [16, 16], strides = [1, 1]} : vector<16x288xf32> to vector<16x16xf32>
    %cst_131 = arith.constant 0.102062076 : f32
    %360 = vector.broadcast %cst_131 : f32 to vector<16x16xf32>
    %361 = arith.mulf %359, %360 : vector<16x16xf32>
    %362 = arith.truncf %361 : vector<16x16xf32> to vector<16x16xbf16>
    %363 = vector.extract_strided_slice %358 {offsets = [0, 96], sizes = [16, 16], strides = [1, 1]} : vector<16x288xf32> to vector<16x16xf32>
    %364 = arith.truncf %363 : vector<16x16xf32> to vector<16x16xbf16>
    %365 = vector.extract_strided_slice %358 {offsets = [0, 192], sizes = [16, 16], strides = [1, 1]} : vector<16x288xf32> to vector<16x16xf32>
    %366 = arith.truncf %365 : vector<16x16xf32> to vector<16x16xbf16>
    %cst_132 = arith.constant dense<0.000000e+00> : vector<16x16xf32>
    %367 = tpu.matmul %362, %364, %cst_132 {dimension_numbers = #tpu.dot_dimension_numbers<[1], [1], [0], [0], [0, 0, 1, 0], [], []>} : vector<16x16xbf16>, vector<16x16xbf16>, vector<16x16xf32> -> vector<16x16xf32>
    %368 = arith.addf %367, %9 : vector<16x16xf32>
    %cst_133 = arith.constant dense<0xFF800000> : vector<16xf32>
    %369 = vector.multi_reduction <maximumf>, %368, %cst_133 [1] : vector<16x16xf32> to vector<16xf32>
    %370 = vector.shape_cast %369 : vector<16xf32> to vector<16x1xf32>
    %371 = vector.broadcast %370 : vector<16x1xf32> to vector<16x16xf32>
    %372 = arith.subf %368, %371 : vector<16x16xf32>
    %373 = math.exp %372 : vector<16x16xf32>
    %cst_134 = arith.constant dense<0.000000e+00> : vector<16xf32>
    %374 = vector.multi_reduction <add>, %373, %cst_134 [1] : vector<16x16xf32> to vector<16xf32>
    %375 = vector.shape_cast %374 : vector<16xf32> to vector<16x1xf32>
    %376 = tpu.reciprocal %375 {approx = true} : vector<16x1xf32> -> vector<16x1xf32>
    %377 = arith.truncf %373 : vector<16x16xf32> to vector<16x16xbf16>
    %cst_135 = arith.constant dense<0.000000e+00> : vector<16x16xf32>
    %378 = tpu.matmul %377, %366, %cst_135 {dimension_numbers = #tpu.dot_dimension_numbers<[1], [0], [0], [1], [0, 0, 1, 1], [], []>} : vector<16x16xbf16>, vector<16x16xbf16>, vector<16x16xf32> -> vector<16x16xf32>
    %379 = vector.broadcast %376 : vector<16x1xf32> to vector<16x16xf32>
    %380 = arith.mulf %378, %379 : vector<16x16xf32>
    %381 = vector.extract_strided_slice %358 {offsets = [0, 16], sizes = [16, 16], strides = [1, 1]} : vector<16x288xf32> to vector<16x16xf32>
    %cst_136 = arith.constant 0.102062076 : f32
    %382 = vector.broadcast %cst_136 : f32 to vector<16x16xf32>
    %383 = arith.mulf %381, %382 : vector<16x16xf32>
    %384 = arith.truncf %383 : vector<16x16xf32> to vector<16x16xbf16>
    %385 = vector.extract_strided_slice %358 {offsets = [0, 112], sizes = [16, 16], strides = [1, 1]} : vector<16x288xf32> to vector<16x16xf32>
    %386 = arith.truncf %385 : vector<16x16xf32> to vector<16x16xbf16>
    %387 = vector.extract_strided_slice %358 {offsets = [0, 208], sizes = [16, 16], strides = [1, 1]} : vector<16x288xf32> to vector<16x16xf32>
    %388 = arith.truncf %387 : vector<16x16xf32> to vector<16x16xbf16>
    %cst_137 = arith.constant dense<0.000000e+00> : vector<16x16xf32>
    %389 = tpu.matmul %384, %386, %cst_137 {dimension_numbers = #tpu.dot_dimension_numbers<[1], [1], [0], [0], [0, 0, 1, 0], [], []>} : vector<16x16xbf16>, vector<16x16xbf16>, vector<16x16xf32> -> vector<16x16xf32>
    %390 = arith.addf %389, %9 : vector<16x16xf32>
    %cst_138 = arith.constant dense<0xFF800000> : vector<16xf32>
    %391 = vector.multi_reduction <maximumf>, %390, %cst_138 [1] : vector<16x16xf32> to vector<16xf32>
    %392 = vector.shape_cast %391 : vector<16xf32> to vector<16x1xf32>
    %393 = vector.broadcast %392 : vector<16x1xf32> to vector<16x16xf32>
    %394 = arith.subf %390, %393 : vector<16x16xf32>
    %395 = math.exp %394 : vector<16x16xf32>
    %cst_139 = arith.constant dense<0.000000e+00> : vector<16xf32>
    %396 = vector.multi_reduction <add>, %395, %cst_139 [1] : vector<16x16xf32> to vector<16xf32>
    %397 = vector.shape_cast %396 : vector<16xf32> to vector<16x1xf32>
    %398 = tpu.reciprocal %397 {approx = true} : vector<16x1xf32> -> vector<16x1xf32>
    %399 = arith.truncf %395 : vector<16x16xf32> to vector<16x16xbf16>
    %cst_140 = arith.constant dense<0.000000e+00> : vector<16x16xf32>
    %400 = tpu.matmul %399, %388, %cst_140 {dimension_numbers = #tpu.dot_dimension_numbers<[1], [0], [0], [1], [0, 0, 1, 1], [], []>} : vector<16x16xbf16>, vector<16x16xbf16>, vector<16x16xf32> -> vector<16x16xf32>
    %401 = vector.broadcast %398 : vector<16x1xf32> to vector<16x16xf32>
    %402 = arith.mulf %400, %401 : vector<16x16xf32>
    %403 = vector.extract_strided_slice %358 {offsets = [0, 32], sizes = [16, 16], strides = [1, 1]} : vector<16x288xf32> to vector<16x16xf32>
    %cst_141 = arith.constant 0.102062076 : f32
    %404 = vector.broadcast %cst_141 : f32 to vector<16x16xf32>
    %405 = arith.mulf %403, %404 : vector<16x16xf32>
    %406 = arith.truncf %405 : vector<16x16xf32> to vector<16x16xbf16>
    %407 = vector.extract_strided_slice %358 {offsets = [0, 128], sizes = [16, 16], strides = [1, 1]} : vector<16x288xf32> to vector<16x16xf32>
    %408 = arith.truncf %407 : vector<16x16xf32> to vector<16x16xbf16>
    %409 = vector.extract_strided_slice %358 {offsets = [0, 224], sizes = [16, 16], strides = [1, 1]} : vector<16x288xf32> to vector<16x16xf32>
    %410 = arith.truncf %409 : vector<16x16xf32> to vector<16x16xbf16>
    %cst_142 = arith.constant dense<0.000000e+00> : vector<16x16xf32>
    %411 = tpu.matmul %406, %408, %cst_142 {dimension_numbers = #tpu.dot_dimension_numbers<[1], [1], [0], [0], [0, 0, 1, 0], [], []>} : vector<16x16xbf16>, vector<16x16xbf16>, vector<16x16xf32> -> vector<16x16xf32>
    %412 = arith.addf %411, %9 : vector<16x16xf32>
    %cst_143 = arith.constant dense<0xFF800000> : vector<16xf32>
    %413 = vector.multi_reduction <maximumf>, %412, %cst_143 [1] : vector<16x16xf32> to vector<16xf32>
    %414 = vector.shape_cast %413 : vector<16xf32> to vector<16x1xf32>
    %415 = vector.broadcast %414 : vector<16x1xf32> to vector<16x16xf32>
    %416 = arith.subf %412, %415 : vector<16x16xf32>
    %417 = math.exp %416 : vector<16x16xf32>
    %cst_144 = arith.constant dense<0.000000e+00> : vector<16xf32>
    %418 = vector.multi_reduction <add>, %417, %cst_144 [1] : vector<16x16xf32> to vector<16xf32>
    %419 = vector.shape_cast %418 : vector<16xf32> to vector<16x1xf32>
    %420 = tpu.reciprocal %419 {approx = true} : vector<16x1xf32> -> vector<16x1xf32>
    %421 = arith.truncf %417 : vector<16x16xf32> to vector<16x16xbf16>
    %cst_145 = arith.constant dense<0.000000e+00> : vector<16x16xf32>
    %422 = tpu.matmul %421, %410, %cst_145 {dimension_numbers = #tpu.dot_dimension_numbers<[1], [0], [0], [1], [0, 0, 1, 1], [], []>} : vector<16x16xbf16>, vector<16x16xbf16>, vector<16x16xf32> -> vector<16x16xf32>
    %423 = vector.broadcast %420 : vector<16x1xf32> to vector<16x16xf32>
    %424 = arith.mulf %422, %423 : vector<16x16xf32>
    %425 = vector.extract_strided_slice %358 {offsets = [0, 48], sizes = [16, 16], strides = [1, 1]} : vector<16x288xf32> to vector<16x16xf32>
    %cst_146 = arith.constant 0.102062076 : f32
    %426 = vector.broadcast %cst_146 : f32 to vector<16x16xf32>
    %427 = arith.mulf %425, %426 : vector<16x16xf32>
    %428 = arith.truncf %427 : vector<16x16xf32> to vector<16x16xbf16>
    %429 = vector.extract_strided_slice %358 {offsets = [0, 144], sizes = [16, 16], strides = [1, 1]} : vector<16x288xf32> to vector<16x16xf32>
    %430 = arith.truncf %429 : vector<16x16xf32> to vector<16x16xbf16>
    %431 = vector.extract_strided_slice %358 {offsets = [0, 240], sizes = [16, 16], strides = [1, 1]} : vector<16x288xf32> to vector<16x16xf32>
    %432 = arith.truncf %431 : vector<16x16xf32> to vector<16x16xbf16>
    %cst_147 = arith.constant dense<0.000000e+00> : vector<16x16xf32>
    %433 = tpu.matmul %428, %430, %cst_147 {dimension_numbers = #tpu.dot_dimension_numbers<[1], [1], [0], [0], [0, 0, 1, 0], [], []>} : vector<16x16xbf16>, vector<16x16xbf16>, vector<16x16xf32> -> vector<16x16xf32>
    %434 = arith.addf %433, %9 : vector<16x16xf32>
    %cst_148 = arith.constant dense<0xFF800000> : vector<16xf32>
    %435 = vector.multi_reduction <maximumf>, %434, %cst_148 [1] : vector<16x16xf32> to vector<16xf32>
    %436 = vector.shape_cast %435 : vector<16xf32> to vector<16x1xf32>
    %437 = vector.broadcast %436 : vector<16x1xf32> to vector<16x16xf32>
    %438 = arith.subf %434, %437 : vector<16x16xf32>
    %439 = math.exp %438 : vector<16x16xf32>
    %cst_149 = arith.constant dense<0.000000e+00> : vector<16xf32>
    %440 = vector.multi_reduction <add>, %439, %cst_149 [1] : vector<16x16xf32> to vector<16xf32>
    %441 = vector.shape_cast %440 : vector<16xf32> to vector<16x1xf32>
    %442 = tpu.reciprocal %441 {approx = true} : vector<16x1xf32> -> vector<16x1xf32>
    %443 = arith.truncf %439 : vector<16x16xf32> to vector<16x16xbf16>
    %cst_150 = arith.constant dense<0.000000e+00> : vector<16x16xf32>
    %444 = tpu.matmul %443, %432, %cst_150 {dimension_numbers = #tpu.dot_dimension_numbers<[1], [0], [0], [1], [0, 0, 1, 1], [], []>} : vector<16x16xbf16>, vector<16x16xbf16>, vector<16x16xf32> -> vector<16x16xf32>
    %445 = vector.broadcast %442 : vector<16x1xf32> to vector<16x16xf32>
    %446 = arith.mulf %444, %445 : vector<16x16xf32>
    %447 = vector.extract_strided_slice %358 {offsets = [0, 64], sizes = [16, 16], strides = [1, 1]} : vector<16x288xf32> to vector<16x16xf32>
    %cst_151 = arith.constant 0.102062076 : f32
    %448 = vector.broadcast %cst_151 : f32 to vector<16x16xf32>
    %449 = arith.mulf %447, %448 : vector<16x16xf32>
    %450 = arith.truncf %449 : vector<16x16xf32> to vector<16x16xbf16>
    %451 = vector.extract_strided_slice %358 {offsets = [0, 160], sizes = [16, 16], strides = [1, 1]} : vector<16x288xf32> to vector<16x16xf32>
    %452 = arith.truncf %451 : vector<16x16xf32> to vector<16x16xbf16>
    %453 = vector.extract_strided_slice %358 {offsets = [0, 256], sizes = [16, 16], strides = [1, 1]} : vector<16x288xf32> to vector<16x16xf32>
    %454 = arith.truncf %453 : vector<16x16xf32> to vector<16x16xbf16>
    %cst_152 = arith.constant dense<0.000000e+00> : vector<16x16xf32>
    %455 = tpu.matmul %450, %452, %cst_152 {dimension_numbers = #tpu.dot_dimension_numbers<[1], [1], [0], [0], [0, 0, 1, 0], [], []>} : vector<16x16xbf16>, vector<16x16xbf16>, vector<16x16xf32> -> vector<16x16xf32>
    %456 = arith.addf %455, %9 : vector<16x16xf32>
    %cst_153 = arith.constant dense<0xFF800000> : vector<16xf32>
    %457 = vector.multi_reduction <maximumf>, %456, %cst_153 [1] : vector<16x16xf32> to vector<16xf32>
    %458 = vector.shape_cast %457 : vector<16xf32> to vector<16x1xf32>
    %459 = vector.broadcast %458 : vector<16x1xf32> to vector<16x16xf32>
    %460 = arith.subf %456, %459 : vector<16x16xf32>
    %461 = math.exp %460 : vector<16x16xf32>
    %cst_154 = arith.constant dense<0.000000e+00> : vector<16xf32>
    %462 = vector.multi_reduction <add>, %461, %cst_154 [1] : vector<16x16xf32> to vector<16xf32>
    %463 = vector.shape_cast %462 : vector<16xf32> to vector<16x1xf32>
    %464 = tpu.reciprocal %463 {approx = true} : vector<16x1xf32> -> vector<16x1xf32>
    %465 = arith.truncf %461 : vector<16x16xf32> to vector<16x16xbf16>
    %cst_155 = arith.constant dense<0.000000e+00> : vector<16x16xf32>
    %466 = tpu.matmul %465, %454, %cst_155 {dimension_numbers = #tpu.dot_dimension_numbers<[1], [0], [0], [1], [0, 0, 1, 1], [], []>} : vector<16x16xbf16>, vector<16x16xbf16>, vector<16x16xf32> -> vector<16x16xf32>
    %467 = vector.broadcast %464 : vector<16x1xf32> to vector<16x16xf32>
    %468 = arith.mulf %466, %467 : vector<16x16xf32>
    %469 = vector.extract_strided_slice %358 {offsets = [0, 80], sizes = [16, 16], strides = [1, 1]} : vector<16x288xf32> to vector<16x16xf32>
    %cst_156 = arith.constant 0.102062076 : f32
    %470 = vector.broadcast %cst_156 : f32 to vector<16x16xf32>
    %471 = arith.mulf %469, %470 : vector<16x16xf32>
    %472 = arith.truncf %471 : vector<16x16xf32> to vector<16x16xbf16>
    %473 = vector.extract_strided_slice %358 {offsets = [0, 176], sizes = [16, 16], strides = [1, 1]} : vector<16x288xf32> to vector<16x16xf32>
    %474 = arith.truncf %473 : vector<16x16xf32> to vector<16x16xbf16>
    %475 = vector.extract_strided_slice %358 {offsets = [0, 272], sizes = [16, 16], strides = [1, 1]} : vector<16x288xf32> to vector<16x16xf32>
    %476 = arith.truncf %475 : vector<16x16xf32> to vector<16x16xbf16>
    %cst_157 = arith.constant dense<0.000000e+00> : vector<16x16xf32>
    %477 = tpu.matmul %472, %474, %cst_157 {dimension_numbers = #tpu.dot_dimension_numbers<[1], [1], [0], [0], [0, 0, 1, 0], [], []>} : vector<16x16xbf16>, vector<16x16xbf16>, vector<16x16xf32> -> vector<16x16xf32>
    %478 = arith.addf %477, %9 : vector<16x16xf32>
    %cst_158 = arith.constant dense<0xFF800000> : vector<16xf32>
    %479 = vector.multi_reduction <maximumf>, %478, %cst_158 [1] : vector<16x16xf32> to vector<16xf32>
    %480 = vector.shape_cast %479 : vector<16xf32> to vector<16x1xf32>
    %481 = vector.broadcast %480 : vector<16x1xf32> to vector<16x16xf32>
    %482 = arith.subf %478, %481 : vector<16x16xf32>
    %483 = math.exp %482 : vector<16x16xf32>
    %cst_159 = arith.constant dense<0.000000e+00> : vector<16xf32>
    %484 = vector.multi_reduction <add>, %483, %cst_159 [1] : vector<16x16xf32> to vector<16xf32>
    %485 = vector.shape_cast %484 : vector<16xf32> to vector<16x1xf32>
    %486 = tpu.reciprocal %485 {approx = true} : vector<16x1xf32> -> vector<16x1xf32>
    %487 = arith.truncf %483 : vector<16x16xf32> to vector<16x16xbf16>
    %cst_160 = arith.constant dense<0.000000e+00> : vector<16x16xf32>
    %488 = tpu.matmul %487, %476, %cst_160 {dimension_numbers = #tpu.dot_dimension_numbers<[1], [0], [0], [1], [0, 0, 1, 1], [], []>} : vector<16x16xbf16>, vector<16x16xbf16>, vector<16x16xf32> -> vector<16x16xf32>
    %489 = vector.broadcast %486 : vector<16x1xf32> to vector<16x16xf32>
    %490 = arith.mulf %488, %489 : vector<16x16xf32>
    %491 = tpu.concatenate %380, %402, %424, %446, %468, %490 in 1 : vector<16x16xf32>, vector<16x16xf32>, vector<16x16xf32>, vector<16x16xf32>, vector<16x16xf32>, vector<16x16xf32> -> vector<16x96xf32>
    %492 = arith.truncf %491 : vector<16x96xf32> to vector<16x96xbf16>
    %cst_161 = arith.constant dense<0.000000e+00> : vector<16x96xf32>
    %493 = tpu.matmul %492, %354, %cst_161 {dimension_numbers = #tpu.dot_dimension_numbers<[1], [0], [0], [1], [0, 0, 1, 1], [], []>} : vector<16x96xbf16>, vector<96x96xbf16>, vector<16x96xf32> -> vector<16x96xf32>
    %494 = vector.broadcast %356 : vector<1x96xf32> to vector<16x96xf32>
    %495 = arith.addf %493, %494 : vector<16x96xf32>
    %496 = arith.addf %324, %495 : vector<16x96xf32>
    %c1_162 = arith.constant 1 : index
    %c0_163 = arith.constant 0 : index
    %c0_164 = arith.constant 0 : index
    %497 = vector.load %arg11[%c1_162, %c0_163, %c0_164] : memref<6x1x96xf32, #tpu.memory_space<vmem>>, vector<1x1x96xf32>
    %498 = vector.shape_cast %497 : vector<1x1x96xf32> to vector<1x96xf32>
    %c1_165 = arith.constant 1 : index
    %c0_166 = arith.constant 0 : index
    %c0_167 = arith.constant 0 : index
    %499 = vector.load %arg12[%c1_165, %c0_166, %c0_167] : memref<6x1x96xf32, #tpu.memory_space<vmem>>, vector<1x1x96xf32>
    %500 = vector.shape_cast %499 : vector<1x1x96xf32> to vector<1x96xf32>
    %cst_168 = arith.constant dense<0.000000e+00> : vector<16xf32>
    %501 = vector.multi_reduction <add>, %496, %cst_168 [1] : vector<16x96xf32> to vector<16xf32>
    %502 = vector.shape_cast %501 : vector<16xf32> to vector<16x1xf32>
    %cst_169 = arith.constant 9.600000e+01 : f32
    %503 = vector.broadcast %cst_169 : f32 to vector<16x1xf32>
    %504 = arith.divf %502, %503 : vector<16x1xf32>
    %505 = vector.broadcast %504 : vector<16x1xf32> to vector<16x96xf32>
    %506 = arith.subf %496, %505 : vector<16x96xf32>
    %507 = arith.mulf %506, %506 : vector<16x96xf32>
    %cst_170 = arith.constant dense<0.000000e+00> : vector<16xf32>
    %508 = vector.multi_reduction <add>, %507, %cst_170 [1] : vector<16x96xf32> to vector<16xf32>
    %509 = vector.shape_cast %508 : vector<16xf32> to vector<16x1xf32>
    %cst_171 = arith.constant 9.600000e+01 : f32
    %510 = vector.broadcast %cst_171 : f32 to vector<16x1xf32>
    %511 = arith.divf %509, %510 : vector<16x1xf32>
    %512 = vector.broadcast %504 : vector<16x1xf32> to vector<16x96xf32>
    %513 = arith.subf %496, %512 : vector<16x96xf32>
    %cst_172 = arith.constant 9.99999974E-6 : f32
    %514 = vector.broadcast %cst_172 : f32 to vector<16x1xf32>
    %515 = arith.addf %511, %514 : vector<16x1xf32>
    %516 = math.rsqrt %515 : vector<16x1xf32>
    %517 = vector.broadcast %516 : vector<16x1xf32> to vector<16x96xf32>
    %518 = arith.mulf %513, %517 : vector<16x96xf32>
    %519 = vector.broadcast %498 : vector<1x96xf32> to vector<16x96xf32>
    %520 = arith.mulf %518, %519 : vector<16x96xf32>
    %521 = vector.broadcast %500 : vector<1x96xf32> to vector<16x96xf32>
    %522 = arith.addf %520, %521 : vector<16x96xf32>
    %523 = arith.truncf %522 : vector<16x96xf32> to vector<16x96xbf16>
    %c1_173 = arith.constant 1 : index
    %c0_174 = arith.constant 0 : index
    %c0_175 = arith.constant 0 : index
    %524 = vector.load %arg13[%c1_173, %c0_174, %c0_175] : memref<6x96x384xbf16, #tpu.memory_space<vmem>>, vector<1x96x384xbf16>
    %525 = vector.shape_cast %524 : vector<1x96x384xbf16> to vector<96x384xbf16>
    %cst_176 = arith.constant dense<0.000000e+00> : vector<16x384xf32>
    %526 = tpu.matmul %523, %525, %cst_176 {dimension_numbers = #tpu.dot_dimension_numbers<[1], [0], [0], [1], [0, 0, 1, 1], [], []>} : vector<16x96xbf16>, vector<96x384xbf16>, vector<16x384xf32> -> vector<16x384xf32>
    %c1_177 = arith.constant 1 : index
    %c0_178 = arith.constant 0 : index
    %c0_179 = arith.constant 0 : index
    %527 = vector.load %arg14[%c1_177, %c0_178, %c0_179] : memref<6x1x384xf32, #tpu.memory_space<vmem>>, vector<1x1x384xf32>
    %528 = vector.shape_cast %527 : vector<1x1x384xf32> to vector<1x384xf32>
    %529 = vector.broadcast %528 : vector<1x384xf32> to vector<16x384xf32>
    %530 = arith.addf %526, %529 : vector<16x384xf32>
    %cst_180 = arith.constant 0.000000e+00 : f32
    %531 = vector.broadcast %cst_180 : f32 to vector<16x384xf32>
    %532 = arith.maximumf %530, %531 : vector<16x384xf32>
    %533 = arith.truncf %532 : vector<16x384xf32> to vector<16x384xbf16>
    %c1_181 = arith.constant 1 : index
    %c0_182 = arith.constant 0 : index
    %c0_183 = arith.constant 0 : index
    %534 = vector.load %arg15[%c1_181, %c0_182, %c0_183] : memref<6x384x96xbf16, #tpu.memory_space<vmem>>, vector<1x384x96xbf16>
    %535 = vector.shape_cast %534 : vector<1x384x96xbf16> to vector<384x96xbf16>
    %cst_184 = arith.constant dense<0.000000e+00> : vector<16x96xf32>
    %536 = tpu.matmul %533, %535, %cst_184 {dimension_numbers = #tpu.dot_dimension_numbers<[1], [0], [0], [1], [0, 0, 1, 1], [], []>} : vector<16x384xbf16>, vector<384x96xbf16>, vector<16x96xf32> -> vector<16x96xf32>
    %c1_185 = arith.constant 1 : index
    %c0_186 = arith.constant 0 : index
    %c0_187 = arith.constant 0 : index
    %537 = vector.load %arg16[%c1_185, %c0_186, %c0_187] : memref<6x1x96xf32, #tpu.memory_space<vmem>>, vector<1x1x96xf32>
    %538 = vector.shape_cast %537 : vector<1x1x96xf32> to vector<1x96xf32>
    %539 = vector.broadcast %538 : vector<1x96xf32> to vector<16x96xf32>
    %540 = arith.addf %536, %539 : vector<16x96xf32>
    %541 = arith.addf %496, %540 : vector<16x96xf32>
    %c2 = arith.constant 2 : index
    %c0_188 = arith.constant 0 : index
    %c0_189 = arith.constant 0 : index
    %542 = vector.load %arg6[%c2, %c0_188, %c0_189] : memref<6x1x96xf32, #tpu.memory_space<vmem>>, vector<1x1x96xf32>
    %543 = vector.shape_cast %542 : vector<1x1x96xf32> to vector<1x96xf32>
    %c2_190 = arith.constant 2 : index
    %c0_191 = arith.constant 0 : index
    %c0_192 = arith.constant 0 : index
    %544 = vector.load %arg7[%c2_190, %c0_191, %c0_192] : memref<6x1x96xf32, #tpu.memory_space<vmem>>, vector<1x1x96xf32>
    %545 = vector.shape_cast %544 : vector<1x1x96xf32> to vector<1x96xf32>
    %cst_193 = arith.constant dense<0.000000e+00> : vector<16xf32>
    %546 = vector.multi_reduction <add>, %541, %cst_193 [1] : vector<16x96xf32> to vector<16xf32>
    %547 = vector.shape_cast %546 : vector<16xf32> to vector<16x1xf32>
    %cst_194 = arith.constant 9.600000e+01 : f32
    %548 = vector.broadcast %cst_194 : f32 to vector<16x1xf32>
    %549 = arith.divf %547, %548 : vector<16x1xf32>
    %550 = vector.broadcast %549 : vector<16x1xf32> to vector<16x96xf32>
    %551 = arith.subf %541, %550 : vector<16x96xf32>
    %552 = arith.mulf %551, %551 : vector<16x96xf32>
    %cst_195 = arith.constant dense<0.000000e+00> : vector<16xf32>
    %553 = vector.multi_reduction <add>, %552, %cst_195 [1] : vector<16x96xf32> to vector<16xf32>
    %554 = vector.shape_cast %553 : vector<16xf32> to vector<16x1xf32>
    %cst_196 = arith.constant 9.600000e+01 : f32
    %555 = vector.broadcast %cst_196 : f32 to vector<16x1xf32>
    %556 = arith.divf %554, %555 : vector<16x1xf32>
    %557 = vector.broadcast %549 : vector<16x1xf32> to vector<16x96xf32>
    %558 = arith.subf %541, %557 : vector<16x96xf32>
    %cst_197 = arith.constant 9.99999974E-6 : f32
    %559 = vector.broadcast %cst_197 : f32 to vector<16x1xf32>
    %560 = arith.addf %556, %559 : vector<16x1xf32>
    %561 = math.rsqrt %560 : vector<16x1xf32>
    %562 = vector.broadcast %561 : vector<16x1xf32> to vector<16x96xf32>
    %563 = arith.mulf %558, %562 : vector<16x96xf32>
    %564 = vector.broadcast %543 : vector<1x96xf32> to vector<16x96xf32>
    %565 = arith.mulf %563, %564 : vector<16x96xf32>
    %566 = vector.broadcast %545 : vector<1x96xf32> to vector<16x96xf32>
    %567 = arith.addf %565, %566 : vector<16x96xf32>
    %c2_198 = arith.constant 2 : index
    %c0_199 = arith.constant 0 : index
    %c0_200 = arith.constant 0 : index
    %568 = vector.load %arg8[%c2_198, %c0_199, %c0_200] : memref<6x96x288xbf16, #tpu.memory_space<vmem>>, vector<1x96x288xbf16>
    %569 = vector.shape_cast %568 : vector<1x96x288xbf16> to vector<96x288xbf16>
    %c2_201 = arith.constant 2 : index
    %c0_202 = arith.constant 0 : index
    %c0_203 = arith.constant 0 : index
    %570 = vector.load %arg9[%c2_201, %c0_202, %c0_203] : memref<6x96x96xbf16, #tpu.memory_space<vmem>>, vector<1x96x96xbf16>
    %571 = vector.shape_cast %570 : vector<1x96x96xbf16> to vector<96x96xbf16>
    %c2_204 = arith.constant 2 : index
    %c0_205 = arith.constant 0 : index
    %c0_206 = arith.constant 0 : index
    %572 = vector.load %arg10[%c2_204, %c0_205, %c0_206] : memref<6x1x96xf32, #tpu.memory_space<vmem>>, vector<1x1x96xf32>
    %573 = vector.shape_cast %572 : vector<1x1x96xf32> to vector<1x96xf32>
    %574 = arith.truncf %567 : vector<16x96xf32> to vector<16x96xbf16>
    %cst_207 = arith.constant dense<0.000000e+00> : vector<16x288xf32>
    %575 = tpu.matmul %574, %569, %cst_207 {dimension_numbers = #tpu.dot_dimension_numbers<[1], [0], [0], [1], [0, 0, 1, 1], [], []>} : vector<16x96xbf16>, vector<96x288xbf16>, vector<16x288xf32> -> vector<16x288xf32>
    %576 = vector.extract_strided_slice %575 {offsets = [0, 0], sizes = [16, 16], strides = [1, 1]} : vector<16x288xf32> to vector<16x16xf32>
    %cst_208 = arith.constant 0.102062076 : f32
    %577 = vector.broadcast %cst_208 : f32 to vector<16x16xf32>
    %578 = arith.mulf %576, %577 : vector<16x16xf32>
    %579 = arith.truncf %578 : vector<16x16xf32> to vector<16x16xbf16>
    %580 = vector.extract_strided_slice %575 {offsets = [0, 96], sizes = [16, 16], strides = [1, 1]} : vector<16x288xf32> to vector<16x16xf32>
    %581 = arith.truncf %580 : vector<16x16xf32> to vector<16x16xbf16>
    %582 = vector.extract_strided_slice %575 {offsets = [0, 192], sizes = [16, 16], strides = [1, 1]} : vector<16x288xf32> to vector<16x16xf32>
    %583 = arith.truncf %582 : vector<16x16xf32> to vector<16x16xbf16>
    %cst_209 = arith.constant dense<0.000000e+00> : vector<16x16xf32>
    %584 = tpu.matmul %579, %581, %cst_209 {dimension_numbers = #tpu.dot_dimension_numbers<[1], [1], [0], [0], [0, 0, 1, 0], [], []>} : vector<16x16xbf16>, vector<16x16xbf16>, vector<16x16xf32> -> vector<16x16xf32>
    %585 = arith.addf %584, %9 : vector<16x16xf32>
    %cst_210 = arith.constant dense<0xFF800000> : vector<16xf32>
    %586 = vector.multi_reduction <maximumf>, %585, %cst_210 [1] : vector<16x16xf32> to vector<16xf32>
    %587 = vector.shape_cast %586 : vector<16xf32> to vector<16x1xf32>
    %588 = vector.broadcast %587 : vector<16x1xf32> to vector<16x16xf32>
    %589 = arith.subf %585, %588 : vector<16x16xf32>
    %590 = math.exp %589 : vector<16x16xf32>
    %cst_211 = arith.constant dense<0.000000e+00> : vector<16xf32>
    %591 = vector.multi_reduction <add>, %590, %cst_211 [1] : vector<16x16xf32> to vector<16xf32>
    %592 = vector.shape_cast %591 : vector<16xf32> to vector<16x1xf32>
    %593 = tpu.reciprocal %592 {approx = true} : vector<16x1xf32> -> vector<16x1xf32>
    %594 = arith.truncf %590 : vector<16x16xf32> to vector<16x16xbf16>
    %cst_212 = arith.constant dense<0.000000e+00> : vector<16x16xf32>
    %595 = tpu.matmul %594, %583, %cst_212 {dimension_numbers = #tpu.dot_dimension_numbers<[1], [0], [0], [1], [0, 0, 1, 1], [], []>} : vector<16x16xbf16>, vector<16x16xbf16>, vector<16x16xf32> -> vector<16x16xf32>
    %596 = vector.broadcast %593 : vector<16x1xf32> to vector<16x16xf32>
    %597 = arith.mulf %595, %596 : vector<16x16xf32>
    %598 = vector.extract_strided_slice %575 {offsets = [0, 16], sizes = [16, 16], strides = [1, 1]} : vector<16x288xf32> to vector<16x16xf32>
    %cst_213 = arith.constant 0.102062076 : f32
    %599 = vector.broadcast %cst_213 : f32 to vector<16x16xf32>
    %600 = arith.mulf %598, %599 : vector<16x16xf32>
    %601 = arith.truncf %600 : vector<16x16xf32> to vector<16x16xbf16>
    %602 = vector.extract_strided_slice %575 {offsets = [0, 112], sizes = [16, 16], strides = [1, 1]} : vector<16x288xf32> to vector<16x16xf32>
    %603 = arith.truncf %602 : vector<16x16xf32> to vector<16x16xbf16>
    %604 = vector.extract_strided_slice %575 {offsets = [0, 208], sizes = [16, 16], strides = [1, 1]} : vector<16x288xf32> to vector<16x16xf32>
    %605 = arith.truncf %604 : vector<16x16xf32> to vector<16x16xbf16>
    %cst_214 = arith.constant dense<0.000000e+00> : vector<16x16xf32>
    %606 = tpu.matmul %601, %603, %cst_214 {dimension_numbers = #tpu.dot_dimension_numbers<[1], [1], [0], [0], [0, 0, 1, 0], [], []>} : vector<16x16xbf16>, vector<16x16xbf16>, vector<16x16xf32> -> vector<16x16xf32>
    %607 = arith.addf %606, %9 : vector<16x16xf32>
    %cst_215 = arith.constant dense<0xFF800000> : vector<16xf32>
    %608 = vector.multi_reduction <maximumf>, %607, %cst_215 [1] : vector<16x16xf32> to vector<16xf32>
    %609 = vector.shape_cast %608 : vector<16xf32> to vector<16x1xf32>
    %610 = vector.broadcast %609 : vector<16x1xf32> to vector<16x16xf32>
    %611 = arith.subf %607, %610 : vector<16x16xf32>
    %612 = math.exp %611 : vector<16x16xf32>
    %cst_216 = arith.constant dense<0.000000e+00> : vector<16xf32>
    %613 = vector.multi_reduction <add>, %612, %cst_216 [1] : vector<16x16xf32> to vector<16xf32>
    %614 = vector.shape_cast %613 : vector<16xf32> to vector<16x1xf32>
    %615 = tpu.reciprocal %614 {approx = true} : vector<16x1xf32> -> vector<16x1xf32>
    %616 = arith.truncf %612 : vector<16x16xf32> to vector<16x16xbf16>
    %cst_217 = arith.constant dense<0.000000e+00> : vector<16x16xf32>
    %617 = tpu.matmul %616, %605, %cst_217 {dimension_numbers = #tpu.dot_dimension_numbers<[1], [0], [0], [1], [0, 0, 1, 1], [], []>} : vector<16x16xbf16>, vector<16x16xbf16>, vector<16x16xf32> -> vector<16x16xf32>
    %618 = vector.broadcast %615 : vector<16x1xf32> to vector<16x16xf32>
    %619 = arith.mulf %617, %618 : vector<16x16xf32>
    %620 = vector.extract_strided_slice %575 {offsets = [0, 32], sizes = [16, 16], strides = [1, 1]} : vector<16x288xf32> to vector<16x16xf32>
    %cst_218 = arith.constant 0.102062076 : f32
    %621 = vector.broadcast %cst_218 : f32 to vector<16x16xf32>
    %622 = arith.mulf %620, %621 : vector<16x16xf32>
    %623 = arith.truncf %622 : vector<16x16xf32> to vector<16x16xbf16>
    %624 = vector.extract_strided_slice %575 {offsets = [0, 128], sizes = [16, 16], strides = [1, 1]} : vector<16x288xf32> to vector<16x16xf32>
    %625 = arith.truncf %624 : vector<16x16xf32> to vector<16x16xbf16>
    %626 = vector.extract_strided_slice %575 {offsets = [0, 224], sizes = [16, 16], strides = [1, 1]} : vector<16x288xf32> to vector<16x16xf32>
    %627 = arith.truncf %626 : vector<16x16xf32> to vector<16x16xbf16>
    %cst_219 = arith.constant dense<0.000000e+00> : vector<16x16xf32>
    %628 = tpu.matmul %623, %625, %cst_219 {dimension_numbers = #tpu.dot_dimension_numbers<[1], [1], [0], [0], [0, 0, 1, 0], [], []>} : vector<16x16xbf16>, vector<16x16xbf16>, vector<16x16xf32> -> vector<16x16xf32>
    %629 = arith.addf %628, %9 : vector<16x16xf32>
    %cst_220 = arith.constant dense<0xFF800000> : vector<16xf32>
    %630 = vector.multi_reduction <maximumf>, %629, %cst_220 [1] : vector<16x16xf32> to vector<16xf32>
    %631 = vector.shape_cast %630 : vector<16xf32> to vector<16x1xf32>
    %632 = vector.broadcast %631 : vector<16x1xf32> to vector<16x16xf32>
    %633 = arith.subf %629, %632 : vector<16x16xf32>
    %634 = math.exp %633 : vector<16x16xf32>
    %cst_221 = arith.constant dense<0.000000e+00> : vector<16xf32>
    %635 = vector.multi_reduction <add>, %634, %cst_221 [1] : vector<16x16xf32> to vector<16xf32>
    %636 = vector.shape_cast %635 : vector<16xf32> to vector<16x1xf32>
    %637 = tpu.reciprocal %636 {approx = true} : vector<16x1xf32> -> vector<16x1xf32>
    %638 = arith.truncf %634 : vector<16x16xf32> to vector<16x16xbf16>
    %cst_222 = arith.constant dense<0.000000e+00> : vector<16x16xf32>
    %639 = tpu.matmul %638, %627, %cst_222 {dimension_numbers = #tpu.dot_dimension_numbers<[1], [0], [0], [1], [0, 0, 1, 1], [], []>} : vector<16x16xbf16>, vector<16x16xbf16>, vector<16x16xf32> -> vector<16x16xf32>
    %640 = vector.broadcast %637 : vector<16x1xf32> to vector<16x16xf32>
    %641 = arith.mulf %639, %640 : vector<16x16xf32>
    %642 = vector.extract_strided_slice %575 {offsets = [0, 48], sizes = [16, 16], strides = [1, 1]} : vector<16x288xf32> to vector<16x16xf32>
    %cst_223 = arith.constant 0.102062076 : f32
    %643 = vector.broadcast %cst_223 : f32 to vector<16x16xf32>
    %644 = arith.mulf %642, %643 : vector<16x16xf32>
    %645 = arith.truncf %644 : vector<16x16xf32> to vector<16x16xbf16>
    %646 = vector.extract_strided_slice %575 {offsets = [0, 144], sizes = [16, 16], strides = [1, 1]} : vector<16x288xf32> to vector<16x16xf32>
    %647 = arith.truncf %646 : vector<16x16xf32> to vector<16x16xbf16>
    %648 = vector.extract_strided_slice %575 {offsets = [0, 240], sizes = [16, 16], strides = [1, 1]} : vector<16x288xf32> to vector<16x16xf32>
    %649 = arith.truncf %648 : vector<16x16xf32> to vector<16x16xbf16>
    %cst_224 = arith.constant dense<0.000000e+00> : vector<16x16xf32>
    %650 = tpu.matmul %645, %647, %cst_224 {dimension_numbers = #tpu.dot_dimension_numbers<[1], [1], [0], [0], [0, 0, 1, 0], [], []>} : vector<16x16xbf16>, vector<16x16xbf16>, vector<16x16xf32> -> vector<16x16xf32>
    %651 = arith.addf %650, %9 : vector<16x16xf32>
    %cst_225 = arith.constant dense<0xFF800000> : vector<16xf32>
    %652 = vector.multi_reduction <maximumf>, %651, %cst_225 [1] : vector<16x16xf32> to vector<16xf32>
    %653 = vector.shape_cast %652 : vector<16xf32> to vector<16x1xf32>
    %654 = vector.broadcast %653 : vector<16x1xf32> to vector<16x16xf32>
    %655 = arith.subf %651, %654 : vector<16x16xf32>
    %656 = math.exp %655 : vector<16x16xf32>
    %cst_226 = arith.constant dense<0.000000e+00> : vector<16xf32>
    %657 = vector.multi_reduction <add>, %656, %cst_226 [1] : vector<16x16xf32> to vector<16xf32>
    %658 = vector.shape_cast %657 : vector<16xf32> to vector<16x1xf32>
    %659 = tpu.reciprocal %658 {approx = true} : vector<16x1xf32> -> vector<16x1xf32>
    %660 = arith.truncf %656 : vector<16x16xf32> to vector<16x16xbf16>
    %cst_227 = arith.constant dense<0.000000e+00> : vector<16x16xf32>
    %661 = tpu.matmul %660, %649, %cst_227 {dimension_numbers = #tpu.dot_dimension_numbers<[1], [0], [0], [1], [0, 0, 1, 1], [], []>} : vector<16x16xbf16>, vector<16x16xbf16>, vector<16x16xf32> -> vector<16x16xf32>
    %662 = vector.broadcast %659 : vector<16x1xf32> to vector<16x16xf32>
    %663 = arith.mulf %661, %662 : vector<16x16xf32>
    %664 = vector.extract_strided_slice %575 {offsets = [0, 64], sizes = [16, 16], strides = [1, 1]} : vector<16x288xf32> to vector<16x16xf32>
    %cst_228 = arith.constant 0.102062076 : f32
    %665 = vector.broadcast %cst_228 : f32 to vector<16x16xf32>
    %666 = arith.mulf %664, %665 : vector<16x16xf32>
    %667 = arith.truncf %666 : vector<16x16xf32> to vector<16x16xbf16>
    %668 = vector.extract_strided_slice %575 {offsets = [0, 160], sizes = [16, 16], strides = [1, 1]} : vector<16x288xf32> to vector<16x16xf32>
    %669 = arith.truncf %668 : vector<16x16xf32> to vector<16x16xbf16>
    %670 = vector.extract_strided_slice %575 {offsets = [0, 256], sizes = [16, 16], strides = [1, 1]} : vector<16x288xf32> to vector<16x16xf32>
    %671 = arith.truncf %670 : vector<16x16xf32> to vector<16x16xbf16>
    %cst_229 = arith.constant dense<0.000000e+00> : vector<16x16xf32>
    %672 = tpu.matmul %667, %669, %cst_229 {dimension_numbers = #tpu.dot_dimension_numbers<[1], [1], [0], [0], [0, 0, 1, 0], [], []>} : vector<16x16xbf16>, vector<16x16xbf16>, vector<16x16xf32> -> vector<16x16xf32>
    %673 = arith.addf %672, %9 : vector<16x16xf32>
    %cst_230 = arith.constant dense<0xFF800000> : vector<16xf32>
    %674 = vector.multi_reduction <maximumf>, %673, %cst_230 [1] : vector<16x16xf32> to vector<16xf32>
    %675 = vector.shape_cast %674 : vector<16xf32> to vector<16x1xf32>
    %676 = vector.broadcast %675 : vector<16x1xf32> to vector<16x16xf32>
    %677 = arith.subf %673, %676 : vector<16x16xf32>
    %678 = math.exp %677 : vector<16x16xf32>
    %cst_231 = arith.constant dense<0.000000e+00> : vector<16xf32>
    %679 = vector.multi_reduction <add>, %678, %cst_231 [1] : vector<16x16xf32> to vector<16xf32>
    %680 = vector.shape_cast %679 : vector<16xf32> to vector<16x1xf32>
    %681 = tpu.reciprocal %680 {approx = true} : vector<16x1xf32> -> vector<16x1xf32>
    %682 = arith.truncf %678 : vector<16x16xf32> to vector<16x16xbf16>
    %cst_232 = arith.constant dense<0.000000e+00> : vector<16x16xf32>
    %683 = tpu.matmul %682, %671, %cst_232 {dimension_numbers = #tpu.dot_dimension_numbers<[1], [0], [0], [1], [0, 0, 1, 1], [], []>} : vector<16x16xbf16>, vector<16x16xbf16>, vector<16x16xf32> -> vector<16x16xf32>
    %684 = vector.broadcast %681 : vector<16x1xf32> to vector<16x16xf32>
    %685 = arith.mulf %683, %684 : vector<16x16xf32>
    %686 = vector.extract_strided_slice %575 {offsets = [0, 80], sizes = [16, 16], strides = [1, 1]} : vector<16x288xf32> to vector<16x16xf32>
    %cst_233 = arith.constant 0.102062076 : f32
    %687 = vector.broadcast %cst_233 : f32 to vector<16x16xf32>
    %688 = arith.mulf %686, %687 : vector<16x16xf32>
    %689 = arith.truncf %688 : vector<16x16xf32> to vector<16x16xbf16>
    %690 = vector.extract_strided_slice %575 {offsets = [0, 176], sizes = [16, 16], strides = [1, 1]} : vector<16x288xf32> to vector<16x16xf32>
    %691 = arith.truncf %690 : vector<16x16xf32> to vector<16x16xbf16>
    %692 = vector.extract_strided_slice %575 {offsets = [0, 272], sizes = [16, 16], strides = [1, 1]} : vector<16x288xf32> to vector<16x16xf32>
    %693 = arith.truncf %692 : vector<16x16xf32> to vector<16x16xbf16>
    %cst_234 = arith.constant dense<0.000000e+00> : vector<16x16xf32>
    %694 = tpu.matmul %689, %691, %cst_234 {dimension_numbers = #tpu.dot_dimension_numbers<[1], [1], [0], [0], [0, 0, 1, 0], [], []>} : vector<16x16xbf16>, vector<16x16xbf16>, vector<16x16xf32> -> vector<16x16xf32>
    %695 = arith.addf %694, %9 : vector<16x16xf32>
    %cst_235 = arith.constant dense<0xFF800000> : vector<16xf32>
    %696 = vector.multi_reduction <maximumf>, %695, %cst_235 [1] : vector<16x16xf32> to vector<16xf32>
    %697 = vector.shape_cast %696 : vector<16xf32> to vector<16x1xf32>
    %698 = vector.broadcast %697 : vector<16x1xf32> to vector<16x16xf32>
    %699 = arith.subf %695, %698 : vector<16x16xf32>
    %700 = math.exp %699 : vector<16x16xf32>
    %cst_236 = arith.constant dense<0.000000e+00> : vector<16xf32>
    %701 = vector.multi_reduction <add>, %700, %cst_236 [1] : vector<16x16xf32> to vector<16xf32>
    %702 = vector.shape_cast %701 : vector<16xf32> to vector<16x1xf32>
    %703 = tpu.reciprocal %702 {approx = true} : vector<16x1xf32> -> vector<16x1xf32>
    %704 = arith.truncf %700 : vector<16x16xf32> to vector<16x16xbf16>
    %cst_237 = arith.constant dense<0.000000e+00> : vector<16x16xf32>
    %705 = tpu.matmul %704, %693, %cst_237 {dimension_numbers = #tpu.dot_dimension_numbers<[1], [0], [0], [1], [0, 0, 1, 1], [], []>} : vector<16x16xbf16>, vector<16x16xbf16>, vector<16x16xf32> -> vector<16x16xf32>
    %706 = vector.broadcast %703 : vector<16x1xf32> to vector<16x16xf32>
    %707 = arith.mulf %705, %706 : vector<16x16xf32>
    %708 = tpu.concatenate %597, %619, %641, %663, %685, %707 in 1 : vector<16x16xf32>, vector<16x16xf32>, vector<16x16xf32>, vector<16x16xf32>, vector<16x16xf32>, vector<16x16xf32> -> vector<16x96xf32>
    %709 = arith.truncf %708 : vector<16x96xf32> to vector<16x96xbf16>
    %cst_238 = arith.constant dense<0.000000e+00> : vector<16x96xf32>
    %710 = tpu.matmul %709, %571, %cst_238 {dimension_numbers = #tpu.dot_dimension_numbers<[1], [0], [0], [1], [0, 0, 1, 1], [], []>} : vector<16x96xbf16>, vector<96x96xbf16>, vector<16x96xf32> -> vector<16x96xf32>
    %711 = vector.broadcast %573 : vector<1x96xf32> to vector<16x96xf32>
    %712 = arith.addf %710, %711 : vector<16x96xf32>
    %713 = arith.addf %541, %712 : vector<16x96xf32>
    %c2_239 = arith.constant 2 : index
    %c0_240 = arith.constant 0 : index
    %c0_241 = arith.constant 0 : index
    %714 = vector.load %arg11[%c2_239, %c0_240, %c0_241] : memref<6x1x96xf32, #tpu.memory_space<vmem>>, vector<1x1x96xf32>
    %715 = vector.shape_cast %714 : vector<1x1x96xf32> to vector<1x96xf32>
    %c2_242 = arith.constant 2 : index
    %c0_243 = arith.constant 0 : index
    %c0_244 = arith.constant 0 : index
    %716 = vector.load %arg12[%c2_242, %c0_243, %c0_244] : memref<6x1x96xf32, #tpu.memory_space<vmem>>, vector<1x1x96xf32>
    %717 = vector.shape_cast %716 : vector<1x1x96xf32> to vector<1x96xf32>
    %cst_245 = arith.constant dense<0.000000e+00> : vector<16xf32>
    %718 = vector.multi_reduction <add>, %713, %cst_245 [1] : vector<16x96xf32> to vector<16xf32>
    %719 = vector.shape_cast %718 : vector<16xf32> to vector<16x1xf32>
    %cst_246 = arith.constant 9.600000e+01 : f32
    %720 = vector.broadcast %cst_246 : f32 to vector<16x1xf32>
    %721 = arith.divf %719, %720 : vector<16x1xf32>
    %722 = vector.broadcast %721 : vector<16x1xf32> to vector<16x96xf32>
    %723 = arith.subf %713, %722 : vector<16x96xf32>
    %724 = arith.mulf %723, %723 : vector<16x96xf32>
    %cst_247 = arith.constant dense<0.000000e+00> : vector<16xf32>
    %725 = vector.multi_reduction <add>, %724, %cst_247 [1] : vector<16x96xf32> to vector<16xf32>
    %726 = vector.shape_cast %725 : vector<16xf32> to vector<16x1xf32>
    %cst_248 = arith.constant 9.600000e+01 : f32
    %727 = vector.broadcast %cst_248 : f32 to vector<16x1xf32>
    %728 = arith.divf %726, %727 : vector<16x1xf32>
    %729 = vector.broadcast %721 : vector<16x1xf32> to vector<16x96xf32>
    %730 = arith.subf %713, %729 : vector<16x96xf32>
    %cst_249 = arith.constant 9.99999974E-6 : f32
    %731 = vector.broadcast %cst_249 : f32 to vector<16x1xf32>
    %732 = arith.addf %728, %731 : vector<16x1xf32>
    %733 = math.rsqrt %732 : vector<16x1xf32>
    %734 = vector.broadcast %733 : vector<16x1xf32> to vector<16x96xf32>
    %735 = arith.mulf %730, %734 : vector<16x96xf32>
    %736 = vector.broadcast %715 : vector<1x96xf32> to vector<16x96xf32>
    %737 = arith.mulf %735, %736 : vector<16x96xf32>
    %738 = vector.broadcast %717 : vector<1x96xf32> to vector<16x96xf32>
    %739 = arith.addf %737, %738 : vector<16x96xf32>
    %740 = arith.truncf %739 : vector<16x96xf32> to vector<16x96xbf16>
    %c2_250 = arith.constant 2 : index
    %c0_251 = arith.constant 0 : index
    %c0_252 = arith.constant 0 : index
    %741 = vector.load %arg13[%c2_250, %c0_251, %c0_252] : memref<6x96x384xbf16, #tpu.memory_space<vmem>>, vector<1x96x384xbf16>
    %742 = vector.shape_cast %741 : vector<1x96x384xbf16> to vector<96x384xbf16>
    %cst_253 = arith.constant dense<0.000000e+00> : vector<16x384xf32>
    %743 = tpu.matmul %740, %742, %cst_253 {dimension_numbers = #tpu.dot_dimension_numbers<[1], [0], [0], [1], [0, 0, 1, 1], [], []>} : vector<16x96xbf16>, vector<96x384xbf16>, vector<16x384xf32> -> vector<16x384xf32>
    %c2_254 = arith.constant 2 : index
    %c0_255 = arith.constant 0 : index
    %c0_256 = arith.constant 0 : index
    %744 = vector.load %arg14[%c2_254, %c0_255, %c0_256] : memref<6x1x384xf32, #tpu.memory_space<vmem>>, vector<1x1x384xf32>
    %745 = vector.shape_cast %744 : vector<1x1x384xf32> to vector<1x384xf32>
    %746 = vector.broadcast %745 : vector<1x384xf32> to vector<16x384xf32>
    %747 = arith.addf %743, %746 : vector<16x384xf32>
    %cst_257 = arith.constant 0.000000e+00 : f32
    %748 = vector.broadcast %cst_257 : f32 to vector<16x384xf32>
    %749 = arith.maximumf %747, %748 : vector<16x384xf32>
    %750 = arith.truncf %749 : vector<16x384xf32> to vector<16x384xbf16>
    %c2_258 = arith.constant 2 : index
    %c0_259 = arith.constant 0 : index
    %c0_260 = arith.constant 0 : index
    %751 = vector.load %arg15[%c2_258, %c0_259, %c0_260] : memref<6x384x96xbf16, #tpu.memory_space<vmem>>, vector<1x384x96xbf16>
    %752 = vector.shape_cast %751 : vector<1x384x96xbf16> to vector<384x96xbf16>
    %cst_261 = arith.constant dense<0.000000e+00> : vector<16x96xf32>
    %753 = tpu.matmul %750, %752, %cst_261 {dimension_numbers = #tpu.dot_dimension_numbers<[1], [0], [0], [1], [0, 0, 1, 1], [], []>} : vector<16x384xbf16>, vector<384x96xbf16>, vector<16x96xf32> -> vector<16x96xf32>
    %c2_262 = arith.constant 2 : index
    %c0_263 = arith.constant 0 : index
    %c0_264 = arith.constant 0 : index
    %754 = vector.load %arg16[%c2_262, %c0_263, %c0_264] : memref<6x1x96xf32, #tpu.memory_space<vmem>>, vector<1x1x96xf32>
    %755 = vector.shape_cast %754 : vector<1x1x96xf32> to vector<1x96xf32>
    %756 = vector.broadcast %755 : vector<1x96xf32> to vector<16x96xf32>
    %757 = arith.addf %753, %756 : vector<16x96xf32>
    %758 = arith.addf %713, %757 : vector<16x96xf32>
    %c3 = arith.constant 3 : index
    %c0_265 = arith.constant 0 : index
    %c0_266 = arith.constant 0 : index
    %759 = vector.load %arg6[%c3, %c0_265, %c0_266] : memref<6x1x96xf32, #tpu.memory_space<vmem>>, vector<1x1x96xf32>
    %760 = vector.shape_cast %759 : vector<1x1x96xf32> to vector<1x96xf32>
    %c3_267 = arith.constant 3 : index
    %c0_268 = arith.constant 0 : index
    %c0_269 = arith.constant 0 : index
    %761 = vector.load %arg7[%c3_267, %c0_268, %c0_269] : memref<6x1x96xf32, #tpu.memory_space<vmem>>, vector<1x1x96xf32>
    %762 = vector.shape_cast %761 : vector<1x1x96xf32> to vector<1x96xf32>
    %cst_270 = arith.constant dense<0.000000e+00> : vector<16xf32>
    %763 = vector.multi_reduction <add>, %758, %cst_270 [1] : vector<16x96xf32> to vector<16xf32>
    %764 = vector.shape_cast %763 : vector<16xf32> to vector<16x1xf32>
    %cst_271 = arith.constant 9.600000e+01 : f32
    %765 = vector.broadcast %cst_271 : f32 to vector<16x1xf32>
    %766 = arith.divf %764, %765 : vector<16x1xf32>
    %767 = vector.broadcast %766 : vector<16x1xf32> to vector<16x96xf32>
    %768 = arith.subf %758, %767 : vector<16x96xf32>
    %769 = arith.mulf %768, %768 : vector<16x96xf32>
    %cst_272 = arith.constant dense<0.000000e+00> : vector<16xf32>
    %770 = vector.multi_reduction <add>, %769, %cst_272 [1] : vector<16x96xf32> to vector<16xf32>
    %771 = vector.shape_cast %770 : vector<16xf32> to vector<16x1xf32>
    %cst_273 = arith.constant 9.600000e+01 : f32
    %772 = vector.broadcast %cst_273 : f32 to vector<16x1xf32>
    %773 = arith.divf %771, %772 : vector<16x1xf32>
    %774 = vector.broadcast %766 : vector<16x1xf32> to vector<16x96xf32>
    %775 = arith.subf %758, %774 : vector<16x96xf32>
    %cst_274 = arith.constant 9.99999974E-6 : f32
    %776 = vector.broadcast %cst_274 : f32 to vector<16x1xf32>
    %777 = arith.addf %773, %776 : vector<16x1xf32>
    %778 = math.rsqrt %777 : vector<16x1xf32>
    %779 = vector.broadcast %778 : vector<16x1xf32> to vector<16x96xf32>
    %780 = arith.mulf %775, %779 : vector<16x96xf32>
    %781 = vector.broadcast %760 : vector<1x96xf32> to vector<16x96xf32>
    %782 = arith.mulf %780, %781 : vector<16x96xf32>
    %783 = vector.broadcast %762 : vector<1x96xf32> to vector<16x96xf32>
    %784 = arith.addf %782, %783 : vector<16x96xf32>
    %c3_275 = arith.constant 3 : index
    %c0_276 = arith.constant 0 : index
    %c0_277 = arith.constant 0 : index
    %785 = vector.load %arg8[%c3_275, %c0_276, %c0_277] : memref<6x96x288xbf16, #tpu.memory_space<vmem>>, vector<1x96x288xbf16>
    %786 = vector.shape_cast %785 : vector<1x96x288xbf16> to vector<96x288xbf16>
    %c3_278 = arith.constant 3 : index
    %c0_279 = arith.constant 0 : index
    %c0_280 = arith.constant 0 : index
    %787 = vector.load %arg9[%c3_278, %c0_279, %c0_280] : memref<6x96x96xbf16, #tpu.memory_space<vmem>>, vector<1x96x96xbf16>
    %788 = vector.shape_cast %787 : vector<1x96x96xbf16> to vector<96x96xbf16>
    %c3_281 = arith.constant 3 : index
    %c0_282 = arith.constant 0 : index
    %c0_283 = arith.constant 0 : index
    %789 = vector.load %arg10[%c3_281, %c0_282, %c0_283] : memref<6x1x96xf32, #tpu.memory_space<vmem>>, vector<1x1x96xf32>
    %790 = vector.shape_cast %789 : vector<1x1x96xf32> to vector<1x96xf32>
    %791 = arith.truncf %784 : vector<16x96xf32> to vector<16x96xbf16>
    %cst_284 = arith.constant dense<0.000000e+00> : vector<16x288xf32>
    %792 = tpu.matmul %791, %786, %cst_284 {dimension_numbers = #tpu.dot_dimension_numbers<[1], [0], [0], [1], [0, 0, 1, 1], [], []>} : vector<16x96xbf16>, vector<96x288xbf16>, vector<16x288xf32> -> vector<16x288xf32>
    %793 = vector.extract_strided_slice %792 {offsets = [0, 0], sizes = [16, 16], strides = [1, 1]} : vector<16x288xf32> to vector<16x16xf32>
    %cst_285 = arith.constant 0.102062076 : f32
    %794 = vector.broadcast %cst_285 : f32 to vector<16x16xf32>
    %795 = arith.mulf %793, %794 : vector<16x16xf32>
    %796 = arith.truncf %795 : vector<16x16xf32> to vector<16x16xbf16>
    %797 = vector.extract_strided_slice %792 {offsets = [0, 96], sizes = [16, 16], strides = [1, 1]} : vector<16x288xf32> to vector<16x16xf32>
    %798 = arith.truncf %797 : vector<16x16xf32> to vector<16x16xbf16>
    %799 = vector.extract_strided_slice %792 {offsets = [0, 192], sizes = [16, 16], strides = [1, 1]} : vector<16x288xf32> to vector<16x16xf32>
    %800 = arith.truncf %799 : vector<16x16xf32> to vector<16x16xbf16>
    %cst_286 = arith.constant dense<0.000000e+00> : vector<16x16xf32>
    %801 = tpu.matmul %796, %798, %cst_286 {dimension_numbers = #tpu.dot_dimension_numbers<[1], [1], [0], [0], [0, 0, 1, 0], [], []>} : vector<16x16xbf16>, vector<16x16xbf16>, vector<16x16xf32> -> vector<16x16xf32>
    %802 = arith.addf %801, %9 : vector<16x16xf32>
    %cst_287 = arith.constant dense<0xFF800000> : vector<16xf32>
    %803 = vector.multi_reduction <maximumf>, %802, %cst_287 [1] : vector<16x16xf32> to vector<16xf32>
    %804 = vector.shape_cast %803 : vector<16xf32> to vector<16x1xf32>
    %805 = vector.broadcast %804 : vector<16x1xf32> to vector<16x16xf32>
    %806 = arith.subf %802, %805 : vector<16x16xf32>
    %807 = math.exp %806 : vector<16x16xf32>
    %cst_288 = arith.constant dense<0.000000e+00> : vector<16xf32>
    %808 = vector.multi_reduction <add>, %807, %cst_288 [1] : vector<16x16xf32> to vector<16xf32>
    %809 = vector.shape_cast %808 : vector<16xf32> to vector<16x1xf32>
    %810 = tpu.reciprocal %809 {approx = true} : vector<16x1xf32> -> vector<16x1xf32>
    %811 = arith.truncf %807 : vector<16x16xf32> to vector<16x16xbf16>
    %cst_289 = arith.constant dense<0.000000e+00> : vector<16x16xf32>
    %812 = tpu.matmul %811, %800, %cst_289 {dimension_numbers = #tpu.dot_dimension_numbers<[1], [0], [0], [1], [0, 0, 1, 1], [], []>} : vector<16x16xbf16>, vector<16x16xbf16>, vector<16x16xf32> -> vector<16x16xf32>
    %813 = vector.broadcast %810 : vector<16x1xf32> to vector<16x16xf32>
    %814 = arith.mulf %812, %813 : vector<16x16xf32>
    %815 = vector.extract_strided_slice %792 {offsets = [0, 16], sizes = [16, 16], strides = [1, 1]} : vector<16x288xf32> to vector<16x16xf32>
    %cst_290 = arith.constant 0.102062076 : f32
    %816 = vector.broadcast %cst_290 : f32 to vector<16x16xf32>
    %817 = arith.mulf %815, %816 : vector<16x16xf32>
    %818 = arith.truncf %817 : vector<16x16xf32> to vector<16x16xbf16>
    %819 = vector.extract_strided_slice %792 {offsets = [0, 112], sizes = [16, 16], strides = [1, 1]} : vector<16x288xf32> to vector<16x16xf32>
    %820 = arith.truncf %819 : vector<16x16xf32> to vector<16x16xbf16>
    %821 = vector.extract_strided_slice %792 {offsets = [0, 208], sizes = [16, 16], strides = [1, 1]} : vector<16x288xf32> to vector<16x16xf32>
    %822 = arith.truncf %821 : vector<16x16xf32> to vector<16x16xbf16>
    %cst_291 = arith.constant dense<0.000000e+00> : vector<16x16xf32>
    %823 = tpu.matmul %818, %820, %cst_291 {dimension_numbers = #tpu.dot_dimension_numbers<[1], [1], [0], [0], [0, 0, 1, 0], [], []>} : vector<16x16xbf16>, vector<16x16xbf16>, vector<16x16xf32> -> vector<16x16xf32>
    %824 = arith.addf %823, %9 : vector<16x16xf32>
    %cst_292 = arith.constant dense<0xFF800000> : vector<16xf32>
    %825 = vector.multi_reduction <maximumf>, %824, %cst_292 [1] : vector<16x16xf32> to vector<16xf32>
    %826 = vector.shape_cast %825 : vector<16xf32> to vector<16x1xf32>
    %827 = vector.broadcast %826 : vector<16x1xf32> to vector<16x16xf32>
    %828 = arith.subf %824, %827 : vector<16x16xf32>
    %829 = math.exp %828 : vector<16x16xf32>
    %cst_293 = arith.constant dense<0.000000e+00> : vector<16xf32>
    %830 = vector.multi_reduction <add>, %829, %cst_293 [1] : vector<16x16xf32> to vector<16xf32>
    %831 = vector.shape_cast %830 : vector<16xf32> to vector<16x1xf32>
    %832 = tpu.reciprocal %831 {approx = true} : vector<16x1xf32> -> vector<16x1xf32>
    %833 = arith.truncf %829 : vector<16x16xf32> to vector<16x16xbf16>
    %cst_294 = arith.constant dense<0.000000e+00> : vector<16x16xf32>
    %834 = tpu.matmul %833, %822, %cst_294 {dimension_numbers = #tpu.dot_dimension_numbers<[1], [0], [0], [1], [0, 0, 1, 1], [], []>} : vector<16x16xbf16>, vector<16x16xbf16>, vector<16x16xf32> -> vector<16x16xf32>
    %835 = vector.broadcast %832 : vector<16x1xf32> to vector<16x16xf32>
    %836 = arith.mulf %834, %835 : vector<16x16xf32>
    %837 = vector.extract_strided_slice %792 {offsets = [0, 32], sizes = [16, 16], strides = [1, 1]} : vector<16x288xf32> to vector<16x16xf32>
    %cst_295 = arith.constant 0.102062076 : f32
    %838 = vector.broadcast %cst_295 : f32 to vector<16x16xf32>
    %839 = arith.mulf %837, %838 : vector<16x16xf32>
    %840 = arith.truncf %839 : vector<16x16xf32> to vector<16x16xbf16>
    %841 = vector.extract_strided_slice %792 {offsets = [0, 128], sizes = [16, 16], strides = [1, 1]} : vector<16x288xf32> to vector<16x16xf32>
    %842 = arith.truncf %841 : vector<16x16xf32> to vector<16x16xbf16>
    %843 = vector.extract_strided_slice %792 {offsets = [0, 224], sizes = [16, 16], strides = [1, 1]} : vector<16x288xf32> to vector<16x16xf32>
    %844 = arith.truncf %843 : vector<16x16xf32> to vector<16x16xbf16>
    %cst_296 = arith.constant dense<0.000000e+00> : vector<16x16xf32>
    %845 = tpu.matmul %840, %842, %cst_296 {dimension_numbers = #tpu.dot_dimension_numbers<[1], [1], [0], [0], [0, 0, 1, 0], [], []>} : vector<16x16xbf16>, vector<16x16xbf16>, vector<16x16xf32> -> vector<16x16xf32>
    %846 = arith.addf %845, %9 : vector<16x16xf32>
    %cst_297 = arith.constant dense<0xFF800000> : vector<16xf32>
    %847 = vector.multi_reduction <maximumf>, %846, %cst_297 [1] : vector<16x16xf32> to vector<16xf32>
    %848 = vector.shape_cast %847 : vector<16xf32> to vector<16x1xf32>
    %849 = vector.broadcast %848 : vector<16x1xf32> to vector<16x16xf32>
    %850 = arith.subf %846, %849 : vector<16x16xf32>
    %851 = math.exp %850 : vector<16x16xf32>
    %cst_298 = arith.constant dense<0.000000e+00> : vector<16xf32>
    %852 = vector.multi_reduction <add>, %851, %cst_298 [1] : vector<16x16xf32> to vector<16xf32>
    %853 = vector.shape_cast %852 : vector<16xf32> to vector<16x1xf32>
    %854 = tpu.reciprocal %853 {approx = true} : vector<16x1xf32> -> vector<16x1xf32>
    %855 = arith.truncf %851 : vector<16x16xf32> to vector<16x16xbf16>
    %cst_299 = arith.constant dense<0.000000e+00> : vector<16x16xf32>
    %856 = tpu.matmul %855, %844, %cst_299 {dimension_numbers = #tpu.dot_dimension_numbers<[1], [0], [0], [1], [0, 0, 1, 1], [], []>} : vector<16x16xbf16>, vector<16x16xbf16>, vector<16x16xf32> -> vector<16x16xf32>
    %857 = vector.broadcast %854 : vector<16x1xf32> to vector<16x16xf32>
    %858 = arith.mulf %856, %857 : vector<16x16xf32>
    %859 = vector.extract_strided_slice %792 {offsets = [0, 48], sizes = [16, 16], strides = [1, 1]} : vector<16x288xf32> to vector<16x16xf32>
    %cst_300 = arith.constant 0.102062076 : f32
    %860 = vector.broadcast %cst_300 : f32 to vector<16x16xf32>
    %861 = arith.mulf %859, %860 : vector<16x16xf32>
    %862 = arith.truncf %861 : vector<16x16xf32> to vector<16x16xbf16>
    %863 = vector.extract_strided_slice %792 {offsets = [0, 144], sizes = [16, 16], strides = [1, 1]} : vector<16x288xf32> to vector<16x16xf32>
    %864 = arith.truncf %863 : vector<16x16xf32> to vector<16x16xbf16>
    %865 = vector.extract_strided_slice %792 {offsets = [0, 240], sizes = [16, 16], strides = [1, 1]} : vector<16x288xf32> to vector<16x16xf32>
    %866 = arith.truncf %865 : vector<16x16xf32> to vector<16x16xbf16>
    %cst_301 = arith.constant dense<0.000000e+00> : vector<16x16xf32>
    %867 = tpu.matmul %862, %864, %cst_301 {dimension_numbers = #tpu.dot_dimension_numbers<[1], [1], [0], [0], [0, 0, 1, 0], [], []>} : vector<16x16xbf16>, vector<16x16xbf16>, vector<16x16xf32> -> vector<16x16xf32>
    %868 = arith.addf %867, %9 : vector<16x16xf32>
    %cst_302 = arith.constant dense<0xFF800000> : vector<16xf32>
    %869 = vector.multi_reduction <maximumf>, %868, %cst_302 [1] : vector<16x16xf32> to vector<16xf32>
    %870 = vector.shape_cast %869 : vector<16xf32> to vector<16x1xf32>
    %871 = vector.broadcast %870 : vector<16x1xf32> to vector<16x16xf32>
    %872 = arith.subf %868, %871 : vector<16x16xf32>
    %873 = math.exp %872 : vector<16x16xf32>
    %cst_303 = arith.constant dense<0.000000e+00> : vector<16xf32>
    %874 = vector.multi_reduction <add>, %873, %cst_303 [1] : vector<16x16xf32> to vector<16xf32>
    %875 = vector.shape_cast %874 : vector<16xf32> to vector<16x1xf32>
    %876 = tpu.reciprocal %875 {approx = true} : vector<16x1xf32> -> vector<16x1xf32>
    %877 = arith.truncf %873 : vector<16x16xf32> to vector<16x16xbf16>
    %cst_304 = arith.constant dense<0.000000e+00> : vector<16x16xf32>
    %878 = tpu.matmul %877, %866, %cst_304 {dimension_numbers = #tpu.dot_dimension_numbers<[1], [0], [0], [1], [0, 0, 1, 1], [], []>} : vector<16x16xbf16>, vector<16x16xbf16>, vector<16x16xf32> -> vector<16x16xf32>
    %879 = vector.broadcast %876 : vector<16x1xf32> to vector<16x16xf32>
    %880 = arith.mulf %878, %879 : vector<16x16xf32>
    %881 = vector.extract_strided_slice %792 {offsets = [0, 64], sizes = [16, 16], strides = [1, 1]} : vector<16x288xf32> to vector<16x16xf32>
    %cst_305 = arith.constant 0.102062076 : f32
    %882 = vector.broadcast %cst_305 : f32 to vector<16x16xf32>
    %883 = arith.mulf %881, %882 : vector<16x16xf32>
    %884 = arith.truncf %883 : vector<16x16xf32> to vector<16x16xbf16>
    %885 = vector.extract_strided_slice %792 {offsets = [0, 160], sizes = [16, 16], strides = [1, 1]} : vector<16x288xf32> to vector<16x16xf32>
    %886 = arith.truncf %885 : vector<16x16xf32> to vector<16x16xbf16>
    %887 = vector.extract_strided_slice %792 {offsets = [0, 256], sizes = [16, 16], strides = [1, 1]} : vector<16x288xf32> to vector<16x16xf32>
    %888 = arith.truncf %887 : vector<16x16xf32> to vector<16x16xbf16>
    %cst_306 = arith.constant dense<0.000000e+00> : vector<16x16xf32>
    %889 = tpu.matmul %884, %886, %cst_306 {dimension_numbers = #tpu.dot_dimension_numbers<[1], [1], [0], [0], [0, 0, 1, 0], [], []>} : vector<16x16xbf16>, vector<16x16xbf16>, vector<16x16xf32> -> vector<16x16xf32>
    %890 = arith.addf %889, %9 : vector<16x16xf32>
    %cst_307 = arith.constant dense<0xFF800000> : vector<16xf32>
    %891 = vector.multi_reduction <maximumf>, %890, %cst_307 [1] : vector<16x16xf32> to vector<16xf32>
    %892 = vector.shape_cast %891 : vector<16xf32> to vector<16x1xf32>
    %893 = vector.broadcast %892 : vector<16x1xf32> to vector<16x16xf32>
    %894 = arith.subf %890, %893 : vector<16x16xf32>
    %895 = math.exp %894 : vector<16x16xf32>
    %cst_308 = arith.constant dense<0.000000e+00> : vector<16xf32>
    %896 = vector.multi_reduction <add>, %895, %cst_308 [1] : vector<16x16xf32> to vector<16xf32>
    %897 = vector.shape_cast %896 : vector<16xf32> to vector<16x1xf32>
    %898 = tpu.reciprocal %897 {approx = true} : vector<16x1xf32> -> vector<16x1xf32>
    %899 = arith.truncf %895 : vector<16x16xf32> to vector<16x16xbf16>
    %cst_309 = arith.constant dense<0.000000e+00> : vector<16x16xf32>
    %900 = tpu.matmul %899, %888, %cst_309 {dimension_numbers = #tpu.dot_dimension_numbers<[1], [0], [0], [1], [0, 0, 1, 1], [], []>} : vector<16x16xbf16>, vector<16x16xbf16>, vector<16x16xf32> -> vector<16x16xf32>
    %901 = vector.broadcast %898 : vector<16x1xf32> to vector<16x16xf32>
    %902 = arith.mulf %900, %901 : vector<16x16xf32>
    %903 = vector.extract_strided_slice %792 {offsets = [0, 80], sizes = [16, 16], strides = [1, 1]} : vector<16x288xf32> to vector<16x16xf32>
    %cst_310 = arith.constant 0.102062076 : f32
    %904 = vector.broadcast %cst_310 : f32 to vector<16x16xf32>
    %905 = arith.mulf %903, %904 : vector<16x16xf32>
    %906 = arith.truncf %905 : vector<16x16xf32> to vector<16x16xbf16>
    %907 = vector.extract_strided_slice %792 {offsets = [0, 176], sizes = [16, 16], strides = [1, 1]} : vector<16x288xf32> to vector<16x16xf32>
    %908 = arith.truncf %907 : vector<16x16xf32> to vector<16x16xbf16>
    %909 = vector.extract_strided_slice %792 {offsets = [0, 272], sizes = [16, 16], strides = [1, 1]} : vector<16x288xf32> to vector<16x16xf32>
    %910 = arith.truncf %909 : vector<16x16xf32> to vector<16x16xbf16>
    %cst_311 = arith.constant dense<0.000000e+00> : vector<16x16xf32>
    %911 = tpu.matmul %906, %908, %cst_311 {dimension_numbers = #tpu.dot_dimension_numbers<[1], [1], [0], [0], [0, 0, 1, 0], [], []>} : vector<16x16xbf16>, vector<16x16xbf16>, vector<16x16xf32> -> vector<16x16xf32>
    %912 = arith.addf %911, %9 : vector<16x16xf32>
    %cst_312 = arith.constant dense<0xFF800000> : vector<16xf32>
    %913 = vector.multi_reduction <maximumf>, %912, %cst_312 [1] : vector<16x16xf32> to vector<16xf32>
    %914 = vector.shape_cast %913 : vector<16xf32> to vector<16x1xf32>
    %915 = vector.broadcast %914 : vector<16x1xf32> to vector<16x16xf32>
    %916 = arith.subf %912, %915 : vector<16x16xf32>
    %917 = math.exp %916 : vector<16x16xf32>
    %cst_313 = arith.constant dense<0.000000e+00> : vector<16xf32>
    %918 = vector.multi_reduction <add>, %917, %cst_313 [1] : vector<16x16xf32> to vector<16xf32>
    %919 = vector.shape_cast %918 : vector<16xf32> to vector<16x1xf32>
    %920 = tpu.reciprocal %919 {approx = true} : vector<16x1xf32> -> vector<16x1xf32>
    %921 = arith.truncf %917 : vector<16x16xf32> to vector<16x16xbf16>
    %cst_314 = arith.constant dense<0.000000e+00> : vector<16x16xf32>
    %922 = tpu.matmul %921, %910, %cst_314 {dimension_numbers = #tpu.dot_dimension_numbers<[1], [0], [0], [1], [0, 0, 1, 1], [], []>} : vector<16x16xbf16>, vector<16x16xbf16>, vector<16x16xf32> -> vector<16x16xf32>
    %923 = vector.broadcast %920 : vector<16x1xf32> to vector<16x16xf32>
    %924 = arith.mulf %922, %923 : vector<16x16xf32>
    %925 = tpu.concatenate %814, %836, %858, %880, %902, %924 in 1 : vector<16x16xf32>, vector<16x16xf32>, vector<16x16xf32>, vector<16x16xf32>, vector<16x16xf32>, vector<16x16xf32> -> vector<16x96xf32>
    %926 = arith.truncf %925 : vector<16x96xf32> to vector<16x96xbf16>
    %cst_315 = arith.constant dense<0.000000e+00> : vector<16x96xf32>
    %927 = tpu.matmul %926, %788, %cst_315 {dimension_numbers = #tpu.dot_dimension_numbers<[1], [0], [0], [1], [0, 0, 1, 1], [], []>} : vector<16x96xbf16>, vector<96x96xbf16>, vector<16x96xf32> -> vector<16x96xf32>
    %928 = vector.broadcast %790 : vector<1x96xf32> to vector<16x96xf32>
    %929 = arith.addf %927, %928 : vector<16x96xf32>
    %930 = arith.addf %758, %929 : vector<16x96xf32>
    %c3_316 = arith.constant 3 : index
    %c0_317 = arith.constant 0 : index
    %c0_318 = arith.constant 0 : index
    %931 = vector.load %arg11[%c3_316, %c0_317, %c0_318] : memref<6x1x96xf32, #tpu.memory_space<vmem>>, vector<1x1x96xf32>
    %932 = vector.shape_cast %931 : vector<1x1x96xf32> to vector<1x96xf32>
    %c3_319 = arith.constant 3 : index
    %c0_320 = arith.constant 0 : index
    %c0_321 = arith.constant 0 : index
    %933 = vector.load %arg12[%c3_319, %c0_320, %c0_321] : memref<6x1x96xf32, #tpu.memory_space<vmem>>, vector<1x1x96xf32>
    %934 = vector.shape_cast %933 : vector<1x1x96xf32> to vector<1x96xf32>
    %cst_322 = arith.constant dense<0.000000e+00> : vector<16xf32>
    %935 = vector.multi_reduction <add>, %930, %cst_322 [1] : vector<16x96xf32> to vector<16xf32>
    %936 = vector.shape_cast %935 : vector<16xf32> to vector<16x1xf32>
    %cst_323 = arith.constant 9.600000e+01 : f32
    %937 = vector.broadcast %cst_323 : f32 to vector<16x1xf32>
    %938 = arith.divf %936, %937 : vector<16x1xf32>
    %939 = vector.broadcast %938 : vector<16x1xf32> to vector<16x96xf32>
    %940 = arith.subf %930, %939 : vector<16x96xf32>
    %941 = arith.mulf %940, %940 : vector<16x96xf32>
    %cst_324 = arith.constant dense<0.000000e+00> : vector<16xf32>
    %942 = vector.multi_reduction <add>, %941, %cst_324 [1] : vector<16x96xf32> to vector<16xf32>
    %943 = vector.shape_cast %942 : vector<16xf32> to vector<16x1xf32>
    %cst_325 = arith.constant 9.600000e+01 : f32
    %944 = vector.broadcast %cst_325 : f32 to vector<16x1xf32>
    %945 = arith.divf %943, %944 : vector<16x1xf32>
    %946 = vector.broadcast %938 : vector<16x1xf32> to vector<16x96xf32>
    %947 = arith.subf %930, %946 : vector<16x96xf32>
    %cst_326 = arith.constant 9.99999974E-6 : f32
    %948 = vector.broadcast %cst_326 : f32 to vector<16x1xf32>
    %949 = arith.addf %945, %948 : vector<16x1xf32>
    %950 = math.rsqrt %949 : vector<16x1xf32>
    %951 = vector.broadcast %950 : vector<16x1xf32> to vector<16x96xf32>
    %952 = arith.mulf %947, %951 : vector<16x96xf32>
    %953 = vector.broadcast %932 : vector<1x96xf32> to vector<16x96xf32>
    %954 = arith.mulf %952, %953 : vector<16x96xf32>
    %955 = vector.broadcast %934 : vector<1x96xf32> to vector<16x96xf32>
    %956 = arith.addf %954, %955 : vector<16x96xf32>
    %957 = arith.truncf %956 : vector<16x96xf32> to vector<16x96xbf16>
    %c3_327 = arith.constant 3 : index
    %c0_328 = arith.constant 0 : index
    %c0_329 = arith.constant 0 : index
    %958 = vector.load %arg13[%c3_327, %c0_328, %c0_329] : memref<6x96x384xbf16, #tpu.memory_space<vmem>>, vector<1x96x384xbf16>
    %959 = vector.shape_cast %958 : vector<1x96x384xbf16> to vector<96x384xbf16>
    %cst_330 = arith.constant dense<0.000000e+00> : vector<16x384xf32>
    %960 = tpu.matmul %957, %959, %cst_330 {dimension_numbers = #tpu.dot_dimension_numbers<[1], [0], [0], [1], [0, 0, 1, 1], [], []>} : vector<16x96xbf16>, vector<96x384xbf16>, vector<16x384xf32> -> vector<16x384xf32>
    %c3_331 = arith.constant 3 : index
    %c0_332 = arith.constant 0 : index
    %c0_333 = arith.constant 0 : index
    %961 = vector.load %arg14[%c3_331, %c0_332, %c0_333] : memref<6x1x384xf32, #tpu.memory_space<vmem>>, vector<1x1x384xf32>
    %962 = vector.shape_cast %961 : vector<1x1x384xf32> to vector<1x384xf32>
    %963 = vector.broadcast %962 : vector<1x384xf32> to vector<16x384xf32>
    %964 = arith.addf %960, %963 : vector<16x384xf32>
    %cst_334 = arith.constant 0.000000e+00 : f32
    %965 = vector.broadcast %cst_334 : f32 to vector<16x384xf32>
    %966 = arith.maximumf %964, %965 : vector<16x384xf32>
    %967 = arith.truncf %966 : vector<16x384xf32> to vector<16x384xbf16>
    %c3_335 = arith.constant 3 : index
    %c0_336 = arith.constant 0 : index
    %c0_337 = arith.constant 0 : index
    %968 = vector.load %arg15[%c3_335, %c0_336, %c0_337] : memref<6x384x96xbf16, #tpu.memory_space<vmem>>, vector<1x384x96xbf16>
    %969 = vector.shape_cast %968 : vector<1x384x96xbf16> to vector<384x96xbf16>
    %cst_338 = arith.constant dense<0.000000e+00> : vector<16x96xf32>
    %970 = tpu.matmul %967, %969, %cst_338 {dimension_numbers = #tpu.dot_dimension_numbers<[1], [0], [0], [1], [0, 0, 1, 1], [], []>} : vector<16x384xbf16>, vector<384x96xbf16>, vector<16x96xf32> -> vector<16x96xf32>
    %c3_339 = arith.constant 3 : index
    %c0_340 = arith.constant 0 : index
    %c0_341 = arith.constant 0 : index
    %971 = vector.load %arg16[%c3_339, %c0_340, %c0_341] : memref<6x1x96xf32, #tpu.memory_space<vmem>>, vector<1x1x96xf32>
    %972 = vector.shape_cast %971 : vector<1x1x96xf32> to vector<1x96xf32>
    %973 = vector.broadcast %972 : vector<1x96xf32> to vector<16x96xf32>
    %974 = arith.addf %970, %973 : vector<16x96xf32>
    %975 = arith.addf %930, %974 : vector<16x96xf32>
    %c4 = arith.constant 4 : index
    %c0_342 = arith.constant 0 : index
    %c0_343 = arith.constant 0 : index
    %976 = vector.load %arg6[%c4, %c0_342, %c0_343] : memref<6x1x96xf32, #tpu.memory_space<vmem>>, vector<1x1x96xf32>
    %977 = vector.shape_cast %976 : vector<1x1x96xf32> to vector<1x96xf32>
    %c4_344 = arith.constant 4 : index
    %c0_345 = arith.constant 0 : index
    %c0_346 = arith.constant 0 : index
    %978 = vector.load %arg7[%c4_344, %c0_345, %c0_346] : memref<6x1x96xf32, #tpu.memory_space<vmem>>, vector<1x1x96xf32>
    %979 = vector.shape_cast %978 : vector<1x1x96xf32> to vector<1x96xf32>
    %cst_347 = arith.constant dense<0.000000e+00> : vector<16xf32>
    %980 = vector.multi_reduction <add>, %975, %cst_347 [1] : vector<16x96xf32> to vector<16xf32>
    %981 = vector.shape_cast %980 : vector<16xf32> to vector<16x1xf32>
    %cst_348 = arith.constant 9.600000e+01 : f32
    %982 = vector.broadcast %cst_348 : f32 to vector<16x1xf32>
    %983 = arith.divf %981, %982 : vector<16x1xf32>
    %984 = vector.broadcast %983 : vector<16x1xf32> to vector<16x96xf32>
    %985 = arith.subf %975, %984 : vector<16x96xf32>
    %986 = arith.mulf %985, %985 : vector<16x96xf32>
    %cst_349 = arith.constant dense<0.000000e+00> : vector<16xf32>
    %987 = vector.multi_reduction <add>, %986, %cst_349 [1] : vector<16x96xf32> to vector<16xf32>
    %988 = vector.shape_cast %987 : vector<16xf32> to vector<16x1xf32>
    %cst_350 = arith.constant 9.600000e+01 : f32
    %989 = vector.broadcast %cst_350 : f32 to vector<16x1xf32>
    %990 = arith.divf %988, %989 : vector<16x1xf32>
    %991 = vector.broadcast %983 : vector<16x1xf32> to vector<16x96xf32>
    %992 = arith.subf %975, %991 : vector<16x96xf32>
    %cst_351 = arith.constant 9.99999974E-6 : f32
    %993 = vector.broadcast %cst_351 : f32 to vector<16x1xf32>
    %994 = arith.addf %990, %993 : vector<16x1xf32>
    %995 = math.rsqrt %994 : vector<16x1xf32>
    %996 = vector.broadcast %995 : vector<16x1xf32> to vector<16x96xf32>
    %997 = arith.mulf %992, %996 : vector<16x96xf32>
    %998 = vector.broadcast %977 : vector<1x96xf32> to vector<16x96xf32>
    %999 = arith.mulf %997, %998 : vector<16x96xf32>
    %1000 = vector.broadcast %979 : vector<1x96xf32> to vector<16x96xf32>
    %1001 = arith.addf %999, %1000 : vector<16x96xf32>
    %c4_352 = arith.constant 4 : index
    %c0_353 = arith.constant 0 : index
    %c0_354 = arith.constant 0 : index
    %1002 = vector.load %arg8[%c4_352, %c0_353, %c0_354] : memref<6x96x288xbf16, #tpu.memory_space<vmem>>, vector<1x96x288xbf16>
    %1003 = vector.shape_cast %1002 : vector<1x96x288xbf16> to vector<96x288xbf16>
    %c4_355 = arith.constant 4 : index
    %c0_356 = arith.constant 0 : index
    %c0_357 = arith.constant 0 : index
    %1004 = vector.load %arg9[%c4_355, %c0_356, %c0_357] : memref<6x96x96xbf16, #tpu.memory_space<vmem>>, vector<1x96x96xbf16>
    %1005 = vector.shape_cast %1004 : vector<1x96x96xbf16> to vector<96x96xbf16>
    %c4_358 = arith.constant 4 : index
    %c0_359 = arith.constant 0 : index
    %c0_360 = arith.constant 0 : index
    %1006 = vector.load %arg10[%c4_358, %c0_359, %c0_360] : memref<6x1x96xf32, #tpu.memory_space<vmem>>, vector<1x1x96xf32>
    %1007 = vector.shape_cast %1006 : vector<1x1x96xf32> to vector<1x96xf32>
    %1008 = arith.truncf %1001 : vector<16x96xf32> to vector<16x96xbf16>
    %cst_361 = arith.constant dense<0.000000e+00> : vector<16x288xf32>
    %1009 = tpu.matmul %1008, %1003, %cst_361 {dimension_numbers = #tpu.dot_dimension_numbers<[1], [0], [0], [1], [0, 0, 1, 1], [], []>} : vector<16x96xbf16>, vector<96x288xbf16>, vector<16x288xf32> -> vector<16x288xf32>
    %1010 = vector.extract_strided_slice %1009 {offsets = [0, 0], sizes = [16, 16], strides = [1, 1]} : vector<16x288xf32> to vector<16x16xf32>
    %cst_362 = arith.constant 0.102062076 : f32
    %1011 = vector.broadcast %cst_362 : f32 to vector<16x16xf32>
    %1012 = arith.mulf %1010, %1011 : vector<16x16xf32>
    %1013 = arith.truncf %1012 : vector<16x16xf32> to vector<16x16xbf16>
    %1014 = vector.extract_strided_slice %1009 {offsets = [0, 96], sizes = [16, 16], strides = [1, 1]} : vector<16x288xf32> to vector<16x16xf32>
    %1015 = arith.truncf %1014 : vector<16x16xf32> to vector<16x16xbf16>
    %1016 = vector.extract_strided_slice %1009 {offsets = [0, 192], sizes = [16, 16], strides = [1, 1]} : vector<16x288xf32> to vector<16x16xf32>
    %1017 = arith.truncf %1016 : vector<16x16xf32> to vector<16x16xbf16>
    %cst_363 = arith.constant dense<0.000000e+00> : vector<16x16xf32>
    %1018 = tpu.matmul %1013, %1015, %cst_363 {dimension_numbers = #tpu.dot_dimension_numbers<[1], [1], [0], [0], [0, 0, 1, 0], [], []>} : vector<16x16xbf16>, vector<16x16xbf16>, vector<16x16xf32> -> vector<16x16xf32>
    %1019 = arith.addf %1018, %9 : vector<16x16xf32>
    %cst_364 = arith.constant dense<0xFF800000> : vector<16xf32>
    %1020 = vector.multi_reduction <maximumf>, %1019, %cst_364 [1] : vector<16x16xf32> to vector<16xf32>
    %1021 = vector.shape_cast %1020 : vector<16xf32> to vector<16x1xf32>
    %1022 = vector.broadcast %1021 : vector<16x1xf32> to vector<16x16xf32>
    %1023 = arith.subf %1019, %1022 : vector<16x16xf32>
    %1024 = math.exp %1023 : vector<16x16xf32>
    %cst_365 = arith.constant dense<0.000000e+00> : vector<16xf32>
    %1025 = vector.multi_reduction <add>, %1024, %cst_365 [1] : vector<16x16xf32> to vector<16xf32>
    %1026 = vector.shape_cast %1025 : vector<16xf32> to vector<16x1xf32>
    %1027 = tpu.reciprocal %1026 {approx = true} : vector<16x1xf32> -> vector<16x1xf32>
    %1028 = arith.truncf %1024 : vector<16x16xf32> to vector<16x16xbf16>
    %cst_366 = arith.constant dense<0.000000e+00> : vector<16x16xf32>
    %1029 = tpu.matmul %1028, %1017, %cst_366 {dimension_numbers = #tpu.dot_dimension_numbers<[1], [0], [0], [1], [0, 0, 1, 1], [], []>} : vector<16x16xbf16>, vector<16x16xbf16>, vector<16x16xf32> -> vector<16x16xf32>
    %1030 = vector.broadcast %1027 : vector<16x1xf32> to vector<16x16xf32>
    %1031 = arith.mulf %1029, %1030 : vector<16x16xf32>
    %1032 = vector.extract_strided_slice %1009 {offsets = [0, 16], sizes = [16, 16], strides = [1, 1]} : vector<16x288xf32> to vector<16x16xf32>
    %cst_367 = arith.constant 0.102062076 : f32
    %1033 = vector.broadcast %cst_367 : f32 to vector<16x16xf32>
    %1034 = arith.mulf %1032, %1033 : vector<16x16xf32>
    %1035 = arith.truncf %1034 : vector<16x16xf32> to vector<16x16xbf16>
    %1036 = vector.extract_strided_slice %1009 {offsets = [0, 112], sizes = [16, 16], strides = [1, 1]} : vector<16x288xf32> to vector<16x16xf32>
    %1037 = arith.truncf %1036 : vector<16x16xf32> to vector<16x16xbf16>
    %1038 = vector.extract_strided_slice %1009 {offsets = [0, 208], sizes = [16, 16], strides = [1, 1]} : vector<16x288xf32> to vector<16x16xf32>
    %1039 = arith.truncf %1038 : vector<16x16xf32> to vector<16x16xbf16>
    %cst_368 = arith.constant dense<0.000000e+00> : vector<16x16xf32>
    %1040 = tpu.matmul %1035, %1037, %cst_368 {dimension_numbers = #tpu.dot_dimension_numbers<[1], [1], [0], [0], [0, 0, 1, 0], [], []>} : vector<16x16xbf16>, vector<16x16xbf16>, vector<16x16xf32> -> vector<16x16xf32>
    %1041 = arith.addf %1040, %9 : vector<16x16xf32>
    %cst_369 = arith.constant dense<0xFF800000> : vector<16xf32>
    %1042 = vector.multi_reduction <maximumf>, %1041, %cst_369 [1] : vector<16x16xf32> to vector<16xf32>
    %1043 = vector.shape_cast %1042 : vector<16xf32> to vector<16x1xf32>
    %1044 = vector.broadcast %1043 : vector<16x1xf32> to vector<16x16xf32>
    %1045 = arith.subf %1041, %1044 : vector<16x16xf32>
    %1046 = math.exp %1045 : vector<16x16xf32>
    %cst_370 = arith.constant dense<0.000000e+00> : vector<16xf32>
    %1047 = vector.multi_reduction <add>, %1046, %cst_370 [1] : vector<16x16xf32> to vector<16xf32>
    %1048 = vector.shape_cast %1047 : vector<16xf32> to vector<16x1xf32>
    %1049 = tpu.reciprocal %1048 {approx = true} : vector<16x1xf32> -> vector<16x1xf32>
    %1050 = arith.truncf %1046 : vector<16x16xf32> to vector<16x16xbf16>
    %cst_371 = arith.constant dense<0.000000e+00> : vector<16x16xf32>
    %1051 = tpu.matmul %1050, %1039, %cst_371 {dimension_numbers = #tpu.dot_dimension_numbers<[1], [0], [0], [1], [0, 0, 1, 1], [], []>} : vector<16x16xbf16>, vector<16x16xbf16>, vector<16x16xf32> -> vector<16x16xf32>
    %1052 = vector.broadcast %1049 : vector<16x1xf32> to vector<16x16xf32>
    %1053 = arith.mulf %1051, %1052 : vector<16x16xf32>
    %1054 = vector.extract_strided_slice %1009 {offsets = [0, 32], sizes = [16, 16], strides = [1, 1]} : vector<16x288xf32> to vector<16x16xf32>
    %cst_372 = arith.constant 0.102062076 : f32
    %1055 = vector.broadcast %cst_372 : f32 to vector<16x16xf32>
    %1056 = arith.mulf %1054, %1055 : vector<16x16xf32>
    %1057 = arith.truncf %1056 : vector<16x16xf32> to vector<16x16xbf16>
    %1058 = vector.extract_strided_slice %1009 {offsets = [0, 128], sizes = [16, 16], strides = [1, 1]} : vector<16x288xf32> to vector<16x16xf32>
    %1059 = arith.truncf %1058 : vector<16x16xf32> to vector<16x16xbf16>
    %1060 = vector.extract_strided_slice %1009 {offsets = [0, 224], sizes = [16, 16], strides = [1, 1]} : vector<16x288xf32> to vector<16x16xf32>
    %1061 = arith.truncf %1060 : vector<16x16xf32> to vector<16x16xbf16>
    %cst_373 = arith.constant dense<0.000000e+00> : vector<16x16xf32>
    %1062 = tpu.matmul %1057, %1059, %cst_373 {dimension_numbers = #tpu.dot_dimension_numbers<[1], [1], [0], [0], [0, 0, 1, 0], [], []>} : vector<16x16xbf16>, vector<16x16xbf16>, vector<16x16xf32> -> vector<16x16xf32>
    %1063 = arith.addf %1062, %9 : vector<16x16xf32>
    %cst_374 = arith.constant dense<0xFF800000> : vector<16xf32>
    %1064 = vector.multi_reduction <maximumf>, %1063, %cst_374 [1] : vector<16x16xf32> to vector<16xf32>
    %1065 = vector.shape_cast %1064 : vector<16xf32> to vector<16x1xf32>
    %1066 = vector.broadcast %1065 : vector<16x1xf32> to vector<16x16xf32>
    %1067 = arith.subf %1063, %1066 : vector<16x16xf32>
    %1068 = math.exp %1067 : vector<16x16xf32>
    %cst_375 = arith.constant dense<0.000000e+00> : vector<16xf32>
    %1069 = vector.multi_reduction <add>, %1068, %cst_375 [1] : vector<16x16xf32> to vector<16xf32>
    %1070 = vector.shape_cast %1069 : vector<16xf32> to vector<16x1xf32>
    %1071 = tpu.reciprocal %1070 {approx = true} : vector<16x1xf32> -> vector<16x1xf32>
    %1072 = arith.truncf %1068 : vector<16x16xf32> to vector<16x16xbf16>
    %cst_376 = arith.constant dense<0.000000e+00> : vector<16x16xf32>
    %1073 = tpu.matmul %1072, %1061, %cst_376 {dimension_numbers = #tpu.dot_dimension_numbers<[1], [0], [0], [1], [0, 0, 1, 1], [], []>} : vector<16x16xbf16>, vector<16x16xbf16>, vector<16x16xf32> -> vector<16x16xf32>
    %1074 = vector.broadcast %1071 : vector<16x1xf32> to vector<16x16xf32>
    %1075 = arith.mulf %1073, %1074 : vector<16x16xf32>
    %1076 = vector.extract_strided_slice %1009 {offsets = [0, 48], sizes = [16, 16], strides = [1, 1]} : vector<16x288xf32> to vector<16x16xf32>
    %cst_377 = arith.constant 0.102062076 : f32
    %1077 = vector.broadcast %cst_377 : f32 to vector<16x16xf32>
    %1078 = arith.mulf %1076, %1077 : vector<16x16xf32>
    %1079 = arith.truncf %1078 : vector<16x16xf32> to vector<16x16xbf16>
    %1080 = vector.extract_strided_slice %1009 {offsets = [0, 144], sizes = [16, 16], strides = [1, 1]} : vector<16x288xf32> to vector<16x16xf32>
    %1081 = arith.truncf %1080 : vector<16x16xf32> to vector<16x16xbf16>
    %1082 = vector.extract_strided_slice %1009 {offsets = [0, 240], sizes = [16, 16], strides = [1, 1]} : vector<16x288xf32> to vector<16x16xf32>
    %1083 = arith.truncf %1082 : vector<16x16xf32> to vector<16x16xbf16>
    %cst_378 = arith.constant dense<0.000000e+00> : vector<16x16xf32>
    %1084 = tpu.matmul %1079, %1081, %cst_378 {dimension_numbers = #tpu.dot_dimension_numbers<[1], [1], [0], [0], [0, 0, 1, 0], [], []>} : vector<16x16xbf16>, vector<16x16xbf16>, vector<16x16xf32> -> vector<16x16xf32>
    %1085 = arith.addf %1084, %9 : vector<16x16xf32>
    %cst_379 = arith.constant dense<0xFF800000> : vector<16xf32>
    %1086 = vector.multi_reduction <maximumf>, %1085, %cst_379 [1] : vector<16x16xf32> to vector<16xf32>
    %1087 = vector.shape_cast %1086 : vector<16xf32> to vector<16x1xf32>
    %1088 = vector.broadcast %1087 : vector<16x1xf32> to vector<16x16xf32>
    %1089 = arith.subf %1085, %1088 : vector<16x16xf32>
    %1090 = math.exp %1089 : vector<16x16xf32>
    %cst_380 = arith.constant dense<0.000000e+00> : vector<16xf32>
    %1091 = vector.multi_reduction <add>, %1090, %cst_380 [1] : vector<16x16xf32> to vector<16xf32>
    %1092 = vector.shape_cast %1091 : vector<16xf32> to vector<16x1xf32>
    %1093 = tpu.reciprocal %1092 {approx = true} : vector<16x1xf32> -> vector<16x1xf32>
    %1094 = arith.truncf %1090 : vector<16x16xf32> to vector<16x16xbf16>
    %cst_381 = arith.constant dense<0.000000e+00> : vector<16x16xf32>
    %1095 = tpu.matmul %1094, %1083, %cst_381 {dimension_numbers = #tpu.dot_dimension_numbers<[1], [0], [0], [1], [0, 0, 1, 1], [], []>} : vector<16x16xbf16>, vector<16x16xbf16>, vector<16x16xf32> -> vector<16x16xf32>
    %1096 = vector.broadcast %1093 : vector<16x1xf32> to vector<16x16xf32>
    %1097 = arith.mulf %1095, %1096 : vector<16x16xf32>
    %1098 = vector.extract_strided_slice %1009 {offsets = [0, 64], sizes = [16, 16], strides = [1, 1]} : vector<16x288xf32> to vector<16x16xf32>
    %cst_382 = arith.constant 0.102062076 : f32
    %1099 = vector.broadcast %cst_382 : f32 to vector<16x16xf32>
    %1100 = arith.mulf %1098, %1099 : vector<16x16xf32>
    %1101 = arith.truncf %1100 : vector<16x16xf32> to vector<16x16xbf16>
    %1102 = vector.extract_strided_slice %1009 {offsets = [0, 160], sizes = [16, 16], strides = [1, 1]} : vector<16x288xf32> to vector<16x16xf32>
    %1103 = arith.truncf %1102 : vector<16x16xf32> to vector<16x16xbf16>
    %1104 = vector.extract_strided_slice %1009 {offsets = [0, 256], sizes = [16, 16], strides = [1, 1]} : vector<16x288xf32> to vector<16x16xf32>
    %1105 = arith.truncf %1104 : vector<16x16xf32> to vector<16x16xbf16>
    %cst_383 = arith.constant dense<0.000000e+00> : vector<16x16xf32>
    %1106 = tpu.matmul %1101, %1103, %cst_383 {dimension_numbers = #tpu.dot_dimension_numbers<[1], [1], [0], [0], [0, 0, 1, 0], [], []>} : vector<16x16xbf16>, vector<16x16xbf16>, vector<16x16xf32> -> vector<16x16xf32>
    %1107 = arith.addf %1106, %9 : vector<16x16xf32>
    %cst_384 = arith.constant dense<0xFF800000> : vector<16xf32>
    %1108 = vector.multi_reduction <maximumf>, %1107, %cst_384 [1] : vector<16x16xf32> to vector<16xf32>
    %1109 = vector.shape_cast %1108 : vector<16xf32> to vector<16x1xf32>
    %1110 = vector.broadcast %1109 : vector<16x1xf32> to vector<16x16xf32>
    %1111 = arith.subf %1107, %1110 : vector<16x16xf32>
    %1112 = math.exp %1111 : vector<16x16xf32>
    %cst_385 = arith.constant dense<0.000000e+00> : vector<16xf32>
    %1113 = vector.multi_reduction <add>, %1112, %cst_385 [1] : vector<16x16xf32> to vector<16xf32>
    %1114 = vector.shape_cast %1113 : vector<16xf32> to vector<16x1xf32>
    %1115 = tpu.reciprocal %1114 {approx = true} : vector<16x1xf32> -> vector<16x1xf32>
    %1116 = arith.truncf %1112 : vector<16x16xf32> to vector<16x16xbf16>
    %cst_386 = arith.constant dense<0.000000e+00> : vector<16x16xf32>
    %1117 = tpu.matmul %1116, %1105, %cst_386 {dimension_numbers = #tpu.dot_dimension_numbers<[1], [0], [0], [1], [0, 0, 1, 1], [], []>} : vector<16x16xbf16>, vector<16x16xbf16>, vector<16x16xf32> -> vector<16x16xf32>
    %1118 = vector.broadcast %1115 : vector<16x1xf32> to vector<16x16xf32>
    %1119 = arith.mulf %1117, %1118 : vector<16x16xf32>
    %1120 = vector.extract_strided_slice %1009 {offsets = [0, 80], sizes = [16, 16], strides = [1, 1]} : vector<16x288xf32> to vector<16x16xf32>
    %cst_387 = arith.constant 0.102062076 : f32
    %1121 = vector.broadcast %cst_387 : f32 to vector<16x16xf32>
    %1122 = arith.mulf %1120, %1121 : vector<16x16xf32>
    %1123 = arith.truncf %1122 : vector<16x16xf32> to vector<16x16xbf16>
    %1124 = vector.extract_strided_slice %1009 {offsets = [0, 176], sizes = [16, 16], strides = [1, 1]} : vector<16x288xf32> to vector<16x16xf32>
    %1125 = arith.truncf %1124 : vector<16x16xf32> to vector<16x16xbf16>
    %1126 = vector.extract_strided_slice %1009 {offsets = [0, 272], sizes = [16, 16], strides = [1, 1]} : vector<16x288xf32> to vector<16x16xf32>
    %1127 = arith.truncf %1126 : vector<16x16xf32> to vector<16x16xbf16>
    %cst_388 = arith.constant dense<0.000000e+00> : vector<16x16xf32>
    %1128 = tpu.matmul %1123, %1125, %cst_388 {dimension_numbers = #tpu.dot_dimension_numbers<[1], [1], [0], [0], [0, 0, 1, 0], [], []>} : vector<16x16xbf16>, vector<16x16xbf16>, vector<16x16xf32> -> vector<16x16xf32>
    %1129 = arith.addf %1128, %9 : vector<16x16xf32>
    %cst_389 = arith.constant dense<0xFF800000> : vector<16xf32>
    %1130 = vector.multi_reduction <maximumf>, %1129, %cst_389 [1] : vector<16x16xf32> to vector<16xf32>
    %1131 = vector.shape_cast %1130 : vector<16xf32> to vector<16x1xf32>
    %1132 = vector.broadcast %1131 : vector<16x1xf32> to vector<16x16xf32>
    %1133 = arith.subf %1129, %1132 : vector<16x16xf32>
    %1134 = math.exp %1133 : vector<16x16xf32>
    %cst_390 = arith.constant dense<0.000000e+00> : vector<16xf32>
    %1135 = vector.multi_reduction <add>, %1134, %cst_390 [1] : vector<16x16xf32> to vector<16xf32>
    %1136 = vector.shape_cast %1135 : vector<16xf32> to vector<16x1xf32>
    %1137 = tpu.reciprocal %1136 {approx = true} : vector<16x1xf32> -> vector<16x1xf32>
    %1138 = arith.truncf %1134 : vector<16x16xf32> to vector<16x16xbf16>
    %cst_391 = arith.constant dense<0.000000e+00> : vector<16x16xf32>
    %1139 = tpu.matmul %1138, %1127, %cst_391 {dimension_numbers = #tpu.dot_dimension_numbers<[1], [0], [0], [1], [0, 0, 1, 1], [], []>} : vector<16x16xbf16>, vector<16x16xbf16>, vector<16x16xf32> -> vector<16x16xf32>
    %1140 = vector.broadcast %1137 : vector<16x1xf32> to vector<16x16xf32>
    %1141 = arith.mulf %1139, %1140 : vector<16x16xf32>
    %1142 = tpu.concatenate %1031, %1053, %1075, %1097, %1119, %1141 in 1 : vector<16x16xf32>, vector<16x16xf32>, vector<16x16xf32>, vector<16x16xf32>, vector<16x16xf32>, vector<16x16xf32> -> vector<16x96xf32>
    %1143 = arith.truncf %1142 : vector<16x96xf32> to vector<16x96xbf16>
    %cst_392 = arith.constant dense<0.000000e+00> : vector<16x96xf32>
    %1144 = tpu.matmul %1143, %1005, %cst_392 {dimension_numbers = #tpu.dot_dimension_numbers<[1], [0], [0], [1], [0, 0, 1, 1], [], []>} : vector<16x96xbf16>, vector<96x96xbf16>, vector<16x96xf32> -> vector<16x96xf32>
    %1145 = vector.broadcast %1007 : vector<1x96xf32> to vector<16x96xf32>
    %1146 = arith.addf %1144, %1145 : vector<16x96xf32>
    %1147 = arith.addf %975, %1146 : vector<16x96xf32>
    %c4_393 = arith.constant 4 : index
    %c0_394 = arith.constant 0 : index
    %c0_395 = arith.constant 0 : index
    %1148 = vector.load %arg11[%c4_393, %c0_394, %c0_395] : memref<6x1x96xf32, #tpu.memory_space<vmem>>, vector<1x1x96xf32>
    %1149 = vector.shape_cast %1148 : vector<1x1x96xf32> to vector<1x96xf32>
    %c4_396 = arith.constant 4 : index
    %c0_397 = arith.constant 0 : index
    %c0_398 = arith.constant 0 : index
    %1150 = vector.load %arg12[%c4_396, %c0_397, %c0_398] : memref<6x1x96xf32, #tpu.memory_space<vmem>>, vector<1x1x96xf32>
    %1151 = vector.shape_cast %1150 : vector<1x1x96xf32> to vector<1x96xf32>
    %cst_399 = arith.constant dense<0.000000e+00> : vector<16xf32>
    %1152 = vector.multi_reduction <add>, %1147, %cst_399 [1] : vector<16x96xf32> to vector<16xf32>
    %1153 = vector.shape_cast %1152 : vector<16xf32> to vector<16x1xf32>
    %cst_400 = arith.constant 9.600000e+01 : f32
    %1154 = vector.broadcast %cst_400 : f32 to vector<16x1xf32>
    %1155 = arith.divf %1153, %1154 : vector<16x1xf32>
    %1156 = vector.broadcast %1155 : vector<16x1xf32> to vector<16x96xf32>
    %1157 = arith.subf %1147, %1156 : vector<16x96xf32>
    %1158 = arith.mulf %1157, %1157 : vector<16x96xf32>
    %cst_401 = arith.constant dense<0.000000e+00> : vector<16xf32>
    %1159 = vector.multi_reduction <add>, %1158, %cst_401 [1] : vector<16x96xf32> to vector<16xf32>
    %1160 = vector.shape_cast %1159 : vector<16xf32> to vector<16x1xf32>
    %cst_402 = arith.constant 9.600000e+01 : f32
    %1161 = vector.broadcast %cst_402 : f32 to vector<16x1xf32>
    %1162 = arith.divf %1160, %1161 : vector<16x1xf32>
    %1163 = vector.broadcast %1155 : vector<16x1xf32> to vector<16x96xf32>
    %1164 = arith.subf %1147, %1163 : vector<16x96xf32>
    %cst_403 = arith.constant 9.99999974E-6 : f32
    %1165 = vector.broadcast %cst_403 : f32 to vector<16x1xf32>
    %1166 = arith.addf %1162, %1165 : vector<16x1xf32>
    %1167 = math.rsqrt %1166 : vector<16x1xf32>
    %1168 = vector.broadcast %1167 : vector<16x1xf32> to vector<16x96xf32>
    %1169 = arith.mulf %1164, %1168 : vector<16x96xf32>
    %1170 = vector.broadcast %1149 : vector<1x96xf32> to vector<16x96xf32>
    %1171 = arith.mulf %1169, %1170 : vector<16x96xf32>
    %1172 = vector.broadcast %1151 : vector<1x96xf32> to vector<16x96xf32>
    %1173 = arith.addf %1171, %1172 : vector<16x96xf32>
    %1174 = arith.truncf %1173 : vector<16x96xf32> to vector<16x96xbf16>
    %c4_404 = arith.constant 4 : index
    %c0_405 = arith.constant 0 : index
    %c0_406 = arith.constant 0 : index
    %1175 = vector.load %arg13[%c4_404, %c0_405, %c0_406] : memref<6x96x384xbf16, #tpu.memory_space<vmem>>, vector<1x96x384xbf16>
    %1176 = vector.shape_cast %1175 : vector<1x96x384xbf16> to vector<96x384xbf16>
    %cst_407 = arith.constant dense<0.000000e+00> : vector<16x384xf32>
    %1177 = tpu.matmul %1174, %1176, %cst_407 {dimension_numbers = #tpu.dot_dimension_numbers<[1], [0], [0], [1], [0, 0, 1, 1], [], []>} : vector<16x96xbf16>, vector<96x384xbf16>, vector<16x384xf32> -> vector<16x384xf32>
    %c4_408 = arith.constant 4 : index
    %c0_409 = arith.constant 0 : index
    %c0_410 = arith.constant 0 : index
    %1178 = vector.load %arg14[%c4_408, %c0_409, %c0_410] : memref<6x1x384xf32, #tpu.memory_space<vmem>>, vector<1x1x384xf32>
    %1179 = vector.shape_cast %1178 : vector<1x1x384xf32> to vector<1x384xf32>
    %1180 = vector.broadcast %1179 : vector<1x384xf32> to vector<16x384xf32>
    %1181 = arith.addf %1177, %1180 : vector<16x384xf32>
    %cst_411 = arith.constant 0.000000e+00 : f32
    %1182 = vector.broadcast %cst_411 : f32 to vector<16x384xf32>
    %1183 = arith.maximumf %1181, %1182 : vector<16x384xf32>
    %1184 = arith.truncf %1183 : vector<16x384xf32> to vector<16x384xbf16>
    %c4_412 = arith.constant 4 : index
    %c0_413 = arith.constant 0 : index
    %c0_414 = arith.constant 0 : index
    %1185 = vector.load %arg15[%c4_412, %c0_413, %c0_414] : memref<6x384x96xbf16, #tpu.memory_space<vmem>>, vector<1x384x96xbf16>
    %1186 = vector.shape_cast %1185 : vector<1x384x96xbf16> to vector<384x96xbf16>
    %cst_415 = arith.constant dense<0.000000e+00> : vector<16x96xf32>
    %1187 = tpu.matmul %1184, %1186, %cst_415 {dimension_numbers = #tpu.dot_dimension_numbers<[1], [0], [0], [1], [0, 0, 1, 1], [], []>} : vector<16x384xbf16>, vector<384x96xbf16>, vector<16x96xf32> -> vector<16x96xf32>
    %c4_416 = arith.constant 4 : index
    %c0_417 = arith.constant 0 : index
    %c0_418 = arith.constant 0 : index
    %1188 = vector.load %arg16[%c4_416, %c0_417, %c0_418] : memref<6x1x96xf32, #tpu.memory_space<vmem>>, vector<1x1x96xf32>
    %1189 = vector.shape_cast %1188 : vector<1x1x96xf32> to vector<1x96xf32>
    %1190 = vector.broadcast %1189 : vector<1x96xf32> to vector<16x96xf32>
    %1191 = arith.addf %1187, %1190 : vector<16x96xf32>
    %1192 = arith.addf %1147, %1191 : vector<16x96xf32>
    %c5 = arith.constant 5 : index
    %c0_419 = arith.constant 0 : index
    %c0_420 = arith.constant 0 : index
    %1193 = vector.load %arg6[%c5, %c0_419, %c0_420] : memref<6x1x96xf32, #tpu.memory_space<vmem>>, vector<1x1x96xf32>
    %1194 = vector.shape_cast %1193 : vector<1x1x96xf32> to vector<1x96xf32>
    %c5_421 = arith.constant 5 : index
    %c0_422 = arith.constant 0 : index
    %c0_423 = arith.constant 0 : index
    %1195 = vector.load %arg7[%c5_421, %c0_422, %c0_423] : memref<6x1x96xf32, #tpu.memory_space<vmem>>, vector<1x1x96xf32>
    %1196 = vector.shape_cast %1195 : vector<1x1x96xf32> to vector<1x96xf32>
    %cst_424 = arith.constant dense<0.000000e+00> : vector<16xf32>
    %1197 = vector.multi_reduction <add>, %1192, %cst_424 [1] : vector<16x96xf32> to vector<16xf32>
    %1198 = vector.shape_cast %1197 : vector<16xf32> to vector<16x1xf32>
    %cst_425 = arith.constant 9.600000e+01 : f32
    %1199 = vector.broadcast %cst_425 : f32 to vector<16x1xf32>
    %1200 = arith.divf %1198, %1199 : vector<16x1xf32>
    %1201 = vector.broadcast %1200 : vector<16x1xf32> to vector<16x96xf32>
    %1202 = arith.subf %1192, %1201 : vector<16x96xf32>
    %1203 = arith.mulf %1202, %1202 : vector<16x96xf32>
    %cst_426 = arith.constant dense<0.000000e+00> : vector<16xf32>
    %1204 = vector.multi_reduction <add>, %1203, %cst_426 [1] : vector<16x96xf32> to vector<16xf32>
    %1205 = vector.shape_cast %1204 : vector<16xf32> to vector<16x1xf32>
    %cst_427 = arith.constant 9.600000e+01 : f32
    %1206 = vector.broadcast %cst_427 : f32 to vector<16x1xf32>
    %1207 = arith.divf %1205, %1206 : vector<16x1xf32>
    %1208 = vector.broadcast %1200 : vector<16x1xf32> to vector<16x96xf32>
    %1209 = arith.subf %1192, %1208 : vector<16x96xf32>
    %cst_428 = arith.constant 9.99999974E-6 : f32
    %1210 = vector.broadcast %cst_428 : f32 to vector<16x1xf32>
    %1211 = arith.addf %1207, %1210 : vector<16x1xf32>
    %1212 = math.rsqrt %1211 : vector<16x1xf32>
    %1213 = vector.broadcast %1212 : vector<16x1xf32> to vector<16x96xf32>
    %1214 = arith.mulf %1209, %1213 : vector<16x96xf32>
    %1215 = vector.broadcast %1194 : vector<1x96xf32> to vector<16x96xf32>
    %1216 = arith.mulf %1214, %1215 : vector<16x96xf32>
    %1217 = vector.broadcast %1196 : vector<1x96xf32> to vector<16x96xf32>
    %1218 = arith.addf %1216, %1217 : vector<16x96xf32>
    %c5_429 = arith.constant 5 : index
    %c0_430 = arith.constant 0 : index
    %c0_431 = arith.constant 0 : index
    %1219 = vector.load %arg8[%c5_429, %c0_430, %c0_431] : memref<6x96x288xbf16, #tpu.memory_space<vmem>>, vector<1x96x288xbf16>
    %1220 = vector.shape_cast %1219 : vector<1x96x288xbf16> to vector<96x288xbf16>
    %c5_432 = arith.constant 5 : index
    %c0_433 = arith.constant 0 : index
    %c0_434 = arith.constant 0 : index
    %1221 = vector.load %arg9[%c5_432, %c0_433, %c0_434] : memref<6x96x96xbf16, #tpu.memory_space<vmem>>, vector<1x96x96xbf16>
    %1222 = vector.shape_cast %1221 : vector<1x96x96xbf16> to vector<96x96xbf16>
    %c5_435 = arith.constant 5 : index
    %c0_436 = arith.constant 0 : index
    %c0_437 = arith.constant 0 : index
    %1223 = vector.load %arg10[%c5_435, %c0_436, %c0_437] : memref<6x1x96xf32, #tpu.memory_space<vmem>>, vector<1x1x96xf32>
    %1224 = vector.shape_cast %1223 : vector<1x1x96xf32> to vector<1x96xf32>
    %1225 = arith.truncf %1218 : vector<16x96xf32> to vector<16x96xbf16>
    %cst_438 = arith.constant dense<0.000000e+00> : vector<16x288xf32>
    %1226 = tpu.matmul %1225, %1220, %cst_438 {dimension_numbers = #tpu.dot_dimension_numbers<[1], [0], [0], [1], [0, 0, 1, 1], [], []>} : vector<16x96xbf16>, vector<96x288xbf16>, vector<16x288xf32> -> vector<16x288xf32>
    %1227 = vector.extract_strided_slice %1226 {offsets = [0, 0], sizes = [16, 16], strides = [1, 1]} : vector<16x288xf32> to vector<16x16xf32>
    %cst_439 = arith.constant 0.102062076 : f32
    %1228 = vector.broadcast %cst_439 : f32 to vector<16x16xf32>
    %1229 = arith.mulf %1227, %1228 : vector<16x16xf32>
    %1230 = arith.truncf %1229 : vector<16x16xf32> to vector<16x16xbf16>
    %1231 = vector.extract_strided_slice %1226 {offsets = [0, 96], sizes = [16, 16], strides = [1, 1]} : vector<16x288xf32> to vector<16x16xf32>
    %1232 = arith.truncf %1231 : vector<16x16xf32> to vector<16x16xbf16>
    %1233 = vector.extract_strided_slice %1226 {offsets = [0, 192], sizes = [16, 16], strides = [1, 1]} : vector<16x288xf32> to vector<16x16xf32>
    %1234 = arith.truncf %1233 : vector<16x16xf32> to vector<16x16xbf16>
    %cst_440 = arith.constant dense<0.000000e+00> : vector<16x16xf32>
    %1235 = tpu.matmul %1230, %1232, %cst_440 {dimension_numbers = #tpu.dot_dimension_numbers<[1], [1], [0], [0], [0, 0, 1, 0], [], []>} : vector<16x16xbf16>, vector<16x16xbf16>, vector<16x16xf32> -> vector<16x16xf32>
    %1236 = arith.addf %1235, %9 : vector<16x16xf32>
    %cst_441 = arith.constant dense<0xFF800000> : vector<16xf32>
    %1237 = vector.multi_reduction <maximumf>, %1236, %cst_441 [1] : vector<16x16xf32> to vector<16xf32>
    %1238 = vector.shape_cast %1237 : vector<16xf32> to vector<16x1xf32>
    %1239 = vector.broadcast %1238 : vector<16x1xf32> to vector<16x16xf32>
    %1240 = arith.subf %1236, %1239 : vector<16x16xf32>
    %1241 = math.exp %1240 : vector<16x16xf32>
    %cst_442 = arith.constant dense<0.000000e+00> : vector<16xf32>
    %1242 = vector.multi_reduction <add>, %1241, %cst_442 [1] : vector<16x16xf32> to vector<16xf32>
    %1243 = vector.shape_cast %1242 : vector<16xf32> to vector<16x1xf32>
    %1244 = tpu.reciprocal %1243 {approx = true} : vector<16x1xf32> -> vector<16x1xf32>
    %1245 = arith.truncf %1241 : vector<16x16xf32> to vector<16x16xbf16>
    %cst_443 = arith.constant dense<0.000000e+00> : vector<16x16xf32>
    %1246 = tpu.matmul %1245, %1234, %cst_443 {dimension_numbers = #tpu.dot_dimension_numbers<[1], [0], [0], [1], [0, 0, 1, 1], [], []>} : vector<16x16xbf16>, vector<16x16xbf16>, vector<16x16xf32> -> vector<16x16xf32>
    %1247 = vector.broadcast %1244 : vector<16x1xf32> to vector<16x16xf32>
    %1248 = arith.mulf %1246, %1247 : vector<16x16xf32>
    %1249 = vector.extract_strided_slice %1226 {offsets = [0, 16], sizes = [16, 16], strides = [1, 1]} : vector<16x288xf32> to vector<16x16xf32>
    %cst_444 = arith.constant 0.102062076 : f32
    %1250 = vector.broadcast %cst_444 : f32 to vector<16x16xf32>
    %1251 = arith.mulf %1249, %1250 : vector<16x16xf32>
    %1252 = arith.truncf %1251 : vector<16x16xf32> to vector<16x16xbf16>
    %1253 = vector.extract_strided_slice %1226 {offsets = [0, 112], sizes = [16, 16], strides = [1, 1]} : vector<16x288xf32> to vector<16x16xf32>
    %1254 = arith.truncf %1253 : vector<16x16xf32> to vector<16x16xbf16>
    %1255 = vector.extract_strided_slice %1226 {offsets = [0, 208], sizes = [16, 16], strides = [1, 1]} : vector<16x288xf32> to vector<16x16xf32>
    %1256 = arith.truncf %1255 : vector<16x16xf32> to vector<16x16xbf16>
    %cst_445 = arith.constant dense<0.000000e+00> : vector<16x16xf32>
    %1257 = tpu.matmul %1252, %1254, %cst_445 {dimension_numbers = #tpu.dot_dimension_numbers<[1], [1], [0], [0], [0, 0, 1, 0], [], []>} : vector<16x16xbf16>, vector<16x16xbf16>, vector<16x16xf32> -> vector<16x16xf32>
    %1258 = arith.addf %1257, %9 : vector<16x16xf32>
    %cst_446 = arith.constant dense<0xFF800000> : vector<16xf32>
    %1259 = vector.multi_reduction <maximumf>, %1258, %cst_446 [1] : vector<16x16xf32> to vector<16xf32>
    %1260 = vector.shape_cast %1259 : vector<16xf32> to vector<16x1xf32>
    %1261 = vector.broadcast %1260 : vector<16x1xf32> to vector<16x16xf32>
    %1262 = arith.subf %1258, %1261 : vector<16x16xf32>
    %1263 = math.exp %1262 : vector<16x16xf32>
    %cst_447 = arith.constant dense<0.000000e+00> : vector<16xf32>
    %1264 = vector.multi_reduction <add>, %1263, %cst_447 [1] : vector<16x16xf32> to vector<16xf32>
    %1265 = vector.shape_cast %1264 : vector<16xf32> to vector<16x1xf32>
    %1266 = tpu.reciprocal %1265 {approx = true} : vector<16x1xf32> -> vector<16x1xf32>
    %1267 = arith.truncf %1263 : vector<16x16xf32> to vector<16x16xbf16>
    %cst_448 = arith.constant dense<0.000000e+00> : vector<16x16xf32>
    %1268 = tpu.matmul %1267, %1256, %cst_448 {dimension_numbers = #tpu.dot_dimension_numbers<[1], [0], [0], [1], [0, 0, 1, 1], [], []>} : vector<16x16xbf16>, vector<16x16xbf16>, vector<16x16xf32> -> vector<16x16xf32>
    %1269 = vector.broadcast %1266 : vector<16x1xf32> to vector<16x16xf32>
    %1270 = arith.mulf %1268, %1269 : vector<16x16xf32>
    %1271 = vector.extract_strided_slice %1226 {offsets = [0, 32], sizes = [16, 16], strides = [1, 1]} : vector<16x288xf32> to vector<16x16xf32>
    %cst_449 = arith.constant 0.102062076 : f32
    %1272 = vector.broadcast %cst_449 : f32 to vector<16x16xf32>
    %1273 = arith.mulf %1271, %1272 : vector<16x16xf32>
    %1274 = arith.truncf %1273 : vector<16x16xf32> to vector<16x16xbf16>
    %1275 = vector.extract_strided_slice %1226 {offsets = [0, 128], sizes = [16, 16], strides = [1, 1]} : vector<16x288xf32> to vector<16x16xf32>
    %1276 = arith.truncf %1275 : vector<16x16xf32> to vector<16x16xbf16>
    %1277 = vector.extract_strided_slice %1226 {offsets = [0, 224], sizes = [16, 16], strides = [1, 1]} : vector<16x288xf32> to vector<16x16xf32>
    %1278 = arith.truncf %1277 : vector<16x16xf32> to vector<16x16xbf16>
    %cst_450 = arith.constant dense<0.000000e+00> : vector<16x16xf32>
    %1279 = tpu.matmul %1274, %1276, %cst_450 {dimension_numbers = #tpu.dot_dimension_numbers<[1], [1], [0], [0], [0, 0, 1, 0], [], []>} : vector<16x16xbf16>, vector<16x16xbf16>, vector<16x16xf32> -> vector<16x16xf32>
    %1280 = arith.addf %1279, %9 : vector<16x16xf32>
    %cst_451 = arith.constant dense<0xFF800000> : vector<16xf32>
    %1281 = vector.multi_reduction <maximumf>, %1280, %cst_451 [1] : vector<16x16xf32> to vector<16xf32>
    %1282 = vector.shape_cast %1281 : vector<16xf32> to vector<16x1xf32>
    %1283 = vector.broadcast %1282 : vector<16x1xf32> to vector<16x16xf32>
    %1284 = arith.subf %1280, %1283 : vector<16x16xf32>
    %1285 = math.exp %1284 : vector<16x16xf32>
    %cst_452 = arith.constant dense<0.000000e+00> : vector<16xf32>
    %1286 = vector.multi_reduction <add>, %1285, %cst_452 [1] : vector<16x16xf32> to vector<16xf32>
    %1287 = vector.shape_cast %1286 : vector<16xf32> to vector<16x1xf32>
    %1288 = tpu.reciprocal %1287 {approx = true} : vector<16x1xf32> -> vector<16x1xf32>
    %1289 = arith.truncf %1285 : vector<16x16xf32> to vector<16x16xbf16>
    %cst_453 = arith.constant dense<0.000000e+00> : vector<16x16xf32>
    %1290 = tpu.matmul %1289, %1278, %cst_453 {dimension_numbers = #tpu.dot_dimension_numbers<[1], [0], [0], [1], [0, 0, 1, 1], [], []>} : vector<16x16xbf16>, vector<16x16xbf16>, vector<16x16xf32> -> vector<16x16xf32>
    %1291 = vector.broadcast %1288 : vector<16x1xf32> to vector<16x16xf32>
    %1292 = arith.mulf %1290, %1291 : vector<16x16xf32>
    %1293 = vector.extract_strided_slice %1226 {offsets = [0, 48], sizes = [16, 16], strides = [1, 1]} : vector<16x288xf32> to vector<16x16xf32>
    %cst_454 = arith.constant 0.102062076 : f32
    %1294 = vector.broadcast %cst_454 : f32 to vector<16x16xf32>
    %1295 = arith.mulf %1293, %1294 : vector<16x16xf32>
    %1296 = arith.truncf %1295 : vector<16x16xf32> to vector<16x16xbf16>
    %1297 = vector.extract_strided_slice %1226 {offsets = [0, 144], sizes = [16, 16], strides = [1, 1]} : vector<16x288xf32> to vector<16x16xf32>
    %1298 = arith.truncf %1297 : vector<16x16xf32> to vector<16x16xbf16>
    %1299 = vector.extract_strided_slice %1226 {offsets = [0, 240], sizes = [16, 16], strides = [1, 1]} : vector<16x288xf32> to vector<16x16xf32>
    %1300 = arith.truncf %1299 : vector<16x16xf32> to vector<16x16xbf16>
    %cst_455 = arith.constant dense<0.000000e+00> : vector<16x16xf32>
    %1301 = tpu.matmul %1296, %1298, %cst_455 {dimension_numbers = #tpu.dot_dimension_numbers<[1], [1], [0], [0], [0, 0, 1, 0], [], []>} : vector<16x16xbf16>, vector<16x16xbf16>, vector<16x16xf32> -> vector<16x16xf32>
    %1302 = arith.addf %1301, %9 : vector<16x16xf32>
    %cst_456 = arith.constant dense<0xFF800000> : vector<16xf32>
    %1303 = vector.multi_reduction <maximumf>, %1302, %cst_456 [1] : vector<16x16xf32> to vector<16xf32>
    %1304 = vector.shape_cast %1303 : vector<16xf32> to vector<16x1xf32>
    %1305 = vector.broadcast %1304 : vector<16x1xf32> to vector<16x16xf32>
    %1306 = arith.subf %1302, %1305 : vector<16x16xf32>
    %1307 = math.exp %1306 : vector<16x16xf32>
    %cst_457 = arith.constant dense<0.000000e+00> : vector<16xf32>
    %1308 = vector.multi_reduction <add>, %1307, %cst_457 [1] : vector<16x16xf32> to vector<16xf32>
    %1309 = vector.shape_cast %1308 : vector<16xf32> to vector<16x1xf32>
    %1310 = tpu.reciprocal %1309 {approx = true} : vector<16x1xf32> -> vector<16x1xf32>
    %1311 = arith.truncf %1307 : vector<16x16xf32> to vector<16x16xbf16>
    %cst_458 = arith.constant dense<0.000000e+00> : vector<16x16xf32>
    %1312 = tpu.matmul %1311, %1300, %cst_458 {dimension_numbers = #tpu.dot_dimension_numbers<[1], [0], [0], [1], [0, 0, 1, 1], [], []>} : vector<16x16xbf16>, vector<16x16xbf16>, vector<16x16xf32> -> vector<16x16xf32>
    %1313 = vector.broadcast %1310 : vector<16x1xf32> to vector<16x16xf32>
    %1314 = arith.mulf %1312, %1313 : vector<16x16xf32>
    %1315 = vector.extract_strided_slice %1226 {offsets = [0, 64], sizes = [16, 16], strides = [1, 1]} : vector<16x288xf32> to vector<16x16xf32>
    %cst_459 = arith.constant 0.102062076 : f32
    %1316 = vector.broadcast %cst_459 : f32 to vector<16x16xf32>
    %1317 = arith.mulf %1315, %1316 : vector<16x16xf32>
    %1318 = arith.truncf %1317 : vector<16x16xf32> to vector<16x16xbf16>
    %1319 = vector.extract_strided_slice %1226 {offsets = [0, 160], sizes = [16, 16], strides = [1, 1]} : vector<16x288xf32> to vector<16x16xf32>
    %1320 = arith.truncf %1319 : vector<16x16xf32> to vector<16x16xbf16>
    %1321 = vector.extract_strided_slice %1226 {offsets = [0, 256], sizes = [16, 16], strides = [1, 1]} : vector<16x288xf32> to vector<16x16xf32>
    %1322 = arith.truncf %1321 : vector<16x16xf32> to vector<16x16xbf16>
    %cst_460 = arith.constant dense<0.000000e+00> : vector<16x16xf32>
    %1323 = tpu.matmul %1318, %1320, %cst_460 {dimension_numbers = #tpu.dot_dimension_numbers<[1], [1], [0], [0], [0, 0, 1, 0], [], []>} : vector<16x16xbf16>, vector<16x16xbf16>, vector<16x16xf32> -> vector<16x16xf32>
    %1324 = arith.addf %1323, %9 : vector<16x16xf32>
    %cst_461 = arith.constant dense<0xFF800000> : vector<16xf32>
    %1325 = vector.multi_reduction <maximumf>, %1324, %cst_461 [1] : vector<16x16xf32> to vector<16xf32>
    %1326 = vector.shape_cast %1325 : vector<16xf32> to vector<16x1xf32>
    %1327 = vector.broadcast %1326 : vector<16x1xf32> to vector<16x16xf32>
    %1328 = arith.subf %1324, %1327 : vector<16x16xf32>
    %1329 = math.exp %1328 : vector<16x16xf32>
    %cst_462 = arith.constant dense<0.000000e+00> : vector<16xf32>
    %1330 = vector.multi_reduction <add>, %1329, %cst_462 [1] : vector<16x16xf32> to vector<16xf32>
    %1331 = vector.shape_cast %1330 : vector<16xf32> to vector<16x1xf32>
    %1332 = tpu.reciprocal %1331 {approx = true} : vector<16x1xf32> -> vector<16x1xf32>
    %1333 = arith.truncf %1329 : vector<16x16xf32> to vector<16x16xbf16>
    %cst_463 = arith.constant dense<0.000000e+00> : vector<16x16xf32>
    %1334 = tpu.matmul %1333, %1322, %cst_463 {dimension_numbers = #tpu.dot_dimension_numbers<[1], [0], [0], [1], [0, 0, 1, 1], [], []>} : vector<16x16xbf16>, vector<16x16xbf16>, vector<16x16xf32> -> vector<16x16xf32>
    %1335 = vector.broadcast %1332 : vector<16x1xf32> to vector<16x16xf32>
    %1336 = arith.mulf %1334, %1335 : vector<16x16xf32>
    %1337 = vector.extract_strided_slice %1226 {offsets = [0, 80], sizes = [16, 16], strides = [1, 1]} : vector<16x288xf32> to vector<16x16xf32>
    %cst_464 = arith.constant 0.102062076 : f32
    %1338 = vector.broadcast %cst_464 : f32 to vector<16x16xf32>
    %1339 = arith.mulf %1337, %1338 : vector<16x16xf32>
    %1340 = arith.truncf %1339 : vector<16x16xf32> to vector<16x16xbf16>
    %1341 = vector.extract_strided_slice %1226 {offsets = [0, 176], sizes = [16, 16], strides = [1, 1]} : vector<16x288xf32> to vector<16x16xf32>
    %1342 = arith.truncf %1341 : vector<16x16xf32> to vector<16x16xbf16>
    %1343 = vector.extract_strided_slice %1226 {offsets = [0, 272], sizes = [16, 16], strides = [1, 1]} : vector<16x288xf32> to vector<16x16xf32>
    %1344 = arith.truncf %1343 : vector<16x16xf32> to vector<16x16xbf16>
    %cst_465 = arith.constant dense<0.000000e+00> : vector<16x16xf32>
    %1345 = tpu.matmul %1340, %1342, %cst_465 {dimension_numbers = #tpu.dot_dimension_numbers<[1], [1], [0], [0], [0, 0, 1, 0], [], []>} : vector<16x16xbf16>, vector<16x16xbf16>, vector<16x16xf32> -> vector<16x16xf32>
    %1346 = arith.addf %1345, %9 : vector<16x16xf32>
    %cst_466 = arith.constant dense<0xFF800000> : vector<16xf32>
    %1347 = vector.multi_reduction <maximumf>, %1346, %cst_466 [1] : vector<16x16xf32> to vector<16xf32>
    %1348 = vector.shape_cast %1347 : vector<16xf32> to vector<16x1xf32>
    %1349 = vector.broadcast %1348 : vector<16x1xf32> to vector<16x16xf32>
    %1350 = arith.subf %1346, %1349 : vector<16x16xf32>
    %1351 = math.exp %1350 : vector<16x16xf32>
    %cst_467 = arith.constant dense<0.000000e+00> : vector<16xf32>
    %1352 = vector.multi_reduction <add>, %1351, %cst_467 [1] : vector<16x16xf32> to vector<16xf32>
    %1353 = vector.shape_cast %1352 : vector<16xf32> to vector<16x1xf32>
    %1354 = tpu.reciprocal %1353 {approx = true} : vector<16x1xf32> -> vector<16x1xf32>
    %1355 = arith.truncf %1351 : vector<16x16xf32> to vector<16x16xbf16>
    %cst_468 = arith.constant dense<0.000000e+00> : vector<16x16xf32>
    %1356 = tpu.matmul %1355, %1344, %cst_468 {dimension_numbers = #tpu.dot_dimension_numbers<[1], [0], [0], [1], [0, 0, 1, 1], [], []>} : vector<16x16xbf16>, vector<16x16xbf16>, vector<16x16xf32> -> vector<16x16xf32>
    %1357 = vector.broadcast %1354 : vector<16x1xf32> to vector<16x16xf32>
    %1358 = arith.mulf %1356, %1357 : vector<16x16xf32>
    %1359 = tpu.concatenate %1248, %1270, %1292, %1314, %1336, %1358 in 1 : vector<16x16xf32>, vector<16x16xf32>, vector<16x16xf32>, vector<16x16xf32>, vector<16x16xf32>, vector<16x16xf32> -> vector<16x96xf32>
    %1360 = arith.truncf %1359 : vector<16x96xf32> to vector<16x96xbf16>
    %cst_469 = arith.constant dense<0.000000e+00> : vector<16x96xf32>
    %1361 = tpu.matmul %1360, %1222, %cst_469 {dimension_numbers = #tpu.dot_dimension_numbers<[1], [0], [0], [1], [0, 0, 1, 1], [], []>} : vector<16x96xbf16>, vector<96x96xbf16>, vector<16x96xf32> -> vector<16x96xf32>
    %1362 = vector.broadcast %1224 : vector<1x96xf32> to vector<16x96xf32>
    %1363 = arith.addf %1361, %1362 : vector<16x96xf32>
    %1364 = arith.addf %1192, %1363 : vector<16x96xf32>
    %c5_470 = arith.constant 5 : index
    %c0_471 = arith.constant 0 : index
    %c0_472 = arith.constant 0 : index
    %1365 = vector.load %arg11[%c5_470, %c0_471, %c0_472] : memref<6x1x96xf32, #tpu.memory_space<vmem>>, vector<1x1x96xf32>
    %1366 = vector.shape_cast %1365 : vector<1x1x96xf32> to vector<1x96xf32>
    %c5_473 = arith.constant 5 : index
    %c0_474 = arith.constant 0 : index
    %c0_475 = arith.constant 0 : index
    %1367 = vector.load %arg12[%c5_473, %c0_474, %c0_475] : memref<6x1x96xf32, #tpu.memory_space<vmem>>, vector<1x1x96xf32>
    %1368 = vector.shape_cast %1367 : vector<1x1x96xf32> to vector<1x96xf32>
    %cst_476 = arith.constant dense<0.000000e+00> : vector<16xf32>
    %1369 = vector.multi_reduction <add>, %1364, %cst_476 [1] : vector<16x96xf32> to vector<16xf32>
    %1370 = vector.shape_cast %1369 : vector<16xf32> to vector<16x1xf32>
    %cst_477 = arith.constant 9.600000e+01 : f32
    %1371 = vector.broadcast %cst_477 : f32 to vector<16x1xf32>
    %1372 = arith.divf %1370, %1371 : vector<16x1xf32>
    %1373 = vector.broadcast %1372 : vector<16x1xf32> to vector<16x96xf32>
    %1374 = arith.subf %1364, %1373 : vector<16x96xf32>
    %1375 = arith.mulf %1374, %1374 : vector<16x96xf32>
    %cst_478 = arith.constant dense<0.000000e+00> : vector<16xf32>
    %1376 = vector.multi_reduction <add>, %1375, %cst_478 [1] : vector<16x96xf32> to vector<16xf32>
    %1377 = vector.shape_cast %1376 : vector<16xf32> to vector<16x1xf32>
    %cst_479 = arith.constant 9.600000e+01 : f32
    %1378 = vector.broadcast %cst_479 : f32 to vector<16x1xf32>
    %1379 = arith.divf %1377, %1378 : vector<16x1xf32>
    %1380 = vector.broadcast %1372 : vector<16x1xf32> to vector<16x96xf32>
    %1381 = arith.subf %1364, %1380 : vector<16x96xf32>
    %cst_480 = arith.constant 9.99999974E-6 : f32
    %1382 = vector.broadcast %cst_480 : f32 to vector<16x1xf32>
    %1383 = arith.addf %1379, %1382 : vector<16x1xf32>
    %1384 = math.rsqrt %1383 : vector<16x1xf32>
    %1385 = vector.broadcast %1384 : vector<16x1xf32> to vector<16x96xf32>
    %1386 = arith.mulf %1381, %1385 : vector<16x96xf32>
    %1387 = vector.broadcast %1366 : vector<1x96xf32> to vector<16x96xf32>
    %1388 = arith.mulf %1386, %1387 : vector<16x96xf32>
    %1389 = vector.broadcast %1368 : vector<1x96xf32> to vector<16x96xf32>
    %1390 = arith.addf %1388, %1389 : vector<16x96xf32>
    %1391 = arith.truncf %1390 : vector<16x96xf32> to vector<16x96xbf16>
    %c5_481 = arith.constant 5 : index
    %c0_482 = arith.constant 0 : index
    %c0_483 = arith.constant 0 : index
    %1392 = vector.load %arg13[%c5_481, %c0_482, %c0_483] : memref<6x96x384xbf16, #tpu.memory_space<vmem>>, vector<1x96x384xbf16>
    %1393 = vector.shape_cast %1392 : vector<1x96x384xbf16> to vector<96x384xbf16>
    %cst_484 = arith.constant dense<0.000000e+00> : vector<16x384xf32>
    %1394 = tpu.matmul %1391, %1393, %cst_484 {dimension_numbers = #tpu.dot_dimension_numbers<[1], [0], [0], [1], [0, 0, 1, 1], [], []>} : vector<16x96xbf16>, vector<96x384xbf16>, vector<16x384xf32> -> vector<16x384xf32>
    %c5_485 = arith.constant 5 : index
    %c0_486 = arith.constant 0 : index
    %c0_487 = arith.constant 0 : index
    %1395 = vector.load %arg14[%c5_485, %c0_486, %c0_487] : memref<6x1x384xf32, #tpu.memory_space<vmem>>, vector<1x1x384xf32>
    %1396 = vector.shape_cast %1395 : vector<1x1x384xf32> to vector<1x384xf32>
    %1397 = vector.broadcast %1396 : vector<1x384xf32> to vector<16x384xf32>
    %1398 = arith.addf %1394, %1397 : vector<16x384xf32>
    %cst_488 = arith.constant 0.000000e+00 : f32
    %1399 = vector.broadcast %cst_488 : f32 to vector<16x384xf32>
    %1400 = arith.maximumf %1398, %1399 : vector<16x384xf32>
    %1401 = arith.truncf %1400 : vector<16x384xf32> to vector<16x384xbf16>
    %c5_489 = arith.constant 5 : index
    %c0_490 = arith.constant 0 : index
    %c0_491 = arith.constant 0 : index
    %1402 = vector.load %arg15[%c5_489, %c0_490, %c0_491] : memref<6x384x96xbf16, #tpu.memory_space<vmem>>, vector<1x384x96xbf16>
    %1403 = vector.shape_cast %1402 : vector<1x384x96xbf16> to vector<384x96xbf16>
    %cst_492 = arith.constant dense<0.000000e+00> : vector<16x96xf32>
    %1404 = tpu.matmul %1401, %1403, %cst_492 {dimension_numbers = #tpu.dot_dimension_numbers<[1], [0], [0], [1], [0, 0, 1, 1], [], []>} : vector<16x384xbf16>, vector<384x96xbf16>, vector<16x96xf32> -> vector<16x96xf32>
    %c5_493 = arith.constant 5 : index
    %c0_494 = arith.constant 0 : index
    %c0_495 = arith.constant 0 : index
    %1405 = vector.load %arg16[%c5_493, %c0_494, %c0_495] : memref<6x1x96xf32, #tpu.memory_space<vmem>>, vector<1x1x96xf32>
    %1406 = vector.shape_cast %1405 : vector<1x1x96xf32> to vector<1x96xf32>
    %1407 = vector.broadcast %1406 : vector<1x96xf32> to vector<16x96xf32>
    %1408 = arith.addf %1404, %1407 : vector<16x96xf32>
    %1409 = arith.addf %1364, %1408 : vector<16x96xf32>
    %c0_496 = arith.constant 0 : index
    %c0_497 = arith.constant 0 : index
    %1410 = vector.load %arg17[%c0_496, %c0_497] : memref<1x96xf32, #tpu.memory_space<vmem>>, vector<1x96xf32>
    %c0_498 = arith.constant 0 : index
    %c0_499 = arith.constant 0 : index
    %1411 = vector.load %arg18[%c0_498, %c0_499] : memref<1x96xf32, #tpu.memory_space<vmem>>, vector<1x96xf32>
    %cst_500 = arith.constant dense<0.000000e+00> : vector<16xf32>
    %1412 = vector.multi_reduction <add>, %1409, %cst_500 [1] : vector<16x96xf32> to vector<16xf32>
    %1413 = vector.shape_cast %1412 : vector<16xf32> to vector<16x1xf32>
    %cst_501 = arith.constant 9.600000e+01 : f32
    %1414 = vector.broadcast %cst_501 : f32 to vector<16x1xf32>
    %1415 = arith.divf %1413, %1414 : vector<16x1xf32>
    %1416 = vector.broadcast %1415 : vector<16x1xf32> to vector<16x96xf32>
    %1417 = arith.subf %1409, %1416 : vector<16x96xf32>
    %1418 = arith.mulf %1417, %1417 : vector<16x96xf32>
    %cst_502 = arith.constant dense<0.000000e+00> : vector<16xf32>
    %1419 = vector.multi_reduction <add>, %1418, %cst_502 [1] : vector<16x96xf32> to vector<16xf32>
    %1420 = vector.shape_cast %1419 : vector<16xf32> to vector<16x1xf32>
    %cst_503 = arith.constant 9.600000e+01 : f32
    %1421 = vector.broadcast %cst_503 : f32 to vector<16x1xf32>
    %1422 = arith.divf %1420, %1421 : vector<16x1xf32>
    %1423 = vector.broadcast %1415 : vector<16x1xf32> to vector<16x96xf32>
    %1424 = arith.subf %1409, %1423 : vector<16x96xf32>
    %cst_504 = arith.constant 9.99999974E-6 : f32
    %1425 = vector.broadcast %cst_504 : f32 to vector<16x1xf32>
    %1426 = arith.addf %1422, %1425 : vector<16x1xf32>
    %1427 = math.rsqrt %1426 : vector<16x1xf32>
    %1428 = vector.broadcast %1427 : vector<16x1xf32> to vector<16x96xf32>
    %1429 = arith.mulf %1424, %1428 : vector<16x96xf32>
    %1430 = vector.broadcast %1410 : vector<1x96xf32> to vector<16x96xf32>
    %1431 = arith.mulf %1429, %1430 : vector<16x96xf32>
    %1432 = vector.broadcast %1411 : vector<1x96xf32> to vector<16x96xf32>
    %1433 = arith.addf %1431, %1432 : vector<16x96xf32>
    %1434 = arith.truncf %1433 : vector<16x96xf32> to vector<16x96xbf16>
    %c0_505 = arith.constant 0 : index
    %c0_506 = arith.constant 0 : index
    %1435 = vector.load %arg19[%c0_505, %c0_506] : memref<96x128xbf16, #tpu.memory_space<vmem>>, vector<96x128xbf16>
    %cst_507 = arith.constant dense<0.000000e+00> : vector<16x128xf32>
    %1436 = tpu.matmul %1434, %1435, %cst_507 {dimension_numbers = #tpu.dot_dimension_numbers<[1], [0], [0], [1], [0, 0, 1, 1], [], []>} : vector<16x96xbf16>, vector<96x128xbf16>, vector<16x128xf32> -> vector<16x128xf32>
    %c0_508 = arith.constant 0 : index
    %c0_509 = arith.constant 0 : index
    %1437 = vector.load %arg20[%c0_508, %c0_509] : memref<1x128xf32, #tpu.memory_space<vmem>>, vector<1x128xf32>
    %1438 = vector.broadcast %1437 : vector<1x128xf32> to vector<16x128xf32>
    %1439 = arith.addf %1436, %1438 : vector<16x128xf32>
    %c0_510 = arith.constant 0 : index
    %c0_511 = arith.constant 0 : index
    %c0_512 = arith.constant 0 : index
    %1440 = vector.load %arg21[%c0_510, %c0_511, %c0_512] : memref<1x16x128xf32, #tpu.memory_space<vmem>>, vector<1x16x128xf32>
    %1441 = vector.shape_cast %1440 : vector<1x16x128xf32> to vector<16x128xf32>
    %1442 = vector.shape_cast %1439 : vector<16x128xf32> to vector<1x16x128xf32>
    tpu.vector_store %arg21[%c0_510, %c0_511, %c0_512], %1442 {strides = array<i32>} : memref<1x16x128xf32, #tpu.memory_space<vmem>>, vector<1x16x128xf32>,
    return
  }
  func.func @transform_0(%arg0: i32) -> (i32, i32, i32) {
    %c0_i32 = arith.constant 0 : i32
    %c0_i32_0 = arith.constant 0 : i32
    %c0_i32_1 = arith.constant 0 : i32
    return %arg0, %c0_i32, %c0_i32_0 : i32, i32, i32
  }
  func.func @transform_1(%arg0: i32) -> (i32, i32) {
    %c0_i32 = arith.constant 0 : i32
    %c0_i32_0 = arith.constant 0 : i32
    %c0_i32_1 = arith.constant 0 : i32
    return %c0_i32, %c0_i32_0 : i32, i32
  }
  func.func @transform_2(%arg0: i32) -> (i32, i32) {
    %c0_i32 = arith.constant 0 : i32
    %c0_i32_0 = arith.constant 0 : i32
    %c0_i32_1 = arith.constant 0 : i32
    return %c0_i32, %c0_i32_0 : i32, i32
  }
  func.func @transform_3(%arg0: i32) -> (i32, i32) {
    %c0_i32 = arith.constant 0 : i32
    %c0_i32_0 = arith.constant 0 : i32
    %c0_i32_1 = arith.constant 0 : i32
    return %c0_i32, %c0_i32_0 : i32, i32
  }
  func.func @transform_4(%arg0: i32) -> (i32, i32) {
    %c0_i32 = arith.constant 0 : i32
    %c0_i32_0 = arith.constant 0 : i32
    %c0_i32_1 = arith.constant 0 : i32
    return %c0_i32, %c0_i32_0 : i32, i32
  }
  func.func @transform_5(%arg0: i32) -> (i32, i32, i32) {
    %c0_i32 = arith.constant 0 : i32
    %c0_i32_0 = arith.constant 0 : i32
    %c0_i32_1 = arith.constant 0 : i32
    %c0_i32_2 = arith.constant 0 : i32
    return %c0_i32, %c0_i32_0, %c0_i32_1 : i32, i32, i32
  }
  func.func @transform_6(%arg0: i32) -> (i32, i32, i32) {
    %c0_i32 = arith.constant 0 : i32
    %c0_i32_0 = arith.constant 0 : i32
    %c0_i32_1 = arith.constant 0 : i32
    %c0_i32_2 = arith.constant 0 : i32
    return %c0_i32, %c0_i32_0, %c0_i32_1 : i32, i32, i32
  }
  func.func @transform_7(%arg0: i32) -> (i32, i32, i32) {
    %c0_i32 = arith.constant 0 : i32
    %c0_i32_0 = arith.constant 0 : i32
    %c0_i32_1 = arith.constant 0 : i32
    %c0_i32_2 = arith.constant 0 : i32
    return %c0_i32, %c0_i32_0, %c0_i32_1 : i32, i32, i32
  }
  func.func @transform_8(%arg0: i32) -> (i32, i32, i32) {
    %c0_i32 = arith.constant 0 : i32
    %c0_i32_0 = arith.constant 0 : i32
    %c0_i32_1 = arith.constant 0 : i32
    %c0_i32_2 = arith.constant 0 : i32
    return %c0_i32, %c0_i32_0, %c0_i32_1 : i32, i32, i32
  }
  func.func @transform_9(%arg0: i32) -> (i32, i32, i32) {
    %c0_i32 = arith.constant 0 : i32
    %c0_i32_0 = arith.constant 0 : i32
    %c0_i32_1 = arith.constant 0 : i32
    %c0_i32_2 = arith.constant 0 : i32
    return %c0_i32, %c0_i32_0, %c0_i32_1 : i32, i32, i32
  }
  func.func @transform_10(%arg0: i32) -> (i32, i32, i32) {
    %c0_i32 = arith.constant 0 : i32
    %c0_i32_0 = arith.constant 0 : i32
    %c0_i32_1 = arith.constant 0 : i32
    %c0_i32_2 = arith.constant 0 : i32
    return %c0_i32, %c0_i32_0, %c0_i32_1 : i32, i32, i32
  }
  func.func @transform_11(%arg0: i32) -> (i32, i32, i32) {
    %c0_i32 = arith.constant 0 : i32
    %c0_i32_0 = arith.constant 0 : i32
    %c0_i32_1 = arith.constant 0 : i32
    %c0_i32_2 = arith.constant 0 : i32
    return %c0_i32, %c0_i32_0, %c0_i32_1 : i32, i32, i32
  }
  func.func @transform_12(%arg0: i32) -> (i32, i32, i32) {
    %c0_i32 = arith.constant 0 : i32
    %c0_i32_0 = arith.constant 0 : i32
    %c0_i32_1 = arith.constant 0 : i32
    %c0_i32_2 = arith.constant 0 : i32
    return %c0_i32, %c0_i32_0, %c0_i32_1 : i32, i32, i32
  }
  func.func @transform_13(%arg0: i32) -> (i32, i32, i32) {
    %c0_i32 = arith.constant 0 : i32
    %c0_i32_0 = arith.constant 0 : i32
    %c0_i32_1 = arith.constant 0 : i32
    %c0_i32_2 = arith.constant 0 : i32
    return %c0_i32, %c0_i32_0, %c0_i32_1 : i32, i32, i32
  }
  func.func @transform_14(%arg0: i32) -> (i32, i32, i32) {
    %c0_i32 = arith.constant 0 : i32
    %c0_i32_0 = arith.constant 0 : i32
    %c0_i32_1 = arith.constant 0 : i32
    %c0_i32_2 = arith.constant 0 : i32
    return %c0_i32, %c0_i32_0, %c0_i32_1 : i32, i32, i32
  }
  func.func @transform_15(%arg0: i32) -> (i32, i32, i32) {
    %c0_i32 = arith.constant 0 : i32
    %c0_i32_0 = arith.constant 0 : i32
    %c0_i32_1 = arith.constant 0 : i32
    %c0_i32_2 = arith.constant 0 : i32
    return %c0_i32, %c0_i32_0, %c0_i32_1 : i32, i32, i32
  }
  func.func @transform_16(%arg0: i32) -> (i32, i32) {
    %c0_i32 = arith.constant 0 : i32
    %c0_i32_0 = arith.constant 0 : i32
    %c0_i32_1 = arith.constant 0 : i32
    return %c0_i32, %c0_i32_0 : i32, i32
  }
  func.func @transform_17(%arg0: i32) -> (i32, i32) {
    %c0_i32 = arith.constant 0 : i32
    %c0_i32_0 = arith.constant 0 : i32
    %c0_i32_1 = arith.constant 0 : i32
    return %c0_i32, %c0_i32_0 : i32, i32
  }
  func.func @transform_18(%arg0: i32) -> (i32, i32) {
    %c0_i32 = arith.constant 0 : i32
    %c0_i32_0 = arith.constant 0 : i32
    %c0_i32_1 = arith.constant 0 : i32
    return %c0_i32, %c0_i32_0 : i32, i32
  }
  func.func @transform_19(%arg0: i32) -> (i32, i32) {
    %c0_i32 = arith.constant 0 : i32
    %c0_i32_0 = arith.constant 0 : i32
    %c0_i32_1 = arith.constant 0 : i32
    return %c0_i32, %c0_i32_0 : i32, i32
  }
  func.func @transform_20(%arg0: i32) -> (i32, i32, i32) {
    %c0_i32 = arith.constant 0 : i32
    %c0_i32_0 = arith.constant 0 : i32
    %c0_i32_1 = arith.constant 0 : i32
    return %arg0, %c0_i32, %c0_i32_0 : i32, i32, i32
  }
}

</mosaic_0001>

<bundles_post_ra>
// kernel: bigram_lm_forward.1
= control target key start
LH: loop header
LB: loop body
LE: loop exit
PB: predicated region body
PF: predicated region fallthrough
CT: control target
= control target key end

     0   :  { %s18951_s0 = inlined_call_operand.vmem [shape: f32[2,16,96], index: 0, kind: input, shape index: {}]   ;;  %s18952_s1 = inlined_call_operand.vmem [shape: f32[16,96], index: 1, kind: input, shape index: {}]   ;;  %s18953_s2 = inlined_call_operand.vmem [shape: bf16[96,288], index: 2, kind: input, shape index: {}]   ;;  %s18954_s3 = inlined_call_operand.vmem [shape: bf16[96,96], index: 3, kind: input, shape index: {}]   ;;  %s18955_s4 = inlined_call_operand.vmem [shape: f32[1,96], index: 4, kind: input, shape index: {}]   ;;  %s18956_s5 = inlined_call_operand.vmem [shape: f32[6,1,96], index: 5, kind: input, shape index: {}]   ;;  %s18957_s6 = inlined_call_operand.vmem [shape: f32[6,1,96], index: 6, kind: input, shape index: {}]   ;;  %s18958_s7 = inlined_call_operand.vmem [shape: bf16[6,96,288], index: 7, kind: input, shape index: {}]   ;;  %s18959_s8 = inlined_call_operand.vmem [shape: bf16[6,96,96], index: 8, kind: input, shape index: {}]   ;;  %s18960_s9 = inlined_call_operand.vmem [shape: f32[6,1,96], index: 9, kind: input, shape index: {}]   ;;  %s18961_s10 = inlined_call_operand.vmem [shape: f32[6,1,96], index: 10, kind: input, shape index: {}]   ;;  %s18962_s11 = inlined_call_operand.vmem [shape: f32[6,1,96], index: 11, kind: input, shape index: {}]   ;;  %s18963_s12 = inlined_call_operand.vmem [shape: bf16[6,96,384], index: 12, kind: input, shape index: {}]   ;;  %s18964_s13 = inlined_call_operand.vmem [shape: f32[6,1,384], index: 13, kind: input, shape index: {}]   ;;  %s18965_s14 = inlined_call_operand.vmem [shape: bf16[6,384,96], index: 14, kind: input, shape index: {}]   ;;  %s18966_s15 = inlined_call_operand.vmem [shape: f32[6,1,96], index: 15, kind: input, shape index: {}]   ;;  %s18967_s16 = inlined_call_operand.vmem [shape: f32[1,96], index: 16, kind: input, shape index: {}]   ;;  %s18968_s17 = inlined_call_operand.vmem [shape: f32[1,96], index: 17, kind: input, shape index: {}]   ;;  %s18969_s18 = inlined_call_operand.vmem [shape: bf16[96,128], index: 18, kind: input, shape index: {}]   ;;  %s18970_s19 = inlined_call_operand.vmem [shape: f32[1,128], index: 19, kind: input, shape index: {}]   ;;  %s18971_s20 = inlined_call_operand.hbm [shape: f32[2,16,128], index: 20, kind: output, shape index: {}]  }
   0x1   :  { %19003 = sst [smem:[#allocation13_spill]] %s18951_s0 }
   0x2   :  { %19004 = sst [smem:[#allocation14_spill]] %s18952_s1 }
   0x3   :  { %19005 = sst [smem:[#allocation15_spill]] %s18953_s2 }
   0x4   :  { %19006 = sst [smem:[#allocation16_spill]] %s18954_s3 }
   0x5   :  { %19007 = sst [smem:[#allocation17_spill]] %s18955_s4 }
   0x6   :  { %19008 = sst [smem:[#allocation18_spill]] %s18968_s17 }
   0x7   :  { %19009 = sst [smem:[#allocation19_spill]] %s18970_s19 }
   0x8   :  { %19010 = sst [smem:[#allocation20_spill]] %s18971_s20 }
   0x9   :  { %25 = vsyncpa [#allocation3], 0 }
   0xa   :  { %27 = vsyncpa [#allocation3 + $0x1], 0  ;;  %s15818_s1 = smov 0   ;;  %s15820_s22 = smov 0  }
   0xb   :  { %s15822_s23 = smov 0   ;;  %s15824_s24 = smov 0  }
   0xc LB: > { %19011 = sst [smem:[#allocation5_spill]] %s15678_s1  ;;  %s15839_s2 = sadd.s32 4294967295, %s15690_s24   ;;  %s15690_s24 = sphi %s15824_s24, %s19043_s24   ;;  %s15686_s23 = sphi %s15822_s23, %s19045_s23   ;;  %s15682_s22 = sphi %s15820_s22, %s19047_s22   ;;  %s15678_s1 = sphi %s15818_s1, %s19046_s1  }
   0xd   : > { %19012 = sst [smem:[#allocation6_spill]] %s15686_s23  ;;  %s11932_s25 = sadd.s32 4294967294, %s15690_s24  }
   0xe   : > { %19013 = sst [smem:[#allocation7_spill]] %s15690_s24  ;;  %s15843_s3 = sadd.s32 1, %s15690_s24  }
   0xf   : > { %19014 = sst [smem:[#allocation8_spill]] %s15839_s2  ;;  %s465_s26 = sadd.s32 1, %s15686_s23 }
  0x10   : > { %19015 = sst [smem:[#allocation9_spill]] %s15843_s3  ;;  %s462_s27 = ssub.s32 %s15690_s24, %s15843_s3 }
  0x11   : > { %p475_p0 = scmp.ne.s32.totalorder %s15686_s23, %s15682_s22  ;;  %p463_p1 = scmp.eq.s32.totalorder %s462_s27, 0 }
  0x12   : > { %p476_p2 = scmp.eq.s32.totalorder %s15839_s2, 1  ;;  %p481_p3 = scmp.ne.s32.totalorder %s15682_s22, %s15678_s1 }
  0x13   : > { %p482_p4 = scmp.eq.s32.totalorder %s11932_s25, 1  ;;  %p11935_p7 = scmp.ge.s32.totalorder %s15690_s24, 1 }
  0x14   : > { %s15854_s28 = scalar_select %p463_p1, %s15686_s23, %s465_s26  }
  0x15   : > { %p15856_p5 = por %p476_p2, %p475_p0  ;;  %p15860_p6 = por %p482_p4, %p481_p3 }
  0x16   : > { %19016 = sst [smem:[#allocation10_spill]] %s15854_s28  ;;  %p565_p8 = scmp.lt.s32.totalorder %s15690_s24, 3 }
  0x17   : > { %s19017_s4 = scalar_select %p15856_p5, 1, 0 }
  0x18   : > { %s19019_s29 = scalar_select %p15860_p6, 1, 0 }
  0x19   : > { %19018 = sst [smem:[#allocation11_spill]] %s19017_s4  ;;  %p566_p9 = pnand %p11935_p7, %p565_p8 }
  0x1a   : > { %19020 = sst [smem:[#allocation12_spill]] %s19019_s29  ;;  %p623_p10 = scmp.lt.s32.totalorder (!%p566_p9), %s15839_s2, 1 }
  0x1b   : > { %569 = sbr.rel (%p566_p9) target bundleno = 17918 (0x45fe), region = 100  ;;  %s19021_s21 = sld [smem:[#allocation15_spill]] (!%p566_p9) }
  0x1c   : > { %s19022_s4 = sld [smem:[#allocation13_spill]] (!%p566_p9)  ;;  %s15697_s17 = smov (!%p566_p9), 104  }
  0x1d   : > { %s19023_s24 = sld [smem:[#allocation14_spill]] (!%p566_p9)  ;;  %s18989_s29 = smov (!%p566_p9), 80  }
  0x1e   : > { %s15700_s0 = smov (!%p566_p9), 88   ;;  %s18987_s25 = smov (!%p566_p9), 64  }
  0x1f   : > { %s18995_s26 = smov (!%p566_p9), 16   ;;  %s15705_s28 = smov (!%p566_p9), 40  }
  0x20   : > { %v15692_v2 = vmov 0   ;;  %s624_s30 = scalar_select %p623_p10, %s15839_s2, 1  ;;  %vm778_vm0 = vcmask 785408   ;;  %v15693_v22 = vmov 0.0   ;;  %vm15694_vm1 = vmmov 0  }
  0x21   : > { %v14754_v0 = vld [vmem:[%s19021_s21 + $0x7c] ss:$12 sps:$4 sm:$0xff]   ;;  %v14756_v1 = vld [vmem:[%s19021_s21 + $0x78] ss:$12 sps:$4 sm:$0xff]   ;;  %814 = vmatprep.mubr.bf16.mxu0 %v15692_v2  ;;  %v14759_v4 = vld [vmem:[%s19021_s21 + $0x60] ss:$12 sps:$4 sm:$0xff]   ;;  %13594 = vmatprep.subr.bf16.mxu1 %v15693_v22  ;;  %v635_v55 = vlaneseq }
  0x22   : > { %786 = vmatprep.subr.bf16.mxu0 %v14754_v0  ;;  %v14757_v3 = vld [vmem:[%s19021_s21 + $0x64] ss:$12 sps:$4 sm:$0xff]   ;;  %v14760_v5 = vld [vmem:[%s19021_s21 + $0x4c] ss:$12 sps:$4 sm:$0xff]   ;;  %v14762_v6 = vld [vmem:[%s19021_s21 + $0x48] ss:$12 sps:$4 sm:$0xff]   ;;  %13606 = vmatprep.mubr.msk.bf16.mxu1 %vm15694_vm1, %v15693_v22 }
  0x23   : > { %787 = vmatpush1.bf16.msra.mxu0 %v14756_v1  ;;  %s13099_s1 = sshll.u32 %s624_s30, 4  ;;  %v14763_v7 = vld [vmem:[%s19021_s21 + $0x34] ss:$12 sps:$4 sm:$0xff]   ;;  %v14765_v8 = vld [vmem:[%s19021_s21 + $0x30] ss:$12 sps:$4 sm:$0xff]   ;;  %s19024_s27 = smov %s19023_s24  ;;  %vm874_vm2 = vcmask 195584  }
  0x24   : > { %788 = vmatprep.subr.bf16.mxu0 %v14757_v3  ;;  %v14766_v9 = vld [vmem:[%s19021_s21 + $0x1c] ss:$12 sps:$4 sm:$0xff]   ;;  %s627_s19 = scalar_lea.vmem %s19022_s4, %s13099_s1  ;;  %v14768_v10 = vld [vmem:[%s19021_s21 + $0x18] ss:$12 sps:$4 sm:$0xff]   ;;  %v14771_v16 = vld [vmem:[%s19021_s21] ss:$12 sps:$4 sm:$0xff]  }
  0x25   : > { %v629_v11 = vld [vmem:[%s627_s19] sm:$0xff]  ;;  %v630_v12 = vld [vmem:[%s627_s19 + $0x8] sm:$0xff]  ;;  %v14774_v23 = vld [vmem:[%s19021_s21 + $0x50] ss:$12 sps:$4 sm:$0xff]   ;;  %s18997_s1 = smov 32   ;;  %s18984_s4 = smov 8  }
  0x26   : > { %v631_v13 = vld [vmem:[%s19023_s24] sm:$0xff]  ;;  %v632_v14 = vld [vmem:[%s19024_s27 + $0x8] sm:$0xff]  ;;  %s18993_s19 = smov 112   ;;  %s15701_s30 = smov 56   ;;  %vm1001_vm3 = vcmask 64512   ;;  %v15981_v56 = vshrl.u32 %v635_v55, 7 }
  0x27   : > { %789 = vmatpush1.bf16.msra.mxu0 %v14759_v4  ;;  %v14769_v15 = vld [vmem:[%s19021_s21 + $0x4] ss:$12 sps:$4 sm:$0xff]   ;;  %v633_v17 = vadd.f32 %v631_v13, %v629_v11  ;;  %v634_v18 = vadd.f32 %v632_v14, %v630_v12  ;;  %v14772_v20 = vld [vmem:[%s19021_s21 + $0x80] ss:$12 sps:$4 sm:$0xff]   ;;  %v14773_v21 = vld [vmem:[%s19021_s21 + $0x68] ss:$12 sps:$4 sm:$0xff]  }
  0x28   : > { %790 = vmatprep.subr.bf16.mxu0 %v14760_v5  ;;  %13595 = vmatpush3.bf16.msra.mxu1 %v14772_v20  ;;  %v14775_v24 = vld [vmem:[%s19021_s21 + $0x38] ss:$12 sps:$4 sm:$0xff]   ;;  %v14776_v28 = vld [vmem:[%s19021_s21 + $0x20] ss:$12 sps:$4 sm:$0xff]   ;;  %v14777_v33 = vld [vmem:[%s19021_s21 + $0x8] ss:$12 sps:$4 sm:$0xff]  }
  0x29   : > { %v681_v19 = vpack.c.bf16 %v634_v18, %v633_v17  ;;  %13596 = vmatprep.subr.bf16.mxu1 %v15693_v22  ;;  %v639_v57 = vand.u32 127, %v635_v55  ;;  %v637_v58 = vadd.s32 8, %v15981_v56  ;;  %v15703_v59 = vmov -1e+30   ;;  %s15706_s24 = smov 120   ;;  %s19025_s3 = sld [smem:[#allocation16_spill]] }
  0x2a   : > { %vm922_vm6 = vcmask 130048   ;;  %s15709_s23 = smov 72   ;;  %vm1394_vm7 = vcmask 392192   ;;  %vm1397_vm8 = vcmask 588800   ;;  %s19027_s20 = smov 80   ;;  %vm2524_vm9 = vcmask 261120  }
  0x2b   : > { %791 = vmatpush1.bf16.msra.mxu0 %v14762_v6  ;;  %vm640_vm4 = vcmp.le.s32.totalorder %v639_v57, %v15981_v56  ;;  %vm641_vm5 = vcmp.le.s32.totalorder %v639_v57, %v637_v58  ;;  %vm2529_vm10 = vcmask 523264   ;;  %vm2532_vm11 = vcmask 654336  }
  0x2c   : > { %792 = vmatprep.subr.bf16.mxu0 %v14763_v7  ;;  %13597 = vmatpush3.bf16.msra.mxu1 %v14773_v21  ;;  %v15985_v60 = vsel %vm640_vm4, 0.0, %v15703_v59  ;;  %v15988_v0 = vsel %vm641_vm5, 0.0, %v15703_v59 }
  0x2d   : > { %13598 = vmatprep.subr.bf16.mxu1 %v15693_v22 }
  0x2f   : > { %793 = vmatpush1.bf16.msra.mxu0 %v14765_v8 }
  0x30   : > { %794 = vmatprep.subr.bf16.mxu0 %v14766_v9  ;;  %13599 = vmatpush3.bf16.msra.mxu1 %v14774_v23 }
  0x31   : > { %13600 = vmatprep.subr.bf16.mxu1 %v15693_v22 }
  0x33   : > { %795 = vmatpush1.bf16.msra.mxu0 %v14768_v10 }
  0x34   : > { %796 = vmatprep.subr.bf16.mxu0 %v14769_v15  ;;  %13601 = vmatpush3.bf16.msra.mxu1 %v14775_v24 }
  0x35   : > { %13602 = vmatprep.subr.bf16.mxu1 %v15693_v22 }
  0x37   : > { %797 = vmatpush1.bf16.msra.mxu0 %v14771_v16 }
  0x38   : > { %13610 = vmatprep.subr.bf16.mxu0 %v15693_v22  ;;  %13603 = vmatpush3.bf16.msra.mxu1 %v14776_v28 }
  0x39   : > { %13604 = vmatprep.subr.bf16.mxu1 %v15693_v22 }
  0x3a   : > { %11957 = vmatmul.mubr.msk.bf16.vlgmr.msra.gmra.mxu0 %vm778_vm0, %v681_v19 }
  0x3b   : > { %13612 = vmatprep.mubr.msk.bf16.mxu0 %vm15694_vm1, %v15693_v22 }
  0x3c   : > { %13605 = vmatpush3.bf16.msra.mxu1 %v14777_v33 }
  0x3d   : > { %13616 = vmatprep.subr.bf16.mxu1 %v15693_v22 }
  0x3f   : > { %13607 = vmatmul.mubr.msk.bf16.vlgmr.msra.gmra.mxu1 %vm778_vm0, %v681_v19 }
  0x40   : > { %13618 = vmatprep.mubr.msk.bf16.mxu1 %vm15694_vm1, %v15693_v22 }
  0xfa   : > { %v816_v25 = vpop.f32.mrf.mxu0 }
  0xfb   : > { %v866_v26 = vmul.f32 0.10206208, %v816_v25 }
  0xfc   : > { %v818_v27 = vpop.f32.mrf.mxu0 }
  0xfe   : > { %v820_v29 = vpop.f32.mrf.mxu0 }
  0xff   : > { %v867_v30 = vmul.f32 0.10206208, %v820_v29  ;;  %v869_v31 = vpack.c.bf16 %v820_v29, %v816_v25  ;;  %v859_v50 = vpop.f32.mrf.mxu1 }
 0x100   : > { %v822_v32 = vpop.f32.mrf.mxu0 }
 0x101   : > { %v15944_v34 = vpack.c.bf16 %v822_v32, %v818_v27  ;;  %872 = vrot.lane.b32.xlu0 %v869_v31, %s18997_s1  ;;  %v868_v35 = vpack.c.bf16 %v867_v30, %v866_v26  ;;  %v13608_v51 = vpop.f32.mrf.mxu1 }
 0x103   : > { %999 = vrot.lane.b32.xlu1 %v15944_v34, %s18984_s4  ;;  %v862_v52 = vpop.f32.mrf.mxu1 }
 0x104   : > { %v1120_v53 = vpack.c.bf16 %v862_v52, %v859_v50 }
 0x105   : > { %997 = vrot.lane.b32.xlu0 %v869_v31, %s18984_s4  ;;  %v13609_v54 = vpop.f32.mrf.mxu1  ;;  %s19029_s4 = smov 48  }
 0x107   : > { %995 = vrot.lane.b32.xlu1 %v868_v35, %s15697_s17  ;;  %s15707_s17 = smov 24  }
 0x109   : > { %1123 = vrot.lane.b32.xlu0 %v15944_v34, %s18993_s19 }
 0x10b   : > { %1121 = vrot.lane.b32.xlu1 %v868_v35, %s18989_s29  ;;  %s19036_s29 = sld [smem:[#allocation19_spill]] }
 0x10d   : > { %1249 = vrot.lane.b32.xlu0 %v15944_v34, %s15700_s0  ;;  %s19026_s0 = sld [smem:[#allocation17_spill]] }
 0x10f   : > { %1247 = vrot.lane.b32.xlu1 %v868_v35, %s15701_s30  ;;  %s18985_s30 = smov 48  }
 0x113   : > { %945 = vrot.lane.b32.xlu1 %v15944_v34, %s18987_s25  ;;  %s19038_s25 = sld [smem:[#allocation20_spill]] }
 0x173   : > { %v873_v36 = vpop.permute.xlu0 %872 }
 0x174   : > { %v879_v37 = vsel %vm874_vm2, %v873_v36, 0 }
 0x175   : > { %13611 = vmatpush3.bf16.xpose.msra.mxu0 %v879_v37  ;;  %v1000_v38 = vpop.permute.xlu1 %999 }
 0x176   : > { %13622 = vmatprep.subr.bf16.mxu0 %v15693_v22 }
 0x177   : > { %v998_v39 = vpop.permute.xlu0 %997 }
 0x178   : > { %v1002_v40 = vsel %vm1001_vm3, %v998_v39, %v1000_v38 }
 0x179   : > { %v996_v41 = vpop.permute.xlu1 %995  ;;  %v1007_v42 = vsel %vm874_vm2, %v1002_v40, 0 }
 0x17b   : > { %v1124_v44 = vpop.permute.xlu0 %1123 }
 0x17c   : > { %13613 = vmatmul.mubr.msk.bf16.vlgmr.msra.gmra.mxu0 %vm874_vm2, %v868_v35  ;;  %v1129_v46 = vsel %vm874_vm2, %v1124_v44, 0 }
 0x17d   : > { %13623 = vmatpush3.bf16.xpose.msra.mxu0 %v1007_v42  ;;  %v1122_v43 = vpop.permute.xlu1 %1121  ;;  %13624 = vmatprep.mubr.msk.bf16.mxu0 %vm15694_vm1, %v15693_v22 }
 0x17e   : > { %13634 = vmatprep.subr.bf16.mxu0 %v15693_v22 }
 0x17f   : > { %v1250_v48 = vpop.permute.xlu0 %1249 }
 0x180   : > { %v1255_v49 = vsel %vm874_vm2, %v1250_v48, 0 }
 0x181   : > { %v1248_v45 = vpop.permute.xlu1 %1247 }
 0x184   : > { %13625 = vmatmul.mubr.msk.bf16.vlgmr.msra.gmra.mxu0 %vm874_vm2, %v996_v41 }
 0x185   : > { %13635 = vmatpush3.bf16.xpose.msra.mxu0 %v1129_v46  ;;  %v946_v47 = vpop.permute.xlu1 %945  ;;  %13636 = vmatprep.mubr.msk.bf16.mxu0 %vm15694_vm1, %v15693_v22 }
 0x186   : > { %13617 = vmatpush3.bf16.msra.mxu1 %v946_v47  ;;  %13646 = vmatprep.subr.bf16.mxu0 %v15693_v22 }
 0x187   : > { %13628 = vmatprep.subr.bf16.mxu1 %v15693_v22 }
 0x18c   : > { %13637 = vmatmul.mubr.msk.bf16.vlgmr.msra.gmra.mxu0 %vm874_vm2, %v1122_v43 }
 0x18d   : > { %13647 = vmatpush3.bf16.xpose.msra.mxu0 %v1255_v49  ;;  %13648 = vmatprep.mubr.msk.bf16.mxu0 %vm15694_vm1, %v15693_v22 }
 0x18e   : > { %13658 = vmatprep.subr.bf16.mxu0 %v15693_v22 }
 0x194   : > { %13649 = vmatmul.mubr.msk.bf16.vlgmr.msra.gmra.mxu0 %vm874_vm2, %v1248_v45 }
 0x195   : > { %13670 = vmatprep.mubr.msk.bf16.mxu0 %vm15694_vm1, %v15693_v22 }
 0x23c   : > { %v915_v61 = vpop.f32.mrf.mxu0 }
 0x23d   : > { %v916_v62 = vadd.f32 %v915_v61, %v15985_v60 }
 0x23e   : > { %v13614_v63 = vpop.f32.mrf.mxu0 }
 0x23f   : > { %v923_v1 = vsel %vm922_vm6, %v916_v62, -inf }
 0x240   : > { %v918_v3 = vpop.f32.mrf.mxu0  ;;  %924 = vmax.xlane.f32.xlu0 %v923_v1 }
 0x241   : > { %v919_v4 = vadd.f32 %v918_v3, %v15988_v0 }
 0x242   : > { %v13615_v5 = vpop.f32.mrf.mxu0 }
 0x243   : > { %v926_v6 = vsel %vm922_vm6, %v919_v4, -inf }
 0x244   : > { %927 = vmax.xlane.f32.xlu1 %v926_v6  ;;  %v1043_v7 = vpop.f32.mrf.mxu0 }
 0x245   : > { %v1044_v8 = vadd.f32 %v1043_v7, %v15985_v60 }
 0x246   : > { %v13626_v9 = vpop.f32.mrf.mxu0 }
 0x247   : > { %v1050_v10 = vsel %vm922_vm6, %v1044_v8, -inf }
 0x248   : > { %1051 = vmax.xlane.f32.xlu0 %v1050_v10  ;;  %v1046_v11 = vpop.f32.mrf.mxu0 }
 0x249   : > { %v1047_v12 = vadd.f32 %v1046_v11, %v15988_v0 }
 0x24a   : > { %v13627_v13 = vpop.f32.mrf.mxu0 }
 0x24b   : > { %v1053_v14 = vsel %vm922_vm6, %v1047_v12, -inf }
 0x24c   : > { %1054 = vmax.xlane.f32.xlu0 %v1053_v14  ;;  %v1165_v15 = vpop.f32.mrf.mxu0 }
 0x24d   : > { %v1166_v16 = vadd.f32 %v1165_v15, %v15985_v60 }
 0x24e   : > { %v13638_v17 = vpop.f32.mrf.mxu0 }
 0x24f   : > { %v1172_v18 = vsel %vm922_vm6, %v1166_v16, -inf }
 0x250   : > { %1173 = vmax.xlane.f32.xlu1 %v1172_v18  ;;  %v1168_v19 = vpop.f32.mrf.mxu0 }
 0x251   : > { %v1169_v20 = vadd.f32 %v1168_v19, %v15988_v0 }
 0x252   : > { %v13639_v21 = vpop.f32.mrf.mxu0 }
 0x253   : > { %v1175_v23 = vsel %vm922_vm6, %v1169_v20, -inf }
 0x254   : > { %1176 = vmax.xlane.f32.xlu0 %v1175_v23  ;;  %v1291_v24 = vpop.f32.mrf.mxu0 }
 0x255   : > { %v1292_v28 = vadd.f32 %v1291_v24, %v15985_v60 }
 0x256   : > { %v13650_v25 = vpop.f32.mrf.mxu0 }
 0x257   : > { %v1298_v30 = vsel %vm922_vm6, %v1292_v28, -inf }
 0x258   : > { %v1294_v26 = vpop.f32.mrf.mxu0 }
 0x259   : > { %v16006_v29 = vadd.f32 %v1294_v26, %v15988_v0 }
 0x25a   : > { %v13651_v27 = vpop.f32.mrf.mxu0 }
 0x25b   : > { %v1301_v31 = vsel %vm922_vm6, %v16006_v29, -inf }
 0x261   : > { %1194 = vrot.lane.b32.xlu1 %v15944_v34, %s18995_s26 }
 0x26a   : > { %1071 = vrot.lane.b32.xlu0 %v15944_v34, %s15705_s28 }
 0x285   : > { %1299 = vmax.xlane.f32.xlu1 %v1298_v30 }
 0x289   : > { %1302 = vmax.xlane.f32.xlu0 %v1301_v31 }
 0x296   : > { %1196 = vrot.lane.b32.xlu1 %v1120_v53, %s18995_s26 }
 0x29f   : > { %1319 = vrot.lane.b32.xlu0 %v1120_v53, %s15706_s24  ;;  %s19035_s24 = sld [smem:[#allocation18_spill]] }
 0x2c9   : > { %v925_v32 = vpop.xlane.xlu0 %924 }
 0x2ca   : > { %v929_v33 = vsub.f32 %v916_v62, %v925_v32 }
 0x2cc   : > { %v931_v35 = vmul.f32 1.442695, %v929_v33 }
 0x2cd   : > { %v928_v34 = vpop.xlane.xlu1 %927 }
 0x2ce   : > { %v930_v36 = vsub.f32 %v919_v4, %v928_v34  ;;  %15258 = vpow2.f32 %v931_v35 }
 0x2d0   : > { %v933_v37 = vmul.f32 1.442695, %v930_v36 }
 0x2d1   : > { %v1052_v38 = vpop.xlane.xlu0 %1051 }
 0x2d2   : > { %15260 = vpow2.f32 %v933_v37  ;;  %v1056_v39 = vsub.f32 %v1044_v8, %v1052_v38 }
 0x2d4   : > { %v1058_v40 = vmul.f32 1.442695, %v1056_v39 }
 0x2d5   : > { %v1055_v41 = vpop.xlane.xlu0 %1054 }
 0x2d6   : > { %15262 = vpow2.f32 %v1058_v40  ;;  %v1057_v42 = vsub.f32 %v1047_v12, %v1055_v41  ;;  %v14779_v40 = vld [vmem:[%s19025_s3 + $0x20] sm:$0xff]   ;;  %v14780_v41 = vld [vmem:[%s19025_s3 + $0x18] sm:$0xff]  }
 0x2d8   : > { %v1060_v43 = vmul.f32 1.442695, %v1057_v42 }
 0x2d9   : > { %v1174_v44 = vpop.xlane.xlu1 %1173 }
 0x2da   : > { %15264 = vpow2.f32 %v1060_v43  ;;  %v1178_v45 = vsub.f32 %v1166_v16, %v1174_v44 }
 0x2db   : > { %v15259_v48 = vpop.eup %15258 }
 0x2dc   : > { %v1180_v46 = vmul.f32 1.442695, %v1178_v45  ;;  %v935_v18 = vsel %vm922_vm6, %v15259_v48, 0.0 }
 0x2dd   : > { %v1177_v47 = vpop.xlane.xlu0 %1176  ;;  %v1195_v3 = vpop.permute.xlu1 %1194 }
 0x2de   : > { %15266 = vpow2.f32 %v1180_v46  ;;  %v1179_v49 = vsub.f32 %v1169_v20, %v1177_v47  ;;  %v14781_v46 = vld [vmem:[%s19025_s3 + $0x10] sm:$0xff]  }
 0x2df   : > { %v15261_v50 = vpop.eup %15260 }
 0x2e0   : > { %v1182_v51 = vmul.f32 1.442695, %v1179_v49  ;;  %v943_v52 = vpack.c.bf16 %v15261_v50, %v15259_v48  ;;  %v938_v20 = vsel %vm922_vm6, %v15261_v50, 0.0 }
 0x2e1   : > { %v1072_v53 = vpop.permute.xlu0 %1071 }
 0x2e2   : > { %15268 = vpow2.f32 %v1182_v51  ;;  %13619 = vmatmul.mubr.msk.bf16.vlgmr.msra.gmra.mxu1 %vm922_vm6, %v943_v52 }
 0x2e3   : > { %v15263_v54 = vpop.eup %15262  ;;  %13629 = vmatpush3.bf16.msra.mxu1 %v1072_v53  ;;  %13630 = vmatprep.mubr.msk.bf16.mxu1 %vm15694_vm1, %v15693_v22 }
 0x2e4   : > { %v1062_v55 = vsel %vm922_vm6, %v15263_v54, 0.0  ;;  %13640 = vmatprep.subr.bf16.mxu1 %v15693_v22 }
 0x2e5   : > { %1063 = vadd.xlane.f32.xlu1 %v1062_v55  ;;  %v14783_v55 = vld [vmem:[%s19025_s3] sm:$0xff]  }
 0x2e7   : > { %v15265_v57 = vpop.eup %15264 }
 0x2e8   : > { %v1065_v58 = vsel %vm922_vm6, %v15265_v57, 0.0  ;;  %v1070_v59 = vpack.c.bf16 %v15265_v57, %v15263_v54  ;;  %v14782_v54 = vld [vmem:[%s19025_s3 + $0x8] sm:$0xff]  }
 0x2e9   : > { %1066 = vadd.xlane.f32.xlu0 %v1065_v58 }
 0x2ea   : > { %13631 = vmatmul.mubr.msk.bf16.vlgmr.msra.gmra.mxu1 %vm922_vm6, %v1070_v59 }
 0x2eb   : > { %v15267_v61 = vpop.eup %15266  ;;  %13642 = vmatprep.mubr.msk.bf16.mxu1 %vm15694_vm1, %v15693_v22 }
 0x2ec   : > { %v1184_v62 = vsel %vm922_vm6, %v15267_v61, 0.0 }
 0x2ed   : > { %1185 = vadd.xlane.f32.xlu0 %v1184_v62 }
 0x2ef   : > { %v15269_v63 = vpop.eup %15268 }
 0x2f0   : > { %v1187_v1 = vsel %vm922_vm6, %v15269_v63, 0.0  ;;  %v1192_v12 = vpack.c.bf16 %v15269_v63, %v15267_v61 }
 0x2f1   : > { %1188 = vadd.xlane.f32.xlu1 %v1187_v1 }
 0x30e   : > { %v1300_v4 = vpop.xlane.xlu1 %1299 }
 0x30f   : > { %v1304_v5 = vsub.f32 %v1292_v28, %v1300_v4  ;;  %v14778_v28 = vld [vmem:[%s19025_s3 + $0x28] sm:$0xff]  }
 0x310   : > { %13659 = vmatpush3.bf16.msra.mxu0 %v14778_v28 }
 0x311   : > { %v1306_v6 = vmul.f32 1.442695, %v1304_v5  ;;  %13660 = vmatprep.subr.bf16.mxu0 %v15693_v22 }
 0x312   : > { %v1303_v7 = vpop.xlane.xlu0 %1302  ;;  %v1197_v8 = vpop.permute.xlu1 %1196 }
 0x313   : > { %15270 = vpow2.f32 %v1306_v6  ;;  %v1305_v9 = vsub.f32 %v16006_v29, %v1303_v7  ;;  %v1199_v10 = vsel %vm922_vm6, %v1195_v3, %v1197_v8 }
 0x314   : > { %13641 = vmatpush3.bf16.msra.mxu1 %v1199_v10  ;;  %13661 = vmatpush3.bf16.msra.mxu0 %v14779_v40 }
 0x315   : > { %v1308_v11 = vmul.f32 1.442695, %v1305_v9  ;;  %13652 = vmatprep.subr.bf16.mxu1 %v15693_v22  ;;  %13662 = vmatprep.subr.bf16.mxu0 %v15693_v22 }
 0x316   : > { %v1320_v13 = vpop.permute.xlu0 %1319 }
 0x317   : > { %15272 = vpow2.f32 %v1308_v11  ;;  %13643 = vmatmul.mubr.msk.bf16.vlgmr.msra.gmra.mxu1 %vm922_vm6, %v1192_v12 }
 0x318   : > { %13653 = vmatpush3.bf16.msra.mxu1 %v1320_v13  ;;  %13654 = vmatprep.mubr.msk.bf16.mxu1 %vm15694_vm1, %v15693_v22 }
 0x319   : > { %13663 = vmatpush3.bf16.msra.mxu0 %v14780_v41 }
 0x31a   : > { %13664 = vmatprep.subr.bf16.mxu0 %v15693_v22 }
 0x31d   : > { %13665 = vmatpush3.bf16.msra.mxu0 %v14781_v46 }
 0x31e   : > { %13666 = vmatprep.subr.bf16.mxu0 %v15693_v22 }
 0x320   : > { %v15271_v14 = vpop.eup %15270 }
 0x321   : > { %v1310_v15 = vsel %vm922_vm6, %v15271_v14, 0.0  ;;  %13667 = vmatpush3.bf16.msra.mxu0 %v14782_v54  ;;  %v14792_v54 = vld [vmem:[%s18958_s7 + $0x48] ss:$12 sps:$4 sm:$0xff]  }
 0x322   : > { %1311 = vadd.xlane.f32.xlu0 %v1310_v15  ;;  %13668 = vmatprep.subr.bf16.mxu0 %v15693_v22 }
 0x324   : > { %v15273_v16 = vpop.eup %15272 }
 0x325   : > { %v1313_v17 = vsel %vm922_vm6, %v15273_v16, 0.0  ;;  %v1318_v19 = vpack.c.bf16 %v15273_v16, %v15271_v14  ;;  %13669 = vmatpush3.bf16.msra.mxu0 %v14783_v55  ;;  %v14795_v55 = vld [vmem:[%s18958_s7 + $0x50] ss:$12 sps:$4 sm:$0xff]  }
 0x326   : > { %1314 = vadd.xlane.f32.xlu1 %v1313_v17  ;;  %936 = vadd.xlane.f32.xlu0 %v935_v18 }
 0x327   : > { %13655 = vmatmul.mubr.msk.bf16.vlgmr.msra.gmra.mxu1 %vm922_vm6, %v1318_v19  ;;  %13674 = vmatprep.subr.bf16.mxu0 %v15693_v22 }
 0x328   : > { %1701 = vmatprep.mubr.bf16.mxu1 %v15692_v2 }
 0x32a   : > { %939 = vadd.xlane.f32.xlu1 %v938_v20 }
 0x36e   : > { %v1064_v21 = vpop.xlane.xlu1 %1063 }
 0x36f   : > { %15274 = vrcp.f32 %v1064_v21 }
 0x372   : > { %v1067_v23 = vpop.xlane.xlu0 %1066 }
 0x373   : > { %15276 = vrcp.f32 %v1067_v23 }
 0x376   : > { %v1186_v38 = vpop.xlane.xlu0 %1185 }
 0x377   : > { %15278 = vrcp.f32 %v1186_v38 }
 0x37a   : > { %v1189_v39 = vpop.xlane.xlu1 %1188 }
 0x37b   : > { %15280 = vrcp.f32 %v1189_v39 }
 0x37c   : > { %v15275_v31 = vpop.eup %15274 }
 0x380   : > { %v15277_v32 = vpop.eup %15276 }
 0x384   : > { %v15279_v44 = vpop.eup %15278 }
 0x388   : > { %v15281_v47 = vpop.eup %15280 }
 0x3a2   : > { %v16035_v24 = vpop.f32.mrf.mxu1 }
 0x3a4   : > { %v13620_v25 = vpop.f32.mrf.mxu1 }
 0x3a6   : > { %v16037_v26 = vpop.f32.mrf.mxu1 }
 0x3a8   : > { %v13621_v27 = vpop.f32.mrf.mxu1 }
 0x3aa   : > { %v1111_v29 = vpop.f32.mrf.mxu1 }
 0x3ab   : > { %v1118_v35 = vmul.f32 %v15275_v31, %v1111_v29  ;;  %v1312_v45 = vpop.xlane.xlu0 %1311 }
 0x3ac   : > { %v13632_v30 = vpop.f32.mrf.mxu1  ;;  %15282 = vrcp.f32 %v1312_v45 }
 0x3ae   : > { %v1114_v33 = vpop.f32.mrf.mxu1 }
 0x3af   : > { %v1119_v34 = vmul.f32 %v15277_v32, %v1114_v33  ;;  %v1315_v48 = vpop.xlane.xlu1 %1314  ;;  %v937_v5 = vpop.xlane.xlu0 %936 }
 0x3b0   : > { %v13633_v36 = vpop.f32.mrf.mxu1  ;;  %15284 = vrcp.f32 %v1315_v48  ;;  %v14784_v48 = vld [vmem:[%s18958_s7 + $0x78] ss:$12 sps:$4 sm:$0xff]  }
 0x3b1   : > { %v14589_v37 = vpack.i.bf16 %v1119_v34, %v1118_v35  ;;  %15286 = vrcp.f32 %v937_v5 }
 0x3b3   : > { %14590 = vrot.lane.b32.xlu0 %v14589_v37, %s15707_s17  ;;  %v940_v6 = vpop.xlane.xlu1 %939  ;;  %s19028_s17 = smov 64  }
 0x3b4   : > { %15288 = vrcp.f32 %v940_v6 }
 0x3b9   : > { %v15283_v59 = vpop.eup %15282 }
 0x3bd   : > { %v15285_v61 = vpop.eup %15284 }
 0x3be   : > { %v15287_v8 = vpop.eup %15286 }
 0x3bf   : > { %v992_v15 = vmul.f32 %v15287_v8, %v16035_v24  ;;  %v11967_v24 = vld [vmem:[%s19026_s0] ss:$0 sm:$0xff]  ;;  %s19033_s0 = smov 96  }
 0x3c1   : > { %v15289_v10 = vpop.eup %15288 }
 0x3c2   : > { %v993_v16 = vmul.f32 %v15289_v10, %v16037_v26 }
 0x3d7   : > { %v1238_v42 = vpop.f32.mrf.mxu1 }
 0x3d8   : > { %v1245_v50 = vmul.f32 %v15279_v44, %v1238_v42 }
 0x3d9   : > { %v13644_v43 = vpop.f32.mrf.mxu1 }
 0x3db   : > { %v1241_v49 = vpop.f32.mrf.mxu1 }
 0x3dc   : > { %v1246_v51 = vmul.f32 %v15281_v47, %v1241_v49  ;;  %v14786_v47 = vld [vmem:[%s18958_s7 + $0x7c] ss:$12 sps:$4 sm:$0xff]   ;;  %v14787_v49 = vld [vmem:[%s18958_s7 + $0x80] ss:$12 sps:$4 sm:$0xff]  }
 0x3dd   : > { %v13645_v52 = vpop.f32.mrf.mxu1  ;;  %1673 = vmatprep.subr.bf16.mxu1 %v14786_v47 }
 0x3de   : > { %v14594_v53 = vpack.i.bf16 %v1246_v51, %v1245_v50  ;;  %1674 = vmatpush1.bf16.msra.mxu1 %v14784_v48  ;;  %v14790_v50 = vld [vmem:[%s18958_s7 + $0x64] ss:$12 sps:$4 sm:$0xff]   ;;  %v14788_v51 = vld [vmem:[%s18958_s7 + $0x60] ss:$12 sps:$4 sm:$0xff]   ;;  %v14791_v52 = vld [vmem:[%s18958_s7 + $0x68] ss:$12 sps:$4 sm:$0xff]  }
 0x3df   : > { %1675 = vmatprep.subr.bf16.mxu1 %v14790_v50 }
 0x3e0   : > { %14595 = vrot.lane.b32.xlu1 %v14594_v53, %s18985_s30  ;;  %v14794_v53 = vld [vmem:[%s18958_s7 + $0x4c] ss:$12 sps:$4 sm:$0xff]   ;;  %s19030_s30 = smov 32  }
 0x3e2   : > { %1676 = vmatpush1.bf16.msra.mxu1 %v14788_v51 }
 0x3e3   : > { %1677 = vmatprep.subr.bf16.mxu1 %v14794_v53 }
 0x3e6   : > { %1678 = vmatpush1.bf16.msra.mxu1 %v14792_v54 }
 0x3e7   : > { %v1359_v57 = vpop.f32.mrf.mxu1 }
 0x3e8   : > { %v1366_v63 = vmul.f32 %v15283_v59, %v1359_v57  ;;  %v14798_v57 = vld [vmem:[%s18958_s7 + $0x34] ss:$12 sps:$4 sm:$0xff]   ;;  %v14799_v59 = vld [vmem:[%s18958_s7 + $0x38] ss:$12 sps:$4 sm:$0xff]  }
 0x3e9   : > { %v13656_v58 = vpop.f32.mrf.mxu1  ;;  %1679 = vmatprep.subr.bf16.mxu1 %v14798_v57 }
 0x3ea   : > { %v14796_v58 = vld [vmem:[%s18958_s7 + $0x30] ss:$12 sps:$4 sm:$0xff]  }
 0x3eb   : > { %v1362_v62 = vpop.f32.mrf.mxu1  ;;  %1680 = vmatpush1.bf16.msra.mxu1 %v14796_v58 }
 0x3ec   : > { %v1367_v1 = vmul.f32 %v15285_v61, %v1362_v62  ;;  %v14802_v61 = vld [vmem:[%s18958_s7 + $0x1c] ss:$12 sps:$4 sm:$0xff]   ;;  %v14800_v62 = vld [vmem:[%s18958_s7 + $0x18] ss:$12 sps:$4 sm:$0xff]  }
 0x3ed   : > { %v13657_v3 = vpop.f32.mrf.mxu1  ;;  %1681 = vmatprep.subr.bf16.mxu1 %v14802_v61 }
 0x3ee   : > { %v14599_v4 = vpack.i.bf16 %v1367_v1, %v1366_v63  ;;  %v14803_v63 = vld [vmem:[%s18958_s7 + $0x20] ss:$12 sps:$4 sm:$0xff]   ;;  %v14806_v1 = vld [vmem:[%s18958_s7 + $0x4] ss:$12 sps:$4 sm:$0xff]  }
 0x3ef   : > { %1682 = vmatpush1.bf16.msra.mxu1 %v14800_v62  ;;  %v14804_v3 = vld [vmem:[%s18958_s7] ss:$12 sps:$4 sm:$0xff]  }
 0x3f0   : > { %14600 = vrot.lane.b32.xlu1 %v14599_v4, %s15709_s23  ;;  %v14807_v4 = vld [vmem:[%s18958_s7 + $0x8] ss:$12 sps:$4 sm:$0xff]   ;;  %1683 = vmatprep.subr.bf16.mxu1 %v14806_v1  ;;  %s18991_s23 = smov 96  }
 0x3f3   : > { %1684 = vmatpush1.bf16.msra.mxu1 %v14804_v3 }
 0x3f4   : > { %13690 = vmatprep.subr.bf16.mxu1 %v15693_v22 }
 0x425   : > { %v14591_v7 = vpop.permute.xlu0 %14590 }
 0x426   : > { %v14593_v11 = vunpack.i.h.bf16 %v14591_v7  ;;  %v14592_v12 = vunpack.i.l.bf16 %v14591_v7 }
 0x428   : > { %v1392_v18 = vsel %vm874_vm2, %v992_v15, %v14592_v12  ;;  %v1393_v19 = vsel %vm874_vm2, %v993_v16, %v14593_v11 }
 0x452   : > { %v14596_v9 = vpop.permute.xlu1 %14595 }
 0x453   : > { %v14598_v13 = vunpack.i.h.bf16 %v14596_v9  ;;  %v14597_v14 = vunpack.i.l.bf16 %v14596_v9 }
 0x455   : > { %v1396_v23 = vsel %vm1394_vm7, %v1393_v19, %v14598_v13  ;;  %v1395_v25 = vsel %vm1394_vm7, %v1392_v18, %v14597_v14  ;;  %v11975_v13 = vld [vmem:[%s18956_s5] ss:$0 sm:$0xff] }
 0x462   : > { %v14601_v17 = vpop.permute.xlu1 %14600 }
 0x463   : > { %v14603_v20 = vunpack.i.h.bf16 %v14601_v17  ;;  %v14602_v21 = vunpack.i.l.bf16 %v14601_v17  ;;  %v11976_v17 = vld [vmem:[%s18957_s6] ss:$0 sm:$0xff] }
 0x465   : > { %v1398_v27 = vsel %vm1397_vm8, %v1395_v25, %v14602_v21  ;;  %v1399_v28 = vsel %vm1397_vm8, %v1396_v23, %v14603_v20 }
 0x466   : > { %v1400_v29 = vpack.c.bf16 %v1399_v28, %v1398_v27 }
 0x468   : > { %13671 = vmatmul.mubr.msk.bf16.vlgmr.msra.gmra.mxu0 %vm778_vm0, %v1400_v29 }
 0x469   : > { %13686 = vmatprep.mubr.msk.bf16.mxu0 %vm15694_vm1, %v15693_v22  ;;  %13675 = vmatpush3.bf16.msra.mxu0 %v14787_v49 }
 0x46a   : > { %13676 = vmatprep.subr.bf16.mxu0 %v15693_v22 }
 0x46d   : > { %13677 = vmatpush3.bf16.msra.mxu0 %v14791_v52 }
 0x46e   : > { %13678 = vmatprep.subr.bf16.mxu0 %v15693_v22 }
 0x471   : > { %13679 = vmatpush3.bf16.msra.mxu0 %v14795_v55 }
 0x472   : > { %13680 = vmatprep.subr.bf16.mxu0 %v15693_v22 }
 0x475   : > { %13681 = vmatpush3.bf16.msra.mxu0 %v14799_v59 }
 0x476   : > { %13682 = vmatprep.subr.bf16.mxu0 %v15693_v22 }
 0x479   : > { %13683 = vmatpush3.bf16.msra.mxu0 %v14803_v63 }
 0x47a   : > { %13684 = vmatprep.subr.bf16.mxu0 %v15693_v22 }
 0x47d   : > { %13685 = vmatpush3.bf16.msra.mxu0 %v14807_v4 }
 0x47e   : > { %13708 = vmatprep.subr.bf16.mxu0 %v15693_v22 }
 0x528   : > { %v1480_v26 = vpop.f32.mrf.mxu0 }
 0x529   : > { %v16076_v30 = vadd.f32 %v11967_v24, %v1480_v26 }
 0x52a   : > { %v13672_v31 = vpop.f32.mrf.mxu0 }
 0x52b   : > { %v1489_v32 = vsel %vm778_vm0, %v16076_v30, 0.0 }
 0x52c   : > { %1490 = vadd.xlane.f32.xlu0 %v1489_v32  ;;  %v1483_v33 = vpop.f32.mrf.mxu0 }
 0x52d   : > { %v16080_v35 = vadd.f32 %v11967_v24, %v1483_v33 }
 0x52e   : > { %v13673_v34 = vpop.f32.mrf.mxu0 }
 0x52f   : > { %v1492_v36 = vsel %vm778_vm0, %v16080_v35, 0.0 }
 0x530   : > { %1493 = vadd.xlane.f32.xlu1 %v1492_v36 }
 0x5b5   : > { %v1491_v37 = vpop.xlane.xlu0 %1490 }
 0x5b6   : > { %v1496_v38 = vmul.f32 0.010416667, %v1491_v37 }
 0x5b8   : > { %v1498_v39 = vsub.f32 %v16076_v30, %v1496_v38 }
 0x5b9   : > { %v1494_v40 = vpop.xlane.xlu1 %1493 }
 0x5ba   : > { %v1497_v41 = vmul.f32 0.010416667, %v1494_v40  ;;  %v1500_v42 = vmul.f32 %v1498_v39, %v1498_v39 }
 0x5bc   : > { %v1499_v43 = vsub.f32 %v16080_v35, %v1497_v41  ;;  %v1502_v44 = vsel %vm778_vm0, %v1500_v42, 0.0 }
 0x5bd   : > { %1503 = vadd.xlane.f32.xlu0 %v1502_v44 }
 0x5be   : > { %v1501_v45 = vmul.f32 %v1499_v43, %v1499_v43 }
 0x5c0   : > { %v1505_v46 = vsel %vm778_vm0, %v1501_v45, 0.0 }
 0x5c1   : > { %1506 = vadd.xlane.f32.xlu0 %v1505_v46 }
 0x646   : > { %v1504_v5 = vpop.xlane.xlu0 %1503 }
 0x647   : > { %v1508_v6 = vmul.f32 0.010416667, %v1504_v5 }
 0x649   : > { %v1510_v7 = vadd.f32 1e-05, %v1508_v6 }
 0x64a   : > { %v1507_v8 = vpop.xlane.xlu0 %1506 }
 0x64b   : > { %15290 = vrsqrt.f32 %v1510_v7  ;;  %v1509_v9 = vmul.f32 0.010416667, %v1507_v8 }
 0x64d   : > { %v1511_v10 = vadd.f32 1e-05, %v1509_v9 }
 0x64f   : > { %15292 = vrsqrt.f32 %v1511_v10 }
 0x658   : > { %v15291_v11 = vpop.eup %15290 }
 0x659   : > { %v1514_v12 = vmul.f32 %v15291_v11, %v1498_v39 }
 0x65b   : > { %v1522_v16 = vmul.f32 %v11975_v13, %v1514_v12 }
 0x65c   : > { %v15293_v14 = vpop.eup %15292 }
 0x65d   : > { %v1515_v15 = vmul.f32 %v15293_v14, %v1499_v43  ;;  %v1530_v19 = vadd.f32 %v11976_v17, %v1522_v16 }
 0x65f   : > { %v1523_v18 = vmul.f32 %v11975_v13, %v1515_v15 }
 0x661   : > { %v1531_v20 = vadd.f32 %v11976_v17, %v1523_v18 }
 0x663   : > { %v1569_v21 = vpack.c.bf16 %v1531_v20, %v1530_v19 }
 0x665   : > { %11995 = vmatmul.mubr.msk.bf16.vlgmr.msra.gmra.mxu1 %vm778_vm0, %v1569_v21  ;;  %13687 = vmatmul.mubr.msk.bf16.vlgmr.msra.gmra.mxu0 %vm778_vm0, %v1569_v21 }
 0x666   : > { %13692 = vmatprep.mubr.msk.bf16.mxu1 %vm15694_vm1, %v15693_v22  ;;  %13710 = vmatprep.mubr.msk.bf16.mxu0 %vm15694_vm1, %v15693_v22 }
 0x725   : > { %v1703_v23 = vpop.f32.mrf.mxu1  ;;  %v1746_v25 = vpop.f32.mrf.mxu0 }
 0x726   : > { %v1753_v34 = vmul.f32 0.10206208, %v1703_v23 }
 0x727   : > { %v1705_v27 = vpop.f32.mrf.mxu1  ;;  %v13688_v28 = vpop.f32.mrf.mxu0 }
 0x729   : > { %v1707_v29 = vpop.f32.mrf.mxu1  ;;  %v1749_v24 = vpop.f32.mrf.mxu0 }
 0x72a   : > { %v1756_v26 = vpack.c.bf16 %v1707_v29, %v1703_v23  ;;  %v16161_v31 = vpack.c.bf16 %v1749_v24, %v1746_v25  ;;  %v1754_v33 = vmul.f32 0.10206208, %v1707_v29 }
 0x72b   : > { %v13689_v32 = vpop.f32.mrf.mxu0  ;;  %v1709_v37 = vpop.f32.mrf.mxu1 }
 0x72c   : > { %1759 = vrot.lane.b32.xlu1 %v1756_v26, %s18997_s1  ;;  %v1755_v36 = vpack.c.bf16 %v1754_v33, %v1753_v34  ;;  %v16167_v38 = vpack.c.bf16 %v1709_v37, %v1705_v27 }
 0x72e   : > { %v2007_v3 = vsel %vm922_vm6, %v16167_v38, 0 }
 0x730   : > { %1882 = vrot.lane.b32.xlu1 %v1756_v26, %s18995_s26 }
 0x734   : > { %1880 = vrot.lane.b32.xlu1 %v1755_v36, %s18993_s19 }
 0x738   : > { %2001 = vrot.lane.b32.xlu1 %v1755_v36, %s18991_s23 }
 0x73c   : > { %2122 = vrot.lane.b32.xlu1 %v16167_v38, %s18993_s19 }
 0x740   : > { %2244 = vrot.lane.b32.xlu1 %v16167_v38, %s18991_s23  ;;  %s19032_s23 = smov 112  }
 0x744   : > { %2362 = vrot.lane.b32.xlu1 %v16167_v38, %s19027_s20 }
 0x79e   : > { %v1760_v39 = vpop.permute.xlu1 %1759 }
 0x79f   : > { %v1765_v40 = vsel %vm922_vm6, %v1760_v39, 0 }
 0x7a0   : > { %13691 = vmatpush3.bf16.xpose.msra.mxu1 %v1765_v40 }
 0x7a1   : > { %13696 = vmatprep.subr.bf16.mxu1 %v15693_v22 }
 0x7a2   : > { %v1883_v57 = vpop.permute.xlu1 %1882 }
 0x7a3   : > { %v1888_v62 = vsel %vm922_vm6, %v1883_v57, 0 }
 0x7a6   : > { %v1881_v63 = vpop.permute.xlu1 %1880 }
 0x7a7   : > { %13693 = vmatmul.mubr.msk.bf16.vlgmr.msra.gmra.mxu1 %vm922_vm6, %v1755_v36 }
 0x7a8   : > { %13698 = vmatprep.mubr.msk.bf16.mxu1 %vm15694_vm1, %v15693_v22 }
 0x7aa   : > { %v2002_v1 = vpop.permute.xlu1 %2001 }
 0x7ae   : > { %v2123_v4 = vpop.permute.xlu1 %2122 }
 0x7af   : > { %v2128_v5 = vsel %vm922_vm6, %v2123_v4, 0 }
 0x7b2   : > { %v2245_v6 = vpop.permute.xlu1 %2244 }
 0x7b3   : > { %v2250_v8 = vsel %vm922_vm6, %v2245_v6, 0 }
 0x7b6   : > { %v2363_v9 = vpop.permute.xlu1 %2362 }
 0x7b7   : > { %v2368_v11 = vsel %vm922_vm6, %v2363_v9, 0 }
 0x867   : > { %v1801_v41 = vpop.f32.mrf.mxu1 }
 0x868   : > { %v1802_v42 = vadd.f32 %v1801_v41, %v15985_v60 }
 0x869   : > { %v13694_v43 = vpop.f32.mrf.mxu1 }
 0x86a   : > { %v1808_v44 = vsel %vm922_vm6, %v1802_v42, -inf }
 0x86b   : > { %1809 = vmax.xlane.f32.xlu0 %v1808_v44  ;;  %v1804_v45 = vpop.f32.mrf.mxu1 }
 0x86c   : > { %v1805_v46 = vadd.f32 %v1804_v45, %v15988_v0 }
 0x86d   : > { %v13695_v47 = vpop.f32.mrf.mxu1 }
 0x86e   : > { %v1811_v48 = vsel %vm922_vm6, %v1805_v46, -inf }
 0x86f   : > { %1812 = vmax.xlane.f32.xlu0 %v1811_v48 }
 0x885   : > { %1830 = vrot.lane.b32.xlu0 %v16167_v38, %s19028_s17 }
 0x889   : > { %2120 = vrot.lane.b32.xlu0 %v1755_v36, %s19027_s20 }
 0x88d   : > { %2242 = vrot.lane.b32.xlu0 %v1755_v36, %s19028_s17 }
 0x891   : > { %2360 = vrot.lane.b32.xlu0 %v1755_v36, %s19029_s4 }
 0x8f4   : > { %v1810_v49 = vpop.xlane.xlu0 %1809 }
 0x8f5   : > { %v1814_v50 = vsub.f32 %v1802_v42, %v1810_v49 }
 0x8f7   : > { %v1816_v51 = vmul.f32 1.442695, %v1814_v50 }
 0x8f8   : > { %v1813_v52 = vpop.xlane.xlu0 %1812 }
 0x8f9   : > { %v1815_v53 = vsub.f32 %v1805_v46, %v1813_v52  ;;  %15294 = vpow2.f32 %v1816_v51 }
 0x8fb   : > { %v1818_v54 = vmul.f32 1.442695, %v1815_v53 }
 0x8fc   : > { %v1831_v55 = vpop.permute.xlu0 %1830 }
 0x8fd   : > { %15296 = vpow2.f32 %v1818_v54  ;;  %13697 = vmatpush3.bf16.msra.mxu1 %v1831_v55 }
 0x8fe   : > { %13702 = vmatprep.subr.bf16.mxu1 %v15693_v22 }
 0x900   : > { %v2121_v7 = vpop.permute.xlu0 %2120 }
 0x904   : > { %v2243_v10 = vpop.permute.xlu0 %2242 }
 0x906   : > { %v16190_v58 = vpop.eup %15294 }
 0x908   : > { %v2361_v12 = vpop.permute.xlu0 %2360 }
 0x90a   : > { %v16192_v59 = vpop.eup %15296 }
 0x90b   : > { %v1828_v61 = vpack.c.bf16 %v16192_v59, %v16190_v58 }
 0x90d   : > { %13699 = vmatmul.mubr.msk.bf16.vlgmr.msra.gmra.mxu1 %vm922_vm6, %v1828_v61 }
 0x90e   : > { %13703 = vmatpush3.bf16.xpose.msra.mxu1 %v1888_v62  ;;  %13704 = vmatprep.mubr.msk.bf16.mxu1 %vm15694_vm1, %v15693_v22 }
 0x90f   : > { %13714 = vmatprep.subr.bf16.mxu1 %v15693_v22 }
 0x915   : > { %13705 = vmatmul.mubr.msk.bf16.vlgmr.msra.gmra.mxu1 %vm922_vm6, %v1881_v63 }
 0x916   : > { %13715 = vmatpush3.bf16.xpose.msra.mxu1 %v2007_v3  ;;  %13716 = vmatprep.mubr.msk.bf16.mxu1 %vm15694_vm1, %v15693_v22 }
 0x917   : > { %13726 = vmatprep.subr.bf16.mxu1 %v15693_v22 }
 0x91d   : > { %13717 = vmatmul.mubr.msk.bf16.vlgmr.msra.gmra.mxu1 %vm922_vm6, %v2002_v1 }
 0x91e   : > { %13727 = vmatpush3.bf16.xpose.msra.mxu1 %v2128_v5  ;;  %13728 = vmatprep.mubr.msk.bf16.mxu1 %vm15694_vm1, %v15693_v22 }
 0x91f   : > { %13738 = vmatprep.subr.bf16.mxu1 %v15693_v22 }
 0x925   : > { %13729 = vmatmul.mubr.msk.bf16.vlgmr.msra.gmra.mxu1 %vm922_vm6, %v2121_v7 }
 0x926   : > { %13739 = vmatpush3.bf16.xpose.msra.mxu1 %v2250_v8  ;;  %13740 = vmatprep.mubr.msk.bf16.mxu1 %vm15694_vm1, %v15693_v22 }
 0x927   : > { %13750 = vmatprep.subr.bf16.mxu1 %v15693_v22 }
 0x92d   : > { %13741 = vmatmul.mubr.msk.bf16.vlgmr.msra.gmra.mxu1 %vm922_vm6, %v2243_v10 }
 0x92e   : > { %13751 = vmatpush3.bf16.xpose.msra.mxu1 %v2368_v11  ;;  %13752 = vmatprep.mubr.msk.bf16.mxu1 %vm15694_vm1, %v15693_v22 }
 0x92f   : > { %13762 = vmatprep.subr.bf16.mxu1 %v15693_v22 }
 0x935   : > { %13753 = vmatmul.mubr.msk.bf16.vlgmr.msra.gmra.mxu1 %vm922_vm6, %v2361_v12 }
 0x936   : > { %13774 = vmatprep.mubr.msk.bf16.mxu1 %vm15694_vm1, %v15693_v22 }
 0x9cd   : > { %v16225_v13 = vpop.f32.mrf.mxu1 }
 0x9cf   : > { %v13700_v14 = vpop.f32.mrf.mxu1 }
 0x9d1   : > { %v16227_v15 = vpop.f32.mrf.mxu1 }
 0x9d3   : > { %v13701_v16 = vpop.f32.mrf.mxu1 }
 0x9d5   : > { %v1924_v17 = vpop.f32.mrf.mxu1 }
 0x9d6   : > { %v1925_v18 = vadd.f32 %v1924_v17, %v15985_v60 }
 0x9d7   : > { %v13706_v19 = vpop.f32.mrf.mxu1 }
 0x9d8   : > { %v1931_v20 = vsel %vm922_vm6, %v1925_v18, -inf }
 0x9d9   : > { %1932 = vmax.xlane.f32.xlu1 %v1931_v20  ;;  %v1927_v21 = vpop.f32.mrf.mxu1 }
 0x9da   : > { %v1928_v23 = vadd.f32 %v1927_v21, %v15988_v0 }
 0x9db   : > { %v13707_v25 = vpop.f32.mrf.mxu1 }
 0x9dc   : > { %v1934_v27 = vsel %vm922_vm6, %v1928_v23, -inf }
 0x9dd   : > { %1935 = vmax.xlane.f32.xlu0 %v1934_v27  ;;  %v2043_v28 = vpop.f32.mrf.mxu1 }
 0x9de   : > { %v16249_v57 = vadd.f32 %v2043_v28, %v15985_v60 }
 0x9df   : > { %v13718_v29 = vpop.f32.mrf.mxu1 }
 0x9e0   : > { %v2050_v62 = vsel %vm922_vm6, %v16249_v57, -inf }
 0x9e1   : > { %v2046_v24 = vpop.f32.mrf.mxu1 }
 0x9e2   : > { %v2047_v26 = vadd.f32 %v2046_v24, %v15988_v0 }
 0x9e3   : > { %v13719_v32 = vpop.f32.mrf.mxu1 }
 0x9e4   : > { %v2053_v33 = vsel %vm922_vm6, %v2047_v26, -inf }
 0x9e5   : > { %2054 = vmax.xlane.f32.xlu1 %v2053_v33  ;;  %v2164_v34 = vpop.f32.mrf.mxu1 }
 0x9e6   : > { %v16254_v61 = vadd.f32 %v2164_v34, %v15985_v60 }
 0x9e7   : > { %v13730_v36 = vpop.f32.mrf.mxu1 }
 0x9e8   : > { %v2171_v1 = vsel %vm922_vm6, %v16254_v61, -inf }
 0x9e9   : > { %v2167_v37 = vpop.f32.mrf.mxu1 }
 0x9ea   : > { %v2168_v39 = vadd.f32 %v2167_v37, %v15988_v0 }
 0x9eb   : > { %v13731_v40 = vpop.f32.mrf.mxu1 }
 0x9ec   : > { %v2174_v41 = vsel %vm922_vm6, %v2168_v39, -inf }
 0x9ed   : > { %2175 = vmax.xlane.f32.xlu1 %v2174_v41  ;;  %v2286_v42 = vpop.f32.mrf.mxu1 }
 0x9ee   : > { %v16259_v63 = vadd.f32 %v2286_v42, %v15985_v60 }
 0x9ef   : > { %v13742_v43 = vpop.f32.mrf.mxu1 }
 0x9f0   : > { %v2293_v3 = vsel %vm922_vm6, %v16259_v63, -inf }
 0x9f1   : > { %v2289_v44 = vpop.f32.mrf.mxu1 }
 0x9f2   : > { %v2290_v45 = vadd.f32 %v2289_v44, %v15988_v0 }
 0x9f3   : > { %1952 = vrot.lane.b32.xlu0 %v16167_v38, %s19029_s4  ;;  %v13743_v46 = vpop.f32.mrf.mxu1 }
 0x9f4   : > { %v2296_v47 = vsel %vm922_vm6, %v2290_v45, -inf  ;;  %v1823_v46 = vsel %vm922_vm6, %v16192_v59, 0.0 }
 0x9f5   : > { %2297 = vmax.xlane.f32.xlu1 %v2296_v47  ;;  %v2404_v48 = vpop.f32.mrf.mxu1 }
 0x9f6   : > { %v16242_v49 = vadd.f32 %v2404_v48, %v15985_v60 }
 0x9f7   : > { %v13754_v50 = vpop.f32.mrf.mxu1 }
 0x9f8   : > { %v2411_v51 = vsel %vm922_vm6, %v16242_v49, -inf }
 0x9f9   : > { %2412 = vmax.xlane.f32.xlu1 %v2411_v51  ;;  %v2407_v52 = vpop.f32.mrf.mxu1 }
 0x9fa   : > { %v2408_v53 = vadd.f32 %v2407_v52, %v15988_v0 }
 0x9fb   : > { %v13755_v54 = vpop.f32.mrf.mxu1 }
 0x9fc   : > { %v2414_v55 = vsel %vm922_vm6, %v2408_v53, -inf }
 0x9fd   : > { %2415 = vmax.xlane.f32.xlu1 %v2414_v55 }
 0xa0e   : > { %2071 = vrot.lane.b32.xlu1 %v16167_v38, %s18997_s1 }
 0xa12   : > { %2051 = vmax.xlane.f32.xlu0 %v2050_v62 }
 0xa16   : > { %2172 = vmax.xlane.f32.xlu0 %v2171_v1 }
 0xa1a   : > { %2294 = vmax.xlane.f32.xlu0 %v2293_v3 }
 0xa30   : > { %2192 = vrot.lane.b32.xlu0 %v16167_v38, %s18995_s26 }
 0xa34   : > { %2433 = vrot.lane.b32.xlu0 %v16161_v31, %s18993_s19  ;;  %s19031_s19 = smov 16  }
 0xa62   : > { %v1933_v4 = vpop.xlane.xlu1 %1932 }
 0xa63   : > { %v1937_v5 = vsub.f32 %v1925_v18, %v1933_v4 }
 0xa65   : > { %v1939_v6 = vmul.f32 1.442695, %v1937_v5 }
 0xa66   : > { %v1936_v7 = vpop.xlane.xlu0 %1935 }
 0xa67   : > { %15298 = vpow2.f32 %v1939_v6  ;;  %v1938_v8 = vsub.f32 %v1928_v23, %v1936_v7 }
 0xa69   : > { %v1941_v9 = vmul.f32 1.442695, %v1938_v8  ;;  %v1820_v8 = vsel %vm922_vm6, %v16190_v58, 0.0 }
 0xa6a   : > { %v1953_v10 = vpop.permute.xlu0 %1952 }
 0xa6b   : > { %15300 = vpow2.f32 %v1941_v9  ;;  %13709 = vmatpush3.bf16.msra.mxu0 %v1953_v10 }
 0xa6c   : > { %13720 = vmatprep.subr.bf16.mxu0 %v15693_v22 }
 0xa6e   : > { %v2055_v11 = vpop.xlane.xlu1 %2054 }
 0xa6f   : > { %v2057_v12 = vsub.f32 %v2047_v26, %v2055_v11 }
 0xa71   : > { %v2060_v14 = vmul.f32 1.442695, %v2057_v12 }
 0xa73   : > { %15302 = vpow2.f32 %v2060_v14 }
 0xa74   : > { %v15299_v38 = vpop.eup %15298 }
 0xa75   : > { %v1943_v16 = vsel %vm922_vm6, %v15299_v38, 0.0 }
 0xa76   : > { %v2176_v17 = vpop.xlane.xlu1 %2175  ;;  %1944 = vadd.xlane.f32.xlu1 %v1943_v16 }
 0xa77   : > { %v2178_v18 = vsub.f32 %v2168_v39, %v2176_v17 }
 0xa78   : > { %v15301_v19 = vpop.eup %15300 }
 0xa79   : > { %v2181_v20 = vmul.f32 1.442695, %v2178_v18  ;;  %v1946_v21 = vsel %vm922_vm6, %v15301_v19, 0.0  ;;  %v1951_v23 = vpack.c.bf16 %v15301_v19, %v15299_v38 }
 0xa7a   : > { %1947 = vadd.xlane.f32.xlu0 %v1946_v21 }
 0xa7b   : > { %15304 = vpow2.f32 %v2181_v20  ;;  %13711 = vmatmul.mubr.msk.bf16.vlgmr.msra.gmra.mxu0 %vm922_vm6, %v1951_v23 }
 0xa7c   : > { %13722 = vmatprep.mubr.msk.bf16.mxu0 %vm15694_vm1, %v15693_v22 }
 0xa7e   : > { %v2298_v25 = vpop.xlane.xlu1 %2297 }
 0xa7f   : > { %v2300_v27 = vsub.f32 %v2290_v45, %v2298_v25 }
 0xa80   : > { %v15303_v28 = vpop.eup %15302 }
 0xa81   : > { %v2303_v29 = vmul.f32 1.442695, %v2300_v27  ;;  %v2065_v24 = vsel %vm922_vm6, %v15303_v28, 0.0 }
 0xa82   : > { %v2413_v26 = vpop.xlane.xlu1 %2412  ;;  %2066 = vadd.xlane.f32.xlu1 %v2065_v24 }
 0xa83   : > { %15306 = vpow2.f32 %v2303_v29  ;;  %v2417_v51 = vsub.f32 %v16242_v49, %v2413_v26  ;;  %v14808_v29 = vld [vmem:[%s18959_s8 + $0x28] sm:$0xff]  }
 0xa84   : > { %13763 = vmatpush3.bf16.msra.mxu1 %v14808_v29 }
 0xa85   : > { %v2419_v55 = vmul.f32 1.442695, %v2417_v51  ;;  %13764 = vmatprep.subr.bf16.mxu1 %v15693_v22 }
 0xa86   : > { %v2416_v32 = vpop.xlane.xlu1 %2415 }
 0xa87   : > { %v2418_v33 = vsub.f32 %v2408_v53, %v2416_v32 }
 0xa88   : > { %v15305_v34 = vpop.eup %15304 }
 0xa89   : > { %v2421_v36 = vmul.f32 1.442695, %v2418_v33  ;;  %v2186_v37 = vsel %vm922_vm6, %v15305_v34, 0.0 }
 0xa8a   : > { %2187 = vadd.xlane.f32.xlu1 %v2186_v37  ;;  %v2072_v39 = vpop.permute.xlu1 %2071 }
 0xa8b   : > { %15308 = vpow2.f32 %v2421_v36  ;;  %13721 = vmatpush3.bf16.msra.mxu0 %v2072_v39 }
 0xa8c   : > { %13732 = vmatprep.subr.bf16.mxu0 %v15693_v22 }
 0xa90   : > { %v15307_v40 = vpop.eup %15306 }
 0xa91   : > { %v2308_v41 = vsel %vm922_vm6, %v15307_v40, 0.0 }
 0xa92   : > { %2309 = vadd.xlane.f32.xlu1 %v2308_v41  ;;  %v14809_v41 = vld [vmem:[%s18959_s8 + $0x20] sm:$0xff]  }
 0xa93   : > { %13765 = vmatpush3.bf16.msra.mxu1 %v14809_v41 }
 0xa94   : > { %13766 = vmatprep.subr.bf16.mxu1 %v15693_v22 }
 0xa98   : > { %v15309_v42 = vpop.eup %15308 }
 0xa99   : > { %v2426_v43 = vsel %vm922_vm6, %v15309_v42, 0.0 }
 0xa9a   : > { %2427 = vadd.xlane.f32.xlu1 %v2426_v43 }
 0xa9b   : > { %v2052_v44 = vpop.xlane.xlu0 %2051 }
 0xa9c   : > { %v2056_v45 = vsub.f32 %v16249_v57, %v2052_v44  ;;  %v14810_v44 = vld [vmem:[%s18959_s8 + $0x18] sm:$0xff]  }
 0xa9d   : > { %13767 = vmatpush3.bf16.msra.mxu1 %v14810_v44 }
 0xa9e   : > { %v2058_v47 = vmul.f32 1.442695, %v2056_v45  ;;  %1824 = vadd.xlane.f32.xlu1 %v1823_v46  ;;  %13768 = vmatprep.subr.bf16.mxu1 %v15693_v22 }
 0xa9f   : > { %v2173_v48 = vpop.xlane.xlu0 %2172 }
 0xaa0   : > { %15310 = vpow2.f32 %v2058_v47  ;;  %v2177_v50 = vsub.f32 %v16254_v61, %v2173_v48 }
 0xaa2   : > { %v2179_v52 = vmul.f32 1.442695, %v2177_v50 }
 0xaa3   : > { %v2295_v53 = vpop.xlane.xlu0 %2294 }
 0xaa4   : > { %15312 = vpow2.f32 %v2179_v52  ;;  %v2299_v54 = vsub.f32 %v16259_v63, %v2295_v53 }
 0xaa6   : > { %v2301_v62 = vmul.f32 1.442695, %v2299_v54 }
 0xaa7   : > { %v2193_v3 = vpop.permute.xlu0 %2192 }
 0xaa8   : > { %15314 = vpow2.f32 %v2301_v62 }
 0xaa9   : > { %15316 = vpow2.f32 %v2419_v55  ;;  %v14811_v55 = vld [vmem:[%s18959_s8 + $0x10] sm:$0xff]  }
 0xaaa   : > { %13769 = vmatpush3.bf16.msra.mxu1 %v14811_v55 }
 0xaab   : > { %v2434_v10 = vpop.permute.xlu0 %2433  ;;  %13770 = vmatprep.subr.bf16.mxu1 %v15693_v22 }
 0xaad   : > { %v15311_v57 = vpop.eup %15310 }
 0xaae   : > { %v2062_v59 = vsel %vm922_vm6, %v15311_v57, 0.0  ;;  %v2070_v1 = vpack.c.bf16 %v15303_v28, %v15311_v57 }
 0xaaf   : > { %2063 = vadd.xlane.f32.xlu0 %v2062_v59  ;;  %v14812_v59 = vld [vmem:[%s18959_s8 + $0x8] sm:$0xff]  }
 0xab0   : > { %13723 = vmatmul.mubr.msk.bf16.vlgmr.msra.gmra.mxu0 %vm922_vm6, %v2070_v1  ;;  %13771 = vmatpush3.bf16.msra.mxu1 %v14812_v59 }
 0xab1   : > { %v15313_v61 = vpop.eup %15312  ;;  %13733 = vmatpush3.bf16.msra.mxu0 %v2193_v3  ;;  %13734 = vmatprep.mubr.msk.bf16.mxu0 %vm15694_vm1, %v15693_v22 }
 0xab2   : > { %v2183_v49 = vsel %vm922_vm6, %v15313_v61, 0.0  ;;  %13744 = vmatprep.subr.bf16.mxu0 %v15693_v22  ;;  %v2191_v5 = vpack.c.bf16 %v15305_v34, %v15313_v61  ;;  %13772 = vmatprep.subr.bf16.mxu1 %v15693_v22 }
 0xab3   : > { %2184 = vadd.xlane.f32.xlu0 %v2183_v49 }
 0xab5   : > { %v15315_v63 = vpop.eup %15314 }
 0xab6   : > { %v2305_v4 = vsel %vm922_vm6, %v15315_v63, 0.0  ;;  %v15317_v6 = vpop.eup %15316  ;;  %v2313_v9 = vpack.c.bf16 %v15307_v40, %v15315_v63 }
 0xab7   : > { %2306 = vadd.xlane.f32.xlu0 %v2305_v4  ;;  %v2423_v7 = vsel %vm922_vm6, %v15317_v6, 0.0 }
 0xab8   : > { %13735 = vmatmul.mubr.msk.bf16.vlgmr.msra.gmra.mxu0 %vm922_vm6, %v2191_v5 }
 0xab9   : > { %13745 = vmatpush3.bf16.msra.mxu0 %v16161_v31  ;;  %13746 = vmatprep.mubr.msk.bf16.mxu0 %vm15694_vm1, %v15693_v22  ;;  %v2431_v31 = vpack.c.bf16 %v15309_v42, %v15317_v6  ;;  %v14813_v6 = vld [vmem:[%s18959_s8] sm:$0xff]  }
 0xaba   : > { %13756 = vmatprep.subr.bf16.mxu0 %v15693_v22  ;;  %13773 = vmatpush3.bf16.msra.mxu1 %v14813_v6 }
 0xabb   : > { %2424 = vadd.xlane.f32.xlu0 %v2423_v7  ;;  %13778 = vmatprep.subr.bf16.mxu1 %v15693_v22 }
 0xabf   : > { %1821 = vadd.xlane.f32.xlu0 %v1820_v8 }
 0xac0   : > { %13747 = vmatmul.mubr.msk.bf16.vlgmr.msra.gmra.mxu0 %vm922_vm6, %v2313_v9 }
 0xac1   : > { %13757 = vmatpush3.bf16.msra.mxu0 %v2434_v10  ;;  %13758 = vmatprep.mubr.msk.bf16.mxu0 %vm15694_vm1, %v15693_v22 }
 0xac8   : > { %13759 = vmatmul.mubr.msk.bf16.vlgmr.msra.gmra.mxu0 %vm922_vm6, %v2431_v31 }
 0xac9   : > { %2841 = vmatprep.mubr.bf16.mxu0 %v15692_v2 }
 0xaff   : > { %v1945_v11 = vpop.xlane.xlu1 %1944 }
 0xb00   : > { %15318 = vrcp.f32 %v1945_v11 }
 0xb03   : > { %v1948_v12 = vpop.xlane.xlu0 %1947 }
 0xb04   : > { %15320 = vrcp.f32 %v1948_v12 }
 0xb0b   : > { %v2067_v23 = vpop.xlane.xlu1 %2066 }
 0xb0c   : > { %15322 = vrcp.f32 %v2067_v23 }
 0xb0d   : > { %v15319_v38 = vpop.eup %15318 }
 0xb11   : > { %v15321_v16 = vpop.eup %15320 }
 0xb13   : > { %v2188_v27 = vpop.xlane.xlu1 %2187 }
 0xb19   : > { %v15323_v32 = vpop.eup %15322 }
 0xb1b   : > { %v2310_v33 = vpop.xlane.xlu1 %2309 }
 0xb23   : > { %v2428_v48 = vpop.xlane.xlu1 %2427 }
 0xb38   : > { %v2064_v25 = vpop.xlane.xlu0 %2063 }
 0xb39   : > { %15324 = vrcp.f32 %v2064_v25 }
 0xb3a   : > { %15326 = vrcp.f32 %v2188_v27 }
 0xb3b   : > { %v1992_v14 = vpop.f32.mrf.mxu0 }
 0xb3c   : > { %v1999_v18 = vmul.f32 %v15319_v38, %v1992_v14  ;;  %v2185_v28 = vpop.xlane.xlu0 %2184 }
 0xb3d   : > { %v13712_v58 = vpop.f32.mrf.mxu0  ;;  %15328 = vrcp.f32 %v2185_v28 }
 0xb3e   : > { %15330 = vrcp.f32 %v2310_v33 }
 0xb3f   : > { %v1995_v17 = vpop.f32.mrf.mxu0 }
 0xb40   : > { %v2000_v19 = vmul.f32 %v15321_v16, %v1995_v17  ;;  %v2307_v36 = vpop.xlane.xlu0 %2306  ;;  %v1825_v17 = vpop.xlane.xlu1 %1824 }
 0xb41   : > { %v13713_v20 = vpop.f32.mrf.mxu0  ;;  %15332 = vrcp.f32 %v2307_v36 }
 0xb42   : > { %v14604_v21 = vpack.i.bf16 %v2000_v19, %v1999_v18  ;;  %15334 = vrcp.f32 %v2428_v48 }
 0xb44   : > { %14605 = vrot.lane.b32.xlu0 %v14604_v21, %s18995_s26  ;;  %v2425_v51 = vpop.xlane.xlu0 %2424  ;;  %s620_s26 = sand.u32 1, %s15682_s22  }
 0xb45   : > { %15336 = vrcp.f32 %v2425_v51  ;;  %s11936_s21 = sshll.u32 %s620_s26, 4 }
 0xb46   : > { %v15325_v34 = vpop.eup %15324  ;;  %15338 = vrcp.f32 %v1825_v17  ;;  %v14824_v17 = vld [vmem:[%s18963_s12 + $0x4c] ss:$12 sps:$4 sm:$0xff]  }
 0xb47   : > { %v15327_v47 = vpop.eup %15326 }
 0xb48   : > { %v1822_v18 = vpop.xlane.xlu0 %1821 }
 0xb49   : > { %15340 = vrcp.f32 %v1822_v18  ;;  %v14822_v18 = vld [vmem:[%s18963_s12 + $0x48] ss:$12 sps:$4 sm:$0xff]  }
 0xb4a   : > { %v15329_v50 = vpop.eup %15328 }
 0xb4b   : > { %v15331_v61 = vpop.eup %15330 }
 0xb4e   : > { %v15333_v49 = vpop.eup %15332 }
 0xb4f   : > { %v15335_v31 = vpop.eup %15334 }
 0xb52   : > { %v15337_v11 = vpop.eup %15336 }
 0xb53   : > { %v15339_v21 = vpop.eup %15338 }
 0xb56   : > { %v15341_v23 = vpop.eup %15340 }
 0xb57   : > { %v1877_v33 = vmul.f32 %v15341_v23, %v16225_v13  ;;  %v14829_v23 = vld [vmem:[%s18963_s12 + $0x38] ss:$12 sps:$4 sm:$0xff]  }
 0xb70   : > { %v2111_v24 = vpop.f32.mrf.mxu0 }
 0xb71   : > { %v2118_v39 = vmul.f32 %v15325_v34, %v2111_v24  ;;  %v1878_v24 = vmul.f32 %v15339_v21, %v16227_v15  ;;  %v14826_v21 = vld [vmem:[%s18963_s12 + $0x30] ss:$12 sps:$4 sm:$0xff]  }
 0xb72   : > { %v13724_v26 = vpop.f32.mrf.mxu0 }
 0xb74   : > { %v2114_v37 = vpop.f32.mrf.mxu0 }
 0xb75   : > { %v2119_v40 = vmul.f32 %v15323_v32, %v2114_v37 }
 0xb76   : > { %v13725_v42 = vpop.f32.mrf.mxu0 }
 0xb77   : > { %v14609_v43 = vpack.i.bf16 %v2119_v40, %v2118_v39 }
 0xb78   : > { %v2232_v45 = vpop.f32.mrf.mxu0 }
 0xb79   : > { %14610 = vrot.lane.b32.xlu1 %v14609_v43, %s18997_s1  ;;  %v2239_v53 = vmul.f32 %v15329_v50, %v2232_v45  ;;  %s622_s1 = scalar_lea.vmem [#allocation2], %s11936_s21 }
 0xb7a   : > { %v13736_v46 = vpop.f32.mrf.mxu0 }
 0xb7c   : > { %v2235_v52 = vpop.f32.mrf.mxu0 }
 0xb7d   : > { %v2240_v54 = vmul.f32 %v15327_v47, %v2235_v52 }
 0xb7e   : > { %v13737_v62 = vpop.f32.mrf.mxu0 }
 0xb7f   : > { %v14614_v57 = vpack.i.bf16 %v2240_v54, %v2239_v53  ;;  %v12009_v53 = vld [vmem:[%s18960_s9] ss:$0 sm:$0xff] }
 0xb80   : > { %v2351_v1 = vpop.f32.mrf.mxu0 }
 0xb81   : > { %14615 = vrot.lane.b32.xlu1 %v14614_v57, %s19029_s4  ;;  %v2358_v4 = vmul.f32 %v15333_v49, %v2351_v1 }
 0xb82   : > { %v13748_v3 = vpop.f32.mrf.mxu0 }
 0xb84   : > { %v2354_v63 = vpop.f32.mrf.mxu0 }
 0xb85   : > { %v2359_v5 = vmul.f32 %v15331_v61, %v2354_v63 }
 0xb86   : > { %v13749_v7 = vpop.f32.mrf.mxu0 }
 0xb87   : > { %v14619_v8 = vpack.i.bf16 %v2359_v5, %v2358_v4 }
 0xb88   : > { %v2473_v9 = vpop.f32.mrf.mxu0 }
 0xb89   : > { %14620 = vrot.lane.b32.xlu0 %v14619_v8, %s19028_s17  ;;  %v2480_v14 = vmul.f32 %v15337_v11, %v2473_v9  ;;  %v14816_v11 = vld [vmem:[%s18963_s12 + $0x7c] ss:$12 sps:$4 sm:$0xff]  }
 0xb8a   : > { %v13760_v10 = vpop.f32.mrf.mxu0  ;;  %2813 = vmatprep.subr.bf16.mxu0 %v14816_v11  ;;  %v14860_v11 = vld [vmem:[%s18965_s14 + $0x40] sm:$0xff]  }
 0xb8c   : > { %v2476_v12 = vpop.f32.mrf.mxu0 }
 0xb8d   : > { %v2481_v58 = vmul.f32 %v15335_v31, %v2476_v12  ;;  %v14814_v12 = vld [vmem:[%s18963_s12 + $0x78] ss:$12 sps:$4 sm:$0xff]  }
 0xb8e   : > { %v13761_v38 = vpop.f32.mrf.mxu0  ;;  %2814 = vmatpush1.bf16.msra.mxu0 %v14814_v12  ;;  %v14861_v12 = vld [vmem:[%s18965_s14] sm:$0xff]  }
 0xb8f   : > { %v14624_v16 = vpack.i.bf16 %v2481_v58, %v2480_v14  ;;  %v14817_v14 = vld [vmem:[%s18963_s12 + $0x80] ss:$12 sps:$4 sm:$0xff]   ;;  %v14820_v58 = vld [vmem:[%s18963_s12 + $0x64] ss:$12 sps:$4 sm:$0xff]  }
 0xb90   : > { %v14818_v38 = vld [vmem:[%s18963_s12 + $0x60] ss:$12 sps:$4 sm:$0xff]   ;;  %2815 = vmatprep.subr.bf16.mxu0 %v14820_v58 }
 0xb91   : > { %14625 = vrot.lane.b32.xlu1 %v14624_v16, %s19027_s20  ;;  %v14821_v16 = vld [vmem:[%s18963_s12 + $0x68] ss:$12 sps:$4 sm:$0xff]   ;;  %v2693_v58 = vld [vmem:[%s18964_s13] sm:$0x7] }
 0xb92   : > { %2816 = vmatpush1.bf16.msra.mxu0 %v14818_v38  ;;  %v16529_v38 = vsub.s32 1, %v15981_v56 }
 0xb93   : > { %2817 = vmatprep.subr.bf16.mxu0 %v14824_v17 }
 0xb96   : > { %2818 = vmatpush1.bf16.msra.mxu0 %v14822_v18 }
 0xbb6   : > { %v14606_v20 = vpop.permute.xlu0 %14605 }
 0xbb7   : > { %v14608_v27 = vunpack.i.h.bf16 %v14606_v20  ;;  %v14607_v28 = vunpack.i.l.bf16 %v14606_v20  ;;  %v14828_v20 = vld [vmem:[%s18963_s12 + $0x34] ss:$12 sps:$4 sm:$0xff]  }
 0xbb8   : > { %2819 = vmatprep.subr.bf16.mxu0 %v14828_v20  ;;  %v2702_v20 = vrot.slane %v2693_v58, %v16529_v38 }
 0xbb9   : > { %v2523_v40 = vsel %vm922_vm6, %v1878_v24, %v14608_v27  ;;  %v2522_v41 = vsel %vm922_vm6, %v1877_v33, %v14607_v28  ;;  %2820 = vmatpush1.bf16.msra.mxu0 %v14826_v21  ;;  %v14830_v27 = vld [vmem:[%s18963_s12 + $0x18] ss:$12 sps:$4 sm:$0xff]   ;;  %v14833_v28 = vld [vmem:[%s18963_s12 + $0x20] ss:$12 sps:$4 sm:$0xff]  }
 0xbba   : > { %v14834_v24 = vld [vmem:[%s18963_s12] ss:$12 sps:$4 sm:$0xff]  }
 0xbeb   : > { %v14611_v19 = vpop.permute.xlu1 %14610 }
 0xbec   : > { %v14613_v26 = vunpack.i.h.bf16 %v14611_v19  ;;  %v14612_v32 = vunpack.i.l.bf16 %v14611_v19  ;;  %v14825_v19 = vld [vmem:[%s18963_s12 + $0x50] ss:$12 sps:$4 sm:$0xff]  }
 0xbee   : > { %v2526_v42 = vsel %vm2524_vm9, %v2523_v40, %v14613_v26  ;;  %v2525_v43 = vsel %vm2524_vm9, %v2522_v41, %v14612_v32  ;;  %v14837_v26 = vld [vmem:[%s18963_s12 + $0x8] ss:$12 sps:$4 sm:$0xff]   ;;  %v14839_v32 = vld [vmem:[%s18965_s14 + $0x78] sm:$0xff]  }
 0xbf3   : > { %v14616_v25 = vpop.permute.xlu1 %14615 }
 0xbf4   : > { %v14618_v34 = vunpack.i.h.bf16 %v14616_v25  ;;  %v14617_v36 = vunpack.i.l.bf16 %v14616_v25  ;;  %v14832_v25 = vld [vmem:[%s18963_s12 + $0x1c] ss:$12 sps:$4 sm:$0xff]  }
 0xbf5   : > { %2821 = vmatprep.subr.bf16.mxu0 %v14832_v25 }
 0xbf6   : > { %v2528_v44 = vsel %vm1394_vm7, %v2526_v42, %v14618_v34  ;;  %v2527_v13 = vsel %vm1394_vm7, %v2525_v43, %v14617_v36  ;;  %2822 = vmatpush1.bf16.msra.mxu0 %v14830_v27  ;;  %v12017_v43 = vld [vmem:[%s18961_s10] ss:$0 sm:$0xff] }
 0xbfb   : > { %v14621_v29 = vpop.permute.xlu0 %14620 }
 0xbfc   : > { %v14623_v37 = vunpack.i.h.bf16 %v14621_v29  ;;  %v14622_v39 = vunpack.i.l.bf16 %v14621_v29  ;;  %v14836_v29 = vld [vmem:[%s18963_s12 + $0x4] ss:$12 sps:$4 sm:$0xff]  }
 0xbfd   : > { %2823 = vmatprep.subr.bf16.mxu0 %v14836_v29 }
 0xbfe   : > { %v2531_v47 = vsel %vm2529_vm10, %v2528_v44, %v14623_v37  ;;  %v2530_v48 = vsel %vm2529_vm10, %v2527_v13, %v14622_v39  ;;  %2824 = vmatpush1.bf16.msra.mxu0 %v14834_v24 }
 0xbff   : > { %13176 = vmatprep.subr.bf16.mxu0 %v14839_v32 }
 0xc03   : > { %v14626_v15 = vpop.permute.xlu1 %14625 }
 0xc04   : > { %v14628_v45 = vunpack.i.h.bf16 %v14626_v15  ;;  %v14627_v46 = vunpack.i.l.bf16 %v14626_v15 }
 0xc06   : > { %v2534_v50 = vsel %vm2532_vm11, %v2531_v47, %v14628_v45  ;;  %v2533_v51 = vsel %vm2532_vm11, %v2530_v48, %v14627_v46  ;;  %v12018_v45 = vld [vmem:[%s18962_s11] ss:$0 sm:$0xff] }
 0xc07   : > { %v2535_v52 = vpack.c.bf16 %v2534_v50, %v2533_v51  ;;  %v14838_v50 = vld [vmem:[%s18965_s14 + $0xb8] sm:$0xff]  }
 0xc08   : > { %v14840_v51 = vld [vmem:[%s18965_s14 + $0x38] sm:$0xff]  }
 0xc09   : > { %13775 = vmatmul.mubr.msk.bf16.vlgmr.msra.gmra.mxu1 %vm778_vm0, %v2535_v52 }
 0xc0a   : > { %13790 = vmatprep.mubr.msk.bf16.mxu1 %vm15694_vm1, %v15693_v22  ;;  %13779 = vmatpush3.bf16.msra.mxu1 %v14817_v14  ;;  %v16523_v14 = vsub.s32 2, %v15981_v56 }
 0xc0b   : > { %13780 = vmatprep.subr.bf16.mxu1 %v15693_v22 }
 0xc0c   : > { %v2706_v17 = vrot.slane %v2693_v58, %v16523_v14 }
 0xc0e   : > { %13781 = vmatpush3.bf16.msra.mxu1 %v14821_v16  ;;  %v16532_v16 = vsub.s32 0, %v15981_v56 }
 0xc0f   : > { %13782 = vmatprep.subr.bf16.mxu1 %v15693_v22 }
 0xc10   : > { %v2698_v21 = vrot.slane %v2693_v58, %v16532_v16  ;;  %v14862_v58 = vld [vmem:[%s18958_s7 + $0x108] ss:$12 sps:$4 sm:$0xff]  }
 0xc12   : > { %13783 = vmatpush3.bf16.msra.mxu1 %v14825_v19 }
 0xc13   : > { %13784 = vmatprep.subr.bf16.mxu1 %v15693_v22 }
 0xc16   : > { %13785 = vmatpush3.bf16.msra.mxu1 %v14829_v23 }
 0xc17   : > { %13786 = vmatprep.subr.bf16.mxu1 %v15693_v22 }
 0xc1a   : > { %13787 = vmatpush3.bf16.msra.mxu1 %v14833_v28 }
 0xc1b   : > { %13788 = vmatprep.subr.bf16.mxu1 %v15693_v22 }
 0xc1e   : > { %13789 = vmatpush3.bf16.msra.mxu1 %v14837_v26 }
 0xc1f   : > { %13794 = vmatprep.subr.bf16.mxu1 %v15693_v22 }
 0xcc9   : > { %v2615_v54 = vpop.f32.mrf.mxu1 }
 0xcca   : > { %v2616_v55 = vadd.f32 %v12009_v53, %v2615_v54  ;;  %v14841_v54 = vld [vmem:[%s18965_s14 + $0xb0] sm:$0xff]  }
 0xccb   : > { %v13776_v62 = vpop.f32.mrf.mxu1 }
 0xccc   : > { %v16354_v57 = vadd.f32 %v2616_v55, %v16076_v30  ;;  %v14843_v55 = vld [vmem:[%s18965_s14 + $0x30] sm:$0xff]   ;;  %v14845_v62 = vld [vmem:[%s18965_s14 + $0x68] sm:$0xff]  }
 0xccd   : > { %v2618_v59 = vpop.f32.mrf.mxu1 }
 0xcce   : > { %v2619_v1 = vadd.f32 %v12009_v53, %v2618_v59  ;;  %v2626_v3 = vsel %vm778_vm0, %v16354_v57, 0.0  ;;  %v14842_v53 = vld [vmem:[%s18965_s14 + $0x70] sm:$0xff]   ;;  %v14844_v59 = vld [vmem:[%s18965_s14 + $0xa8] sm:$0xff]  }
 0xccf   : > { %2627 = vadd.xlane.f32.xlu0 %v2626_v3  ;;  %v13777_v61 = vpop.f32.mrf.mxu1  ;;  %v14848_v3 = vld [vmem:[%s18965_s14 + $0x60] sm:$0xff]  }
 0xcd0   : > { %v16359_v49 = vadd.f32 %v2619_v1, %v16080_v35  ;;  %v14846_v1 = vld [vmem:[%s18965_s14 + $0x28] sm:$0xff]   ;;  %v14847_v61 = vld [vmem:[%s18965_s14 + $0xa0] sm:$0xff]  }
 0xcd2   : > { %v2629_v63 = vsel %vm778_vm0, %v16359_v49, 0.0 }
 0xcd3   : > { %2630 = vadd.xlane.f32.xlu1 %v2629_v63  ;;  %v14849_v63 = vld [vmem:[%s18965_s14 + $0x20] sm:$0xff]  }
 0xd58   : > { %v2628_v4 = vpop.xlane.xlu0 %2627 }
 0xd59   : > { %v2632_v5 = vmul.f32 0.010416667, %v2628_v4  ;;  %v14851_v4 = vld [vmem:[%s18965_s14 + $0x58] sm:$0xff]  }
 0xd5b   : > { %v16364_v6 = vsub.f32 %v16354_v57, %v2632_v5  ;;  %v14850_v5 = vld [vmem:[%s18965_s14 + $0x98] sm:$0xff]  }
 0xd5c   : > { %v2631_v30 = vpop.xlane.xlu1 %2630 }
 0xd5d   : > { %v2633_v7 = vmul.f32 0.010416667, %v2631_v30  ;;  %v2636_v8 = vmul.f32 %v16364_v6, %v16364_v6  ;;  %v14853_v30 = vld [vmem:[%s18965_s14 + $0x90] sm:$0xff]  }
 0xd5f   : > { %v2635_v9 = vsub.f32 %v16359_v49, %v2633_v7  ;;  %v2638_v10 = vsel %vm778_vm0, %v2636_v8, 0.0  ;;  %v14854_v7 = vld [vmem:[%s18965_s14 + $0x50] sm:$0xff]  }
 0xd60   : > { %2639 = vadd.xlane.f32.xlu0 %v2638_v10  ;;  %v14855_v8 = vld [vmem:[%s18965_s14 + $0x10] sm:$0xff]   ;;  %v14857_v10 = vld [vmem:[%s18965_s14 + $0x48] sm:$0xff]  }
 0xd61   : > { %v2637_v35 = vmul.f32 %v2635_v9, %v2635_v9 }
 0xd63   : > { %v2641_v31 = vsel %vm778_vm0, %v2637_v35, 0.0  ;;  %v14858_v35 = vld [vmem:[%s18965_s14 + $0x8] sm:$0xff]  }
 0xd64   : > { %2642 = vadd.xlane.f32.xlu0 %v2641_v31  ;;  %v14859_v31 = vld [vmem:[%s18965_s14 + $0x80] sm:$0xff]  }
 0xde9   : > { %v2640_v33 = vpop.xlane.xlu0 %2639 }
 0xdea   : > { %v2644_v34 = vmul.f32 0.010416667, %v2640_v33 }
 0xdec   : > { %v2646_v36 = vadd.f32 1e-05, %v2644_v34 }
 0xded   : > { %v2643_v37 = vpop.xlane.xlu0 %2642 }
 0xdee   : > { %15342 = vrsqrt.f32 %v2646_v36  ;;  %v2645_v39 = vmul.f32 0.010416667, %v2643_v37 }
 0xdf0   : > { %v2647_v40 = vadd.f32 1e-05, %v2645_v39 }
 0xdf2   : > { %15344 = vrsqrt.f32 %v2647_v40 }
 0xdfb   : > { %v15343_v41 = vpop.eup %15342 }
 0xdfc   : > { %v2650_v42 = vmul.f32 %v15343_v41, %v16364_v6  ;;  %v14852_v6 = vld [vmem:[%s18965_s14 + $0x18] sm:$0xff]  }
 0xdfe   : > { %v2658_v13 = vmul.f32 %v12017_v43, %v2650_v42 }
 0xdff   : > { %v15345_v15 = vpop.eup %15344 }
 0xe00   : > { %v2651_v44 = vmul.f32 %v15345_v15, %v2635_v9  ;;  %v2666_v47 = vadd.f32 %v12018_v45, %v2658_v13  ;;  %v14856_v9 = vld [vmem:[%s18965_s14 + $0x88] sm:$0xff]  }
 0xe02   : > { %v2659_v46 = vmul.f32 %v12017_v43, %v2651_v44 }
 0xe04   : > { %v2667_v48 = vadd.f32 %v12018_v45, %v2659_v46 }
 0xe06   : > { %v2668_v52 = vpack.c.bf16 %v2667_v48, %v2666_v47 }
 0xe08   : > { %12037 = vmatmul.mubr.msk.bf16.vlgmr.msra.gmra.mxu0 %vm778_vm0, %v2668_v52  ;;  %13791 = vmatmul.mubr.msk.bf16.vlgmr.msra.gmra.mxu1 %vm778_vm0, %v2668_v52 }
 0xe09   : > { %13795 = vmatpush3.bf16.msra.mxu1 %v14838_v50  ;;  %13177 = vmatpush3.bf16.msra.mxu0 %v14840_v51  ;;  %v12039_v50 = vld [vmem:[%s18966_s15] ss:$0 sm:$0xff] }
 0xe0a   : > { %13796 = vmatprep.subr.bf16.mxu1 %v15693_v22  ;;  %13178 = vmatprep.subr.bf16.mxu0 %v14842_v53 }
 0xe0b   : > { %13810 = vmatprep.mubr.msk.bf16.mxu1 %vm15694_vm1, %v15693_v22 }
 0xe0d   : > { %13797 = vmatpush3.bf16.msra.mxu1 %v14841_v54  ;;  %13179 = vmatpush3.bf16.msra.mxu0 %v14843_v55 }
 0xe0e   : > { %13798 = vmatprep.subr.bf16.mxu1 %v15693_v22  ;;  %13180 = vmatprep.subr.bf16.mxu0 %v14845_v62 }
 0xe11   : > { %13799 = vmatpush3.bf16.msra.mxu1 %v14844_v59  ;;  %13181 = vmatpush3.bf16.msra.mxu0 %v14846_v1 }
 0xe12   : > { %13800 = vmatprep.subr.bf16.mxu1 %v15693_v22  ;;  %13182 = vmatprep.subr.bf16.mxu0 %v14848_v3 }
 0xe15   : > { %13801 = vmatpush3.bf16.msra.mxu1 %v14847_v61  ;;  %13183 = vmatpush3.bf16.msra.mxu0 %v14849_v63 }
 0xe16   : > { %13802 = vmatprep.subr.bf16.mxu1 %v15693_v22  ;;  %13184 = vmatprep.subr.bf16.mxu0 %v14851_v4 }
 0xe19   : > { %13803 = vmatpush3.bf16.msra.mxu1 %v14850_v5  ;;  %13185 = vmatpush3.bf16.msra.mxu0 %v14852_v6 }
 0xe1a   : > { %13804 = vmatprep.subr.bf16.mxu1 %v15693_v22  ;;  %13186 = vmatprep.subr.bf16.mxu0 %v14854_v7 }
 0xe1d   : > { %13805 = vmatpush3.bf16.msra.mxu1 %v14853_v30  ;;  %13187 = vmatpush3.bf16.msra.mxu0 %v14855_v8 }
 0xe1e   : > { %13806 = vmatprep.subr.bf16.mxu1 %v15693_v22  ;;  %13188 = vmatprep.subr.bf16.mxu0 %v14857_v10 }
 0xe21   : > { %13807 = vmatpush3.bf16.msra.mxu1 %v14856_v9  ;;  %13189 = vmatpush3.bf16.msra.mxu0 %v14858_v35 }
 0xe22   : > { %13808 = vmatprep.subr.bf16.mxu1 %v15693_v22  ;;  %13190 = vmatprep.subr.bf16.mxu0 %v14860_v11 }
 0xe25   : > { %13809 = vmatpush3.bf16.msra.mxu1 %v14859_v31  ;;  %13191 = vmatpush3.bf16.msra.mxu0 %v14861_v12  ;;  %v14864_v12 = vld [vmem:[%s18958_s7 + $0x10c] ss:$12 sps:$4 sm:$0xff]  }
 0xe26   : > { %13814 = vmatprep.subr.bf16.mxu1 %v15693_v22  ;;  %3375 = vmatprep.subr.bf16.mxu0 %v14864_v12 }
 0xec8   : > { %v2843_v18 = vpop.f32.mrf.mxu0  ;;  %v2886_v19 = vpop.f32.mrf.mxu1 }
 0xec9   : > { %v2887_v27 = vadd.f32 %v2886_v19, %v2706_v17  ;;  %v2844_v33 = vadd.f32 %v2843_v18, %v2698_v21  ;;  %v14868_v18 = vld [vmem:[%s18958_s7 + $0xf4] ss:$12 sps:$4 sm:$0xff]   ;;  %v14866_v19 = vld [vmem:[%s18958_s7 + $0xf0] ss:$12 sps:$4 sm:$0xff]  }
 0xeca   : > { %v2845_v23 = vpop.f32.mrf.mxu0  ;;  %v13792_v25 = vpop.f32.mrf.mxu1 }
 0xecb   : > { %v2846_v24 = vadd.f32 %v2845_v23, %v2702_v20  ;;  %v2895_v36 = vmax.f32 %v2887_v27, 0.0  ;;  %v2893_v15 = vmax.f32 %v2844_v33, 0.0  ;;  %v14870_v23 = vld [vmem:[%s18958_s7 + $0xd8] ss:$12 sps:$4 sm:$0xff]   ;;  %v14873_v25 = vld [vmem:[%s18958_s7 + $0xe0] ss:$12 sps:$4 sm:$0xff]  }
 0xecc   : > { %v2847_v28 = vpop.f32.mrf.mxu0  ;;  %v2889_v29 = vpop.f32.mrf.mxu1  ;;  %v14876_v27 = vld [vmem:[%s18958_s7 + $0xc4] ss:$12 sps:$4 sm:$0xff]   ;;  %v14884_v33 = vld [vmem:[%s18958_s7 + $0x94] ss:$12 sps:$4 sm:$0xff]  }
 0xecd   : > { %v2848_v26 = vadd.f32 %v2847_v28, %v2698_v21  ;;  %v2890_v32 = vadd.f32 %v2889_v29, %v2706_v17  ;;  %v2894_v41 = vmax.f32 %v2846_v24, 0.0  ;;  %v14865_v17 = vld [vmem:[%s18958_s7 + $0x110] ss:$12 sps:$4 sm:$0xff]   ;;  %v14874_v28 = vld [vmem:[%s18958_s7 + $0xc0] ss:$12 sps:$4 sm:$0xff]  }
 0xece   : > { %v2849_v34 = vpop.f32.mrf.mxu0  ;;  %v13793_v56 = vpop.f32.mrf.mxu1  ;;  %v14872_v21 = vld [vmem:[%s18958_s7 + $0xdc] ss:$12 sps:$4 sm:$0xff]   ;;  %v14880_v24 = vld [vmem:[%s18958_s7 + $0xac] ss:$12 sps:$4 sm:$0xff]  }
 0xecf   : > { %v2898_v37 = vmax.f32 %v2890_v32, 0.0  ;;  %v2850_v39 = vadd.f32 %v2849_v34, %v2702_v20  ;;  %v2896_v40 = vmax.f32 %v2848_v26, 0.0  ;;  %v14869_v20 = vld [vmem:[%s18958_s7 + $0xf8] ss:$12 sps:$4 sm:$0xff]   ;;  %v14877_v29 = vld [vmem:[%s18958_s7 + $0xc8] ss:$12 sps:$4 sm:$0xff]  }
 0xed0   : > { %v14878_v26 = vld [vmem:[%s18958_s7 + $0xa8] ss:$12 sps:$4 sm:$0xff]   ;;  %v14881_v32 = vld [vmem:[%s18958_s7 + $0xb0] ss:$12 sps:$4 sm:$0xff]   ;;  %v14885_v56 = vld [vmem:[%s18958_s7 + $0x98] ss:$12 sps:$4 sm:$0xff]  }
 0xed1   : > { %v2901_v42 = vpack.c.bf16 %v2898_v37, %v2895_v36  ;;  %v2897_v43 = vmax.f32 %v2850_v39, 0.0  ;;  %v2899_v13 = vpack.c.bf16 %v2896_v40, %v2893_v15  ;;  %v14882_v34 = vld [vmem:[%s18958_s7 + $0x90] ss:$12 sps:$4 sm:$0xff]  }
 0xed3   : > { %13811 = vmatmul.mubr.bf16.vlgmr.msra.gmra.mxu1 %v2901_v42  ;;  %v2900_v44 = vpack.c.bf16 %v2897_v43, %v2894_v41 }
 0xed4   : > { %13826 = vmatprep.mubr.msk.bf16.mxu1 %vm15694_vm1, %v15693_v22  ;;  %13815 = vmatpush3.bf16.msra.mxu1 %v14865_v17 }
 0xed5   : > { %3133 = vmatprep.mubr.bf16.mxu0 %v2900_v44  ;;  %13816 = vmatprep.subr.bf16.mxu1 %v15693_v22  ;;  %v12066_v44 = vld [vmem:[%s18956_s5 + $0x1] ss:$0 sm:$0xff] }
 0xed6   : > { %3134 = vmatmul.mubr.bf16.vlgmr.msra.gmra.mxu0 %v2899_v13 }
 0xed7   : > { %3403 = vmatprep.mubr.bf16.mxu0 %v15692_v2  ;;  %3376 = vmatpush1.bf16.msra.mxu0 %v14862_v58 }
 0xed8   : > { %3377 = vmatprep.subr.bf16.mxu0 %v14868_v18  ;;  %13817 = vmatpush3.bf16.msra.mxu1 %v14869_v20 }
 0xed9   : > { %13818 = vmatprep.subr.bf16.mxu1 %v15693_v22 }
 0xedb   : > { %3378 = vmatpush1.bf16.msra.mxu0 %v14866_v19 }
 0xedc   : > { %3379 = vmatprep.subr.bf16.mxu0 %v14872_v21  ;;  %13819 = vmatpush3.bf16.msra.mxu1 %v14873_v25 }
 0xedd   : > { %13820 = vmatprep.subr.bf16.mxu1 %v15693_v22 }
 0xedf   : > { %3380 = vmatpush1.bf16.msra.mxu0 %v14870_v23 }
 0xee0   : > { %3381 = vmatprep.subr.bf16.mxu0 %v14876_v27  ;;  %13821 = vmatpush3.bf16.msra.mxu1 %v14877_v29 }
 0xee1   : > { %13822 = vmatprep.subr.bf16.mxu1 %v15693_v22 }
 0xee3   : > { %3382 = vmatpush1.bf16.msra.mxu0 %v14874_v28 }
 0xee4   : > { %3383 = vmatprep.subr.bf16.mxu0 %v14880_v24  ;;  %13823 = vmatpush3.bf16.msra.mxu1 %v14881_v32 }
 0xee5   : > { %13824 = vmatprep.subr.bf16.mxu1 %v15693_v22 }
 0xee7   : > { %3384 = vmatpush1.bf16.msra.mxu0 %v14878_v26 }
 0xee8   : > { %3385 = vmatprep.subr.bf16.mxu0 %v14884_v33  ;;  %13825 = vmatpush3.bf16.msra.mxu1 %v14885_v56 }
 0xee9   : > { %13848 = vmatprep.subr.bf16.mxu1 %v15693_v22 }
 0xeeb   : > { %3386 = vmatpush1.bf16.msra.mxu0 %v14882_v34 }
 0xeec   : > { %13830 = vmatprep.subr.bf16.mxu0 %v15693_v22 }
 0xf93   : > { %v3176_v45 = vpop.f32.mrf.mxu1 }
 0xf95   : > { %v13812_v46 = vpop.f32.mrf.mxu1 }
 0xf96   : > { %v13192_v47 = vpop.f32.mrf.mxu0 }
 0xf97   : > { %v3179_v48 = vpop.f32.mrf.mxu1 }
 0xf98   : > { %v13193_v51 = vpop.f32.mrf.mxu0 }
 0xf99   : > { %v13194_v52 = vadd.f32 %v13193_v51, %v13192_v47  ;;  %v13813_v53 = vpop.f32.mrf.mxu1  ;;  %v12067_v47 = vld [vmem:[%s18957_s6 + $0x1] ss:$0 sm:$0xff] }
 0xf9a   : > { %v13195_v54 = vpop.f32.mrf.mxu0 }
 0xf9b   : > { %v3136_v55 = vadd.f32 %v13194_v52, %v12039_v50 }
 0xf9c   : > { %v13196_v62 = vpop.f32.mrf.mxu0 }
 0xf9d   : > { %v3177_v59 = vadd.f32 %v3176_v45, %v3136_v55  ;;  %v13197_v1 = vadd.f32 %v13196_v62, %v13195_v54 }
 0xf9f   : > { %v3139_v3 = vadd.f32 %v13197_v1, %v12039_v50  ;;  %v16544_v61 = vadd.f32 %v3177_v59, %v16354_v57 }
 0xfa1   : > { %v3180_v63 = vadd.f32 %v3179_v48, %v3139_v3  ;;  %v3189_v4 = vsel %vm778_vm0, %v16544_v61, 0.0 }
 0xfa2   : > { %3190 = vadd.xlane.f32.xlu1 %v3189_v4 }
 0xfa3   : > { %v16549_v5 = vadd.f32 %v3180_v63, %v16359_v49 }
 0xfa5   : > { %v3192_v6 = vsel %vm778_vm0, %v16549_v5, 0.0 }
 0xfa6   : > { %3193 = vadd.xlane.f32.xlu0 %v3192_v6 }
0x102b   : > { %v3191_v30 = vpop.xlane.xlu1 %3190 }
0x102c   : > { %v3195_v7 = vmul.f32 0.010416667, %v3191_v30 }
0x102e   : > { %v3197_v8 = vsub.f32 %v16544_v61, %v3195_v7 }
0x102f   : > { %v3194_v9 = vpop.xlane.xlu0 %3193 }
0x1030   : > { %v3196_v10 = vmul.f32 0.010416667, %v3194_v9  ;;  %v3199_v57 = vmul.f32 %v3197_v8, %v3197_v8 }
0x1032   : > { %v3198_v35 = vsub.f32 %v16549_v5, %v3196_v10  ;;  %v3201_v31 = vsel %vm778_vm0, %v3199_v57, 0.0 }
0x1033   : > { %3202 = vadd.xlane.f32.xlu1 %v3201_v31 }
0x1034   : > { %v3200_v11 = vmul.f32 %v3198_v35, %v3198_v35 }
0x1036   : > { %v3204_v49 = vsel %vm778_vm0, %v3200_v11, 0.0 }
0x1037   : > { %3205 = vadd.xlane.f32.xlu0 %v3204_v49 }
0x10bc   : > { %v3203_v36 = vpop.xlane.xlu1 %3202 }
0x10bd   : > { %v3207_v37 = vmul.f32 0.010416667, %v3203_v36 }
0x10bf   : > { %v3209_v39 = vadd.f32 1e-05, %v3207_v37 }
0x10c0   : > { %v3206_v40 = vpop.xlane.xlu0 %3205 }
0x10c1   : > { %15346 = vrsqrt.f32 %v3209_v39  ;;  %v3208_v41 = vmul.f32 0.010416667, %v3206_v40 }
0x10c3   : > { %v3210_v42 = vadd.f32 1e-05, %v3208_v41 }
0x10c5   : > { %15348 = vrsqrt.f32 %v3210_v42 }
0x10ce   : > { %v15347_v43 = vpop.eup %15346 }
0x10cf   : > { %v3213_v15 = vmul.f32 %v15347_v43, %v3197_v8 }
0x10d1   : > { %v3221_v46 = vmul.f32 %v12066_v44, %v3213_v15 }
0x10d2   : > { %v15349_v13 = vpop.eup %15348 }
0x10d3   : > { %v3214_v45 = vmul.f32 %v15349_v13, %v3198_v35  ;;  %v3229_v50 = vadd.f32 %v12067_v47, %v3221_v46 }
0x10d5   : > { %v3222_v48 = vmul.f32 %v12066_v44, %v3214_v45 }
0x10d7   : > { %v3230_v51 = vadd.f32 %v12067_v47, %v3222_v48 }
0x10d9   : > { %v3271_v52 = vpack.c.bf16 %v3230_v51, %v3229_v50 }
0x10db   : > { %12123 = vmatmul.mubr.msk.bf16.vlgmr.msra.gmra.mxu0 %vm778_vm0, %v3271_v52  ;;  %13827 = vmatmul.mubr.msk.bf16.vlgmr.msra.gmra.mxu1 %vm778_vm0, %v3271_v52 }
0x10dc   : > { %13832 = vmatprep.mubr.msk.bf16.mxu0 %vm15694_vm1, %v15693_v22  ;;  %13850 = vmatprep.mubr.msk.bf16.mxu1 %vm15694_vm1, %v15693_v22 }
0x119b   : > { %v3405_v53 = vpop.f32.mrf.mxu0  ;;  %v3448_v54 = vpop.f32.mrf.mxu1 }
0x119c   : > { %v3455_v30 = vmul.f32 0.10206208, %v3405_v53 }
0x119d   : > { %v3407_v55 = vpop.f32.mrf.mxu0  ;;  %v13828_v62 = vpop.f32.mrf.mxu1 }
0x119f   : > { %v3409_v59 = vpop.f32.mrf.mxu0  ;;  %v3451_v1 = vpop.f32.mrf.mxu1 }
0x11a0   : > { %v3458_v3 = vpack.c.bf16 %v3409_v59, %v3405_v53  ;;  %v16630_v63 = vpack.c.bf16 %v3451_v1, %v3448_v54  ;;  %v3456_v6 = vmul.f32 0.10206208, %v3409_v59 }
0x11a1   : > { %v13829_v4 = vpop.f32.mrf.mxu1  ;;  %v3411_v8 = vpop.f32.mrf.mxu0 }
0x11a2   : > { %3461 = vrot.lane.b32.xlu1 %v3458_v3, %s19030_s30  ;;  %v3457_v7 = vpack.c.bf16 %v3456_v6, %v3455_v30  ;;  %v16636_v9 = vpack.c.bf16 %v3411_v8, %v3407_v55 }
0x11a4   : > { %v3709_v36 = vsel %vm922_vm6, %v16636_v9, 0 }
0x11a6   : > { %3584 = vrot.lane.b32.xlu1 %v3458_v3, %s19031_s19 }
0x11aa   : > { %3582 = vrot.lane.b32.xlu1 %v3457_v7, %s19032_s23 }
0x11ae   : > { %3703 = vrot.lane.b32.xlu1 %v3457_v7, %s19033_s0 }
0x11b2   : > { %3824 = vrot.lane.b32.xlu1 %v16636_v9, %s19032_s23 }
0x11b6   : > { %3946 = vrot.lane.b32.xlu1 %v16636_v9, %s19033_s0 }
0x11ba   : > { %4064 = vrot.lane.b32.xlu1 %v16636_v9, %s19027_s20 }
0x1214   : > { %v3462_v10 = vpop.permute.xlu1 %3461 }
0x1215   : > { %v3467_v57 = vsel %vm922_vm6, %v3462_v10, 0 }
0x1216   : > { %13831 = vmatpush3.bf16.xpose.msra.mxu0 %v3467_v57 }
0x1217   : > { %13836 = vmatprep.subr.bf16.mxu0 %v15693_v22 }
0x1218   : > { %v3585_v29 = vpop.permute.xlu1 %3584 }
0x1219   : > { %v3590_v33 = vsel %vm922_vm6, %v3585_v29, 0 }
0x121c   : > { %v3583_v34 = vpop.permute.xlu1 %3582 }
0x121d   : > { %13833 = vmatmul.mubr.msk.bf16.vlgmr.msra.gmra.mxu0 %vm922_vm6, %v3457_v7 }
0x121e   : > { %13838 = vmatprep.mubr.msk.bf16.mxu0 %vm15694_vm1, %v15693_v22 }
0x1220   : > { %v3704_v56 = vpop.permute.xlu1 %3703 }
0x1224   : > { %v3825_v37 = vpop.permute.xlu1 %3824 }
0x1225   : > { %v3830_v39 = vsel %vm922_vm6, %v3825_v37, 0 }
0x1228   : > { %v3947_v40 = vpop.permute.xlu1 %3946 }
0x1229   : > { %v3952_v42 = vsel %vm922_vm6, %v3947_v40, 0 }
0x122c   : > { %v4065_v43 = vpop.permute.xlu1 %4064 }
0x122d   : > { %v4070_v44 = vsel %vm922_vm6, %v4065_v43, 0 }
0x12dd   : > { %v3503_v35 = vpop.f32.mrf.mxu0 }
0x12de   : > { %v3504_v31 = vadd.f32 %v3503_v35, %v15985_v60 }
0x12df   : > { %v13834_v11 = vpop.f32.mrf.mxu0 }
0x12e0   : > { %v3510_v49 = vsel %vm922_vm6, %v3504_v31, -inf }
0x12e1   : > { %3511 = vmax.xlane.f32.xlu0 %v3510_v49  ;;  %v3506_v12 = vpop.f32.mrf.mxu0 }
0x12e2   : > { %v3507_v58 = vadd.f32 %v3506_v12, %v15988_v0 }
0x12e3   : > { %v13835_v17 = vpop.f32.mrf.mxu0 }
0x12e4   : > { %v3513_v18 = vsel %vm922_vm6, %v3507_v58, -inf }
0x12e5   : > { %3514 = vmax.xlane.f32.xlu0 %v3513_v18 }
0x12fb   : > { %3532 = vrot.lane.b32.xlu0 %v16636_v9, %s19028_s17 }
0x12ff   : > { %3822 = vrot.lane.b32.xlu0 %v3457_v7, %s19027_s20 }
0x1303   : > { %3944 = vrot.lane.b32.xlu0 %v3457_v7, %s19028_s17 }
0x1307   : > { %4062 = vrot.lane.b32.xlu0 %v3457_v7, %s19029_s4 }
0x136a   : > { %v3512_v19 = vpop.xlane.xlu0 %3511 }
0x136b   : > { %v3516_v20 = vsub.f32 %v3504_v31, %v3512_v19 }
0x136d   : > { %v3518_v21 = vmul.f32 1.442695, %v3516_v20 }
0x136e   : > { %v3515_v23 = vpop.xlane.xlu0 %3514 }
0x136f   : > { %v3517_v25 = vsub.f32 %v3507_v58, %v3515_v23  ;;  %15350 = vpow2.f32 %v3518_v21 }
0x1371   : > { %v3520_v27 = vmul.f32 1.442695, %v3517_v25 }
0x1372   : > { %v3533_v28 = vpop.permute.xlu0 %3532 }
0x1373   : > { %15352 = vpow2.f32 %v3520_v27  ;;  %13837 = vmatpush3.bf16.msra.mxu0 %v3533_v28 }
0x1374   : > { %13842 = vmatprep.subr.bf16.mxu0 %v15693_v22 }
0x1376   : > { %v3823_v41 = vpop.permute.xlu0 %3822 }
0x137a   : > { %v3945_v15 = vpop.permute.xlu0 %3944 }
0x137c   : > { %v16659_v24 = vpop.eup %15350 }
0x137e   : > { %v4063_v13 = vpop.permute.xlu0 %4062 }
0x1380   : > { %v16661_v26 = vpop.eup %15352 }
0x1381   : > { %v3530_v32 = vpack.c.bf16 %v16661_v26, %v16659_v24 }
0x1383   : > { %13839 = vmatmul.mubr.msk.bf16.vlgmr.msra.gmra.mxu0 %vm922_vm6, %v3530_v32 }
0x1384   : > { %13843 = vmatpush3.bf16.xpose.msra.mxu0 %v3590_v33  ;;  %13844 = vmatprep.mubr.msk.bf16.mxu0 %vm15694_vm1, %v15693_v22 }
0x1385   : > { %13854 = vmatprep.subr.bf16.mxu0 %v15693_v22 }
0x138b   : > { %13845 = vmatmul.mubr.msk.bf16.vlgmr.msra.gmra.mxu0 %vm922_vm6, %v3583_v34 }
0x138c   : > { %13855 = vmatpush3.bf16.xpose.msra.mxu0 %v3709_v36  ;;  %13856 = vmatprep.mubr.msk.bf16.mxu0 %vm15694_vm1, %v15693_v22 }
0x138d   : > { %13866 = vmatprep.subr.bf16.mxu0 %v15693_v22 }
0x1393   : > { %13857 = vmatmul.mubr.msk.bf16.vlgmr.msra.gmra.mxu0 %vm922_vm6, %v3704_v56 }
0x1394   : > { %13867 = vmatpush3.bf16.xpose.msra.mxu0 %v3830_v39  ;;  %13868 = vmatprep.mubr.msk.bf16.mxu0 %vm15694_vm1, %v15693_v22 }
0x1395   : > { %13878 = vmatprep.subr.bf16.mxu0 %v15693_v22 }
0x139b   : > { %13869 = vmatmul.mubr.msk.bf16.vlgmr.msra.gmra.mxu0 %vm922_vm6, %v3823_v41 }
0x139c   : > { %13879 = vmatpush3.bf16.xpose.msra.mxu0 %v3952_v42  ;;  %13880 = vmatprep.mubr.msk.bf16.mxu0 %vm15694_vm1, %v15693_v22 }
0x139d   : > { %13890 = vmatprep.subr.bf16.mxu0 %v15693_v22 }
0x13a3   : > { %13881 = vmatmul.mubr.msk.bf16.vlgmr.msra.gmra.mxu0 %vm922_vm6, %v3945_v15 }
0x13a4   : > { %13891 = vmatpush3.bf16.xpose.msra.mxu0 %v4070_v44  ;;  %13892 = vmatprep.mubr.msk.bf16.mxu0 %vm15694_vm1, %v15693_v22 }
0x13a5   : > { %13902 = vmatprep.subr.bf16.mxu0 %v15693_v22 }
0x13ab   : > { %13893 = vmatmul.mubr.msk.bf16.vlgmr.msra.gmra.mxu0 %vm922_vm6, %v4063_v13 }
0x13ac   : > { %13914 = vmatprep.mubr.msk.bf16.mxu0 %vm15694_vm1, %v15693_v22 }
0x1443   : > { %v16694_v45 = vpop.f32.mrf.mxu0 }
0x1445   : > { %v13840_v46 = vpop.f32.mrf.mxu0 }
0x1447   : > { %v16696_v47 = vpop.f32.mrf.mxu0 }
0x1449   : > { %v13841_v48 = vpop.f32.mrf.mxu0 }
0x144b   : > { %v3626_v50 = vpop.f32.mrf.mxu0 }
0x144c   : > { %v3627_v51 = vadd.f32 %v3626_v50, %v15985_v60 }
0x144d   : > { %v13846_v52 = vpop.f32.mrf.mxu0 }
0x144e   : > { %v3633_v53 = vsel %vm922_vm6, %v3627_v51, -inf }
0x144f   : > { %3634 = vmax.xlane.f32.xlu1 %v3633_v53  ;;  %v3629_v54 = vpop.f32.mrf.mxu0 }
0x1450   : > { %v3630_v55 = vadd.f32 %v3629_v54, %v15988_v0 }
0x1451   : > { %v13847_v62 = vpop.f32.mrf.mxu0 }
0x1452   : > { %v3636_v59 = vsel %vm922_vm6, %v3630_v55, -inf }
0x1453   : > { %3637 = vmax.xlane.f32.xlu0 %v3636_v59  ;;  %v3745_v1 = vpop.f32.mrf.mxu0 }
0x1454   : > { %v16718_v33 = vadd.f32 %v3745_v1, %v15985_v60 }
0x1455   : > { %v13858_v3 = vpop.f32.mrf.mxu0 }
0x1456   : > { %v3752_v56 = vsel %vm922_vm6, %v16718_v33, -inf }
0x1457   : > { %v3748_v4 = vpop.f32.mrf.mxu0 }
0x1458   : > { %v3749_v6 = vadd.f32 %v3748_v4, %v15988_v0 }
0x1459   : > { %v13859_v30 = vpop.f32.mrf.mxu0 }
0x145a   : > { %v3755_v7 = vsel %vm922_vm6, %v3749_v6, -inf }
0x145b   : > { %3756 = vmax.xlane.f32.xlu1 %v3755_v7  ;;  %v3866_v8 = vpop.f32.mrf.mxu0 }
0x145c   : > { %v16723_v34 = vadd.f32 %v3866_v8, %v15985_v60 }
0x145d   : > { %v13870_v10 = vpop.f32.mrf.mxu0 }
0x145e   : > { %v3873_v37 = vsel %vm922_vm6, %v16723_v34, -inf }
0x145f   : > { %v3869_v57 = vpop.f32.mrf.mxu0 }
0x1460   : > { %v3870_v35 = vadd.f32 %v3869_v57, %v15988_v0 }
0x1461   : > { %v13871_v31 = vpop.f32.mrf.mxu0 }
0x1462   : > { %v3876_v11 = vsel %vm922_vm6, %v3870_v35, -inf }
0x1463   : > { %3877 = vmax.xlane.f32.xlu1 %v3876_v11  ;;  %v3988_v49 = vpop.f32.mrf.mxu0 }
0x1464   : > { %v16728_v36 = vadd.f32 %v3988_v49, %v15985_v60 }
0x1465   : > { %v13882_v12 = vpop.f32.mrf.mxu0 }
0x1466   : > { %v3995_v39 = vsel %vm922_vm6, %v16728_v36, -inf }
0x1467   : > { %v3991_v58 = vpop.f32.mrf.mxu0 }
0x1468   : > { %v3992_v17 = vadd.f32 %v3991_v58, %v15988_v0 }
0x1469   : > { %3654 = vrot.lane.b32.xlu0 %v16636_v9, %s19029_s4  ;;  %v13883_v18 = vpop.f32.mrf.mxu0 }
0x146a   : > { %v3998_v19 = vsel %vm922_vm6, %v3992_v17, -inf }
0x146b   : > { %3999 = vmax.xlane.f32.xlu1 %v3998_v19  ;;  %v4106_v20 = vpop.f32.mrf.mxu0 }
0x146c   : > { %v16711_v21 = vadd.f32 %v4106_v20, %v15985_v60  ;;  %v3525_v20 = vsel %vm922_vm6, %v16661_v26, 0.0 }
0x146d   : > { %v13894_v23 = vpop.f32.mrf.mxu0 }
0x146e   : > { %v4113_v25 = vsel %vm922_vm6, %v16711_v21, -inf }
0x146f   : > { %4114 = vmax.xlane.f32.xlu1 %v4113_v25  ;;  %v4109_v27 = vpop.f32.mrf.mxu0 }
0x1470   : > { %v4110_v28 = vadd.f32 %v4109_v27, %v15988_v0 }
0x1471   : > { %v13895_v29 = vpop.f32.mrf.mxu0 }
0x1472   : > { %v4116_v32 = vsel %vm922_vm6, %v4110_v28, -inf }
0x1473   : > { %4117 = vmax.xlane.f32.xlu1 %v4116_v32 }
0x1484   : > { %3773 = vrot.lane.b32.xlu1 %v16636_v9, %s19030_s30 }
0x1488   : > { %3753 = vmax.xlane.f32.xlu0 %v3752_v56 }
0x148c   : > { %3874 = vmax.xlane.f32.xlu0 %v3873_v37 }
0x1490   : > { %3996 = vmax.xlane.f32.xlu0 %v3995_v39 }
0x14a6   : > { %3894 = vrot.lane.b32.xlu0 %v16636_v9, %s19031_s19 }
0x14aa   : > { %4135 = vrot.lane.b32.xlu0 %v16630_v63, %s19032_s23 }
0x14d8   : > { %v3635_v40 = vpop.xlane.xlu1 %3634 }
0x14d9   : > { %v3639_v41 = vsub.f32 %v3627_v51, %v3635_v40 }
0x14db   : > { %v3641_v42 = vmul.f32 1.442695, %v3639_v41 }
0x14dc   : > { %v3638_v43 = vpop.xlane.xlu0 %3637 }
0x14dd   : > { %15354 = vpow2.f32 %v3641_v42  ;;  %v3640_v15 = vsub.f32 %v3630_v55, %v3638_v43 }
0x14df   : > { %v3643_v44 = vmul.f32 1.442695, %v3640_v15 }
0x14e0   : > { %v3655_v13 = vpop.permute.xlu0 %3654 }
0x14e1   : > { %15356 = vpow2.f32 %v3643_v44  ;;  %13849 = vmatpush3.bf16.msra.mxu1 %v3655_v13  ;;  %v3522_v13 = vsel %vm922_vm6, %v16659_v24, 0.0 }
0x14e2   : > { %13860 = vmatprep.subr.bf16.mxu1 %v15693_v22 }
0x14e4   : > { %v3757_v46 = vpop.xlane.xlu1 %3756 }
0x14e5   : > { %v3759_v48 = vsub.f32 %v3749_v6, %v3757_v46 }
0x14e7   : > { %v3762_v50 = vmul.f32 1.442695, %v3759_v48 }
0x14e9   : > { %15358 = vpow2.f32 %v3762_v50 }
0x14ea   : > { %v15355_v9 = vpop.eup %15354 }
0x14eb   : > { %v3645_v52 = vsel %vm922_vm6, %v15355_v9, 0.0 }
0x14ec   : > { %v3878_v53 = vpop.xlane.xlu1 %3877  ;;  %3646 = vadd.xlane.f32.xlu1 %v3645_v52 }
0x14ed   : > { %v3880_v51 = vsub.f32 %v3870_v35, %v3878_v53 }
0x14ee   : > { %v15357_v54 = vpop.eup %15356 }
0x14ef   : > { %v3883_v62 = vmul.f32 1.442695, %v3880_v51  ;;  %v3648_v55 = vsel %vm922_vm6, %v15357_v54, 0.0  ;;  %v3653_v59 = vpack.c.bf16 %v15357_v54, %v15355_v9 }
0x14f0   : > { %3649 = vadd.xlane.f32.xlu0 %v3648_v55 }
0x14f1   : > { %15360 = vpow2.f32 %v3883_v62  ;;  %13851 = vmatmul.mubr.msk.bf16.vlgmr.msra.gmra.mxu1 %vm922_vm6, %v3653_v59 }
0x14f2   : > { %13862 = vmatprep.mubr.msk.bf16.mxu1 %vm15694_vm1, %v15693_v22 }
0x14f4   : > { %v4000_v1 = vpop.xlane.xlu1 %3999 }
0x14f5   : > { %v4002_v3 = vsub.f32 %v3992_v17, %v4000_v1 }
0x14f6   : > { %v15359_v4 = vpop.eup %15358 }
0x14f7   : > { %v4005_v6 = vmul.f32 1.442695, %v4002_v3  ;;  %v3767_v30 = vsel %vm922_vm6, %v15359_v4, 0.0 }
0x14f8   : > { %v4115_v7 = vpop.xlane.xlu1 %4114  ;;  %3768 = vadd.xlane.f32.xlu1 %v3767_v30 }
0x14f9   : > { %15362 = vpow2.f32 %v4005_v6 }
0x14fc   : > { %v4118_v8 = vpop.xlane.xlu1 %4117 }
0x14fd   : > { %v4120_v10 = vsub.f32 %v4110_v28, %v4118_v8  ;;  %v4119_v28 = vsub.f32 %v16711_v21, %v4115_v7  ;;  %v14886_v7 = vld [vmem:[%s18959_s8 + $0x58] sm:$0xff]  }
0x14fe   : > { %v15361_v57 = vpop.eup %15360  ;;  %13903 = vmatpush3.bf16.msra.mxu0 %v14886_v7 }
0x14ff   : > { %v4123_v35 = vmul.f32 1.442695, %v4120_v10  ;;  %v3888_v31 = vsel %vm922_vm6, %v15361_v57, 0.0  ;;  %v4121_v37 = vmul.f32 1.442695, %v4119_v28  ;;  %13904 = vmatprep.subr.bf16.mxu0 %v15693_v22 }
0x1500   : > { %3889 = vadd.xlane.f32.xlu1 %v3888_v31  ;;  %v3774_v11 = vpop.permute.xlu1 %3773 }
0x1501   : > { %15364 = vpow2.f32 %v4123_v35  ;;  %13861 = vmatpush3.bf16.msra.mxu1 %v3774_v11 }
0x1502   : > { %13872 = vmatprep.subr.bf16.mxu1 %v15693_v22 }
0x1506   : > { %v15363_v49 = vpop.eup %15362 }
0x1507   : > { %v4010_v12 = vsel %vm922_vm6, %v15363_v49, 0.0 }
0x1508   : > { %4011 = vadd.xlane.f32.xlu1 %v4010_v12 }
0x150e   : > { %v15365_v58 = vpop.eup %15364 }
0x150f   : > { %v4128_v17 = vsel %vm922_vm6, %v15365_v58, 0.0 }
0x1510   : > { %4129 = vadd.xlane.f32.xlu1 %v4128_v17  ;;  %v14887_v17 = vld [vmem:[%s18959_s8 + $0x50] sm:$0xff]  }
0x1511   : > { %v3754_v18 = vpop.xlane.xlu0 %3753  ;;  %13905 = vmatpush3.bf16.msra.mxu0 %v14887_v17 }
0x1512   : > { %v3758_v19 = vsub.f32 %v16718_v33, %v3754_v18  ;;  %13906 = vmatprep.subr.bf16.mxu0 %v15693_v22 }
0x1514   : > { %v3760_v23 = vmul.f32 1.442695, %v3758_v19  ;;  %3526 = vadd.xlane.f32.xlu1 %v3525_v20  ;;  %v14888_v20 = vld [vmem:[%s18959_s8 + $0x48] sm:$0xff]  }
0x1515   : > { %v3875_v25 = vpop.xlane.xlu0 %3874  ;;  %13907 = vmatpush3.bf16.msra.mxu0 %v14888_v20 }
0x1516   : > { %15366 = vpow2.f32 %v3760_v23  ;;  %v3879_v27 = vsub.f32 %v16723_v34, %v3875_v25  ;;  %13908 = vmatprep.subr.bf16.mxu0 %v15693_v22 }
0x1518   : > { %v3881_v29 = vmul.f32 1.442695, %v3879_v27 }
0x1519   : > { %v3997_v32 = vpop.xlane.xlu0 %3996 }
0x151a   : > { %15368 = vpow2.f32 %v3881_v29  ;;  %v4001_v56 = vsub.f32 %v16728_v36, %v3997_v32 }
0x151c   : > { %v4003_v39 = vmul.f32 1.442695, %v4001_v56 }
0x151d   : > { %v3895_v41 = vpop.permute.xlu0 %3894 }
0x151e   : > { %15370 = vpow2.f32 %v4003_v39 }
0x151f   : > { %15372 = vpow2.f32 %v4121_v37 }
0x1521   : > { %v4136_v48 = vpop.permute.xlu0 %4135 }
0x1523   : > { %v15367_v33 = vpop.eup %15366 }
0x1524   : > { %v3764_v26 = vsel %vm922_vm6, %v15367_v33, 0.0  ;;  %v3772_v40 = vpack.c.bf16 %v15359_v4, %v15367_v33  ;;  %v14889_v33 = vld [vmem:[%s18959_s8 + $0x40] sm:$0xff]  }
0x1525   : > { %3765 = vadd.xlane.f32.xlu0 %v3764_v26  ;;  %13909 = vmatpush3.bf16.msra.mxu0 %v14889_v33  ;;  %v12137_v33 = vld [vmem:[%s18960_s9 + $0x1] ss:$0 sm:$0xff] }
0x1526   : > { %13863 = vmatmul.mubr.msk.bf16.vlgmr.msra.gmra.mxu1 %vm922_vm6, %v3772_v40  ;;  %13910 = vmatprep.subr.bf16.mxu0 %v15693_v22 }
0x1527   : > { %v15369_v34 = vpop.eup %15368  ;;  %13873 = vmatpush3.bf16.msra.mxu1 %v3895_v41  ;;  %13874 = vmatprep.mubr.msk.bf16.mxu1 %vm15694_vm1, %v15693_v22  ;;  %v14890_v41 = vld [vmem:[%s18959_s8 + $0x38] sm:$0xff]  }
0x1528   : > { %v3885_v21 = vsel %vm922_vm6, %v15369_v34, 0.0  ;;  %13884 = vmatprep.subr.bf16.mxu1 %v15693_v22  ;;  %v3893_v43 = vpack.c.bf16 %v15361_v57, %v15369_v34 }
0x1529   : > { %3886 = vadd.xlane.f32.xlu0 %v3885_v21  ;;  %13911 = vmatpush3.bf16.msra.mxu0 %v14890_v41 }
0x152a   : > { %13912 = vmatprep.subr.bf16.mxu0 %v15693_v22 }
0x152b   : > { %v15371_v36 = vpop.eup %15370 }
0x152c   : > { %v4007_v42 = vsel %vm922_vm6, %v15371_v36, 0.0  ;;  %v15373_v15 = vpop.eup %15372  ;;  %v4015_v46 = vpack.c.bf16 %v15363_v49, %v15371_v36 }
0x152d   : > { %4008 = vadd.xlane.f32.xlu0 %v4007_v42  ;;  %v4125_v44 = vsel %vm922_vm6, %v15373_v15, 0.0 }
0x152e   : > { %13875 = vmatmul.mubr.msk.bf16.vlgmr.msra.gmra.mxu1 %vm922_vm6, %v3893_v43 }
0x152f   : > { %13885 = vmatpush3.bf16.msra.mxu1 %v16630_v63  ;;  %13886 = vmatprep.mubr.msk.bf16.mxu1 %vm15694_vm1, %v15693_v22  ;;  %v4133_v63 = vpack.c.bf16 %v15365_v58, %v15373_v15 }
0x1530   : > { %13896 = vmatprep.subr.bf16.mxu1 %v15693_v22 }
0x1531   : > { %4126 = vadd.xlane.f32.xlu0 %v4125_v44 }
0x1535   : > { %3523 = vadd.xlane.f32.xlu0 %v3522_v13  ;;  %v14891_v13 = vld [vmem:[%s18959_s8 + $0x30] sm:$0xff]  }
0x1536   : > { %13887 = vmatmul.mubr.msk.bf16.vlgmr.msra.gmra.mxu1 %vm922_vm6, %v4015_v46  ;;  %13913 = vmatpush3.bf16.msra.mxu0 %v14891_v13 }
0x1537   : > { %13897 = vmatpush3.bf16.msra.mxu1 %v4136_v48  ;;  %13898 = vmatprep.mubr.msk.bf16.mxu1 %vm15694_vm1, %v15693_v22 }
0x1538   : > { %13918 = vmatprep.subr.bf16.mxu0 %v15693_v22 }
0x153e   : > { %13899 = vmatmul.mubr.msk.bf16.vlgmr.msra.gmra.mxu1 %vm922_vm6, %v4133_v63 }
0x153f   : > { %4544 = vmatprep.mubr.bf16.mxu1 %v15692_v2 }
0x1575   : > { %v3647_v50 = vpop.xlane.xlu1 %3646 }
0x1576   : > { %15374 = vrcp.f32 %v3647_v50 }
0x1579   : > { %v3650_v9 = vpop.xlane.xlu0 %3649 }
0x157a   : > { %15376 = vrcp.f32 %v3650_v9 }
0x1581   : > { %v3769_v3 = vpop.xlane.xlu1 %3768 }
0x1582   : > { %15378 = vrcp.f32 %v3769_v3 }
0x1583   : > { %v15375_v53 = vpop.eup %15374 }
0x1587   : > { %v15377_v51 = vpop.eup %15376 }
0x1589   : > { %v3890_v6 = vpop.xlane.xlu1 %3889 }
0x158f   : > { %v15379_v57 = vpop.eup %15378 }
0x1591   : > { %v4012_v35 = vpop.xlane.xlu1 %4011 }
0x1599   : > { %v4130_v28 = vpop.xlane.xlu1 %4129 }
0x15ae   : > { %v3766_v4 = vpop.xlane.xlu0 %3765 }
0x15af   : > { %15380 = vrcp.f32 %v3766_v4 }
0x15b0   : > { %15382 = vrcp.f32 %v3890_v6 }
0x15b1   : > { %v3694_v52 = vpop.f32.mrf.mxu1 }
0x15b2   : > { %v3701_v62 = vmul.f32 %v15375_v53, %v3694_v52  ;;  %v3887_v30 = vpop.xlane.xlu0 %3886 }
0x15b3   : > { %v13852_v24 = vpop.f32.mrf.mxu1  ;;  %15384 = vrcp.f32 %v3887_v30 }
0x15b4   : > { %15386 = vrcp.f32 %v4012_v35 }
0x15b5   : > { %v3697_v54 = vpop.f32.mrf.mxu1 }
0x15b6   : > { %v3702_v55 = vmul.f32 %v15377_v51, %v3697_v54  ;;  %v4009_v11 = vpop.xlane.xlu0 %4008 }
0x15b7   : > { %v13853_v59 = vpop.f32.mrf.mxu1  ;;  %15388 = vrcp.f32 %v4009_v11 }
0x15b8   : > { %v14629_v1 = vpack.i.bf16 %v3702_v55, %v3701_v62  ;;  %15390 = vrcp.f32 %v4130_v28  ;;  %v3527_v55 = vpop.xlane.xlu1 %3526 }
0x15ba   : > { %14630 = vrot.lane.b32.xlu0 %v14629_v1, %s19031_s19  ;;  %v4127_v32 = vpop.xlane.xlu0 %4126 }
0x15bb   : > { %15392 = vrcp.f32 %v4127_v32 }
0x15bc   : > { %v15381_v31 = vpop.eup %15380  ;;  %15394 = vrcp.f32 %v3527_v55  ;;  %v14896_v55 = vld [vmem:[%s18963_s12 + $0xf0] ss:$12 sps:$4 sm:$0xff]  }
0x15bd   : > { %v15383_v27 = vpop.eup %15382 }
0x15be   : > { %v3524_v59 = vpop.xlane.xlu0 %3523 }
0x15bf   : > { %15396 = vrcp.f32 %v3524_v59  ;;  %v14899_v59 = vld [vmem:[%s18963_s12 + $0xf8] ss:$12 sps:$4 sm:$0xff]  }
0x15c0   : > { %v15385_v29 = vpop.eup %15384 }
0x15c1   : > { %v15387_v36 = vpop.eup %15386 }
0x15c4   : > { %v15389_v42 = vpop.eup %15388 }
0x15c5   : > { %v15391_v9 = vpop.eup %15390 }
0x15c8   : > { %v15393_v52 = vpop.eup %15392 }
0x15c9   : > { %v15395_v4 = vpop.eup %15394 }
0x15ca   : > { %v3580_v11 = vmul.f32 %v15395_v4, %v16696_v47  ;;  %v14903_v4 = vld [vmem:[%s18963_s12 + $0xe0] ss:$12 sps:$4 sm:$0xff]  }
0x15cc   : > { %v15397_v6 = vpop.eup %15396 }
0x15e6   : > { %v3813_v8 = vpop.f32.mrf.mxu1 }
0x15e7   : > { %v3820_v12 = vmul.f32 %v15381_v31, %v3813_v8  ;;  %v3579_v31 = vmul.f32 %v15397_v6, %v16694_v45  ;;  %v14906_v6 = vld [vmem:[%s18963_s12 + $0xc4] ss:$12 sps:$4 sm:$0xff]  }
0x15e8   : > { %v13864_v10 = vpop.f32.mrf.mxu1 }
0x15ea   : > { %v3816_v49 = vpop.f32.mrf.mxu1 }
0x15eb   : > { %v3821_v58 = vmul.f32 %v15379_v57, %v3816_v49 }
0x15ec   : > { %v13865_v18 = vpop.f32.mrf.mxu1 }
0x15ed   : > { %v14634_v19 = vpack.i.bf16 %v3821_v58, %v3820_v12 }
0x15ee   : > { %v3934_v23 = vpop.f32.mrf.mxu1 }
0x15ef   : > { %14635 = vrot.lane.b32.xlu1 %v14634_v19, %s19030_s30  ;;  %v3941_v37 = vmul.f32 %v15385_v29, %v3934_v23 }
0x15f0   : > { %v13876_v25 = vpop.f32.mrf.mxu1 }
0x15f2   : > { %v3937_v56 = vpop.f32.mrf.mxu1 }
0x15f3   : > { %v3942_v39 = vmul.f32 %v15383_v27, %v3937_v56 }
0x15f4   : > { %v13877_v26 = vpop.f32.mrf.mxu1 }
0x15f5   : > { %v14639_v40 = vpack.i.bf16 %v3942_v39, %v3941_v37 }
0x15f6   : > { %v4053_v34 = vpop.f32.mrf.mxu1 }
0x15f7   : > { %14640 = vrot.lane.b32.xlu1 %v14639_v40, %s19029_s4  ;;  %v4060_v15 = vmul.f32 %v15389_v42, %v4053_v34 }
0x15f8   : > { %v13888_v21 = vpop.f32.mrf.mxu1 }
0x15fa   : > { %v4056_v43 = vpop.f32.mrf.mxu1 }
0x15fb   : > { %v4061_v44 = vmul.f32 %v15387_v36, %v4056_v43 }
0x15fc   : > { %v13889_v46 = vpop.f32.mrf.mxu1 }
0x15fd   : > { %v14644_v48 = vpack.i.bf16 %v4061_v44, %v4060_v15 }
0x15fe   : > { %v4175_v63 = vpop.f32.mrf.mxu1 }
0x15ff   : > { %14645 = vrot.lane.b32.xlu0 %v14644_v48, %s19028_s17  ;;  %v4182_v53 = vmul.f32 %v15393_v52, %v4175_v63 }
0x1600   : > { %v13900_v50 = vpop.f32.mrf.mxu1 }
0x1602   : > { %v4178_v24 = vpop.f32.mrf.mxu1 }
0x1603   : > { %v4183_v51 = vmul.f32 %v15391_v9, %v4178_v24 }
0x1604   : > { %v13901_v54 = vpop.f32.mrf.mxu1 }
0x1605   : > { %v14649_v62 = vpack.i.bf16 %v4183_v51, %v4182_v53  ;;  %v14894_v53 = vld [vmem:[%s18963_s12 + $0x10c] ss:$12 sps:$4 sm:$0xff]   ;;  %v14892_v51 = vld [vmem:[%s18963_s12 + $0x108] ss:$12 sps:$4 sm:$0xff]   ;;  %v14895_v54 = vld [vmem:[%s18963_s12 + $0x110] ss:$12 sps:$4 sm:$0xff]  }
0x1606   : > { %4516 = vmatprep.subr.bf16.mxu1 %v14894_v53  ;;  %v14936_v53 = vld [vmem:[%s18965_s14 + $0xc8] sm:$0xff]  }
0x1607   : > { %14650 = vrot.lane.b32.xlu1 %v14649_v62, %s19027_s20  ;;  %4517 = vmatpush1.bf16.msra.mxu1 %v14892_v51  ;;  %v14898_v62 = vld [vmem:[%s18963_s12 + $0xf4] ss:$12 sps:$4 sm:$0xff]  }
0x1608   : > { %4518 = vmatprep.subr.bf16.mxu1 %v14898_v62  ;;  %v14937_v51 = vld [vmem:[%s18965_s14 + $0x140] sm:$0xff]  }
0x1609   : > { %v14939_v62 = vld [vmem:[%s18965_s14 + $0xc0] sm:$0xff]  }
0x160b   : > { %4519 = vmatpush1.bf16.msra.mxu1 %v14896_v55  ;;  %v12173_v55 = vld [vmem:[%s18964_s13 + $0x3] sm:$0x7] }
0x162c   : > { %v14631_v3 = vpop.permute.xlu0 %14630 }
0x162d   : > { %v14633_v7 = vunpack.i.h.bf16 %v14631_v3  ;;  %v14632_v8 = vunpack.i.l.bf16 %v14631_v3  ;;  %v14900_v3 = vld [vmem:[%s18963_s12 + $0xd8] ss:$12 sps:$4 sm:$0xff]  }
0x162f   : > { %v4224_v18 = vsel %vm922_vm6, %v3579_v31, %v14632_v8  ;;  %v4225_v19 = vsel %vm922_vm6, %v3580_v11, %v14633_v7  ;;  %v14907_v7 = vld [vmem:[%s18963_s12 + $0xc8] ss:$12 sps:$4 sm:$0xff]   ;;  %v14910_v8 = vld [vmem:[%s18963_s12 + $0xac] ss:$12 sps:$4 sm:$0xff]   ;;  %v14912_v31 = vld [vmem:[%s18963_s12 + $0x90] ss:$12 sps:$4 sm:$0xff]  }
0x1630   : > { %v14915_v11 = vld [vmem:[%s18963_s12 + $0x98] ss:$12 sps:$4 sm:$0xff]  }
0x1661   : > { %v14636_v1 = vpop.permute.xlu1 %14635 }
0x1662   : > { %v14638_v57 = vunpack.i.h.bf16 %v14636_v1  ;;  %v14637_v35 = vunpack.i.l.bf16 %v14636_v1  ;;  %v14902_v1 = vld [vmem:[%s18963_s12 + $0xdc] ss:$12 sps:$4 sm:$0xff]  }
0x1663   : > { %4520 = vmatprep.subr.bf16.mxu1 %v14902_v1 }
0x1664   : > { %v4227_v20 = vsel %vm2524_vm9, %v4225_v19, %v14638_v57  ;;  %v4226_v23 = vsel %vm2524_vm9, %v4224_v18, %v14637_v35  ;;  %4521 = vmatpush1.bf16.msra.mxu1 %v14900_v3  ;;  %v14911_v57 = vld [vmem:[%s18963_s12 + $0xb0] ss:$12 sps:$4 sm:$0xff]   ;;  %v14914_v35 = vld [vmem:[%s18963_s12 + $0x94] ss:$12 sps:$4 sm:$0xff]  }
0x1665   : > { %4522 = vmatprep.subr.bf16.mxu1 %v14906_v6  ;;  %v4401_v6 = vrot.slane %v12173_v55, %v16532_v16 }
0x1669   : > { %v14641_v30 = vpop.permute.xlu1 %14640 }
0x166a   : > { %v14643_v49 = vunpack.i.h.bf16 %v14641_v30  ;;  %v14642_v12 = vunpack.i.l.bf16 %v14641_v30  ;;  %v14904_v30 = vld [vmem:[%s18963_s12 + $0xc0] ss:$12 sps:$4 sm:$0xff]  }
0x166b   : > { %4523 = vmatpush1.bf16.msra.mxu1 %v14904_v30 }
0x166c   : > { %v4228_v27 = vsel %vm1394_vm7, %v4226_v23, %v14642_v12  ;;  %v4229_v28 = vsel %vm1394_vm7, %v4227_v20, %v14643_v49  ;;  %4524 = vmatprep.subr.bf16.mxu1 %v14910_v8  ;;  %v14917_v49 = vld [vmem:[%s18965_s14 + $0x138] sm:$0xff]  }
0x1671   : > { %v14646_v10 = vpop.permute.xlu0 %14645 }
0x1672   : > { %v14648_v58 = vunpack.i.h.bf16 %v14646_v10  ;;  %v14647_v17 = vunpack.i.l.bf16 %v14646_v10  ;;  %v14908_v10 = vld [vmem:[%s18963_s12 + $0xa8] ss:$12 sps:$4 sm:$0xff]  }
0x1673   : > { %4525 = vmatpush1.bf16.msra.mxu1 %v14908_v10 }
0x1674   : > { %v4230_v47 = vsel %vm2529_vm10, %v4228_v27, %v14647_v17  ;;  %v4231_v32 = vsel %vm2529_vm10, %v4229_v28, %v14648_v58  ;;  %4526 = vmatprep.subr.bf16.mxu1 %v14914_v35  ;;  %v12147_v27 = vld [vmem:[%s18961_s10 + $0x1] ss:$0 sm:$0xff] }
0x1677   : > { %4527 = vmatpush1.bf16.msra.mxu1 %v14912_v31 }
0x1678   : > { %13252 = vmatprep.subr.bf16.mxu1 %v14917_v49 }
0x1679   : > { %v14651_v25 = vpop.permute.xlu1 %14650 }
0x167a   : > { %v14653_v45 = vunpack.i.h.bf16 %v14651_v25  ;;  %v14652_v29 = vunpack.i.l.bf16 %v14651_v25 }
0x167c   : > { %v4232_v56 = vsel %vm2532_vm11, %v4230_v47, %v14652_v29  ;;  %v4233_v37 = vsel %vm2532_vm11, %v4231_v32, %v14653_v45  ;;  %v12148_v47 = vld [vmem:[%s18962_s11 + $0x1] ss:$0 sm:$0xff] }
0x167d   : > { %v4234_v39 = vpack.c.bf16 %v4233_v37, %v4232_v56 }
0x167f   : > { %13915 = vmatmul.mubr.msk.bf16.vlgmr.msra.gmra.mxu0 %vm778_vm0, %v4234_v39  ;;  %v14916_v39 = vld [vmem:[%s18965_s14 + $0x178] sm:$0xff]  }
0x1680   : > { %13930 = vmatprep.mubr.msk.bf16.mxu0 %vm15694_vm1, %v15693_v22  ;;  %13919 = vmatpush3.bf16.msra.mxu0 %v14895_v54  ;;  %v14938_v54 = vld [vmem:[%s18965_s14 + $0x100] sm:$0xff]  }
0x1681   : > { %13920 = vmatprep.subr.bf16.mxu0 %v15693_v22 }
0x1684   : > { %13921 = vmatpush3.bf16.msra.mxu0 %v14899_v59  ;;  %v4409_v59 = vrot.slane %v12173_v55, %v16523_v14 }
0x1685   : > { %13922 = vmatprep.subr.bf16.mxu0 %v15693_v22 }
0x1688   : > { %13923 = vmatpush3.bf16.msra.mxu0 %v14903_v4  ;;  %v4405_v4 = vrot.slane %v12173_v55, %v16529_v38  ;;  %v14940_v55 = vld [vmem:[%s18958_s7 + $0x198] ss:$12 sps:$4 sm:$0xff]  }
0x1689   : > { %13924 = vmatprep.subr.bf16.mxu0 %v15693_v22 }
0x168c   : > { %13925 = vmatpush3.bf16.msra.mxu0 %v14907_v7 }
0x168d   : > { %13926 = vmatprep.subr.bf16.mxu0 %v15693_v22 }
0x1690   : > { %13927 = vmatpush3.bf16.msra.mxu0 %v14911_v57 }
0x1691   : > { %13928 = vmatprep.subr.bf16.mxu0 %v15693_v22 }
0x1694   : > { %13929 = vmatpush3.bf16.msra.mxu0 %v14915_v11 }
0x1695   : > { %13934 = vmatprep.subr.bf16.mxu0 %v15693_v22 }
0x173f   : > { %v4314_v26 = vpop.f32.mrf.mxu0 }
0x1740   : > { %v4315_v40 = vadd.f32 %v12137_v33, %v4314_v26 }
0x1741   : > { %v13916_v41 = vpop.f32.mrf.mxu0 }
0x1742   : > { %v16823_v34 = vadd.f32 %v4315_v40, %v16544_v61  ;;  %v14920_v40 = vld [vmem:[%s18965_s14 + $0x130] sm:$0xff]  }
0x1743   : > { %v4317_v21 = vpop.f32.mrf.mxu0  ;;  %v14919_v41 = vld [vmem:[%s18965_s14 + $0x170] sm:$0xff]  }
0x1744   : > { %v4318_v36 = vadd.f32 %v12137_v33, %v4317_v21  ;;  %v4327_v42 = vsel %vm778_vm0, %v16823_v34, 0.0  ;;  %v14918_v33 = vld [vmem:[%s18965_s14 + $0xf8] sm:$0xff]   ;;  %v14921_v21 = vld [vmem:[%s18965_s14 + $0xf0] sm:$0xff]  }
0x1745   : > { %4328 = vadd.xlane.f32.xlu0 %v4327_v42  ;;  %v13917_v43 = vpop.f32.mrf.mxu0  ;;  %v14922_v42 = vld [vmem:[%s18965_s14 + $0x168] sm:$0xff]  }
0x1746   : > { %v16828_v15 = vadd.f32 %v4318_v36, %v16549_v5  ;;  %v14923_v36 = vld [vmem:[%s18965_s14 + $0x128] sm:$0xff]  }
0x1747   : > { %v14924_v43 = vld [vmem:[%s18965_s14 + $0xe8] sm:$0xff]  }
0x1748   : > { %v4330_v44 = vsel %vm778_vm0, %v16828_v15, 0.0 }
0x1749   : > { %4331 = vadd.xlane.f32.xlu1 %v4330_v44  ;;  %v14926_v44 = vld [vmem:[%s18965_s14 + $0x120] sm:$0xff]  }
0x17ce   : > { %v4329_v13 = vpop.xlane.xlu0 %4328 }
0x17cf   : > { %v4333_v46 = vmul.f32 0.010416667, %v4329_v13  ;;  %v14925_v13 = vld [vmem:[%s18965_s14 + $0x160] sm:$0xff]  }
0x17d1   : > { %v16833_v48 = vsub.f32 %v16823_v34, %v4333_v46  ;;  %v14927_v46 = vld [vmem:[%s18965_s14 + $0xe0] sm:$0xff]  }
0x17d2   : > { %v4332_v61 = vpop.xlane.xlu1 %4331 }
0x17d3   : > { %v4334_v63 = vmul.f32 0.010416667, %v4332_v61  ;;  %v4337_v50 = vmul.f32 %v16833_v48, %v16833_v48  ;;  %v14928_v61 = vld [vmem:[%s18965_s14 + $0x158] sm:$0xff]  }
0x17d5   : > { %v4336_v9 = vsub.f32 %v16828_v15, %v4334_v63  ;;  %v4339_v52 = vsel %vm778_vm0, %v4337_v50, 0.0  ;;  %v14930_v63 = vld [vmem:[%s18965_s14 + $0xd8] sm:$0xff]   ;;  %v14931_v50 = vld [vmem:[%s18965_s14 + $0x150] sm:$0xff]  }
0x17d6   : > { %4340 = vadd.xlane.f32.xlu0 %v4339_v52  ;;  %v14933_v52 = vld [vmem:[%s18965_s14 + $0xd0] sm:$0xff]  }
0x17d7   : > { %v4338_v5 = vmul.f32 %v4336_v9, %v4336_v9 }
0x17d9   : > { %v4342_v24 = vsel %vm778_vm0, %v4338_v5, 0.0  ;;  %v14934_v5 = vld [vmem:[%s18965_s14 + $0x148] sm:$0xff]  }
0x17da   : > { %4343 = vadd.xlane.f32.xlu0 %v4342_v24  ;;  %v14935_v24 = vld [vmem:[%s18965_s14 + $0x108] sm:$0xff]  }
0x185f   : > { %v4341_v12 = vpop.xlane.xlu0 %4340 }
0x1860   : > { %v4345_v58 = vmul.f32 0.010416667, %v4341_v12 }
0x1862   : > { %v4347_v17 = vadd.f32 1e-05, %v4345_v58 }
0x1863   : > { %v4344_v18 = vpop.xlane.xlu0 %4343 }
0x1864   : > { %15398 = vrsqrt.f32 %v4347_v17  ;;  %v4346_v19 = vmul.f32 0.010416667, %v4344_v18 }
0x1866   : > { %v4348_v20 = vadd.f32 1e-05, %v4346_v19 }
0x1868   : > { %15400 = vrsqrt.f32 %v4348_v20 }
0x1871   : > { %v15399_v23 = vpop.eup %15398 }
0x1872   : > { %v4351_v25 = vmul.f32 %v15399_v23, %v16833_v48  ;;  %v14929_v48 = vld [vmem:[%s18965_s14 + $0x118] sm:$0xff]  }
0x1874   : > { %v4359_v29 = vmul.f32 %v12147_v27, %v4351_v25 }
0x1875   : > { %v15401_v28 = vpop.eup %15400 }
0x1876   : > { %v4352_v45 = vmul.f32 %v15401_v28, %v4336_v9  ;;  %v4367_v56 = vadd.f32 %v12148_v47, %v4359_v29  ;;  %v14932_v9 = vld [vmem:[%s18965_s14 + $0x110] sm:$0xff]  }
0x1878   : > { %v4360_v32 = vmul.f32 %v12147_v27, %v4352_v45 }
0x187a   : > { %v4368_v37 = vadd.f32 %v12148_v47, %v4360_v32 }
0x187c   : > { %v4369_v26 = vpack.c.bf16 %v4368_v37, %v4367_v56 }
0x187e   : > { %12192 = vmatmul.mubr.msk.bf16.vlgmr.msra.gmra.mxu1 %vm778_vm0, %v4369_v26  ;;  %13931 = vmatmul.mubr.msk.bf16.vlgmr.msra.gmra.mxu0 %vm778_vm0, %v4369_v26 }
0x187f   : > { %13935 = vmatpush3.bf16.msra.mxu0 %v14916_v39  ;;  %13253 = vmatpush3.bf16.msra.mxu1 %v14918_v33  ;;  %v12243_v39 = vld [vmem:[%s18966_s15 + $0x1] ss:$0 sm:$0xff] }
0x1880   : > { %13936 = vmatprep.subr.bf16.mxu0 %v15693_v22  ;;  %13254 = vmatprep.subr.bf16.mxu1 %v14920_v40 }
0x1881   : > { %13950 = vmatprep.mubr.msk.bf16.mxu0 %vm15694_vm1, %v15693_v22 }
0x1883   : > { %13937 = vmatpush3.bf16.msra.mxu0 %v14919_v41  ;;  %13255 = vmatpush3.bf16.msra.mxu1 %v14921_v21 }
0x1884   : > { %13938 = vmatprep.subr.bf16.mxu0 %v15693_v22  ;;  %13256 = vmatprep.subr.bf16.mxu1 %v14923_v36 }
0x1887   : > { %13939 = vmatpush3.bf16.msra.mxu0 %v14922_v42  ;;  %13257 = vmatpush3.bf16.msra.mxu1 %v14924_v43 }
0x1888   : > { %13940 = vmatprep.subr.bf16.mxu0 %v15693_v22  ;;  %13258 = vmatprep.subr.bf16.mxu1 %v14926_v44 }
0x188b   : > { %13941 = vmatpush3.bf16.msra.mxu0 %v14925_v13  ;;  %13259 = vmatpush3.bf16.msra.mxu1 %v14927_v46 }
0x188c   : > { %13942 = vmatprep.subr.bf16.mxu0 %v15693_v22  ;;  %13260 = vmatprep.subr.bf16.mxu1 %v14929_v48 }
0x188f   : > { %13943 = vmatpush3.bf16.msra.mxu0 %v14928_v61  ;;  %13261 = vmatpush3.bf16.msra.mxu1 %v14930_v63 }
0x1890   : > { %13944 = vmatprep.subr.bf16.mxu0 %v15693_v22  ;;  %13262 = vmatprep.subr.bf16.mxu1 %v14932_v9 }
0x1893   : > { %13945 = vmatpush3.bf16.msra.mxu0 %v14931_v50  ;;  %13263 = vmatpush3.bf16.msra.mxu1 %v14933_v52 }
0x1894   : > { %13946 = vmatprep.subr.bf16.mxu0 %v15693_v22  ;;  %13264 = vmatprep.subr.bf16.mxu1 %v14935_v24 }
0x1897   : > { %13947 = vmatpush3.bf16.msra.mxu0 %v14934_v5  ;;  %13265 = vmatpush3.bf16.msra.mxu1 %v14936_v53 }
0x1898   : > { %13948 = vmatprep.subr.bf16.mxu0 %v15693_v22  ;;  %13266 = vmatprep.subr.bf16.mxu1 %v14938_v54 }
0x189b   : > { %13949 = vmatpush3.bf16.msra.mxu0 %v14937_v51  ;;  %13267 = vmatpush3.bf16.msra.mxu1 %v14939_v62  ;;  %v14942_v62 = vld [vmem:[%s18958_s7 + $0x19c] ss:$12 sps:$4 sm:$0xff]  }
0x189c   : > { %13954 = vmatprep.subr.bf16.mxu0 %v15693_v22  ;;  %5080 = vmatprep.subr.bf16.mxu1 %v14942_v62 }
0x193e   : > { %v4546_v1 = vpop.f32.mrf.mxu1  ;;  %v4589_v3 = vpop.f32.mrf.mxu0 }
0x193f   : > { %v4590_v8 = vadd.f32 %v4589_v3, %v4409_v59  ;;  %v4547_v49 = vadd.f32 %v4546_v1, %v4401_v6  ;;  %v14946_v1 = vld [vmem:[%s18958_s7 + $0x184] ss:$12 sps:$4 sm:$0xff]   ;;  %v14944_v3 = vld [vmem:[%s18958_s7 + $0x180] ss:$12 sps:$4 sm:$0xff]  }
0x1940   : > { %v4548_v30 = vpop.f32.mrf.mxu1  ;;  %v13932_v7 = vpop.f32.mrf.mxu0 }
0x1941   : > { %v4549_v35 = vadd.f32 %v4548_v30, %v4405_v4  ;;  %v4598_v17 = vmax.f32 %v4590_v8, 0.0  ;;  %v4596_v28 = vmax.f32 %v4547_v49, 0.0  ;;  %v14948_v30 = vld [vmem:[%s18958_s7 + $0x168] ss:$12 sps:$4 sm:$0xff]   ;;  %v14951_v7 = vld [vmem:[%s18958_s7 + $0x170] ss:$12 sps:$4 sm:$0xff]  }
0x1942   : > { %v4550_v10 = vpop.f32.mrf.mxu1  ;;  %v4592_v57 = vpop.f32.mrf.mxu0  ;;  %v14954_v8 = vld [vmem:[%s18958_s7 + $0x154] ss:$12 sps:$4 sm:$0xff]   ;;  %v14962_v49 = vld [vmem:[%s18958_s7 + $0x124] ss:$12 sps:$4 sm:$0xff]  }
0x1943   : > { %v4551_v31 = vadd.f32 %v4550_v10, %v4401_v6  ;;  %v4593_v11 = vadd.f32 %v4592_v57, %v4409_v59  ;;  %v4597_v23 = vmax.f32 %v4549_v35, 0.0  ;;  %v14943_v59 = vld [vmem:[%s18958_s7 + $0x1a0] ss:$12 sps:$4 sm:$0xff]   ;;  %v14952_v10 = vld [vmem:[%s18958_s7 + $0x150] ss:$12 sps:$4 sm:$0xff]  }
0x1944   : > { %v4552_v12 = vpop.f32.mrf.mxu1  ;;  %v13933_v58 = vpop.f32.mrf.mxu0  ;;  %v14950_v6 = vld [vmem:[%s18958_s7 + $0x16c] ss:$12 sps:$4 sm:$0xff]   ;;  %v14958_v35 = vld [vmem:[%s18958_s7 + $0x13c] ss:$12 sps:$4 sm:$0xff]  }
0x1945   : > { %v4601_v18 = vmax.f32 %v4593_v11, 0.0  ;;  %v4553_v19 = vadd.f32 %v4552_v12, %v4405_v4  ;;  %v4599_v20 = vmax.f32 %v4551_v31, 0.0  ;;  %v14947_v4 = vld [vmem:[%s18958_s7 + $0x188] ss:$12 sps:$4 sm:$0xff]   ;;  %v14955_v57 = vld [vmem:[%s18958_s7 + $0x158] ss:$12 sps:$4 sm:$0xff]  }
0x1946   : > { %v14956_v31 = vld [vmem:[%s18958_s7 + $0x138] ss:$12 sps:$4 sm:$0xff]   ;;  %v14959_v11 = vld [vmem:[%s18958_s7 + $0x140] ss:$12 sps:$4 sm:$0xff]   ;;  %v14963_v58 = vld [vmem:[%s18958_s7 + $0x128] ss:$12 sps:$4 sm:$0xff]  }
0x1947   : > { %v4604_v25 = vpack.c.bf16 %v4601_v18, %v4598_v17  ;;  %v4600_v27 = vmax.f32 %v4553_v19, 0.0  ;;  %v4602_v29 = vpack.c.bf16 %v4599_v20, %v4596_v28  ;;  %v14960_v12 = vld [vmem:[%s18958_s7 + $0x120] ss:$12 sps:$4 sm:$0xff]  }
0x1949   : > { %13951 = vmatmul.mubr.bf16.vlgmr.msra.gmra.mxu0 %v4604_v25  ;;  %v4603_v45 = vpack.c.bf16 %v4600_v27, %v4597_v23 }
0x194a   : > { %13966 = vmatprep.mubr.msk.bf16.mxu0 %vm15694_vm1, %v15693_v22  ;;  %13955 = vmatpush3.bf16.msra.mxu0 %v14943_v59 }
0x194b   : > { %4838 = vmatprep.mubr.bf16.mxu1 %v4603_v45  ;;  %13956 = vmatprep.subr.bf16.mxu0 %v15693_v22  ;;  %v12270_v45 = vld [vmem:[%s18956_s5 + $0x2] ss:$0 sm:$0xff] }
0x194c   : > { %4839 = vmatmul.mubr.bf16.vlgmr.msra.gmra.mxu1 %v4602_v29 }
0x194d   : > { %5108 = vmatprep.mubr.bf16.mxu1 %v15692_v2  ;;  %5081 = vmatpush1.bf16.msra.mxu1 %v14940_v55 }
0x194e   : > { %5082 = vmatprep.subr.bf16.mxu1 %v14946_v1  ;;  %13957 = vmatpush3.bf16.msra.mxu0 %v14947_v4 }
0x194f   : > { %13958 = vmatprep.subr.bf16.mxu0 %v15693_v22 }
0x1951   : > { %5083 = vmatpush1.bf16.msra.mxu1 %v14944_v3 }
0x1952   : > { %5084 = vmatprep.subr.bf16.mxu1 %v14950_v6  ;;  %13959 = vmatpush3.bf16.msra.mxu0 %v14951_v7 }
0x1953   : > { %13960 = vmatprep.subr.bf16.mxu0 %v15693_v22 }
0x1955   : > { %5085 = vmatpush1.bf16.msra.mxu1 %v14948_v30 }
0x1956   : > { %5086 = vmatprep.subr.bf16.mxu1 %v14954_v8  ;;  %13961 = vmatpush3.bf16.msra.mxu0 %v14955_v57 }
0x1957   : > { %13962 = vmatprep.subr.bf16.mxu0 %v15693_v22 }
0x1959   : > { %5087 = vmatpush1.bf16.msra.mxu1 %v14952_v10 }
0x195a   : > { %5088 = vmatprep.subr.bf16.mxu1 %v14958_v35  ;;  %13963 = vmatpush3.bf16.msra.mxu0 %v14959_v11 }
0x195b   : > { %13964 = vmatprep.subr.bf16.mxu0 %v15693_v22 }
0x195d   : > { %5089 = vmatpush1.bf16.msra.mxu1 %v14956_v31 }
0x195e   : > { %5090 = vmatprep.subr.bf16.mxu1 %v14962_v49  ;;  %13965 = vmatpush3.bf16.msra.mxu0 %v14963_v58 }
0x195f   : > { %13988 = vmatprep.subr.bf16.mxu0 %v15693_v22 }
0x1961   : > { %5091 = vmatpush1.bf16.msra.mxu1 %v14960_v12 }
0x1962   : > { %13970 = vmatprep.subr.bf16.mxu1 %v15693_v22 }
0x1a09   : > { %v4881_v47 = vpop.f32.mrf.mxu0 }
0x1a0b   : > { %v13952_v32 = vpop.f32.mrf.mxu0 }
0x1a0c   : > { %v13268_v56 = vpop.f32.mrf.mxu1 }
0x1a0d   : > { %v4884_v37 = vpop.f32.mrf.mxu0 }
0x1a0e   : > { %v13269_v33 = vpop.f32.mrf.mxu1 }
0x1a0f   : > { %v13270_v26 = vadd.f32 %v13269_v33, %v13268_v56  ;;  %v13953_v40 = vpop.f32.mrf.mxu0  ;;  %v12271_v56 = vld [vmem:[%s18957_s6 + $0x2] ss:$0 sm:$0xff] }
0x1a10   : > { %v13271_v41 = vpop.f32.mrf.mxu1 }
0x1a11   : > { %v4841_v21 = vadd.f32 %v13270_v26, %v12243_v39 }
0x1a12   : > { %v13272_v36 = vpop.f32.mrf.mxu1 }
0x1a13   : > { %v4882_v42 = vadd.f32 %v4881_v47, %v4841_v21  ;;  %v13273_v43 = vadd.f32 %v13272_v36, %v13271_v41 }
0x1a15   : > { %v4844_v44 = vadd.f32 %v13273_v43, %v12243_v39  ;;  %v17004_v13 = vadd.f32 %v4882_v42, %v16823_v34 }
0x1a17   : > { %v4885_v46 = vadd.f32 %v4884_v37, %v4844_v44  ;;  %v4894_v48 = vsel %vm778_vm0, %v17004_v13, 0.0 }
0x1a18   : > { %4895 = vadd.xlane.f32.xlu1 %v4894_v48 }
0x1a19   : > { %v17009_v61 = vadd.f32 %v4885_v46, %v16828_v15 }
0x1a1b   : > { %v4897_v63 = vsel %vm778_vm0, %v17009_v61, 0.0 }
0x1a1c   : > { %4898 = vadd.xlane.f32.xlu0 %v4897_v63 }
0x1aa1   : > { %v4896_v50 = vpop.xlane.xlu1 %4895 }
0x1aa2   : > { %v4900_v9 = vmul.f32 0.010416667, %v4896_v50 }
0x1aa4   : > { %v4902_v52 = vsub.f32 %v17004_v13, %v4900_v9 }
0x1aa5   : > { %v4899_v5 = vpop.xlane.xlu0 %4898 }
0x1aa6   : > { %v4901_v24 = vmul.f32 0.010416667, %v4899_v5  ;;  %v4904_v34 = vmul.f32 %v4902_v52, %v4902_v52 }
0x1aa8   : > { %v4903_v53 = vsub.f32 %v17009_v61, %v4901_v24  ;;  %v4906_v51 = vsel %vm778_vm0, %v4904_v34, 0.0 }
0x1aa9   : > { %4907 = vadd.xlane.f32.xlu1 %v4906_v51 }
0x1aaa   : > { %v4905_v54 = vmul.f32 %v4903_v53, %v4903_v53 }
0x1aac   : > { %v4909_v15 = vsel %vm778_vm0, %v4905_v54, 0.0 }
0x1aad   : > { %4910 = vadd.xlane.f32.xlu0 %v4909_v15 }
0x1b32   : > { %v4908_v17 = vpop.xlane.xlu1 %4907 }
0x1b33   : > { %v4912_v18 = vmul.f32 0.010416667, %v4908_v17 }
0x1b35   : > { %v4914_v19 = vadd.f32 1e-05, %v4912_v18 }
0x1b36   : > { %v4911_v20 = vpop.xlane.xlu0 %4910 }
0x1b37   : > { %15402 = vrsqrt.f32 %v4914_v19  ;;  %v4913_v23 = vmul.f32 0.010416667, %v4911_v20 }
0x1b39   : > { %v4915_v25 = vadd.f32 1e-05, %v4913_v23 }
0x1b3b   : > { %15404 = vrsqrt.f32 %v4915_v25 }
0x1b44   : > { %v15403_v27 = vpop.eup %15402 }
0x1b45   : > { %v4918_v28 = vmul.f32 %v15403_v27, %v4902_v52 }
0x1b47   : > { %v4926_v32 = vmul.f32 %v12270_v45, %v4918_v28 }
0x1b48   : > { %v15405_v29 = vpop.eup %15404 }
0x1b49   : > { %v4919_v47 = vmul.f32 %v15405_v29, %v4903_v53  ;;  %v4934_v39 = vadd.f32 %v12271_v56, %v4926_v32 }
0x1b4b   : > { %v4927_v37 = vmul.f32 %v12270_v45, %v4919_v47 }
0x1b4d   : > { %v4935_v33 = vadd.f32 %v12271_v56, %v4927_v37 }
0x1b4f   : > { %v4976_v26 = vpack.c.bf16 %v4935_v33, %v4934_v39 }
0x1b51   : > { %12327 = vmatmul.mubr.msk.bf16.vlgmr.msra.gmra.mxu1 %vm778_vm0, %v4976_v26  ;;  %13967 = vmatmul.mubr.msk.bf16.vlgmr.msra.gmra.mxu0 %vm778_vm0, %v4976_v26 }
0x1b52   : > { %13972 = vmatprep.mubr.msk.bf16.mxu1 %vm15694_vm1, %v15693_v22  ;;  %13990 = vmatprep.mubr.msk.bf16.mxu0 %vm15694_vm1, %v15693_v22 }
0x1c11   : > { %v5110_v40 = vpop.f32.mrf.mxu1  ;;  %v5153_v41 = vpop.f32.mrf.mxu0 }
0x1c12   : > { %v5160_v50 = vmul.f32 0.10206208, %v5110_v40 }
0x1c13   : > { %v5112_v21 = vpop.f32.mrf.mxu1  ;;  %v13968_v36 = vpop.f32.mrf.mxu0 }
0x1c15   : > { %v5114_v42 = vpop.f32.mrf.mxu1  ;;  %v5156_v43 = vpop.f32.mrf.mxu0 }
0x1c16   : > { %v5163_v44 = vpack.c.bf16 %v5114_v42, %v5110_v40  ;;  %v17090_v46 = vpack.c.bf16 %v5156_v43, %v5153_v41  ;;  %v5161_v63 = vmul.f32 0.10206208, %v5114_v42 }
0x1c17   : > { %v13969_v48 = vpop.f32.mrf.mxu0  ;;  %v5116_v52 = vpop.f32.mrf.mxu1 }
0x1c18   : > { %5166 = vrot.lane.b32.xlu1 %v5163_v44, %s19030_s30  ;;  %v5162_v9 = vpack.c.bf16 %v5161_v63, %v5160_v50  ;;  %v17096_v5 = vpack.c.bf16 %v5116_v52, %v5112_v21 }
0x1c1a   : > { %v5414_v17 = vsel %vm922_vm6, %v17096_v5, 0 }
0x1c1c   : > { %5289 = vrot.lane.b32.xlu1 %v5163_v44, %s19031_s19 }
0x1c20   : > { %5287 = vrot.lane.b32.xlu1 %v5162_v9, %s19032_s23 }
0x1c24   : > { %5408 = vrot.lane.b32.xlu1 %v5162_v9, %s19033_s0 }
0x1c28   : > { %5529 = vrot.lane.b32.xlu1 %v17096_v5, %s19032_s23 }
0x1c2c   : > { %5651 = vrot.lane.b32.xlu1 %v17096_v5, %s19033_s0 }
0x1c30   : > { %5769 = vrot.lane.b32.xlu1 %v17096_v5, %s19027_s20 }
0x1c8a   : > { %v5167_v24 = vpop.permute.xlu1 %5166 }
0x1c8b   : > { %v5172_v34 = vsel %vm922_vm6, %v5167_v24, 0 }
0x1c8c   : > { %13971 = vmatpush3.bf16.xpose.msra.mxu1 %v5172_v34 }
0x1c8d   : > { %13976 = vmatprep.subr.bf16.mxu1 %v15693_v22 }
0x1c8e   : > { %v5290_v57 = vpop.permute.xlu1 %5289 }
0x1c8f   : > { %v5295_v49 = vsel %vm922_vm6, %v5290_v57, 0 }
0x1c92   : > { %v5288_v12 = vpop.permute.xlu1 %5287 }
0x1c93   : > { %13973 = vmatmul.mubr.msk.bf16.vlgmr.msra.gmra.mxu1 %vm922_vm6, %v5162_v9 }
0x1c94   : > { %13978 = vmatprep.mubr.msk.bf16.mxu1 %vm15694_vm1, %v15693_v22 }
0x1c96   : > { %v5409_v58 = vpop.permute.xlu1 %5408 }
0x1c9a   : > { %v5530_v18 = vpop.permute.xlu1 %5529 }
0x1c9b   : > { %v5535_v19 = vsel %vm922_vm6, %v5530_v18, 0 }
0x1c9e   : > { %v5652_v20 = vpop.permute.xlu1 %5651 }
0x1c9f   : > { %v5657_v25 = vsel %vm922_vm6, %v5652_v20, 0 }
0x1ca2   : > { %v5770_v27 = vpop.permute.xlu1 %5769 }
0x1ca3   : > { %v5775_v45 = vsel %vm922_vm6, %v5770_v27, 0 }
0x1d53   : > { %v5208_v53 = vpop.f32.mrf.mxu1 }
0x1d54   : > { %v5209_v51 = vadd.f32 %v5208_v53, %v15985_v60 }
0x1d55   : > { %v13974_v54 = vpop.f32.mrf.mxu1 }
0x1d56   : > { %v5215_v15 = vsel %vm922_vm6, %v5209_v51, -inf }
0x1d57   : > { %5216 = vmax.xlane.f32.xlu0 %v5215_v15  ;;  %v5211_v62 = vpop.f32.mrf.mxu1 }
0x1d58   : > { %v5212_v55 = vadd.f32 %v5211_v62, %v15988_v0 }
0x1d59   : > { %v13975_v59 = vpop.f32.mrf.mxu1 }
0x1d5a   : > { %v5218_v1 = vsel %vm922_vm6, %v5212_v55, -inf }
0x1d5b   : > { %5219 = vmax.xlane.f32.xlu0 %v5218_v1 }
0x1d71   : > { %5237 = vrot.lane.b32.xlu0 %v17096_v5, %s19028_s17 }
0x1d75   : > { %5527 = vrot.lane.b32.xlu0 %v5162_v9, %s19027_s20 }
0x1d79   : > { %5649 = vrot.lane.b32.xlu0 %v5162_v9, %s19028_s17 }
0x1d7d   : > { %5767 = vrot.lane.b32.xlu0 %v5162_v9, %s19029_s4 }
0x1de0   : > { %v5217_v3 = vpop.xlane.xlu0 %5216 }
0x1de1   : > { %v5221_v4 = vsub.f32 %v5209_v51, %v5217_v3 }
0x1de3   : > { %v5223_v6 = vmul.f32 1.442695, %v5221_v4 }
0x1de4   : > { %v5220_v30 = vpop.xlane.xlu0 %5219 }
0x1de5   : > { %v5222_v7 = vsub.f32 %v5212_v55, %v5220_v30  ;;  %15406 = vpow2.f32 %v5223_v6 }
0x1de7   : > { %v5225_v8 = vmul.f32 1.442695, %v5222_v7 }
0x1de8   : > { %v5238_v10 = vpop.permute.xlu0 %5237 }
0x1de9   : > { %15408 = vpow2.f32 %v5225_v8  ;;  %13977 = vmatpush3.bf16.msra.mxu1 %v5238_v10 }
0x1dea   : > { %13982 = vmatprep.subr.bf16.mxu1 %v15693_v22 }
0x1dec   : > { %v5528_v23 = vpop.permute.xlu0 %5527 }
0x1df0   : > { %v5650_v28 = vpop.permute.xlu0 %5649 }
0x1df2   : > { %v17119_v35 = vpop.eup %15406 }
0x1df4   : > { %v5768_v29 = vpop.permute.xlu0 %5767 }
0x1df6   : > { %v17121_v31 = vpop.eup %15408 }
0x1df7   : > { %v5235_v11 = vpack.c.bf16 %v17121_v31, %v17119_v35 }
0x1df9   : > { %13979 = vmatmul.mubr.msk.bf16.vlgmr.msra.gmra.mxu1 %vm922_vm6, %v5235_v11 }
0x1dfa   : > { %13983 = vmatpush3.bf16.xpose.msra.mxu1 %v5295_v49  ;;  %13984 = vmatprep.mubr.msk.bf16.mxu1 %vm15694_vm1, %v15693_v22 }
0x1dfb   : > { %13994 = vmatprep.subr.bf16.mxu1 %v15693_v22 }
0x1e01   : > { %13985 = vmatmul.mubr.msk.bf16.vlgmr.msra.gmra.mxu1 %vm922_vm6, %v5288_v12 }
0x1e02   : > { %13995 = vmatpush3.bf16.xpose.msra.mxu1 %v5414_v17  ;;  %13996 = vmatprep.mubr.msk.bf16.mxu1 %vm15694_vm1, %v15693_v22 }
0x1e03   : > { %14006 = vmatprep.subr.bf16.mxu1 %v15693_v22 }
0x1e09   : > { %13997 = vmatmul.mubr.msk.bf16.vlgmr.msra.gmra.mxu1 %vm922_vm6, %v5409_v58 }
0x1e0a   : > { %14007 = vmatpush3.bf16.xpose.msra.mxu1 %v5535_v19  ;;  %14008 = vmatprep.mubr.msk.bf16.mxu1 %vm15694_vm1, %v15693_v22 }
0x1e0b   : > { %14018 = vmatprep.subr.bf16.mxu1 %v15693_v22 }
0x1e11   : > { %14009 = vmatmul.mubr.msk.bf16.vlgmr.msra.gmra.mxu1 %vm922_vm6, %v5528_v23 }
0x1e12   : > { %14019 = vmatpush3.bf16.xpose.msra.mxu1 %v5657_v25  ;;  %14020 = vmatprep.mubr.msk.bf16.mxu1 %vm15694_vm1, %v15693_v22 }
0x1e13   : > { %14030 = vmatprep.subr.bf16.mxu1 %v15693_v22 }
0x1e19   : > { %14021 = vmatmul.mubr.msk.bf16.vlgmr.msra.gmra.mxu1 %vm922_vm6, %v5650_v28 }
0x1e1a   : > { %14031 = vmatpush3.bf16.xpose.msra.mxu1 %v5775_v45  ;;  %14032 = vmatprep.mubr.msk.bf16.mxu1 %vm15694_vm1, %v15693_v22 }
0x1e1b   : > { %14042 = vmatprep.subr.bf16.mxu1 %v15693_v22 }
0x1e21   : > { %14033 = vmatmul.mubr.msk.bf16.vlgmr.msra.gmra.mxu1 %vm922_vm6, %v5768_v29 }
0x1e22   : > { %14054 = vmatprep.mubr.msk.bf16.mxu1 %vm15694_vm1, %v15693_v22 }
0x1eb9   : > { %v17154_v47 = vpop.f32.mrf.mxu1 }
0x1ebb   : > { %v13980_v32 = vpop.f32.mrf.mxu1 }
0x1ebd   : > { %v17156_v56 = vpop.f32.mrf.mxu1 }
0x1ebf   : > { %v13981_v37 = vpop.f32.mrf.mxu1 }
0x1ec1   : > { %v5331_v39 = vpop.f32.mrf.mxu1 }
0x1ec2   : > { %v5332_v33 = vadd.f32 %v5331_v39, %v15985_v60 }
0x1ec3   : > { %v13986_v26 = vpop.f32.mrf.mxu1 }
0x1ec4   : > { %v5338_v40 = vsel %vm922_vm6, %v5332_v33, -inf }
0x1ec5   : > { %5339 = vmax.xlane.f32.xlu1 %v5338_v40  ;;  %v5334_v41 = vpop.f32.mrf.mxu1 }
0x1ec6   : > { %v5335_v21 = vadd.f32 %v5334_v41, %v15988_v0 }
0x1ec7   : > { %v13987_v36 = vpop.f32.mrf.mxu1 }
0x1ec8   : > { %v5341_v42 = vsel %vm922_vm6, %v5335_v21, -inf }
0x1ec9   : > { %5342 = vmax.xlane.f32.xlu0 %v5341_v42  ;;  %v5450_v43 = vpop.f32.mrf.mxu1 }
0x1eca   : > { %v17178_v49 = vadd.f32 %v5450_v43, %v15985_v60 }
0x1ecb   : > { %v13998_v44 = vpop.f32.mrf.mxu1 }
0x1ecc   : > { %v5457_v58 = vsel %vm922_vm6, %v17178_v49, -inf }
0x1ecd   : > { %v5453_v48 = vpop.f32.mrf.mxu1 }
0x1ece   : > { %v5454_v63 = vadd.f32 %v5453_v48, %v15988_v0 }
0x1ecf   : > { %v13999_v50 = vpop.f32.mrf.mxu1 }
0x1ed0   : > { %v5460_v9 = vsel %vm922_vm6, %v5454_v63, -inf }
0x1ed1   : > { %5461 = vmax.xlane.f32.xlu1 %v5460_v9  ;;  %v5571_v52 = vpop.f32.mrf.mxu1 }
0x1ed2   : > { %v17183_v12 = vadd.f32 %v5571_v52, %v15985_v60 }
0x1ed3   : > { %v14010_v24 = vpop.f32.mrf.mxu1 }
0x1ed4   : > { %v5578_v18 = vsel %vm922_vm6, %v17183_v12, -inf }
0x1ed5   : > { %v5574_v34 = vpop.f32.mrf.mxu1 }
0x1ed6   : > { %v5575_v53 = vadd.f32 %v5574_v34, %v15988_v0 }
0x1ed7   : > { %v14011_v51 = vpop.f32.mrf.mxu1 }
0x1ed8   : > { %v5581_v54 = vsel %vm922_vm6, %v5575_v53, -inf }
0x1ed9   : > { %5582 = vmax.xlane.f32.xlu1 %v5581_v54  ;;  %v5693_v15 = vpop.f32.mrf.mxu1 }
0x1eda   : > { %v17188_v17 = vadd.f32 %v5693_v15, %v15985_v60 }
0x1edb   : > { %v14022_v62 = vpop.f32.mrf.mxu1 }
0x1edc   : > { %v5700_v19 = vsel %vm922_vm6, %v17188_v17, -inf }
0x1edd   : > { %v5696_v55 = vpop.f32.mrf.mxu1 }
0x1ede   : > { %v5697_v59 = vadd.f32 %v5696_v55, %v15988_v0 }
0x1edf   : > { %5359 = vrot.lane.b32.xlu0 %v17096_v5, %s19029_s4  ;;  %v14023_v1 = vpop.f32.mrf.mxu1 }
0x1ee0   : > { %v5703_v3 = vsel %vm922_vm6, %v5697_v59, -inf }
0x1ee1   : > { %5704 = vmax.xlane.f32.xlu1 %v5703_v3  ;;  %v5811_v4 = vpop.f32.mrf.mxu1 }
0x1ee2   : > { %v17171_v6 = vadd.f32 %v5811_v4, %v15985_v60  ;;  %v5230_v4 = vsel %vm922_vm6, %v17121_v31, 0.0 }
0x1ee3   : > { %v14034_v30 = vpop.f32.mrf.mxu1 }
0x1ee4   : > { %v5818_v7 = vsel %vm922_vm6, %v17171_v6, -inf }
0x1ee5   : > { %5819 = vmax.xlane.f32.xlu1 %v5818_v7  ;;  %v5814_v8 = vpop.f32.mrf.mxu1 }
0x1ee6   : > { %v5815_v10 = vadd.f32 %v5814_v8, %v15988_v0 }
0x1ee7   : > { %v14035_v57 = vpop.f32.mrf.mxu1 }
0x1ee8   : > { %v5821_v11 = vsel %vm922_vm6, %v5815_v10, -inf }
0x1ee9   : > { %5822 = vmax.xlane.f32.xlu1 %v5821_v11 }
0x1efa   : > { %5478 = vrot.lane.b32.xlu1 %v17096_v5, %s19030_s30 }
0x1efe   : > { %5458 = vmax.xlane.f32.xlu0 %v5457_v58 }
0x1f02   : > { %5579 = vmax.xlane.f32.xlu0 %v5578_v18 }
0x1f06   : > { %5701 = vmax.xlane.f32.xlu0 %v5700_v19 }
0x1f1c   : > { %5599 = vrot.lane.b32.xlu0 %v17096_v5, %s19031_s19 }
0x1f20   : > { %5840 = vrot.lane.b32.xlu0 %v17090_v46, %s19032_s23 }
0x1f4e   : > { %v5340_v20 = vpop.xlane.xlu1 %5339 }
0x1f4f   : > { %v5344_v23 = vsub.f32 %v5332_v33, %v5340_v20 }
0x1f51   : > { %v5346_v25 = vmul.f32 1.442695, %v5344_v23 }
0x1f52   : > { %v5343_v27 = vpop.xlane.xlu0 %5342 }
0x1f53   : > { %15410 = vpow2.f32 %v5346_v25  ;;  %v5345_v28 = vsub.f32 %v5335_v21, %v5343_v27 }
0x1f55   : > { %v5348_v45 = vmul.f32 1.442695, %v5345_v28 }
0x1f56   : > { %v5360_v29 = vpop.permute.xlu0 %5359 }
0x1f57   : > { %15412 = vpow2.f32 %v5348_v45  ;;  %13989 = vmatpush3.bf16.msra.mxu0 %v5360_v29 }
0x1f58   : > { %14000 = vmatprep.subr.bf16.mxu0 %v15693_v22 }
0x1f5a   : > { %v5462_v32 = vpop.xlane.xlu1 %5461 }
0x1f5b   : > { %v5464_v37 = vsub.f32 %v5454_v63, %v5462_v32  ;;  %v5227_v32 = vsel %vm922_vm6, %v17119_v35, 0.0 }
0x1f5d   : > { %v5467_v39 = vmul.f32 1.442695, %v5464_v37 }
0x1f5f   : > { %15414 = vpow2.f32 %v5467_v39 }
0x1f60   : > { %v15411_v5 = vpop.eup %15410 }
0x1f61   : > { %v5350_v26 = vsel %vm922_vm6, %v15411_v5, 0.0 }
0x1f62   : > { %v5583_v40 = vpop.xlane.xlu1 %5582  ;;  %5351 = vadd.xlane.f32.xlu1 %v5350_v26 }
0x1f63   : > { %v5585_v33 = vsub.f32 %v5575_v53, %v5583_v40 }
0x1f64   : > { %v15413_v41 = vpop.eup %15412 }
0x1f65   : > { %v5588_v36 = vmul.f32 1.442695, %v5585_v33  ;;  %v5353_v21 = vsel %vm922_vm6, %v15413_v41, 0.0  ;;  %v5358_v42 = vpack.c.bf16 %v15413_v41, %v15411_v5 }
0x1f66   : > { %5354 = vadd.xlane.f32.xlu0 %v5353_v21 }
0x1f67   : > { %15416 = vpow2.f32 %v5588_v36  ;;  %13991 = vmatmul.mubr.msk.bf16.vlgmr.msra.gmra.mxu0 %vm922_vm6, %v5358_v42 }
0x1f68   : > { %14002 = vmatprep.mubr.msk.bf16.mxu0 %vm15694_vm1, %v15693_v22 }
0x1f6a   : > { %v5705_v43 = vpop.xlane.xlu1 %5704 }
0x1f6b   : > { %v5707_v44 = vsub.f32 %v5697_v59, %v5705_v43 }
0x1f6c   : > { %v15415_v48 = vpop.eup %15414 }
0x1f6d   : > { %v5710_v63 = vmul.f32 1.442695, %v5707_v44  ;;  %v5472_v50 = vsel %vm922_vm6, %v15415_v48, 0.0 }
0x1f6e   : > { %v5820_v9 = vpop.xlane.xlu1 %5819  ;;  %5473 = vadd.xlane.f32.xlu1 %v5472_v50 }
0x1f6f   : > { %15418 = vpow2.f32 %v5710_v63 }
0x1f72   : > { %v5823_v52 = vpop.xlane.xlu1 %5822 }
0x1f73   : > { %v5825_v24 = vsub.f32 %v5815_v10, %v5823_v52  ;;  %v5824_v10 = vsub.f32 %v17171_v6, %v5820_v9  ;;  %v14964_v9 = vld [vmem:[%s18959_s8 + $0x88] sm:$0xff]  }
0x1f74   : > { %v15417_v34 = vpop.eup %15416  ;;  %14043 = vmatpush3.bf16.msra.mxu1 %v14964_v9 }
0x1f75   : > { %v5828_v53 = vmul.f32 1.442695, %v5825_v24  ;;  %v5593_v51 = vsel %vm922_vm6, %v15417_v34, 0.0  ;;  %v5826_v18 = vmul.f32 1.442695, %v5824_v10  ;;  %14044 = vmatprep.subr.bf16.mxu1 %v15693_v22 }
0x1f76   : > { %5594 = vadd.xlane.f32.xlu1 %v5593_v51  ;;  %v5479_v54 = vpop.permute.xlu1 %5478 }
0x1f77   : > { %15420 = vpow2.f32 %v5828_v53  ;;  %14001 = vmatpush3.bf16.msra.mxu0 %v5479_v54 }
0x1f78   : > { %14012 = vmatprep.subr.bf16.mxu0 %v15693_v22 }
0x1f7c   : > { %v15419_v15 = vpop.eup %15418 }
0x1f7d   : > { %v5715_v62 = vsel %vm922_vm6, %v15419_v15, 0.0 }
0x1f7e   : > { %5716 = vadd.xlane.f32.xlu1 %v5715_v62 }
0x1f84   : > { %v15421_v55 = vpop.eup %15420 }
0x1f85   : > { %v5833_v59 = vsel %vm922_vm6, %v15421_v55, 0.0 }
0x1f86   : > { %5834 = vadd.xlane.f32.xlu1 %v5833_v59  ;;  %v14965_v59 = vld [vmem:[%s18959_s8 + $0x80] sm:$0xff]  }
0x1f87   : > { %v5459_v1 = vpop.xlane.xlu0 %5458  ;;  %14045 = vmatpush3.bf16.msra.mxu1 %v14965_v59 }
0x1f88   : > { %v5463_v3 = vsub.f32 %v17178_v49, %v5459_v1  ;;  %14046 = vmatprep.subr.bf16.mxu1 %v15693_v22 }
0x1f8a   : > { %v5465_v30 = vmul.f32 1.442695, %v5463_v3  ;;  %5231 = vadd.xlane.f32.xlu1 %v5230_v4  ;;  %v14966_v4 = vld [vmem:[%s18959_s8 + $0x78] sm:$0xff]  }
0x1f8b   : > { %v5580_v7 = vpop.xlane.xlu0 %5579  ;;  %14047 = vmatpush3.bf16.msra.mxu1 %v14966_v4 }
0x1f8c   : > { %15422 = vpow2.f32 %v5465_v30  ;;  %v5584_v8 = vsub.f32 %v17183_v12, %v5580_v7  ;;  %14048 = vmatprep.subr.bf16.mxu1 %v15693_v22 }
0x1f8e   : > { %v5586_v57 = vmul.f32 1.442695, %v5584_v8 }
0x1f8f   : > { %v5702_v11 = vpop.xlane.xlu0 %5701 }
0x1f90   : > { %15424 = vpow2.f32 %v5586_v57  ;;  %v5706_v58 = vsub.f32 %v17188_v17, %v5702_v11 }
0x1f92   : > { %v5708_v19 = vmul.f32 1.442695, %v5706_v58 }
0x1f93   : > { %v5600_v23 = vpop.permute.xlu0 %5599 }
0x1f94   : > { %15426 = vpow2.f32 %v5708_v19 }
0x1f95   : > { %15428 = vpow2.f32 %v5826_v18 }
0x1f97   : > { %v5841_v37 = vpop.permute.xlu0 %5840 }
0x1f99   : > { %v15423_v49 = vpop.eup %15422 }
0x1f9a   : > { %v5469_v31 = vsel %vm922_vm6, %v15423_v49, 0.0  ;;  %v5477_v20 = vpack.c.bf16 %v15415_v48, %v15423_v49  ;;  %v14967_v49 = vld [vmem:[%s18959_s8 + $0x70] sm:$0xff]  }
0x1f9b   : > { %5470 = vadd.xlane.f32.xlu0 %v5469_v31  ;;  %14049 = vmatpush3.bf16.msra.mxu1 %v14967_v49  ;;  %v12341_v49 = vld [vmem:[%s18960_s9 + $0x2] ss:$0 sm:$0xff] }
0x1f9c   : > { %14003 = vmatmul.mubr.msk.bf16.vlgmr.msra.gmra.mxu0 %vm922_vm6, %v5477_v20  ;;  %14050 = vmatprep.subr.bf16.mxu1 %v15693_v22 }
0x1f9d   : > { %v15425_v12 = vpop.eup %15424  ;;  %14013 = vmatpush3.bf16.msra.mxu0 %v5600_v23  ;;  %14014 = vmatprep.mubr.msk.bf16.mxu0 %vm15694_vm1, %v15693_v22  ;;  %v14968_v23 = vld [vmem:[%s18959_s8 + $0x68] sm:$0xff]  }
0x1f9e   : > { %v5590_v6 = vsel %vm922_vm6, %v15425_v12, 0.0  ;;  %14024 = vmatprep.subr.bf16.mxu0 %v15693_v22  ;;  %v5598_v25 = vpack.c.bf16 %v15417_v34, %v15425_v12 }
0x1f9f   : > { %5591 = vadd.xlane.f32.xlu0 %v5590_v6  ;;  %14051 = vmatpush3.bf16.msra.mxu1 %v14968_v23 }
0x1fa0   : > { %14052 = vmatprep.subr.bf16.mxu1 %v15693_v22 }
0x1fa1   : > { %v15427_v17 = vpop.eup %15426 }
0x1fa2   : > { %v5712_v27 = vsel %vm922_vm6, %v15427_v17, 0.0  ;;  %v15429_v28 = vpop.eup %15428  ;;  %v5720_v29 = vpack.c.bf16 %v15419_v15, %v15427_v17 }
0x1fa3   : > { %5713 = vadd.xlane.f32.xlu0 %v5712_v27  ;;  %v5830_v45 = vsel %vm922_vm6, %v15429_v28, 0.0 }
0x1fa4   : > { %14015 = vmatmul.mubr.msk.bf16.vlgmr.msra.gmra.mxu0 %vm922_vm6, %v5598_v25 }
0x1fa5   : > { %14025 = vmatpush3.bf16.msra.mxu0 %v17090_v46  ;;  %14026 = vmatprep.mubr.msk.bf16.mxu0 %vm15694_vm1, %v15693_v22  ;;  %v5838_v46 = vpack.c.bf16 %v15421_v55, %v15429_v28 }
0x1fa6   : > { %14036 = vmatprep.subr.bf16.mxu0 %v15693_v22 }
0x1fa7   : > { %5831 = vadd.xlane.f32.xlu0 %v5830_v45 }
0x1fab   : > { %5228 = vadd.xlane.f32.xlu0 %v5227_v32 }
0x1fac   : > { %14027 = vmatmul.mubr.msk.bf16.vlgmr.msra.gmra.mxu0 %vm922_vm6, %v5720_v29  ;;  %v14969_v29 = vld [vmem:[%s18959_s8 + $0x60] sm:$0xff]  }
0x1fad   : > { %14037 = vmatpush3.bf16.msra.mxu0 %v5841_v37  ;;  %14038 = vmatprep.mubr.msk.bf16.mxu0 %vm15694_vm1, %v15693_v22 }
0x1fae   : > { %14053 = vmatpush3.bf16.msra.mxu1 %v14969_v29 }
0x1faf   : > { %14058 = vmatprep.subr.bf16.mxu1 %v15693_v22 }
0x1fb4   : > { %14039 = vmatmul.mubr.msk.bf16.vlgmr.msra.gmra.mxu0 %vm922_vm6, %v5838_v46 }
0x1fb5   : > { %6249 = vmatprep.mubr.bf16.mxu0 %v15692_v2 }
0x1feb   : > { %v5352_v39 = vpop.xlane.xlu1 %5351 }
0x1fec   : > { %15430 = vrcp.f32 %v5352_v39 }
0x1fef   : > { %v5355_v5 = vpop.xlane.xlu0 %5354 }
0x1ff0   : > { %15432 = vrcp.f32 %v5355_v5 }
0x1ff7   : > { %v5474_v44 = vpop.xlane.xlu1 %5473 }
0x1ff8   : > { %15434 = vrcp.f32 %v5474_v44 }
0x1ff9   : > { %v15431_v35 = vpop.eup %15430 }
0x1ffd   : > { %v15433_v33 = vpop.eup %15432 }
0x1fff   : > { %v5595_v63 = vpop.xlane.xlu1 %5594 }
0x2005   : > { %v15435_v34 = vpop.eup %15434 }
0x2007   : > { %v5717_v53 = vpop.xlane.xlu1 %5716 }
0x200f   : > { %v5835_v10 = vpop.xlane.xlu1 %5834 }
0x2024   : > { %v5471_v48 = vpop.xlane.xlu0 %5470 }
0x2025   : > { %15436 = vrcp.f32 %v5471_v48 }
0x2026   : > { %15438 = vrcp.f32 %v5595_v63 }
0x2027   : > { %v5399_v26 = vpop.f32.mrf.mxu0 }
0x2028   : > { %v5406_v36 = vmul.f32 %v15431_v35, %v5399_v26  ;;  %v5592_v50 = vpop.xlane.xlu0 %5591 }
0x2029   : > { %v13992_v40 = vpop.f32.mrf.mxu0  ;;  %15440 = vrcp.f32 %v5592_v50 }
0x202a   : > { %15442 = vrcp.f32 %v5717_v53 }
0x202b   : > { %v5402_v41 = vpop.f32.mrf.mxu0 }
0x202c   : > { %v5407_v21 = vmul.f32 %v15433_v33, %v5402_v41  ;;  %v5714_v54 = vpop.xlane.xlu0 %5713 }
0x202d   : > { %v13993_v42 = vpop.f32.mrf.mxu0  ;;  %15444 = vrcp.f32 %v5714_v54 }
0x202e   : > { %v14654_v43 = vpack.i.bf16 %v5407_v21, %v5406_v36  ;;  %15446 = vrcp.f32 %v5835_v10  ;;  %v5232_v21 = vpop.xlane.xlu1 %5231 }
0x2030   : > { %14655 = vrot.lane.b32.xlu0 %v14654_v43, %s19031_s19  ;;  %v5832_v11 = vpop.xlane.xlu0 %5831 }
0x2031   : > { %15448 = vrcp.f32 %v5832_v11 }
0x2032   : > { %v15437_v51 = vpop.eup %15436  ;;  %15450 = vrcp.f32 %v5232_v21  ;;  %v14974_v21 = vld [vmem:[%s18963_s12 + $0x180] ss:$12 sps:$4 sm:$0xff]  }
0x2033   : > { %v15439_v8 = vpop.eup %15438 }
0x2034   : > { %v5229_v42 = vpop.xlane.xlu0 %5228 }
0x2035   : > { %15452 = vrcp.f32 %v5229_v42  ;;  %v14977_v42 = vld [vmem:[%s18963_s12 + $0x188] ss:$12 sps:$4 sm:$0xff]  }
0x2036   : > { %v15441_v57 = vpop.eup %15440 }
0x2037   : > { %v15443_v17 = vpop.eup %15442 }
0x203a   : > { %v15445_v25 = vpop.eup %15444 }
0x203b   : > { %v15447_v5 = vpop.eup %15446 }
0x203e   : > { %v15449_v26 = vpop.eup %15448 }
0x203f   : > { %v15451_v48 = vpop.eup %15450 }
0x2040   : > { %v5285_v54 = vmul.f32 %v15451_v48, %v17156_v56  ;;  %v14981_v48 = vld [vmem:[%s18963_s12 + $0x170] ss:$12 sps:$4 sm:$0xff]  }
0x2042   : > { %v15453_v63 = vpop.eup %15452 }
0x205c   : > { %v5518_v52 = vpop.f32.mrf.mxu0 }
0x205d   : > { %v5525_v62 = vmul.f32 %v15437_v51, %v5518_v52  ;;  %v5284_v51 = vmul.f32 %v15453_v63, %v17154_v47  ;;  %v14984_v63 = vld [vmem:[%s18963_s12 + $0x154] ss:$12 sps:$4 sm:$0xff]  }
0x205e   : > { %v14004_v24 = vpop.f32.mrf.mxu0 }
0x2060   : > { %v5521_v15 = vpop.f32.mrf.mxu0 }
0x2061   : > { %v5526_v55 = vmul.f32 %v15435_v34, %v5521_v15 }
0x2062   : > { %v14005_v1 = vpop.f32.mrf.mxu0 }
0x2063   : > { %v14659_v3 = vpack.i.bf16 %v5526_v55, %v5525_v62 }
0x2064   : > { %v5639_v30 = vpop.f32.mrf.mxu0 }
0x2065   : > { %14660 = vrot.lane.b32.xlu1 %v14659_v3, %s19030_s30  ;;  %v5646_v18 = vmul.f32 %v15441_v57, %v5639_v30 }
0x2066   : > { %v14016_v7 = vpop.f32.mrf.mxu0 }
0x2068   : > { %v5642_v58 = vpop.f32.mrf.mxu0 }
0x2069   : > { %v5647_v19 = vmul.f32 %v15439_v8, %v5642_v58 }
0x206a   : > { %v14017_v31 = vpop.f32.mrf.mxu0 }
0x206b   : > { %v14664_v20 = vpack.i.bf16 %v5647_v19, %v5646_v18 }
0x206c   : > { %v5758_v12 = vpop.f32.mrf.mxu0 }
0x206d   : > { %14665 = vrot.lane.b32.xlu1 %v14664_v20, %s19029_s4  ;;  %v5765_v28 = vmul.f32 %v15445_v25, %v5758_v12 }
0x206e   : > { %v14028_v6 = vpop.f32.mrf.mxu0 }
0x2070   : > { %v5761_v27 = vpop.f32.mrf.mxu0 }
0x2071   : > { %v5766_v45 = vmul.f32 %v15443_v17, %v5761_v27 }
0x2072   : > { %v14029_v32 = vpop.f32.mrf.mxu0 }
0x2073   : > { %v14669_v37 = vpack.i.bf16 %v5766_v45, %v5765_v28 }
0x2074   : > { %v5880_v46 = vpop.f32.mrf.mxu0 }
0x2075   : > { %14670 = vrot.lane.b32.xlu0 %v14669_v37, %s19028_s17  ;;  %v5887_v35 = vmul.f32 %v15449_v26, %v5880_v46 }
0x2076   : > { %v14040_v39 = vpop.f32.mrf.mxu0 }
0x2078   : > { %v5883_v40 = vpop.f32.mrf.mxu0 }
0x2079   : > { %v5888_v33 = vmul.f32 %v15447_v5, %v5883_v40 }
0x207a   : > { %v14041_v41 = vpop.f32.mrf.mxu0 }
0x207b   : > { %v14674_v36 = vpack.i.bf16 %v5888_v33, %v5887_v35  ;;  %v14972_v35 = vld [vmem:[%s18963_s12 + $0x19c] ss:$12 sps:$4 sm:$0xff]   ;;  %v14970_v33 = vld [vmem:[%s18963_s12 + $0x198] ss:$12 sps:$4 sm:$0xff]   ;;  %v14973_v41 = vld [vmem:[%s18963_s12 + $0x1a0] ss:$12 sps:$4 sm:$0xff]  }
0x207c   : > { %6221 = vmatprep.subr.bf16.mxu0 %v14972_v35  ;;  %v15014_v35 = vld [vmem:[%s18965_s14 + $0x188] sm:$0xff]  }
0x207d   : > { %14675 = vrot.lane.b32.xlu1 %v14674_v36, %s19027_s20  ;;  %6222 = vmatpush1.bf16.msra.mxu0 %v14970_v33  ;;  %v14976_v36 = vld [vmem:[%s18963_s12 + $0x184] ss:$12 sps:$4 sm:$0xff]  }
0x207e   : > { %6223 = vmatprep.subr.bf16.mxu0 %v14976_v36  ;;  %v15015_v33 = vld [vmem:[%s18965_s14 + $0x200] sm:$0xff]  }
0x207f   : > { %v15017_v36 = vld [vmem:[%s18965_s14 + $0x180] sm:$0xff]  }
0x2081   : > { %6224 = vmatpush1.bf16.msra.mxu0 %v14974_v21  ;;  %v12377_v21 = vld [vmem:[%s18964_s13 + $0x6] sm:$0x7] }
0x20a2   : > { %v14656_v44 = vpop.permute.xlu0 %14655 }
0x20a3   : > { %v14658_v9 = vunpack.i.h.bf16 %v14656_v44  ;;  %v14657_v52 = vunpack.i.l.bf16 %v14656_v44  ;;  %v14978_v44 = vld [vmem:[%s18963_s12 + $0x168] ss:$12 sps:$4 sm:$0xff]  }
0x20a5   : > { %v5930_v1 = vsel %vm922_vm6, %v5285_v54, %v14658_v9  ;;  %v5929_v3 = vsel %vm922_vm6, %v5284_v51, %v14657_v52  ;;  %v14985_v9 = vld [vmem:[%s18963_s12 + $0x158] ss:$12 sps:$4 sm:$0xff]   ;;  %v14988_v52 = vld [vmem:[%s18963_s12 + $0x13c] ss:$12 sps:$4 sm:$0xff]  }
0x20a6   : > { %v14992_v51 = vld [vmem:[%s18963_s12 + $0x124] ss:$12 sps:$4 sm:$0xff]   ;;  %v14993_v54 = vld [vmem:[%s18963_s12 + $0x128] ss:$12 sps:$4 sm:$0xff]  }
0x20d7   : > { %v14661_v43 = vpop.permute.xlu1 %14660 }
0x20d8   : > { %v14663_v34 = vunpack.i.h.bf16 %v14661_v43  ;;  %v14662_v53 = vunpack.i.l.bf16 %v14661_v43  ;;  %v14980_v43 = vld [vmem:[%s18963_s12 + $0x16c] ss:$12 sps:$4 sm:$0xff]  }
0x20d9   : > { %6225 = vmatprep.subr.bf16.mxu0 %v14980_v43 }
0x20da   : > { %v5932_v4 = vsel %vm2524_vm9, %v5930_v1, %v14663_v34  ;;  %v5931_v30 = vsel %vm2524_vm9, %v5929_v3, %v14662_v53  ;;  %6226 = vmatpush1.bf16.msra.mxu0 %v14978_v44  ;;  %v14989_v34 = vld [vmem:[%s18963_s12 + $0x140] ss:$12 sps:$4 sm:$0xff]  }
0x20db   : > { %6227 = vmatprep.subr.bf16.mxu0 %v14984_v63  ;;  %v14990_v53 = vld [vmem:[%s18963_s12 + $0x120] ss:$12 sps:$4 sm:$0xff]   ;;  %v6106_v63 = vrot.slane %v12377_v21, %v16532_v16 }
0x20df   : > { %v14666_v50 = vpop.permute.xlu1 %14665 }
0x20e0   : > { %v14668_v15 = vunpack.i.h.bf16 %v14666_v50  ;;  %v14667_v62 = vunpack.i.l.bf16 %v14666_v50  ;;  %v14982_v50 = vld [vmem:[%s18963_s12 + $0x150] ss:$12 sps:$4 sm:$0xff]  }
0x20e1   : > { %6228 = vmatpush1.bf16.msra.mxu0 %v14982_v50 }
0x20e2   : > { %v5934_v8 = vsel %vm1394_vm7, %v5932_v4, %v14668_v15  ;;  %v5933_v10 = vsel %vm1394_vm7, %v5931_v30, %v14667_v62  ;;  %6229 = vmatprep.subr.bf16.mxu0 %v14988_v52  ;;  %v14995_v15 = vld [vmem:[%s18965_s14 + $0x1f8] sm:$0xff]  }
0x20e7   : > { %v14671_v24 = vpop.permute.xlu0 %14670 }
0x20e8   : > { %v14673_v55 = vunpack.i.h.bf16 %v14671_v24  ;;  %v14672_v59 = vunpack.i.l.bf16 %v14671_v24  ;;  %v14986_v24 = vld [vmem:[%s18963_s12 + $0x138] ss:$12 sps:$4 sm:$0xff]  }
0x20e9   : > { %6230 = vmatpush1.bf16.msra.mxu0 %v14986_v24 }
0x20ea   : > { %v5936_v56 = vsel %vm2529_vm10, %v5934_v8, %v14673_v55  ;;  %v5935_v11 = vsel %vm2529_vm10, %v5933_v10, %v14672_v59  ;;  %6231 = vmatprep.subr.bf16.mxu0 %v14992_v51  ;;  %v12351_v8 = vld [vmem:[%s18961_s10 + $0x2] ss:$0 sm:$0xff] }
0x20ed   : > { %6232 = vmatpush1.bf16.msra.mxu0 %v14990_v53 }
0x20ee   : > { %13328 = vmatprep.subr.bf16.mxu0 %v14995_v15 }
0x20ef   : > { %v14676_v7 = vpop.permute.xlu1 %14675 }
0x20f0   : > { %v14678_v47 = vunpack.i.h.bf16 %v14676_v7  ;;  %v14677_v57 = vunpack.i.l.bf16 %v14676_v7 }
0x20f2   : > { %v5938_v58 = vsel %vm2532_vm11, %v5936_v56, %v14678_v47  ;;  %v5937_v18 = vsel %vm2532_vm11, %v5935_v11, %v14677_v57  ;;  %v12352_v56 = vld [vmem:[%s18962_s11 + $0x2] ss:$0 sm:$0xff] }
0x20f3   : > { %v5939_v19 = vpack.c.bf16 %v5938_v58, %v5937_v18 }
0x20f5   : > { %14055 = vmatmul.mubr.msk.bf16.vlgmr.msra.gmra.mxu1 %vm778_vm0, %v5939_v19  ;;  %v14994_v19 = vld [vmem:[%s18965_s14 + $0x238] sm:$0xff]  }
0x20f6   : > { %14070 = vmatprep.mubr.msk.bf16.mxu1 %vm15694_vm1, %v15693_v22  ;;  %14059 = vmatpush3.bf16.msra.mxu1 %v14973_v41  ;;  %v15016_v41 = vld [vmem:[%s18965_s14 + $0x1c0] sm:$0xff]  }
0x20f7   : > { %14060 = vmatprep.subr.bf16.mxu1 %v15693_v22 }
0x20fa   : > { %14061 = vmatpush3.bf16.msra.mxu1 %v14977_v42  ;;  %v6114_v42 = vrot.slane %v12377_v21, %v16523_v14 }
0x20fb   : > { %14062 = vmatprep.subr.bf16.mxu1 %v15693_v22 }
0x20fe   : > { %14063 = vmatpush3.bf16.msra.mxu1 %v14981_v48  ;;  %v6110_v48 = vrot.slane %v12377_v21, %v16529_v38  ;;  %v15018_v21 = vld [vmem:[%s18958_s7 + $0x228] ss:$12 sps:$4 sm:$0xff]  }
0x20ff   : > { %14064 = vmatprep.subr.bf16.mxu1 %v15693_v22 }
0x2102   : > { %14065 = vmatpush3.bf16.msra.mxu1 %v14985_v9 }
0x2103   : > { %14066 = vmatprep.subr.bf16.mxu1 %v15693_v22 }
0x2106   : > { %14067 = vmatpush3.bf16.msra.mxu1 %v14989_v34 }
0x2107   : > { %14068 = vmatprep.subr.bf16.mxu1 %v15693_v22 }
0x210a   : > { %14069 = vmatpush3.bf16.msra.mxu1 %v14993_v54 }
0x210b   : > { %14074 = vmatprep.subr.bf16.mxu1 %v15693_v22 }
0x21b5   : > { %v6019_v31 = vpop.f32.mrf.mxu1 }
0x21b6   : > { %v6020_v20 = vadd.f32 %v12341_v49, %v6019_v31 }
0x21b7   : > { %v14056_v23 = vpop.f32.mrf.mxu1 }
0x21b8   : > { %v17283_v12 = vadd.f32 %v6020_v20, %v17004_v13  ;;  %v14998_v20 = vld [vmem:[%s18965_s14 + $0x1f0] sm:$0xff]  }
0x21b9   : > { %v6022_v6 = vpop.f32.mrf.mxu1  ;;  %v14997_v23 = vld [vmem:[%s18965_s14 + $0x230] sm:$0xff]  }
0x21ba   : > { %v6023_v17 = vadd.f32 %v12341_v49, %v6022_v6  ;;  %v6032_v25 = vsel %vm778_vm0, %v17283_v12, 0.0  ;;  %v14996_v49 = vld [vmem:[%s18965_s14 + $0x1b8] sm:$0xff]   ;;  %v14999_v6 = vld [vmem:[%s18965_s14 + $0x1b0] sm:$0xff]  }
0x21bb   : > { %6033 = vadd.xlane.f32.xlu0 %v6032_v25  ;;  %v14057_v27 = vpop.f32.mrf.mxu1  ;;  %v15000_v25 = vld [vmem:[%s18965_s14 + $0x228] sm:$0xff]  }
0x21bc   : > { %v17288_v28 = vadd.f32 %v6023_v17, %v17009_v61  ;;  %v15001_v17 = vld [vmem:[%s18965_s14 + $0x1e8] sm:$0xff]  }
0x21bd   : > { %v15002_v27 = vld [vmem:[%s18965_s14 + $0x1a8] sm:$0xff]  }
0x21be   : > { %v6035_v45 = vsel %vm778_vm0, %v17288_v28, 0.0 }
0x21bf   : > { %6036 = vadd.xlane.f32.xlu1 %v6035_v45  ;;  %v15004_v45 = vld [vmem:[%s18965_s14 + $0x1e0] sm:$0xff]  }
0x2244   : > { %v6034_v29 = vpop.xlane.xlu0 %6033 }
0x2245   : > { %v6038_v32 = vmul.f32 0.010416667, %v6034_v29  ;;  %v15003_v29 = vld [vmem:[%s18965_s14 + $0x220] sm:$0xff]  }
0x2247   : > { %v17293_v37 = vsub.f32 %v17283_v12, %v6038_v32  ;;  %v15005_v32 = vld [vmem:[%s18965_s14 + $0x1a0] sm:$0xff]  }
0x2248   : > { %v6037_v13 = vpop.xlane.xlu1 %6036 }
0x2249   : > { %v6039_v46 = vmul.f32 0.010416667, %v6037_v13  ;;  %v6042_v39 = vmul.f32 %v17293_v37, %v17293_v37  ;;  %v15006_v13 = vld [vmem:[%s18965_s14 + $0x218] sm:$0xff]  }
0x224b   : > { %v17298_v5 = vsub.f32 %v17288_v28, %v6039_v46  ;;  %v6044_v61 = vsel %vm778_vm0, %v6042_v39, 0.0  ;;  %v15008_v46 = vld [vmem:[%s18965_s14 + $0x198] sm:$0xff]   ;;  %v15009_v39 = vld [vmem:[%s18965_s14 + $0x210] sm:$0xff]  }
0x224c   : > { %6045 = vadd.xlane.f32.xlu0 %v6044_v61  ;;  %v15011_v61 = vld [vmem:[%s18965_s14 + $0x190] sm:$0xff]  }
0x224d   : > { %v6043_v26 = vmul.f32 %v17298_v5, %v17298_v5 }
0x224f   : > { %v6047_v40 = vsel %vm778_vm0, %v6043_v26, 0.0  ;;  %v15012_v26 = vld [vmem:[%s18965_s14 + $0x208] sm:$0xff]  }
0x2250   : > { %6048 = vadd.xlane.f32.xlu0 %v6047_v40  ;;  %v15013_v40 = vld [vmem:[%s18965_s14 + $0x1c8] sm:$0xff]  }
0x22d5   : > { %v6046_v62 = vpop.xlane.xlu0 %6045 }
0x22d6   : > { %v6050_v55 = vmul.f32 0.010416667, %v6046_v62 }
0x22d8   : > { %v6052_v59 = vadd.f32 1e-05, %v6050_v55 }
0x22d9   : > { %v6049_v1 = vpop.xlane.xlu0 %6048 }
0x22da   : > { %15454 = vrsqrt.f32 %v6052_v59  ;;  %v6051_v3 = vmul.f32 0.010416667, %v6049_v1 }
0x22dc   : > { %v6053_v4 = vadd.f32 1e-05, %v6051_v3 }
0x22de   : > { %15456 = vrsqrt.f32 %v6053_v4 }
0x22e7   : > { %v15455_v30 = vpop.eup %15454 }
0x22e8   : > { %v6056_v7 = vmul.f32 %v15455_v30, %v17293_v37  ;;  %v15007_v37 = vld [vmem:[%s18965_s14 + $0x1d8] sm:$0xff]  }
0x22ea   : > { %v6064_v47 = vmul.f32 %v12351_v8, %v6056_v7 }
0x22eb   : > { %v15457_v10 = vpop.eup %15456 }
0x22ec   : > { %v6057_v57 = vmul.f32 %v15457_v10, %v17298_v5  ;;  %v6072_v58 = vadd.f32 %v12352_v56, %v6064_v47  ;;  %v15010_v5 = vld [vmem:[%s18965_s14 + $0x1d0] sm:$0xff]  }
0x22ee   : > { %v6065_v11 = vmul.f32 %v12351_v8, %v6057_v57 }
0x22f0   : > { %v6073_v18 = vadd.f32 %v12352_v56, %v6065_v11 }
0x22f2   : > { %v6074_v31 = vpack.c.bf16 %v6073_v18, %v6072_v58 }
0x22f4   : > { %12396 = vmatmul.mubr.msk.bf16.vlgmr.msra.gmra.mxu0 %vm778_vm0, %v6074_v31  ;;  %14071 = vmatmul.mubr.msk.bf16.vlgmr.msra.gmra.mxu1 %vm778_vm0, %v6074_v31 }
0x22f5   : > { %14075 = vmatpush3.bf16.msra.mxu1 %v14994_v19  ;;  %13329 = vmatpush3.bf16.msra.mxu0 %v14996_v49  ;;  %v12447_v19 = vld [vmem:[%s18966_s15 + $0x2] ss:$0 sm:$0xff] }
0x22f6   : > { %14076 = vmatprep.subr.bf16.mxu1 %v15693_v22  ;;  %13330 = vmatprep.subr.bf16.mxu0 %v14998_v20 }
0x22f7   : > { %14090 = vmatprep.mubr.msk.bf16.mxu1 %vm15694_vm1, %v15693_v22 }
0x22f9   : > { %14077 = vmatpush3.bf16.msra.mxu1 %v14997_v23  ;;  %13331 = vmatpush3.bf16.msra.mxu0 %v14999_v6 }
0x22fa   : > { %14078 = vmatprep.subr.bf16.mxu1 %v15693_v22  ;;  %13332 = vmatprep.subr.bf16.mxu0 %v15001_v17 }
0x22fd   : > { %14079 = vmatpush3.bf16.msra.mxu1 %v15000_v25  ;;  %13333 = vmatpush3.bf16.msra.mxu0 %v15002_v27 }
0x22fe   : > { %14080 = vmatprep.subr.bf16.mxu1 %v15693_v22  ;;  %13334 = vmatprep.subr.bf16.mxu0 %v15004_v45 }
0x2301   : > { %14081 = vmatpush3.bf16.msra.mxu1 %v15003_v29  ;;  %13335 = vmatpush3.bf16.msra.mxu0 %v15005_v32 }
0x2302   : > { %14082 = vmatprep.subr.bf16.mxu1 %v15693_v22  ;;  %13336 = vmatprep.subr.bf16.mxu0 %v15007_v37 }
0x2305   : > { %14083 = vmatpush3.bf16.msra.mxu1 %v15006_v13  ;;  %13337 = vmatpush3.bf16.msra.mxu0 %v15008_v46 }
0x2306   : > { %14084 = vmatprep.subr.bf16.mxu1 %v15693_v22  ;;  %13338 = vmatprep.subr.bf16.mxu0 %v15010_v5 }
0x2309   : > { %14085 = vmatpush3.bf16.msra.mxu1 %v15009_v39  ;;  %13339 = vmatpush3.bf16.msra.mxu0 %v15011_v61 }
0x230a   : > { %14086 = vmatprep.subr.bf16.mxu1 %v15693_v22  ;;  %13340 = vmatprep.subr.bf16.mxu0 %v15013_v40 }
0x230d   : > { %14087 = vmatpush3.bf16.msra.mxu1 %v15012_v26  ;;  %13341 = vmatpush3.bf16.msra.mxu0 %v15014_v35 }
0x230e   : > { %14088 = vmatprep.subr.bf16.mxu1 %v15693_v22  ;;  %13342 = vmatprep.subr.bf16.mxu0 %v15016_v41 }
0x2311   : > { %14089 = vmatpush3.bf16.msra.mxu1 %v15015_v33  ;;  %13343 = vmatpush3.bf16.msra.mxu0 %v15017_v36  ;;  %v15020_v36 = vld [vmem:[%s18958_s7 + $0x22c] ss:$12 sps:$4 sm:$0xff]  }
0x2312   : > { %14094 = vmatprep.subr.bf16.mxu1 %v15693_v22  ;;  %6785 = vmatprep.subr.bf16.mxu0 %v15020_v36 }
0x23b4   : > { %v6251_v43 = vpop.f32.mrf.mxu0  ;;  %v6294_v44 = vpop.f32.mrf.mxu1 }
0x23b5   : > { %v6295_v52 = vadd.f32 %v6294_v44, %v6114_v42  ;;  %v6252_v15 = vadd.f32 %v6251_v43, %v6106_v63  ;;  %v15024_v43 = vld [vmem:[%s18958_s7 + $0x214] ss:$12 sps:$4 sm:$0xff]   ;;  %v15022_v44 = vld [vmem:[%s18958_s7 + $0x210] ss:$12 sps:$4 sm:$0xff]  }
0x23b6   : > { %v6253_v50 = vpop.f32.mrf.mxu0  ;;  %v14072_v9 = vpop.f32.mrf.mxu1 }
0x23b7   : > { %v6254_v53 = vadd.f32 %v6253_v50, %v6110_v48  ;;  %v6303_v59 = vmax.f32 %v6295_v52, 0.0  ;;  %v6301_v10 = vmax.f32 %v6252_v15, 0.0  ;;  %v15026_v50 = vld [vmem:[%s18958_s7 + $0x1f8] ss:$12 sps:$4 sm:$0xff]   ;;  %v15029_v9 = vld [vmem:[%s18958_s7 + $0x200] ss:$12 sps:$4 sm:$0xff]  }
0x23b8   : > { %v6255_v24 = vpop.f32.mrf.mxu0  ;;  %v6297_v34 = vpop.f32.mrf.mxu1  ;;  %v15032_v52 = vld [vmem:[%s18958_s7 + $0x1e4] ss:$12 sps:$4 sm:$0xff]  }
0x23b9   : > { %v6256_v51 = vadd.f32 %v6255_v24, %v6106_v63  ;;  %v6298_v54 = vadd.f32 %v6297_v34, %v6114_v42  ;;  %v6302_v30 = vmax.f32 %v6254_v53, 0.0  ;;  %v15021_v42 = vld [vmem:[%s18958_s7 + $0x230] ss:$12 sps:$4 sm:$0xff]   ;;  %v15030_v24 = vld [vmem:[%s18958_s7 + $0x1e0] ss:$12 sps:$4 sm:$0xff]  }
0x23ba   : > { %v6257_v62 = vpop.f32.mrf.mxu0  ;;  %v14073_v55 = vpop.f32.mrf.mxu1  ;;  %v15028_v63 = vld [vmem:[%s18958_s7 + $0x1fc] ss:$12 sps:$4 sm:$0xff]   ;;  %v15036_v53 = vld [vmem:[%s18958_s7 + $0x1cc] ss:$12 sps:$4 sm:$0xff]  }
0x23bb   : > { %v6306_v1 = vmax.f32 %v6298_v54, 0.0  ;;  %v6258_v3 = vadd.f32 %v6257_v62, %v6110_v48  ;;  %v6304_v4 = vmax.f32 %v6256_v51, 0.0  ;;  %v15025_v48 = vld [vmem:[%s18958_s7 + $0x218] ss:$12 sps:$4 sm:$0xff]   ;;  %v15033_v34 = vld [vmem:[%s18958_s7 + $0x1e8] ss:$12 sps:$4 sm:$0xff]  }
0x23bc   : > { %v15034_v51 = vld [vmem:[%s18958_s7 + $0x1c8] ss:$12 sps:$4 sm:$0xff]   ;;  %v15037_v54 = vld [vmem:[%s18958_s7 + $0x1d0] ss:$12 sps:$4 sm:$0xff]   ;;  %v15041_v55 = vld [vmem:[%s18958_s7 + $0x1b8] ss:$12 sps:$4 sm:$0xff]  }
0x23bd   : > { %v6309_v7 = vpack.c.bf16 %v6306_v1, %v6303_v59  ;;  %v6305_v8 = vmax.f32 %v6258_v3, 0.0  ;;  %v6307_v57 = vpack.c.bf16 %v6304_v4, %v6301_v10  ;;  %v15038_v15 = vld [vmem:[%s18958_s7 + $0x1b0] ss:$12 sps:$4 sm:$0xff]   ;;  %v15040_v62 = vld [vmem:[%s18958_s7 + $0x1b4] ss:$12 sps:$4 sm:$0xff]  }
0x23bf   : > { %14091 = vmatmul.mubr.bf16.vlgmr.msra.gmra.mxu1 %v6309_v7  ;;  %v6308_v47 = vpack.c.bf16 %v6305_v8, %v6302_v30 }
0x23c0   : > { %14106 = vmatprep.mubr.msk.bf16.mxu1 %vm15694_vm1, %v15693_v22  ;;  %14095 = vmatpush3.bf16.msra.mxu1 %v15021_v42 }
0x23c1   : > { %6543 = vmatprep.mubr.bf16.mxu0 %v6308_v47  ;;  %14096 = vmatprep.subr.bf16.mxu1 %v15693_v22  ;;  %v12474_v47 = vld [vmem:[%s18956_s5 + $0x3] ss:$0 sm:$0xff] }
0x23c2   : > { %6544 = vmatmul.mubr.bf16.vlgmr.msra.gmra.mxu0 %v6307_v57 }
0x23c3   : > { %6813 = vmatprep.mubr.bf16.mxu0 %v15692_v2  ;;  %6786 = vmatpush1.bf16.msra.mxu0 %v15018_v21 }
0x23c4   : > { %6787 = vmatprep.subr.bf16.mxu0 %v15024_v43  ;;  %14097 = vmatpush3.bf16.msra.mxu1 %v15025_v48 }
0x23c5   : > { %14098 = vmatprep.subr.bf16.mxu1 %v15693_v22 }
0x23c7   : > { %6788 = vmatpush1.bf16.msra.mxu0 %v15022_v44 }
0x23c8   : > { %6789 = vmatprep.subr.bf16.mxu0 %v15028_v63  ;;  %14099 = vmatpush3.bf16.msra.mxu1 %v15029_v9 }
0x23c9   : > { %14100 = vmatprep.subr.bf16.mxu1 %v15693_v22 }
0x23cb   : > { %6790 = vmatpush1.bf16.msra.mxu0 %v15026_v50 }
0x23cc   : > { %6791 = vmatprep.subr.bf16.mxu0 %v15032_v52  ;;  %14101 = vmatpush3.bf16.msra.mxu1 %v15033_v34 }
0x23cd   : > { %14102 = vmatprep.subr.bf16.mxu1 %v15693_v22 }
0x23cf   : > { %6792 = vmatpush1.bf16.msra.mxu0 %v15030_v24 }
0x23d0   : > { %6793 = vmatprep.subr.bf16.mxu0 %v15036_v53  ;;  %14103 = vmatpush3.bf16.msra.mxu1 %v15037_v54 }
0x23d1   : > { %14104 = vmatprep.subr.bf16.mxu1 %v15693_v22 }
0x23d3   : > { %6794 = vmatpush1.bf16.msra.mxu0 %v15034_v51 }
0x23d4   : > { %6795 = vmatprep.subr.bf16.mxu0 %v15040_v62  ;;  %14105 = vmatpush3.bf16.msra.mxu1 %v15041_v55 }
0x23d5   : > { %14128 = vmatprep.subr.bf16.mxu1 %v15693_v22 }
0x23d7   : > { %6796 = vmatpush1.bf16.msra.mxu0 %v15038_v15 }
0x23d8   : > { %14110 = vmatprep.subr.bf16.mxu0 %v15693_v22 }
0x247f   : > { %v6586_v56 = vpop.f32.mrf.mxu1 }
0x2481   : > { %v14092_v11 = vpop.f32.mrf.mxu1 }
0x2482   : > { %v13344_v58 = vpop.f32.mrf.mxu0 }
0x2483   : > { %v6589_v18 = vpop.f32.mrf.mxu1 }
0x2484   : > { %v13345_v49 = vpop.f32.mrf.mxu0 }
0x2485   : > { %v13346_v31 = vadd.f32 %v13345_v49, %v13344_v58  ;;  %v14093_v20 = vpop.f32.mrf.mxu1  ;;  %v12475_v58 = vld [vmem:[%s18957_s6 + $0x3] ss:$0 sm:$0xff] }
0x2486   : > { %v13347_v23 = vpop.f32.mrf.mxu0 }
0x2487   : > { %v6546_v6 = vadd.f32 %v13346_v31, %v12447_v19 }
0x2488   : > { %v13348_v17 = vpop.f32.mrf.mxu0 }
0x2489   : > { %v6587_v25 = vadd.f32 %v6586_v56, %v6546_v6  ;;  %v13349_v27 = vadd.f32 %v13348_v17, %v13347_v23 }
0x248b   : > { %v6549_v45 = vadd.f32 %v13349_v27, %v12447_v19  ;;  %v17469_v29 = vadd.f32 %v6587_v25, %v17283_v12 }
0x248d   : > { %v6590_v32 = vadd.f32 %v6589_v18, %v6549_v45  ;;  %v6599_v37 = vsel %vm778_vm0, %v17469_v29, 0.0 }
0x248e   : > { %6600 = vadd.xlane.f32.xlu1 %v6599_v37 }
0x248f   : > { %v17474_v13 = vadd.f32 %v6590_v32, %v17288_v28 }
0x2491   : > { %v6602_v46 = vsel %vm778_vm0, %v17474_v13, 0.0 }
0x2492   : > { %6603 = vadd.xlane.f32.xlu0 %v6602_v46 }
0x2517   : > { %v6601_v39 = vpop.xlane.xlu1 %6600 }
0x2518   : > { %v6605_v5 = vmul.f32 0.010416667, %v6601_v39 }
0x251a   : > { %v6607_v61 = vsub.f32 %v17469_v29, %v6605_v5 }
0x251b   : > { %v6604_v26 = vpop.xlane.xlu0 %6603 }
0x251c   : > { %v6606_v40 = vmul.f32 0.010416667, %v6604_v26  ;;  %v6609_v12 = vmul.f32 %v6607_v61, %v6607_v61 }
0x251e   : > { %v6608_v35 = vsub.f32 %v17474_v13, %v6606_v40  ;;  %v6611_v33 = vsel %vm778_vm0, %v6609_v12, 0.0 }
0x251f   : > { %6612 = vadd.xlane.f32.xlu1 %v6611_v33 }
0x2520   : > { %v6610_v41 = vmul.f32 %v6608_v35, %v6608_v35 }
0x2522   : > { %v6614_v28 = vsel %vm778_vm0, %v6610_v41, 0.0 }
0x2523   : > { %6615 = vadd.xlane.f32.xlu0 %v6614_v28 }
0x25a8   : > { %v6613_v59 = vpop.xlane.xlu1 %6612 }
0x25a9   : > { %v6617_v1 = vmul.f32 0.010416667, %v6613_v59 }
0x25ab   : > { %v6619_v3 = vadd.f32 1e-05, %v6617_v1 }
0x25ac   : > { %v6616_v4 = vpop.xlane.xlu0 %6615 }
0x25ad   : > { %15458 = vrsqrt.f32 %v6619_v3  ;;  %v6618_v30 = vmul.f32 0.010416667, %v6616_v4 }
0x25af   : > { %v6620_v7 = vadd.f32 1e-05, %v6618_v30 }
0x25b1   : > { %15460 = vrsqrt.f32 %v6620_v7 }
0x25ba   : > { %v15459_v8 = vpop.eup %15458 }
0x25bb   : > { %v6623_v10 = vmul.f32 %v15459_v8, %v6607_v61 }
0x25bd   : > { %v6631_v56 = vmul.f32 %v12474_v47, %v6623_v10 }
0x25be   : > { %v15461_v57 = vpop.eup %15460 }
0x25bf   : > { %v6624_v11 = vmul.f32 %v15461_v57, %v6608_v35  ;;  %v6639_v19 = vadd.f32 %v12475_v58, %v6631_v56 }
0x25c1   : > { %v6632_v18 = vmul.f32 %v12474_v47, %v6624_v11 }
0x25c3   : > { %v6640_v49 = vadd.f32 %v12475_v58, %v6632_v18 }
0x25c5   : > { %v6681_v31 = vpack.c.bf16 %v6640_v49, %v6639_v19 }
0x25c7   : > { %12531 = vmatmul.mubr.msk.bf16.vlgmr.msra.gmra.mxu0 %vm778_vm0, %v6681_v31  ;;  %14107 = vmatmul.mubr.msk.bf16.vlgmr.msra.gmra.mxu1 %vm778_vm0, %v6681_v31 }
0x25c8   : > { %14112 = vmatprep.mubr.msk.bf16.mxu0 %vm15694_vm1, %v15693_v22  ;;  %14130 = vmatprep.mubr.msk.bf16.mxu1 %vm15694_vm1, %v15693_v22 }
0x2687   : > { %v6815_v20 = vpop.f32.mrf.mxu0  ;;  %v6858_v23 = vpop.f32.mrf.mxu1 }
0x2688   : > { %v6865_v39 = vmul.f32 0.10206208, %v6815_v20 }
0x2689   : > { %v6817_v6 = vpop.f32.mrf.mxu0  ;;  %v14108_v17 = vpop.f32.mrf.mxu1 }
0x268b   : > { %v6819_v25 = vpop.f32.mrf.mxu0  ;;  %v6861_v27 = vpop.f32.mrf.mxu1 }
0x268c   : > { %v6868_v45 = vpack.c.bf16 %v6819_v25, %v6815_v20  ;;  %v17555_v32 = vpack.c.bf16 %v6861_v27, %v6858_v23  ;;  %v6866_v46 = vmul.f32 0.10206208, %v6819_v25 }
0x268d   : > { %v14109_v37 = vpop.f32.mrf.mxu1  ;;  %v6821_v61 = vpop.f32.mrf.mxu0 }
0x268e   : > { %6871 = vrot.lane.b32.xlu1 %v6868_v45, %s19030_s30  ;;  %v6867_v5 = vpack.c.bf16 %v6866_v46, %v6865_v39  ;;  %v17561_v26 = vpack.c.bf16 %v6821_v61, %v6817_v6 }
0x2690   : > { %v7119_v59 = vsel %vm922_vm6, %v17561_v26, 0 }
0x2692   : > { %6994 = vrot.lane.b32.xlu1 %v6868_v45, %s19031_s19 }
0x2696   : > { %6992 = vrot.lane.b32.xlu1 %v6867_v5, %s19032_s23 }
0x269a   : > { %7113 = vrot.lane.b32.xlu1 %v6867_v5, %s19033_s0 }
0x269e   : > { %7234 = vrot.lane.b32.xlu1 %v17561_v26, %s19032_s23 }
0x26a2   : > { %7356 = vrot.lane.b32.xlu1 %v17561_v26, %s19033_s0 }
0x26a6   : > { %7474 = vrot.lane.b32.xlu1 %v17561_v26, %s19027_s20 }
0x2700   : > { %v6872_v40 = vpop.permute.xlu1 %6871 }
0x2701   : > { %v6877_v12 = vsel %vm922_vm6, %v6872_v40, 0 }
0x2702   : > { %14111 = vmatpush3.bf16.xpose.msra.mxu0 %v6877_v12 }
0x2703   : > { %14116 = vmatprep.subr.bf16.mxu0 %v15693_v22 }
0x2704   : > { %v6995_v34 = vpop.permute.xlu1 %6994 }
0x2705   : > { %v7000_v15 = vsel %vm922_vm6, %v6995_v34, 0 }
0x2708   : > { %v6993_v62 = vpop.permute.xlu1 %6992 }
0x2709   : > { %14113 = vmatmul.mubr.msk.bf16.vlgmr.msra.gmra.mxu0 %vm922_vm6, %v6867_v5 }
0x270a   : > { %14118 = vmatprep.mubr.msk.bf16.mxu0 %vm15694_vm1, %v15693_v22 }
0x270c   : > { %v7114_v55 = vpop.permute.xlu1 %7113 }
0x2710   : > { %v7235_v1 = vpop.permute.xlu1 %7234 }
0x2711   : > { %v7240_v3 = vsel %vm922_vm6, %v7235_v1, 0 }
0x2714   : > { %v7357_v4 = vpop.permute.xlu1 %7356 }
0x2715   : > { %v7362_v7 = vsel %vm922_vm6, %v7357_v4, 0 }
0x2718   : > { %v7475_v8 = vpop.permute.xlu1 %7474 }
0x2719   : > { %v7480_v47 = vsel %vm922_vm6, %v7475_v8, 0 }
0x27c9   : > { %v6913_v35 = vpop.f32.mrf.mxu0 }
0x27ca   : > { %v6914_v33 = vadd.f32 %v6913_v35, %v15985_v60 }
0x27cb   : > { %v14114_v41 = vpop.f32.mrf.mxu0 }
0x27cc   : > { %v6920_v28 = vsel %vm922_vm6, %v6914_v33, -inf }
0x27cd   : > { %6921 = vmax.xlane.f32.xlu0 %v6920_v28  ;;  %v6916_v36 = vpop.f32.mrf.mxu0 }
0x27ce   : > { %v6917_v21 = vadd.f32 %v6916_v36, %v15988_v0 }
0x27cf   : > { %v14115_v42 = vpop.f32.mrf.mxu0 }
0x27d0   : > { %v6923_v43 = vsel %vm922_vm6, %v6917_v21, -inf }
0x27d1   : > { %6924 = vmax.xlane.f32.xlu0 %v6923_v43 }
0x27e7   : > { %6942 = vrot.lane.b32.xlu0 %v17561_v26, %s19028_s17 }
0x27eb   : > { %7232 = vrot.lane.b32.xlu0 %v6867_v5, %s19027_s20 }
0x27ef   : > { %7354 = vrot.lane.b32.xlu0 %v6867_v5, %s19028_s17 }
0x27f3   : > { %7472 = vrot.lane.b32.xlu0 %v6867_v5, %s19029_s4 }
0x2856   : > { %v6922_v44 = vpop.xlane.xlu0 %6921 }
0x2857   : > { %v6926_v48 = vsub.f32 %v6914_v33, %v6922_v44 }
0x2859   : > { %v6928_v63 = vmul.f32 1.442695, %v6926_v48 }
0x285a   : > { %v6925_v50 = vpop.xlane.xlu0 %6924 }
0x285b   : > { %v6927_v9 = vsub.f32 %v6917_v21, %v6925_v50  ;;  %15462 = vpow2.f32 %v6928_v63 }
0x285d   : > { %v6930_v52 = vmul.f32 1.442695, %v6927_v9 }
0x285e   : > { %v6943_v24 = vpop.permute.xlu0 %6942 }
0x285f   : > { %15464 = vpow2.f32 %v6930_v52  ;;  %14117 = vmatpush3.bf16.msra.mxu0 %v6943_v24 }
0x2860   : > { %14122 = vmatprep.subr.bf16.mxu0 %v15693_v22 }
0x2862   : > { %v7233_v30 = vpop.permute.xlu0 %7232 }
0x2866   : > { %v7355_v10 = vpop.permute.xlu0 %7354 }
0x2868   : > { %v17584_v53 = vpop.eup %15462 }
0x286a   : > { %v7473_v57 = vpop.permute.xlu0 %7472 }
0x286c   : > { %v17586_v51 = vpop.eup %15464 }
0x286d   : > { %v6940_v54 = vpack.c.bf16 %v17586_v51, %v17584_v53 }
0x286f   : > { %14119 = vmatmul.mubr.msk.bf16.vlgmr.msra.gmra.mxu0 %vm922_vm6, %v6940_v54 }
0x2870   : > { %14123 = vmatpush3.bf16.xpose.msra.mxu0 %v7000_v15  ;;  %14124 = vmatprep.mubr.msk.bf16.mxu0 %vm15694_vm1, %v15693_v22 }
0x2871   : > { %14134 = vmatprep.subr.bf16.mxu0 %v15693_v22 }
0x2877   : > { %14125 = vmatmul.mubr.msk.bf16.vlgmr.msra.gmra.mxu0 %vm922_vm6, %v6993_v62 }
0x2878   : > { %14135 = vmatpush3.bf16.xpose.msra.mxu0 %v7119_v59  ;;  %14136 = vmatprep.mubr.msk.bf16.mxu0 %vm15694_vm1, %v15693_v22 }
0x2879   : > { %14146 = vmatprep.subr.bf16.mxu0 %v15693_v22 }
0x287f   : > { %14137 = vmatmul.mubr.msk.bf16.vlgmr.msra.gmra.mxu0 %vm922_vm6, %v7114_v55 }
0x2880   : > { %14147 = vmatpush3.bf16.xpose.msra.mxu0 %v7240_v3  ;;  %14148 = vmatprep.mubr.msk.bf16.mxu0 %vm15694_vm1, %v15693_v22 }
0x2881   : > { %14158 = vmatprep.subr.bf16.mxu0 %v15693_v22 }
0x2887   : > { %14149 = vmatmul.mubr.msk.bf16.vlgmr.msra.gmra.mxu0 %vm922_vm6, %v7233_v30 }
0x2888   : > { %14159 = vmatpush3.bf16.xpose.msra.mxu0 %v7362_v7  ;;  %14160 = vmatprep.mubr.msk.bf16.mxu0 %vm15694_vm1, %v15693_v22 }
0x2889   : > { %14170 = vmatprep.subr.bf16.mxu0 %v15693_v22 }
0x288f   : > { %14161 = vmatmul.mubr.msk.bf16.vlgmr.msra.gmra.mxu0 %vm922_vm6, %v7355_v10 }
0x2890   : > { %14171 = vmatpush3.bf16.xpose.msra.mxu0 %v7480_v47  ;;  %14172 = vmatprep.mubr.msk.bf16.mxu0 %vm15694_vm1, %v15693_v22 }
0x2891   : > { %14182 = vmatprep.subr.bf16.mxu0 %v15693_v22 }
0x2897   : > { %14173 = vmatmul.mubr.msk.bf16.vlgmr.msra.gmra.mxu0 %vm922_vm6, %v7473_v57 }
0x2898   : > { %14194 = vmatprep.mubr.msk.bf16.mxu0 %vm15694_vm1, %v15693_v22 }
0x292f   : > { %v17619_v56 = vpop.f32.mrf.mxu0 }
0x2931   : > { %v14120_v11 = vpop.f32.mrf.mxu0 }
0x2933   : > { %v17621_v58 = vpop.f32.mrf.mxu0 }
0x2935   : > { %v14121_v18 = vpop.f32.mrf.mxu0 }
0x2937   : > { %v7036_v19 = vpop.f32.mrf.mxu0 }
0x2938   : > { %v7037_v49 = vadd.f32 %v7036_v19, %v15985_v60 }
0x2939   : > { %v14126_v31 = vpop.f32.mrf.mxu0 }
0x293a   : > { %v7043_v20 = vsel %vm922_vm6, %v7037_v49, -inf }
0x293b   : > { %7044 = vmax.xlane.f32.xlu1 %v7043_v20  ;;  %v7039_v23 = vpop.f32.mrf.mxu0 }
0x293c   : > { %v7040_v6 = vadd.f32 %v7039_v23, %v15988_v0 }
0x293d   : > { %v14127_v17 = vpop.f32.mrf.mxu0 }
0x293e   : > { %v7046_v25 = vsel %vm922_vm6, %v7040_v6, -inf }
0x293f   : > { %7047 = vmax.xlane.f32.xlu0 %v7046_v25  ;;  %v7155_v27 = vpop.f32.mrf.mxu0 }
0x2940   : > { %v17643_v15 = vadd.f32 %v7155_v27, %v15985_v60 }
0x2941   : > { %v14138_v45 = vpop.f32.mrf.mxu0 }
0x2942   : > { %v7162_v55 = vsel %vm922_vm6, %v17643_v15, -inf }
0x2943   : > { %v7158_v37 = vpop.f32.mrf.mxu0 }
0x2944   : > { %v7159_v46 = vadd.f32 %v7158_v37, %v15988_v0 }
0x2945   : > { %v14139_v39 = vpop.f32.mrf.mxu0 }
0x2946   : > { %v7165_v5 = vsel %vm922_vm6, %v7159_v46, -inf }
0x2947   : > { %7166 = vmax.xlane.f32.xlu1 %v7165_v5  ;;  %v7276_v61 = vpop.f32.mrf.mxu0 }
0x2948   : > { %v17648_v62 = vadd.f32 %v7276_v61, %v15985_v60 }
0x2949   : > { %v14150_v40 = vpop.f32.mrf.mxu0 }
0x294a   : > { %v7283_v1 = vsel %vm922_vm6, %v17648_v62, -inf }
0x294b   : > { %v7279_v12 = vpop.f32.mrf.mxu0 }
0x294c   : > { %v7280_v35 = vadd.f32 %v7279_v12, %v15988_v0 }
0x294d   : > { %v14151_v33 = vpop.f32.mrf.mxu0 }
0x294e   : > { %v7286_v41 = vsel %vm922_vm6, %v7280_v35, -inf }
0x294f   : > { %7287 = vmax.xlane.f32.xlu1 %v7286_v41  ;;  %v7398_v28 = vpop.f32.mrf.mxu0 }
0x2950   : > { %v17653_v59 = vadd.f32 %v7398_v28, %v15985_v60 }
0x2951   : > { %v14162_v36 = vpop.f32.mrf.mxu0 }
0x2952   : > { %v7405_v3 = vsel %vm922_vm6, %v17653_v59, -inf }
0x2953   : > { %v7401_v21 = vpop.f32.mrf.mxu0 }
0x2954   : > { %v7402_v42 = vadd.f32 %v7401_v21, %v15988_v0 }
0x2955   : > { %7064 = vrot.lane.b32.xlu0 %v17561_v26, %s19029_s4  ;;  %v14163_v43 = vpop.f32.mrf.mxu0 }
0x2956   : > { %v7408_v44 = vsel %vm922_vm6, %v7402_v42, -inf }
0x2957   : > { %7409 = vmax.xlane.f32.xlu1 %v7408_v44  ;;  %v7516_v48 = vpop.f32.mrf.mxu0 }
0x2958   : > { %v17636_v63 = vadd.f32 %v7516_v48, %v15985_v60  ;;  %v6935_v48 = vsel %vm922_vm6, %v17586_v51, 0.0 }
0x2959   : > { %v14174_v50 = vpop.f32.mrf.mxu0 }
0x295a   : > { %v7523_v9 = vsel %vm922_vm6, %v17636_v63, -inf }
0x295b   : > { %7524 = vmax.xlane.f32.xlu1 %v7523_v9  ;;  %v7519_v52 = vpop.f32.mrf.mxu0 }
0x295c   : > { %v7520_v24 = vadd.f32 %v7519_v52, %v15988_v0 }
0x295d   : > { %v14175_v34 = vpop.f32.mrf.mxu0 }
0x295e   : > { %v7526_v54 = vsel %vm922_vm6, %v7520_v24, -inf }
0x295f   : > { %7527 = vmax.xlane.f32.xlu1 %v7526_v54 }
0x2970   : > { %7183 = vrot.lane.b32.xlu1 %v17561_v26, %s19030_s30 }
0x2974   : > { %7163 = vmax.xlane.f32.xlu0 %v7162_v55 }
0x2978   : > { %7284 = vmax.xlane.f32.xlu0 %v7283_v1 }
0x297c   : > { %7406 = vmax.xlane.f32.xlu0 %v7405_v3 }
0x2992   : > { %7304 = vrot.lane.b32.xlu0 %v17561_v26, %s19031_s19 }
0x2996   : > { %7545 = vrot.lane.b32.xlu0 %v17555_v32, %s19032_s23 }
0x29c4   : > { %v7045_v4 = vpop.xlane.xlu1 %7044 }
0x29c5   : > { %v7049_v30 = vsub.f32 %v7037_v49, %v7045_v4 }
0x29c7   : > { %v7051_v7 = vmul.f32 1.442695, %v7049_v30 }
0x29c8   : > { %v7048_v8 = vpop.xlane.xlu0 %7047 }
0x29c9   : > { %15466 = vpow2.f32 %v7051_v7  ;;  %v7050_v10 = vsub.f32 %v7040_v6, %v7048_v8 }
0x29cb   : > { %v7053_v47 = vmul.f32 1.442695, %v7050_v10 }
0x29cc   : > { %v7065_v57 = vpop.permute.xlu0 %7064 }
0x29cd   : > { %15468 = vpow2.f32 %v7053_v47  ;;  %14129 = vmatpush3.bf16.msra.mxu1 %v7065_v57 }
0x29ce   : > { %14140 = vmatprep.subr.bf16.mxu1 %v15693_v22 }
0x29d0   : > { %v7167_v11 = vpop.xlane.xlu1 %7166 }
0x29d1   : > { %v7169_v18 = vsub.f32 %v7159_v46, %v7167_v11  ;;  %v6932_v11 = vsel %vm922_vm6, %v17584_v53, 0.0 }
0x29d3   : > { %v7172_v19 = vmul.f32 1.442695, %v7169_v18 }
0x29d5   : > { %15470 = vpow2.f32 %v7172_v19 }
0x29d6   : > { %v15467_v26 = vpop.eup %15466 }
0x29d7   : > { %v7055_v31 = vsel %vm922_vm6, %v15467_v26, 0.0 }
0x29d8   : > { %v7288_v20 = vpop.xlane.xlu1 %7287  ;;  %7056 = vadd.xlane.f32.xlu1 %v7055_v31 }
0x29d9   : > { %v7290_v49 = vsub.f32 %v7280_v35, %v7288_v20 }
0x29da   : > { %v15469_v23 = vpop.eup %15468 }
0x29db   : > { %v7063_v17 = vpack.c.bf16 %v15469_v23, %v15467_v26  ;;  %v7293_v25 = vmul.f32 1.442695, %v7290_v49  ;;  %v7058_v6 = vsel %vm922_vm6, %v15469_v23, 0.0 }
0x29dc   : > { %7059 = vadd.xlane.f32.xlu0 %v7058_v6 }
0x29dd   : > { %15472 = vpow2.f32 %v7293_v25  ;;  %14131 = vmatmul.mubr.msk.bf16.vlgmr.msra.gmra.mxu1 %vm922_vm6, %v7063_v17 }
0x29de   : > { %14142 = vmatprep.mubr.msk.bf16.mxu1 %vm15694_vm1, %v15693_v22 }
0x29e0   : > { %v7410_v27 = vpop.xlane.xlu1 %7409 }
0x29e1   : > { %v7412_v45 = vsub.f32 %v7402_v42, %v7410_v27 }
0x29e2   : > { %v15471_v37 = vpop.eup %15470 }
0x29e3   : > { %v7415_v46 = vmul.f32 1.442695, %v7412_v45  ;;  %v7177_v39 = vsel %vm922_vm6, %v15471_v37, 0.0 }
0x29e4   : > { %v7525_v5 = vpop.xlane.xlu1 %7524  ;;  %7178 = vadd.xlane.f32.xlu1 %v7177_v39 }
0x29e5   : > { %15474 = vpow2.f32 %v7415_v46 }
0x29e8   : > { %v7528_v61 = vpop.xlane.xlu1 %7527 }
0x29e9   : > { %v7530_v40 = vsub.f32 %v7520_v24, %v7528_v61  ;;  %v7529_v24 = vsub.f32 %v17636_v63, %v7525_v5  ;;  %v15042_v5 = vld [vmem:[%s18959_s8 + $0xb8] sm:$0xff]  }
0x29ea   : > { %v15473_v12 = vpop.eup %15472  ;;  %14183 = vmatpush3.bf16.msra.mxu0 %v15042_v5 }
0x29eb   : > { %v7533_v35 = vmul.f32 1.442695, %v7530_v40  ;;  %v7298_v33 = vsel %vm922_vm6, %v15473_v12, 0.0  ;;  %v7531_v1 = vmul.f32 1.442695, %v7529_v24  ;;  %14184 = vmatprep.subr.bf16.mxu0 %v15693_v22 }
0x29ec   : > { %7299 = vadd.xlane.f32.xlu1 %v7298_v33  ;;  %v7184_v41 = vpop.permute.xlu1 %7183 }
0x29ed   : > { %15476 = vpow2.f32 %v7533_v35  ;;  %14141 = vmatpush3.bf16.msra.mxu1 %v7184_v41 }
0x29ee   : > { %14152 = vmatprep.subr.bf16.mxu1 %v15693_v22 }
0x29f2   : > { %v15475_v28 = vpop.eup %15474 }
0x29f3   : > { %v7420_v36 = vsel %vm922_vm6, %v15475_v28, 0.0 }
0x29f4   : > { %7421 = vadd.xlane.f32.xlu1 %v7420_v36 }
0x29fa   : > { %v15477_v21 = vpop.eup %15476 }
0x29fb   : > { %v7538_v42 = vsel %vm922_vm6, %v15477_v21, 0.0 }
0x29fc   : > { %7539 = vadd.xlane.f32.xlu1 %v7538_v42  ;;  %v15043_v42 = vld [vmem:[%s18959_s8 + $0xb0] sm:$0xff]  }
0x29fd   : > { %v7164_v43 = vpop.xlane.xlu0 %7163  ;;  %14185 = vmatpush3.bf16.msra.mxu0 %v15043_v42 }
0x29fe   : > { %v7168_v44 = vsub.f32 %v17643_v15, %v7164_v43  ;;  %14186 = vmatprep.subr.bf16.mxu0 %v15693_v22 }
0x2a00   : > { %v7170_v50 = vmul.f32 1.442695, %v7168_v44  ;;  %6936 = vadd.xlane.f32.xlu1 %v6935_v48  ;;  %v15044_v48 = vld [vmem:[%s18959_s8 + $0xa8] sm:$0xff]  }
0x2a01   : > { %v7285_v9 = vpop.xlane.xlu0 %7284  ;;  %14187 = vmatpush3.bf16.msra.mxu0 %v15044_v48 }
0x2a02   : > { %15478 = vpow2.f32 %v7170_v50  ;;  %v7289_v52 = vsub.f32 %v17648_v62, %v7285_v9  ;;  %14188 = vmatprep.subr.bf16.mxu0 %v15693_v22 }
0x2a04   : > { %v7291_v34 = vmul.f32 1.442695, %v7289_v52 }
0x2a05   : > { %v7407_v54 = vpop.xlane.xlu0 %7406 }
0x2a06   : > { %15480 = vpow2.f32 %v7291_v34  ;;  %v7411_v55 = vsub.f32 %v17653_v59, %v7407_v54 }
0x2a08   : > { %v7413_v3 = vmul.f32 1.442695, %v7411_v55 }
0x2a09   : > { %v7305_v30 = vpop.permute.xlu0 %7304 }
0x2a0a   : > { %15482 = vpow2.f32 %v7413_v3 }
0x2a0b   : > { %15484 = vpow2.f32 %v7531_v1 }
0x2a0d   : > { %v7546_v18 = vpop.permute.xlu0 %7545 }
0x2a0f   : > { %v15479_v15 = vpop.eup %15478 }
0x2a10   : > { %v7182_v4 = vpack.c.bf16 %v15471_v37, %v15479_v15  ;;  %v7174_v51 = vsel %vm922_vm6, %v15479_v15, 0.0  ;;  %v15045_v15 = vld [vmem:[%s18959_s8 + $0xa0] sm:$0xff]  }
0x2a11   : > { %7175 = vadd.xlane.f32.xlu0 %v7174_v51  ;;  %14189 = vmatpush3.bf16.msra.mxu0 %v15045_v15  ;;  %v12545_v15 = vld [vmem:[%s18960_s9 + $0x3] ss:$0 sm:$0xff] }
0x2a12   : > { %14143 = vmatmul.mubr.msk.bf16.vlgmr.msra.gmra.mxu1 %vm922_vm6, %v7182_v4  ;;  %14190 = vmatprep.subr.bf16.mxu0 %v15693_v22 }
0x2a13   : > { %v15481_v62 = vpop.eup %15480  ;;  %14153 = vmatpush3.bf16.msra.mxu1 %v7305_v30  ;;  %14154 = vmatprep.mubr.msk.bf16.mxu1 %vm15694_vm1, %v15693_v22  ;;  %v15046_v30 = vld [vmem:[%s18959_s8 + $0x98] sm:$0xff]  }
0x2a14   : > { %v7295_v63 = vsel %vm922_vm6, %v15481_v62, 0.0  ;;  %14164 = vmatprep.subr.bf16.mxu1 %v15693_v22  ;;  %v7303_v7 = vpack.c.bf16 %v15473_v12, %v15481_v62 }
0x2a15   : > { %7296 = vadd.xlane.f32.xlu0 %v7295_v63  ;;  %14191 = vmatpush3.bf16.msra.mxu0 %v15046_v30 }
0x2a16   : > { %14192 = vmatprep.subr.bf16.mxu0 %v15693_v22 }
0x2a17   : > { %v15483_v59 = vpop.eup %15482 }
0x2a18   : > { %v7417_v8 = vsel %vm922_vm6, %v15483_v59, 0.0  ;;  %v15485_v10 = vpop.eup %15484  ;;  %v7425_v57 = vpack.c.bf16 %v15475_v28, %v15483_v59 }
0x2a19   : > { %7418 = vadd.xlane.f32.xlu0 %v7417_v8  ;;  %v7535_v47 = vsel %vm922_vm6, %v15485_v10, 0.0 }
0x2a1a   : > { %14155 = vmatmul.mubr.msk.bf16.vlgmr.msra.gmra.mxu1 %vm922_vm6, %v7303_v7 }
0x2a1b   : > { %14165 = vmatpush3.bf16.msra.mxu1 %v17555_v32  ;;  %14166 = vmatprep.mubr.msk.bf16.mxu1 %vm15694_vm1, %v15693_v22  ;;  %v7543_v32 = vpack.c.bf16 %v15477_v21, %v15485_v10 }
0x2a1c   : > { %14176 = vmatprep.subr.bf16.mxu1 %v15693_v22 }
0x2a1d   : > { %7536 = vadd.xlane.f32.xlu0 %v7535_v47 }
0x2a21   : > { %6933 = vadd.xlane.f32.xlu0 %v6932_v11 }
0x2a22   : > { %14167 = vmatmul.mubr.msk.bf16.vlgmr.msra.gmra.mxu1 %vm922_vm6, %v7425_v57  ;;  %v15047_v57 = vld [vmem:[%s18959_s8 + $0x90] sm:$0xff]  }
0x2a23   : > { %14177 = vmatpush3.bf16.msra.mxu1 %v7546_v18  ;;  %14178 = vmatprep.mubr.msk.bf16.mxu1 %vm15694_vm1, %v15693_v22 }
0x2a24   : > { %14193 = vmatpush3.bf16.msra.mxu0 %v15047_v57 }
0x2a25   : > { %14198 = vmatprep.subr.bf16.mxu0 %v15693_v22 }
0x2a2a   : > { %14179 = vmatmul.mubr.msk.bf16.vlgmr.msra.gmra.mxu1 %vm922_vm6, %v7543_v32 }
0x2a2b   : > { %7954 = vmatprep.mubr.bf16.mxu1 %v15692_v2 }
0x2a61   : > { %v7057_v19 = vpop.xlane.xlu1 %7056 }
0x2a62   : > { %15486 = vrcp.f32 %v7057_v19 }
0x2a65   : > { %v7060_v26 = vpop.xlane.xlu0 %7059 }
0x2a66   : > { %15488 = vrcp.f32 %v7060_v26 }
0x2a6d   : > { %v7179_v45 = vpop.xlane.xlu1 %7178 }
0x2a6e   : > { %15490 = vrcp.f32 %v7179_v45 }
0x2a6f   : > { %v15487_v53 = vpop.eup %15486 }
0x2a73   : > { %v15489_v49 = vpop.eup %15488 }
0x2a75   : > { %v7300_v46 = vpop.xlane.xlu1 %7299 }
0x2a7b   : > { %v15491_v12 = vpop.eup %15490 }
0x2a7d   : > { %v7422_v35 = vpop.xlane.xlu1 %7421 }
0x2a85   : > { %v7540_v24 = vpop.xlane.xlu1 %7539 }
0x2a9a   : > { %v7176_v37 = vpop.xlane.xlu0 %7175 }
0x2a9b   : > { %15492 = vrcp.f32 %v7176_v37 }
0x2a9c   : > { %15494 = vrcp.f32 %v7300_v46 }
0x2a9d   : > { %v7104_v31 = vpop.f32.mrf.mxu1 }
0x2a9e   : > { %v7111_v17 = vmul.f32 %v15487_v53, %v7104_v31  ;;  %v7297_v39 = vpop.xlane.xlu0 %7296 }
0x2a9f   : > { %v14132_v20 = vpop.f32.mrf.mxu1  ;;  %15496 = vrcp.f32 %v7297_v39 }
0x2aa0   : > { %15498 = vrcp.f32 %v7422_v35 }
0x2aa1   : > { %v7107_v23 = vpop.f32.mrf.mxu1 }
0x2aa2   : > { %v7112_v25 = vmul.f32 %v15489_v49, %v7107_v23  ;;  %v7419_v41 = vpop.xlane.xlu0 %7418 }
0x2aa3   : > { %v14133_v6 = vpop.f32.mrf.mxu1  ;;  %15500 = vrcp.f32 %v7419_v41 }
0x2aa4   : > { %v14679_v27 = vpack.i.bf16 %v7112_v25, %v7111_v17  ;;  %15502 = vrcp.f32 %v7540_v24  ;;  %v6937_v25 = vpop.xlane.xlu1 %6936 }
0x2aa6   : > { %14680 = vrot.lane.b32.xlu0 %v14679_v27, %s19031_s19  ;;  %v7537_v54 = vpop.xlane.xlu0 %7536 }
0x2aa7   : > { %15504 = vrcp.f32 %v7537_v54 }
0x2aa8   : > { %v15493_v33 = vpop.eup %15492  ;;  %15506 = vrcp.f32 %v6937_v25  ;;  %v15052_v25 = vld [vmem:[%s18963_s12 + $0x210] ss:$12 sps:$4 sm:$0xff]  }
0x2aa9   : > { %v15495_v52 = vpop.eup %15494 }
0x2aaa   : > { %v6934_v6 = vpop.xlane.xlu0 %6933 }
0x2aab   : > { %15508 = vrcp.f32 %v6934_v6  ;;  %v15055_v6 = vld [vmem:[%s18963_s12 + $0x218] ss:$12 sps:$4 sm:$0xff]  }
0x2aac   : > { %v15497_v34 = vpop.eup %15496 }
0x2aad   : > { %v15499_v59 = vpop.eup %15498 }
0x2ab0   : > { %v15501_v7 = vpop.eup %15500 }
0x2ab1   : > { %v15503_v26 = vpop.eup %15502 }
0x2ab4   : > { %v15505_v31 = vpop.eup %15504 }
0x2ab5   : > { %v15507_v37 = vpop.eup %15506 }
0x2ab6   : > { %v6990_v41 = vmul.f32 %v15507_v37, %v17621_v58  ;;  %v15059_v37 = vld [vmem:[%s18963_s12 + $0x200] ss:$12 sps:$4 sm:$0xff]  }
0x2ab8   : > { %v15509_v46 = vpop.eup %15508 }
0x2ad2   : > { %v7223_v61 = vpop.f32.mrf.mxu1 }
0x2ad3   : > { %v7230_v36 = vmul.f32 %v15493_v33, %v7223_v61  ;;  %v6989_v33 = vmul.f32 %v15509_v46, %v17619_v56  ;;  %v15062_v46 = vld [vmem:[%s18963_s12 + $0x1e4] ss:$12 sps:$4 sm:$0xff]  }
0x2ad4   : > { %v14144_v40 = vpop.f32.mrf.mxu1 }
0x2ad6   : > { %v7226_v28 = vpop.f32.mrf.mxu1 }
0x2ad7   : > { %v7231_v21 = vmul.f32 %v15491_v12, %v7226_v28 }
0x2ad8   : > { %v14145_v43 = vpop.f32.mrf.mxu1 }
0x2ad9   : > { %v14684_v44 = vpack.i.bf16 %v7231_v21, %v7230_v36 }
0x2ada   : > { %v7344_v50 = vpop.f32.mrf.mxu1 }
0x2adb   : > { %14685 = vrot.lane.b32.xlu1 %v14684_v44, %s19030_s30  ;;  %v7351_v1 = vmul.f32 %v15497_v34, %v7344_v50 }
0x2adc   : > { %v14156_v9 = vpop.f32.mrf.mxu1 }
0x2ade   : > { %v7347_v55 = vpop.f32.mrf.mxu1 }
0x2adf   : > { %v7352_v3 = vmul.f32 %v15495_v52, %v7347_v55 }
0x2ae0   : > { %v14157_v4 = vpop.f32.mrf.mxu1 }
0x2ae1   : > { %v14689_v51 = vpack.i.bf16 %v7352_v3, %v7351_v1 }
0x2ae2   : > { %v7463_v62 = vpop.f32.mrf.mxu1 }
0x2ae3   : > { %14690 = vrot.lane.b32.xlu1 %v14689_v51, %s19029_s4  ;;  %v7470_v10 = vmul.f32 %v15501_v7, %v7463_v62 }
0x2ae4   : > { %v14168_v63 = vpop.f32.mrf.mxu1 }
0x2ae6   : > { %v7466_v8 = vpop.f32.mrf.mxu1 }
0x2ae7   : > { %v7471_v47 = vmul.f32 %v15499_v59, %v7466_v8 }
0x2ae8   : > { %v14169_v11 = vpop.f32.mrf.mxu1 }
0x2ae9   : > { %v14694_v18 = vpack.i.bf16 %v7471_v47, %v7470_v10 }
0x2aea   : > { %v7585_v32 = vpop.f32.mrf.mxu1 }
0x2aeb   : > { %14695 = vrot.lane.b32.xlu0 %v14694_v18, %s19028_s17  ;;  %v7592_v53 = vmul.f32 %v15505_v31, %v7585_v32 }
0x2aec   : > { %v14180_v19 = vpop.f32.mrf.mxu1 }
0x2aee   : > { %v7588_v20 = vpop.f32.mrf.mxu1 }
0x2aef   : > { %v7593_v49 = vmul.f32 %v15503_v26, %v7588_v20 }
0x2af0   : > { %v14181_v23 = vpop.f32.mrf.mxu1 }
0x2af1   : > { %v14699_v17 = vpack.i.bf16 %v7593_v49, %v7592_v53  ;;  %v15050_v53 = vld [vmem:[%s18963_s12 + $0x22c] ss:$12 sps:$4 sm:$0xff]   ;;  %v15048_v49 = vld [vmem:[%s18963_s12 + $0x228] ss:$12 sps:$4 sm:$0xff]   ;;  %v15051_v23 = vld [vmem:[%s18963_s12 + $0x230] ss:$12 sps:$4 sm:$0xff]  }
0x2af2   : > { %7926 = vmatprep.subr.bf16.mxu1 %v15050_v53  ;;  %v15092_v53 = vld [vmem:[%s18965_s14 + $0x248] sm:$0xff]  }
0x2af3   : > { %14700 = vrot.lane.b32.xlu1 %v14699_v17, %s19027_s20  ;;  %7927 = vmatpush1.bf16.msra.mxu1 %v15048_v49  ;;  %v15054_v17 = vld [vmem:[%s18963_s12 + $0x214] ss:$12 sps:$4 sm:$0xff]  }
0x2af4   : > { %7928 = vmatprep.subr.bf16.mxu1 %v15054_v17  ;;  %v15093_v49 = vld [vmem:[%s18965_s14 + $0x2c0] sm:$0xff]  }
0x2af5   : > { %v15095_v17 = vld [vmem:[%s18965_s14 + $0x240] sm:$0xff]  }
0x2af7   : > { %7929 = vmatpush1.bf16.msra.mxu1 %v15052_v25  ;;  %v12581_v25 = vld [vmem:[%s18964_s13 + $0x9] sm:$0x7] }
0x2b18   : > { %v14681_v45 = vpop.permute.xlu0 %14680 }
0x2b19   : > { %v14683_v5 = vunpack.i.h.bf16 %v14681_v45  ;;  %v14682_v61 = vunpack.i.l.bf16 %v14681_v45  ;;  %v15056_v45 = vld [vmem:[%s18963_s12 + $0x1f8] ss:$12 sps:$4 sm:$0xff]  }
0x2b1b   : > { %v7634_v43 = vsel %vm922_vm6, %v6989_v33, %v14682_v61  ;;  %v7635_v44 = vsel %vm922_vm6, %v6990_v41, %v14683_v5  ;;  %v15063_v5 = vld [vmem:[%s18963_s12 + $0x1e8] ss:$12 sps:$4 sm:$0xff]   ;;  %v15066_v61 = vld [vmem:[%s18963_s12 + $0x1cc] ss:$12 sps:$4 sm:$0xff]  }
0x2b1c   : > { %v15070_v33 = vld [vmem:[%s18963_s12 + $0x1b4] ss:$12 sps:$4 sm:$0xff]   ;;  %v15071_v41 = vld [vmem:[%s18963_s12 + $0x1b8] ss:$12 sps:$4 sm:$0xff]  }
0x2b4d   : > { %v14686_v27 = vpop.permute.xlu1 %14685 }
0x2b4e   : > { %v14688_v12 = vunpack.i.h.bf16 %v14686_v27  ;;  %v14687_v35 = vunpack.i.l.bf16 %v14686_v27  ;;  %v15058_v27 = vld [vmem:[%s18963_s12 + $0x1fc] ss:$12 sps:$4 sm:$0xff]  }
0x2b4f   : > { %7930 = vmatprep.subr.bf16.mxu1 %v15058_v27 }
0x2b50   : > { %v7637_v48 = vsel %vm2524_vm9, %v7635_v44, %v14688_v12  ;;  %v7636_v50 = vsel %vm2524_vm9, %v7634_v43, %v14687_v35  ;;  %7931 = vmatpush1.bf16.msra.mxu1 %v15056_v45  ;;  %v15067_v12 = vld [vmem:[%s18963_s12 + $0x1d0] ss:$12 sps:$4 sm:$0xff]  }
0x2b51   : > { %7932 = vmatprep.subr.bf16.mxu1 %v15062_v46  ;;  %v15068_v35 = vld [vmem:[%s18963_s12 + $0x1b0] ss:$12 sps:$4 sm:$0xff]   ;;  %v7811_v46 = vrot.slane %v12581_v25, %v16532_v16 }
0x2b55   : > { %v14691_v39 = vpop.permute.xlu1 %14690 }
0x2b56   : > { %v14693_v28 = vunpack.i.h.bf16 %v14691_v39  ;;  %v14692_v36 = vunpack.i.l.bf16 %v14691_v39  ;;  %v15060_v39 = vld [vmem:[%s18963_s12 + $0x1e0] ss:$12 sps:$4 sm:$0xff]  }
0x2b57   : > { %7933 = vmatpush1.bf16.msra.mxu1 %v15060_v39 }
0x2b58   : > { %v7638_v52 = vsel %vm1394_vm7, %v7636_v50, %v14692_v36  ;;  %v7639_v24 = vsel %vm1394_vm7, %v7637_v48, %v14693_v28  ;;  %7934 = vmatprep.subr.bf16.mxu1 %v15066_v61  ;;  %v15073_v28 = vld [vmem:[%s18965_s14 + $0x2b8] sm:$0xff]  }
0x2b5d   : > { %v14696_v40 = vpop.permute.xlu0 %14695 }
0x2b5e   : > { %v14698_v21 = vunpack.i.h.bf16 %v14696_v40  ;;  %v14697_v42 = vunpack.i.l.bf16 %v14696_v40  ;;  %v15064_v40 = vld [vmem:[%s18963_s12 + $0x1c8] ss:$12 sps:$4 sm:$0xff]  }
0x2b5f   : > { %7935 = vmatpush1.bf16.msra.mxu1 %v15064_v40 }
0x2b60   : > { %v7640_v58 = vsel %vm2529_vm10, %v7638_v52, %v14697_v42  ;;  %v7641_v54 = vsel %vm2529_vm10, %v7639_v24, %v14698_v21  ;;  %7936 = vmatprep.subr.bf16.mxu1 %v15070_v33  ;;  %v12555_v52 = vld [vmem:[%s18961_s10 + $0x3] ss:$0 sm:$0xff] }
0x2b63   : > { %7937 = vmatpush1.bf16.msra.mxu1 %v15068_v35 }
0x2b64   : > { %13404 = vmatprep.subr.bf16.mxu1 %v15073_v28 }
0x2b65   : > { %v14701_v9 = vpop.permute.xlu1 %14700 }
0x2b66   : > { %v14703_v56 = vunpack.i.h.bf16 %v14701_v9  ;;  %v14702_v34 = vunpack.i.l.bf16 %v14701_v9 }
0x2b68   : > { %v7642_v55 = vsel %vm2532_vm11, %v7640_v58, %v14702_v34  ;;  %v7643_v1 = vsel %vm2532_vm11, %v7641_v54, %v14703_v56  ;;  %v12556_v58 = vld [vmem:[%s18962_s11 + $0x3] ss:$0 sm:$0xff] }
0x2b69   : > { %v7644_v3 = vpack.c.bf16 %v7643_v1, %v7642_v55 }
0x2b6b   : > { %14195 = vmatmul.mubr.msk.bf16.vlgmr.msra.gmra.mxu0 %vm778_vm0, %v7644_v3  ;;  %v15072_v3 = vld [vmem:[%s18965_s14 + $0x2f8] sm:$0xff]  }
0x2b6c   : > { %14210 = vmatprep.mubr.msk.bf16.mxu0 %vm15694_vm1, %v15693_v22  ;;  %14199 = vmatpush3.bf16.msra.mxu0 %v15051_v23  ;;  %v15094_v23 = vld [vmem:[%s18965_s14 + $0x280] sm:$0xff]  }
0x2b6d   : > { %14200 = vmatprep.subr.bf16.mxu0 %v15693_v22 }
0x2b70   : > { %14201 = vmatpush3.bf16.msra.mxu0 %v15055_v6  ;;  %v7819_v6 = vrot.slane %v12581_v25, %v16523_v14 }
0x2b71   : > { %14202 = vmatprep.subr.bf16.mxu0 %v15693_v22 }
0x2b74   : > { %14203 = vmatpush3.bf16.msra.mxu0 %v15059_v37  ;;  %v7815_v37 = vrot.slane %v12581_v25, %v16529_v38  ;;  %v15096_v25 = vld [vmem:[%s18958_s7 + $0x2b8] ss:$12 sps:$4 sm:$0xff]  }
0x2b75   : > { %14204 = vmatprep.subr.bf16.mxu0 %v15693_v22 }
0x2b78   : > { %14205 = vmatpush3.bf16.msra.mxu0 %v15063_v5 }
0x2b79   : > { %14206 = vmatprep.subr.bf16.mxu0 %v15693_v22 }
0x2b7c   : > { %14207 = vmatpush3.bf16.msra.mxu0 %v15067_v12 }
0x2b7d   : > { %14208 = vmatprep.subr.bf16.mxu0 %v15693_v22 }
0x2b80   : > { %14209 = vmatpush3.bf16.msra.mxu0 %v15071_v41 }
0x2b81   : > { %14214 = vmatprep.subr.bf16.mxu0 %v15693_v22 }
0x2c2b   : > { %v7724_v4 = vpop.f32.mrf.mxu0 }
0x2c2c   : > { %v7725_v51 = vadd.f32 %v12545_v15, %v7724_v4 }
0x2c2d   : > { %v14196_v30 = vpop.f32.mrf.mxu0 }
0x2c2e   : > { %v17748_v62 = vadd.f32 %v7725_v51, %v17469_v29  ;;  %v15076_v51 = vld [vmem:[%s18965_s14 + $0x2b0] sm:$0xff]  }
0x2c2f   : > { %v7727_v63 = vpop.f32.mrf.mxu0  ;;  %v15075_v30 = vld [vmem:[%s18965_s14 + $0x2f0] sm:$0xff]  }
0x2c30   : > { %v7728_v59 = vadd.f32 %v12545_v15, %v7727_v63  ;;  %v7737_v7 = vsel %vm778_vm0, %v17748_v62, 0.0  ;;  %v15074_v15 = vld [vmem:[%s18965_s14 + $0x278] sm:$0xff]   ;;  %v15077_v63 = vld [vmem:[%s18965_s14 + $0x270] sm:$0xff]  }
0x2c31   : > { %7738 = vadd.xlane.f32.xlu0 %v7737_v7  ;;  %v14197_v8 = vpop.f32.mrf.mxu0  ;;  %v15078_v7 = vld [vmem:[%s18965_s14 + $0x2e8] sm:$0xff]  }
0x2c32   : > { %v17753_v10 = vadd.f32 %v7728_v59, %v17474_v13  ;;  %v15079_v59 = vld [vmem:[%s18965_s14 + $0x2a8] sm:$0xff]  }
0x2c33   : > { %v15080_v8 = vld [vmem:[%s18965_s14 + $0x268] sm:$0xff]  }
0x2c34   : > { %v7740_v47 = vsel %vm778_vm0, %v17753_v10, 0.0 }
0x2c35   : > { %7741 = vadd.xlane.f32.xlu1 %v7740_v47  ;;  %v15082_v47 = vld [vmem:[%s18965_s14 + $0x2a0] sm:$0xff]  }
0x2cba   : > { %v7739_v57 = vpop.xlane.xlu0 %7738 }
0x2cbb   : > { %v7743_v11 = vmul.f32 0.010416667, %v7739_v57  ;;  %v15081_v57 = vld [vmem:[%s18965_s14 + $0x2e0] sm:$0xff]  }
0x2cbd   : > { %v17758_v18 = vsub.f32 %v17748_v62, %v7743_v11  ;;  %v15083_v11 = vld [vmem:[%s18965_s14 + $0x260] sm:$0xff]  }
0x2cbe   : > { %v7742_v29 = vpop.xlane.xlu1 %7741 }
0x2cbf   : > { %v7744_v32 = vmul.f32 0.010416667, %v7742_v29  ;;  %v7747_v19 = vmul.f32 %v17758_v18, %v17758_v18  ;;  %v15084_v29 = vld [vmem:[%s18965_s14 + $0x2d8] sm:$0xff]  }
0x2cc1   : > { %v17763_v26 = vsub.f32 %v17753_v10, %v7744_v32  ;;  %v7749_v13 = vsel %vm778_vm0, %v7747_v19, 0.0  ;;  %v15086_v32 = vld [vmem:[%s18965_s14 + $0x258] sm:$0xff]   ;;  %v15087_v19 = vld [vmem:[%s18965_s14 + $0x2d0] sm:$0xff]  }
0x2cc2   : > { %7750 = vadd.xlane.f32.xlu0 %v7749_v13  ;;  %v15089_v13 = vld [vmem:[%s18965_s14 + $0x250] sm:$0xff]  }
0x2cc3   : > { %v7748_v31 = vmul.f32 %v17763_v26, %v17763_v26 }
0x2cc5   : > { %v7752_v20 = vsel %vm778_vm0, %v7748_v31, 0.0  ;;  %v15090_v31 = vld [vmem:[%s18965_s14 + $0x2c8] sm:$0xff]  }
0x2cc6   : > { %7753 = vadd.xlane.f32.xlu0 %v7752_v20  ;;  %v15091_v20 = vld [vmem:[%s18965_s14 + $0x288] sm:$0xff]  }
0x2d4b   : > { %v7751_v36 = vpop.xlane.xlu0 %7750 }
0x2d4c   : > { %v7755_v21 = vmul.f32 0.010416667, %v7751_v36 }
0x2d4e   : > { %v7757_v42 = vadd.f32 1e-05, %v7755_v21 }
0x2d4f   : > { %v7754_v43 = vpop.xlane.xlu0 %7753 }
0x2d50   : > { %15510 = vrsqrt.f32 %v7757_v42  ;;  %v7756_v44 = vmul.f32 0.010416667, %v7754_v43 }
0x2d52   : > { %v7758_v48 = vadd.f32 1e-05, %v7756_v44 }
0x2d54   : > { %15512 = vrsqrt.f32 %v7758_v48 }
0x2d5d   : > { %v15511_v50 = vpop.eup %15510 }
0x2d5e   : > { %v7761_v9 = vmul.f32 %v15511_v50, %v17758_v18  ;;  %v15085_v18 = vld [vmem:[%s18965_s14 + $0x298] sm:$0xff]  }
0x2d60   : > { %v7769_v56 = vmul.f32 %v12555_v52, %v7761_v9 }
0x2d61   : > { %v15513_v24 = vpop.eup %15512 }
0x2d62   : > { %v7762_v34 = vmul.f32 %v15513_v24, %v17763_v26  ;;  %v7777_v55 = vadd.f32 %v12556_v58, %v7769_v56  ;;  %v15088_v26 = vld [vmem:[%s18965_s14 + $0x290] sm:$0xff]  }
0x2d64   : > { %v7770_v54 = vmul.f32 %v12555_v52, %v7762_v34 }
0x2d66   : > { %v7778_v1 = vadd.f32 %v12556_v58, %v7770_v54 }
0x2d68   : > { %v7779_v4 = vpack.c.bf16 %v7778_v1, %v7777_v55 }
0x2d6a   : > { %12600 = vmatmul.mubr.msk.bf16.vlgmr.msra.gmra.mxu1 %vm778_vm0, %v7779_v4  ;;  %14211 = vmatmul.mubr.msk.bf16.vlgmr.msra.gmra.mxu0 %vm778_vm0, %v7779_v4 }
0x2d6b   : > { %14215 = vmatpush3.bf16.msra.mxu0 %v15072_v3  ;;  %13405 = vmatpush3.bf16.msra.mxu1 %v15074_v15  ;;  %v12651_v3 = vld [vmem:[%s18966_s15 + $0x3] ss:$0 sm:$0xff] }
0x2d6c   : > { %14216 = vmatprep.subr.bf16.mxu0 %v15693_v22  ;;  %13406 = vmatprep.subr.bf16.mxu1 %v15076_v51 }
0x2d6d   : > { %14230 = vmatprep.mubr.msk.bf16.mxu0 %vm15694_vm1, %v15693_v22 }
0x2d6f   : > { %14217 = vmatpush3.bf16.msra.mxu0 %v15075_v30  ;;  %13407 = vmatpush3.bf16.msra.mxu1 %v15077_v63 }
0x2d70   : > { %14218 = vmatprep.subr.bf16.mxu0 %v15693_v22  ;;  %13408 = vmatprep.subr.bf16.mxu1 %v15079_v59 }
0x2d73   : > { %14219 = vmatpush3.bf16.msra.mxu0 %v15078_v7  ;;  %13409 = vmatpush3.bf16.msra.mxu1 %v15080_v8 }
0x2d74   : > { %14220 = vmatprep.subr.bf16.mxu0 %v15693_v22  ;;  %13410 = vmatprep.subr.bf16.mxu1 %v15082_v47 }
0x2d77   : > { %14221 = vmatpush3.bf16.msra.mxu0 %v15081_v57  ;;  %13411 = vmatpush3.bf16.msra.mxu1 %v15083_v11 }
0x2d78   : > { %14222 = vmatprep.subr.bf16.mxu0 %v15693_v22  ;;  %13412 = vmatprep.subr.bf16.mxu1 %v15085_v18 }
0x2d7b   : > { %14223 = vmatpush3.bf16.msra.mxu0 %v15084_v29  ;;  %13413 = vmatpush3.bf16.msra.mxu1 %v15086_v32 }
0x2d7c   : > { %14224 = vmatprep.subr.bf16.mxu0 %v15693_v22  ;;  %13414 = vmatprep.subr.bf16.mxu1 %v15088_v26 }
0x2d7f   : > { %14225 = vmatpush3.bf16.msra.mxu0 %v15087_v19  ;;  %13415 = vmatpush3.bf16.msra.mxu1 %v15089_v13 }
0x2d80   : > { %14226 = vmatprep.subr.bf16.mxu0 %v15693_v22  ;;  %13416 = vmatprep.subr.bf16.mxu1 %v15091_v20 }
0x2d83   : > { %14227 = vmatpush3.bf16.msra.mxu0 %v15090_v31  ;;  %13417 = vmatpush3.bf16.msra.mxu1 %v15092_v53 }
0x2d84   : > { %14228 = vmatprep.subr.bf16.mxu0 %v15693_v22  ;;  %13418 = vmatprep.subr.bf16.mxu1 %v15094_v23 }
0x2d87   : > { %14229 = vmatpush3.bf16.msra.mxu0 %v15093_v49  ;;  %13419 = vmatpush3.bf16.msra.mxu1 %v15095_v17  ;;  %v15098_v17 = vld [vmem:[%s18958_s7 + $0x2bc] ss:$12 sps:$4 sm:$0xff]  }
0x2d88   : > { %14234 = vmatprep.subr.bf16.mxu0 %v15693_v22  ;;  %8490 = vmatprep.subr.bf16.mxu1 %v15098_v17 }
0x2e2a   : > { %v7956_v27 = vpop.f32.mrf.mxu1  ;;  %v7999_v45 = vpop.f32.mrf.mxu0 }
0x2e2b   : > { %v8000_v61 = vadd.f32 %v7999_v45, %v7819_v6  ;;  %v7957_v28 = vadd.f32 %v7956_v27, %v7811_v46  ;;  %v15102_v27 = vld [vmem:[%s18958_s7 + $0x2a4] ss:$12 sps:$4 sm:$0xff]   ;;  %v15100_v45 = vld [vmem:[%s18958_s7 + $0x2a0] ss:$12 sps:$4 sm:$0xff]  }
0x2e2c   : > { %v7958_v39 = vpop.f32.mrf.mxu1  ;;  %v14212_v5 = vpop.f32.mrf.mxu0 }
0x2e2d   : > { %v7959_v35 = vadd.f32 %v7958_v39, %v7815_v37  ;;  %v8008_v42 = vmax.f32 %v8000_v61, 0.0  ;;  %v8006_v24 = vmax.f32 %v7957_v28, 0.0  ;;  %v15104_v39 = vld [vmem:[%s18958_s7 + $0x288] ss:$12 sps:$4 sm:$0xff]   ;;  %v15107_v5 = vld [vmem:[%s18958_s7 + $0x290] ss:$12 sps:$4 sm:$0xff]  }
0x2e2e   : > { %v7960_v40 = vpop.f32.mrf.mxu1  ;;  %v8002_v12 = vpop.f32.mrf.mxu0  ;;  %v15110_v61 = vld [vmem:[%s18958_s7 + $0x274] ss:$12 sps:$4 sm:$0xff]  }
0x2e2f   : > { %v7961_v33 = vadd.f32 %v7960_v40, %v7811_v46  ;;  %v8003_v41 = vadd.f32 %v8002_v12, %v7819_v6  ;;  %v8007_v50 = vmax.f32 %v7959_v35, 0.0  ;;  %v15099_v6 = vld [vmem:[%s18958_s7 + $0x2c0] ss:$12 sps:$4 sm:$0xff]   ;;  %v15108_v40 = vld [vmem:[%s18958_s7 + $0x270] ss:$12 sps:$4 sm:$0xff]  }
0x2e30   : > { %v7962_v36 = vpop.f32.mrf.mxu1  ;;  %v14213_v21 = vpop.f32.mrf.mxu0  ;;  %v15106_v46 = vld [vmem:[%s18958_s7 + $0x28c] ss:$12 sps:$4 sm:$0xff]   ;;  %v15114_v35 = vld [vmem:[%s18958_s7 + $0x25c] ss:$12 sps:$4 sm:$0xff]  }
0x2e31   : > { %v8011_v43 = vmax.f32 %v8003_v41, 0.0  ;;  %v7963_v44 = vadd.f32 %v7962_v36, %v7815_v37  ;;  %v8009_v48 = vmax.f32 %v7961_v33, 0.0  ;;  %v15103_v37 = vld [vmem:[%s18958_s7 + $0x2a8] ss:$12 sps:$4 sm:$0xff]   ;;  %v15111_v12 = vld [vmem:[%s18958_s7 + $0x278] ss:$12 sps:$4 sm:$0xff]  }
0x2e32   : > { %v15112_v33 = vld [vmem:[%s18958_s7 + $0x258] ss:$12 sps:$4 sm:$0xff]   ;;  %v15115_v41 = vld [vmem:[%s18958_s7 + $0x260] ss:$12 sps:$4 sm:$0xff]   ;;  %v15119_v21 = vld [vmem:[%s18958_s7 + $0x248] ss:$12 sps:$4 sm:$0xff]  }
0x2e33   : > { %v8014_v9 = vpack.c.bf16 %v8011_v43, %v8008_v42  ;;  %v8010_v52 = vmax.f32 %v7963_v44, 0.0  ;;  %v8012_v34 = vpack.c.bf16 %v8009_v48, %v8006_v24  ;;  %v15116_v28 = vld [vmem:[%s18958_s7 + $0x240] ss:$12 sps:$4 sm:$0xff]   ;;  %v15118_v36 = vld [vmem:[%s18958_s7 + $0x244] ss:$12 sps:$4 sm:$0xff]  }
0x2e35   : > { %v8013_v56 = vpack.c.bf16 %v8010_v52, %v8007_v50  ;;  %14231 = vmatmul.mubr.bf16.vlgmr.msra.gmra.mxu0 %v8014_v9 }
0x2e36   : > { %14246 = vmatprep.mubr.msk.bf16.mxu0 %vm15694_vm1, %v15693_v22  ;;  %14235 = vmatpush3.bf16.msra.mxu0 %v15099_v6 }
0x2e37   : > { %8248 = vmatprep.mubr.bf16.mxu1 %v8013_v56  ;;  %14236 = vmatprep.subr.bf16.mxu0 %v15693_v22  ;;  %v12678_v56 = vld [vmem:[%s18956_s5 + $0x4] ss:$0 sm:$0xff] }
0x2e38   : > { %8249 = vmatmul.mubr.bf16.vlgmr.msra.gmra.mxu1 %v8012_v34 }
0x2e39   : > { %8518 = vmatprep.mubr.bf16.mxu1 %v15692_v2  ;;  %8491 = vmatpush1.bf16.msra.mxu1 %v15096_v25 }
0x2e3a   : > { %8492 = vmatprep.subr.bf16.mxu1 %v15102_v27  ;;  %14237 = vmatpush3.bf16.msra.mxu0 %v15103_v37 }
0x2e3b   : > { %14238 = vmatprep.subr.bf16.mxu0 %v15693_v22 }
0x2e3d   : > { %8493 = vmatpush1.bf16.msra.mxu1 %v15100_v45 }
0x2e3e   : > { %8494 = vmatprep.subr.bf16.mxu1 %v15106_v46  ;;  %14239 = vmatpush3.bf16.msra.mxu0 %v15107_v5 }
0x2e3f   : > { %14240 = vmatprep.subr.bf16.mxu0 %v15693_v22 }
0x2e41   : > { %8495 = vmatpush1.bf16.msra.mxu1 %v15104_v39 }
0x2e42   : > { %8496 = vmatprep.subr.bf16.mxu1 %v15110_v61  ;;  %14241 = vmatpush3.bf16.msra.mxu0 %v15111_v12 }
0x2e43   : > { %14242 = vmatprep.subr.bf16.mxu0 %v15693_v22 }
0x2e45   : > { %8497 = vmatpush1.bf16.msra.mxu1 %v15108_v40 }
0x2e46   : > { %8498 = vmatprep.subr.bf16.mxu1 %v15114_v35  ;;  %14243 = vmatpush3.bf16.msra.mxu0 %v15115_v41 }
0x2e47   : > { %14244 = vmatprep.subr.bf16.mxu0 %v15693_v22 }
0x2e49   : > { %8499 = vmatpush1.bf16.msra.mxu1 %v15112_v33 }
0x2e4a   : > { %8500 = vmatprep.subr.bf16.mxu1 %v15118_v36  ;;  %14245 = vmatpush3.bf16.msra.mxu0 %v15119_v21 }
0x2e4b   : > { %14268 = vmatprep.subr.bf16.mxu0 %v15693_v22 }
0x2e4d   : > { %8501 = vmatpush1.bf16.msra.mxu1 %v15116_v28 }
0x2e4e   : > { %14250 = vmatprep.subr.bf16.mxu1 %v15693_v22 }
0x2ef5   : > { %v8291_v58 = vpop.f32.mrf.mxu0 }
0x2ef7   : > { %v14232_v54 = vpop.f32.mrf.mxu0 }
0x2ef8   : > { %v13420_v55 = vpop.f32.mrf.mxu1 }
0x2ef9   : > { %v8294_v1 = vpop.f32.mrf.mxu0 }
0x2efa   : > { %v13421_v15 = vpop.f32.mrf.mxu1 }
0x2efb   : > { %v13422_v4 = vadd.f32 %v13421_v15, %v13420_v55  ;;  %v14233_v51 = vpop.f32.mrf.mxu0  ;;  %v12679_v55 = vld [vmem:[%s18957_s6 + $0x4] ss:$0 sm:$0xff] }
0x2efc   : > { %v13423_v30 = vpop.f32.mrf.mxu1 }
0x2efd   : > { %v8251_v63 = vadd.f32 %v13422_v4, %v12651_v3 }
0x2efe   : > { %v13424_v59 = vpop.f32.mrf.mxu1 }
0x2eff   : > { %v8292_v7 = vadd.f32 %v8291_v58, %v8251_v63  ;;  %v13425_v8 = vadd.f32 %v13424_v59, %v13423_v30 }
0x2f01   : > { %v8254_v47 = vadd.f32 %v13425_v8, %v12651_v3  ;;  %v17934_v57 = vadd.f32 %v8292_v7, %v17748_v62 }
0x2f03   : > { %v8295_v11 = vadd.f32 %v8294_v1, %v8254_v47  ;;  %v8304_v18 = vsel %vm778_vm0, %v17934_v57, 0.0 }
0x2f04   : > { %8305 = vadd.xlane.f32.xlu1 %v8304_v18 }
0x2f05   : > { %v17939_v29 = vadd.f32 %v8295_v11, %v17753_v10 }
0x2f07   : > { %v8307_v32 = vsel %vm778_vm0, %v17939_v29, 0.0 }
0x2f08   : > { %8308 = vadd.xlane.f32.xlu0 %v8307_v32 }
0x2f8d   : > { %v8306_v19 = vpop.xlane.xlu1 %8305 }
0x2f8e   : > { %v8310_v26 = vmul.f32 0.010416667, %v8306_v19 }
0x2f90   : > { %v8312_v13 = vsub.f32 %v17934_v57, %v8310_v26 }
0x2f91   : > { %v8309_v31 = vpop.xlane.xlu0 %8308 }
0x2f92   : > { %v8311_v20 = vmul.f32 0.010416667, %v8309_v31  ;;  %v8314_v62 = vmul.f32 %v8312_v13, %v8312_v13 }
0x2f94   : > { %v8313_v53 = vsub.f32 %v17939_v29, %v8311_v20  ;;  %v8316_v49 = vsel %vm778_vm0, %v8314_v62, 0.0 }
0x2f95   : > { %8317 = vadd.xlane.f32.xlu1 %v8316_v49 }
0x2f96   : > { %v8315_v23 = vmul.f32 %v8313_v53, %v8313_v53 }
0x2f98   : > { %v8319_v10 = vsel %vm778_vm0, %v8315_v23, 0.0 }
0x2f99   : > { %8320 = vadd.xlane.f32.xlu0 %v8319_v10 }
0x301e   : > { %v8318_v42 = vpop.xlane.xlu1 %8317 }
0x301f   : > { %v8322_v43 = vmul.f32 0.010416667, %v8318_v42 }
0x3021   : > { %v8324_v44 = vadd.f32 1e-05, %v8322_v43 }
0x3022   : > { %v8321_v48 = vpop.xlane.xlu0 %8320 }
0x3023   : > { %15514 = vrsqrt.f32 %v8324_v44  ;;  %v8323_v50 = vmul.f32 0.010416667, %v8321_v48 }
0x3025   : > { %v8325_v9 = vadd.f32 1e-05, %v8323_v50 }
0x3027   : > { %15516 = vrsqrt.f32 %v8325_v9 }
0x3030   : > { %v15515_v52 = vpop.eup %15514 }
0x3031   : > { %v8328_v24 = vmul.f32 %v15515_v52, %v8312_v13 }
0x3033   : > { %v8336_v58 = vmul.f32 %v12678_v56, %v8328_v24 }
0x3034   : > { %v15517_v34 = vpop.eup %15516 }
0x3035   : > { %v8329_v54 = vmul.f32 %v15517_v34, %v8313_v53  ;;  %v8344_v3 = vadd.f32 %v12679_v55, %v8336_v58 }
0x3037   : > { %v8337_v1 = vmul.f32 %v12678_v56, %v8329_v54 }
0x3039   : > { %v8345_v15 = vadd.f32 %v12679_v55, %v8337_v1 }
0x303b   : > { %v8386_v4 = vpack.c.bf16 %v8345_v15, %v8344_v3 }
0x303d   : > { %12735 = vmatmul.mubr.msk.bf16.vlgmr.msra.gmra.mxu1 %vm778_vm0, %v8386_v4  ;;  %14247 = vmatmul.mubr.msk.bf16.vlgmr.msra.gmra.mxu0 %vm778_vm0, %v8386_v4 }
0x303e   : > { %14252 = vmatprep.mubr.msk.bf16.mxu1 %vm15694_vm1, %v15693_v22  ;;  %14270 = vmatprep.mubr.msk.bf16.mxu0 %vm15694_vm1, %v15693_v22 }
0x30fd   : > { %v8520_v51 = vpop.f32.mrf.mxu1  ;;  %v8563_v30 = vpop.f32.mrf.mxu0 }
0x30fe   : > { %v8570_v19 = vmul.f32 0.10206208, %v8520_v51 }
0x30ff   : > { %v8522_v63 = vpop.f32.mrf.mxu1  ;;  %v14248_v59 = vpop.f32.mrf.mxu0 }
0x3101   : > { %v8524_v7 = vpop.f32.mrf.mxu1  ;;  %v8566_v8 = vpop.f32.mrf.mxu0 }
0x3102   : > { %v8573_v47 = vpack.c.bf16 %v8524_v7, %v8520_v51  ;;  %v18020_v11 = vpack.c.bf16 %v8566_v8, %v8563_v30  ;;  %v8571_v32 = vmul.f32 0.10206208, %v8524_v7 }
0x3103   : > { %v14249_v18 = vpop.f32.mrf.mxu0  ;;  %v8526_v13 = vpop.f32.mrf.mxu1 }
0x3104   : > { %8576 = vrot.lane.b32.xlu1 %v8573_v47, %s19030_s30  ;;  %v8572_v26 = vpack.c.bf16 %v8571_v32, %v8570_v19  ;;  %v18026_v31 = vpack.c.bf16 %v8526_v13, %v8522_v63 }
0x3106   : > { %v8824_v42 = vsel %vm922_vm6, %v18026_v31, 0 }
0x3108   : > { %8699 = vrot.lane.b32.xlu1 %v8573_v47, %s19031_s19 }
0x310c   : > { %8697 = vrot.lane.b32.xlu1 %v8572_v26, %s19032_s23 }
0x3110   : > { %8818 = vrot.lane.b32.xlu1 %v8572_v26, %s19033_s0 }
0x3114   : > { %8939 = vrot.lane.b32.xlu1 %v18026_v31, %s19032_s23 }
0x3118   : > { %9061 = vrot.lane.b32.xlu1 %v18026_v31, %s19033_s0 }
0x311c   : > { %9179 = vrot.lane.b32.xlu1 %v18026_v31, %s19027_s20 }
0x3176   : > { %v8577_v20 = vpop.permute.xlu1 %8576 }
0x3177   : > { %v8582_v62 = vsel %vm922_vm6, %v8577_v20, 0 }
0x3178   : > { %14251 = vmatpush3.bf16.xpose.msra.mxu1 %v8582_v62 }
0x3179   : > { %14256 = vmatprep.subr.bf16.mxu1 %v15693_v22 }
0x317a   : > { %v8700_v12 = vpop.permute.xlu1 %8699 }
0x317b   : > { %v8705_v28 = vsel %vm922_vm6, %v8700_v12, 0 }
0x317e   : > { %v8698_v36 = vpop.permute.xlu1 %8697 }
0x317f   : > { %14253 = vmatmul.mubr.msk.bf16.vlgmr.msra.gmra.mxu1 %vm922_vm6, %v8572_v26 }
0x3180   : > { %14258 = vmatprep.mubr.msk.bf16.mxu1 %vm15694_vm1, %v15693_v22 }
0x3182   : > { %v8819_v21 = vpop.permute.xlu1 %8818 }
0x3186   : > { %v8940_v43 = vpop.permute.xlu1 %8939 }
0x3187   : > { %v8945_v44 = vsel %vm922_vm6, %v8940_v43, 0 }
0x318a   : > { %v9062_v48 = vpop.permute.xlu1 %9061 }
0x318b   : > { %v9067_v9 = vsel %vm922_vm6, %v9062_v48, 0 }
0x318e   : > { %v9180_v52 = vpop.permute.xlu1 %9179 }
0x318f   : > { %v9185_v56 = vsel %vm922_vm6, %v9180_v52, 0 }
0x323f   : > { %v8618_v53 = vpop.f32.mrf.mxu1 }
0x3240   : > { %v8619_v49 = vadd.f32 %v8618_v53, %v15985_v60 }
0x3241   : > { %v14254_v23 = vpop.f32.mrf.mxu1 }
0x3242   : > { %v8625_v10 = vsel %vm922_vm6, %v8619_v49, -inf }
0x3243   : > { %8626 = vmax.xlane.f32.xlu0 %v8625_v10  ;;  %v8621_v17 = vpop.f32.mrf.mxu1 }
0x3244   : > { %v8622_v25 = vadd.f32 %v8621_v17, %v15988_v0 }
0x3245   : > { %v14255_v6 = vpop.f32.mrf.mxu1 }
0x3246   : > { %v8628_v27 = vsel %vm922_vm6, %v8622_v25, -inf }
0x3247   : > { %8629 = vmax.xlane.f32.xlu0 %v8628_v27 }
0x325d   : > { %8647 = vrot.lane.b32.xlu0 %v18026_v31, %s19028_s17 }
0x3261   : > { %8937 = vrot.lane.b32.xlu0 %v8572_v26, %s19027_s20 }
0x3265   : > { %9059 = vrot.lane.b32.xlu0 %v8572_v26, %s19028_s17 }
0x3269   : > { %9177 = vrot.lane.b32.xlu0 %v8572_v26, %s19029_s4 }
0x32cc   : > { %v8627_v45 = vpop.xlane.xlu0 %8626 }
0x32cd   : > { %v8631_v37 = vsub.f32 %v8619_v49, %v8627_v45 }
0x32cf   : > { %v8633_v46 = vmul.f32 1.442695, %v8631_v37 }
0x32d0   : > { %v8630_v39 = vpop.xlane.xlu0 %8629 }
0x32d1   : > { %v8632_v5 = vsub.f32 %v8622_v25, %v8630_v39  ;;  %15518 = vpow2.f32 %v8633_v46 }
0x32d3   : > { %v8635_v61 = vmul.f32 1.442695, %v8632_v5 }
0x32d4   : > { %v8648_v40 = vpop.permute.xlu0 %8647 }
0x32d5   : > { %15520 = vpow2.f32 %v8635_v61  ;;  %14257 = vmatpush3.bf16.msra.mxu1 %v8648_v40 }
0x32d6   : > { %14262 = vmatprep.subr.bf16.mxu1 %v15693_v22 }
0x32d8   : > { %v8938_v50 = vpop.permute.xlu0 %8937 }
0x32dc   : > { %v9060_v24 = vpop.permute.xlu0 %9059 }
0x32de   : > { %v18049_v35 = vpop.eup %15518 }
0x32e0   : > { %v9178_v34 = vpop.permute.xlu0 %9177 }
0x32e2   : > { %v18051_v33 = vpop.eup %15520 }
0x32e3   : > { %v8645_v41 = vpack.c.bf16 %v18051_v33, %v18049_v35 }
0x32e5   : > { %14259 = vmatmul.mubr.msk.bf16.vlgmr.msra.gmra.mxu1 %vm922_vm6, %v8645_v41 }
0x32e6   : > { %14263 = vmatpush3.bf16.xpose.msra.mxu1 %v8705_v28  ;;  %14264 = vmatprep.mubr.msk.bf16.mxu1 %vm15694_vm1, %v15693_v22 }
0x32e7   : > { %14274 = vmatprep.subr.bf16.mxu1 %v15693_v22 }
0x32ed   : > { %14265 = vmatmul.mubr.msk.bf16.vlgmr.msra.gmra.mxu1 %vm922_vm6, %v8698_v36 }
0x32ee   : > { %14275 = vmatpush3.bf16.xpose.msra.mxu1 %v8824_v42  ;;  %14276 = vmatprep.mubr.msk.bf16.mxu1 %vm15694_vm1, %v15693_v22 }
0x32ef   : > { %14286 = vmatprep.subr.bf16.mxu1 %v15693_v22 }
0x32f5   : > { %14277 = vmatmul.mubr.msk.bf16.vlgmr.msra.gmra.mxu1 %vm922_vm6, %v8819_v21 }
0x32f6   : > { %14287 = vmatpush3.bf16.xpose.msra.mxu1 %v8945_v44  ;;  %14288 = vmatprep.mubr.msk.bf16.mxu1 %vm15694_vm1, %v15693_v22 }
0x32f7   : > { %14298 = vmatprep.subr.bf16.mxu1 %v15693_v22 }
0x32fd   : > { %14289 = vmatmul.mubr.msk.bf16.vlgmr.msra.gmra.mxu1 %vm922_vm6, %v8938_v50 }
0x32fe   : > { %14299 = vmatpush3.bf16.xpose.msra.mxu1 %v9067_v9  ;;  %14300 = vmatprep.mubr.msk.bf16.mxu1 %vm15694_vm1, %v15693_v22 }
0x32ff   : > { %14310 = vmatprep.subr.bf16.mxu1 %v15693_v22 }
0x3305   : > { %14301 = vmatmul.mubr.msk.bf16.vlgmr.msra.gmra.mxu1 %vm922_vm6, %v9060_v24 }
0x3306   : > { %14311 = vmatpush3.bf16.xpose.msra.mxu1 %v9185_v56  ;;  %14312 = vmatprep.mubr.msk.bf16.mxu1 %vm15694_vm1, %v15693_v22 }
0x3307   : > { %14322 = vmatprep.subr.bf16.mxu1 %v15693_v22 }
0x330d   : > { %14313 = vmatmul.mubr.msk.bf16.vlgmr.msra.gmra.mxu1 %vm922_vm6, %v9178_v34 }
0x330e   : > { %14334 = vmatprep.mubr.msk.bf16.mxu1 %vm15694_vm1, %v15693_v22 }
0x33a5   : > { %v18084_v58 = vpop.f32.mrf.mxu1 }
0x33a7   : > { %v14260_v54 = vpop.f32.mrf.mxu1 }
0x33a9   : > { %v18086_v55 = vpop.f32.mrf.mxu1 }
0x33ab   : > { %v14261_v1 = vpop.f32.mrf.mxu1 }
0x33ad   : > { %v8741_v3 = vpop.f32.mrf.mxu1 }
0x33ae   : > { %v8742_v15 = vadd.f32 %v8741_v3, %v15985_v60 }
0x33af   : > { %v14266_v4 = vpop.f32.mrf.mxu1 }
0x33b0   : > { %v8748_v51 = vsel %vm922_vm6, %v8742_v15, -inf }
0x33b1   : > { %8749 = vmax.xlane.f32.xlu1 %v8748_v51  ;;  %v8744_v30 = vpop.f32.mrf.mxu1 }
0x33b2   : > { %v8745_v63 = vadd.f32 %v8744_v30, %v15988_v0 }
0x33b3   : > { %v14267_v59 = vpop.f32.mrf.mxu1 }
0x33b4   : > { %v8751_v7 = vsel %vm922_vm6, %v8745_v63, -inf }
0x33b5   : > { %8752 = vmax.xlane.f32.xlu0 %v8751_v7  ;;  %v8860_v8 = vpop.f32.mrf.mxu1 }
0x33b6   : > { %v18108_v28 = vadd.f32 %v8860_v8, %v15985_v60 }
0x33b7   : > { %v14278_v47 = vpop.f32.mrf.mxu1 }
0x33b8   : > { %v8867_v21 = vsel %vm922_vm6, %v18108_v28, -inf }
0x33b9   : > { %v8863_v18 = vpop.f32.mrf.mxu1 }
0x33ba   : > { %v8864_v32 = vadd.f32 %v8863_v18, %v15988_v0 }
0x33bb   : > { %v14279_v19 = vpop.f32.mrf.mxu1 }
0x33bc   : > { %v8870_v26 = vsel %vm922_vm6, %v8864_v32, -inf }
0x33bd   : > { %8871 = vmax.xlane.f32.xlu1 %v8870_v26  ;;  %v8981_v13 = vpop.f32.mrf.mxu1 }
0x33be   : > { %v18113_v36 = vadd.f32 %v8981_v13, %v15985_v60 }
0x33bf   : > { %v14290_v20 = vpop.f32.mrf.mxu1 }
0x33c0   : > { %v8988_v43 = vsel %vm922_vm6, %v18113_v36, -inf }
0x33c1   : > { %v8984_v62 = vpop.f32.mrf.mxu1 }
0x33c2   : > { %v8985_v53 = vadd.f32 %v8984_v62, %v15988_v0 }
0x33c3   : > { %v14291_v49 = vpop.f32.mrf.mxu1 }
0x33c4   : > { %v8991_v23 = vsel %vm922_vm6, %v8985_v53, -inf }
0x33c5   : > { %8992 = vmax.xlane.f32.xlu1 %v8991_v23  ;;  %v9103_v10 = vpop.f32.mrf.mxu1 }
0x33c6   : > { %v18118_v42 = vadd.f32 %v9103_v10, %v15985_v60 }
0x33c7   : > { %v14302_v17 = vpop.f32.mrf.mxu1 }
0x33c8   : > { %v9110_v44 = vsel %vm922_vm6, %v18118_v42, -inf }
0x33c9   : > { %v9106_v25 = vpop.f32.mrf.mxu1 }
0x33ca   : > { %v9107_v6 = vadd.f32 %v9106_v25, %v15988_v0 }
0x33cb   : > { %8769 = vrot.lane.b32.xlu0 %v18026_v31, %s19029_s4  ;;  %v14303_v27 = vpop.f32.mrf.mxu1 }
0x33cc   : > { %v9113_v45 = vsel %vm922_vm6, %v9107_v6, -inf }
0x33cd   : > { %9114 = vmax.xlane.f32.xlu1 %v9113_v45  ;;  %v9221_v37 = vpop.f32.mrf.mxu1 }
0x33ce   : > { %v18101_v46 = vadd.f32 %v9221_v37, %v15985_v60  ;;  %v8640_v37 = vsel %vm922_vm6, %v18051_v33, 0.0 }
0x33cf   : > { %v14314_v39 = vpop.f32.mrf.mxu1 }
0x33d0   : > { %v9228_v5 = vsel %vm922_vm6, %v18101_v46, -inf }
0x33d1   : > { %9229 = vmax.xlane.f32.xlu1 %v9228_v5  ;;  %v9224_v61 = vpop.f32.mrf.mxu1 }
0x33d2   : > { %v9225_v40 = vadd.f32 %v9224_v61, %v15988_v0 }
0x33d3   : > { %v14315_v12 = vpop.f32.mrf.mxu1 }
0x33d4   : > { %v9231_v41 = vsel %vm922_vm6, %v9225_v40, -inf }
0x33d5   : > { %9232 = vmax.xlane.f32.xlu1 %v9231_v41 }
0x33e6   : > { %8888 = vrot.lane.b32.xlu1 %v18026_v31, %s19030_s30 }
0x33ea   : > { %8868 = vmax.xlane.f32.xlu0 %v8867_v21 }
0x33ee   : > { %8989 = vmax.xlane.f32.xlu0 %v8988_v43 }
0x33f2   : > { %9111 = vmax.xlane.f32.xlu0 %v9110_v44 }
0x3408   : > { %9009 = vrot.lane.b32.xlu0 %v18026_v31, %s19031_s19 }
0x340c   : > { %9250 = vrot.lane.b32.xlu0 %v18020_v11, %s19032_s23 }
0x343a   : > { %v8750_v48 = vpop.xlane.xlu1 %8749 }
0x343b   : > { %v8754_v50 = vsub.f32 %v8742_v15, %v8750_v48 }
0x343d   : > { %v8756_v9 = vmul.f32 1.442695, %v8754_v50 }
0x343e   : > { %v8753_v52 = vpop.xlane.xlu0 %8752 }
0x343f   : > { %15522 = vpow2.f32 %v8756_v9  ;;  %v8755_v24 = vsub.f32 %v8745_v63, %v8753_v52 }
0x3441   : > { %v8758_v56 = vmul.f32 1.442695, %v8755_v24 }
0x3442   : > { %v8770_v34 = vpop.permute.xlu0 %8769 }
0x3443   : > { %15524 = vpow2.f32 %v8758_v56  ;;  %14269 = vmatpush3.bf16.msra.mxu0 %v8770_v34 }
0x3444   : > { %14280 = vmatprep.subr.bf16.mxu0 %v15693_v22 }
0x3446   : > { %v8872_v54 = vpop.xlane.xlu1 %8871 }
0x3447   : > { %v8874_v1 = vsub.f32 %v8864_v32, %v8872_v54  ;;  %v8637_v54 = vsel %vm922_vm6, %v18049_v35, 0.0 }
0x3449   : > { %v8877_v3 = vmul.f32 1.442695, %v8874_v1 }
0x344b   : > { %15526 = vpow2.f32 %v8877_v3 }
0x344c   : > { %v15523_v31 = vpop.eup %15522 }
0x344d   : > { %v8760_v4 = vsel %vm922_vm6, %v15523_v31, 0.0 }
0x344e   : > { %v8993_v51 = vpop.xlane.xlu1 %8992  ;;  %8761 = vadd.xlane.f32.xlu1 %v8760_v4 }
0x344f   : > { %v8995_v15 = vsub.f32 %v8985_v53, %v8993_v51 }
0x3450   : > { %v15525_v30 = vpop.eup %15524 }
0x3451   : > { %v8768_v59 = vpack.c.bf16 %v15525_v30, %v15523_v31  ;;  %v8998_v7 = vmul.f32 1.442695, %v8995_v15  ;;  %v8763_v63 = vsel %vm922_vm6, %v15525_v30, 0.0 }
0x3452   : > { %8764 = vadd.xlane.f32.xlu0 %v8763_v63 }
0x3453   : > { %15528 = vpow2.f32 %v8998_v7  ;;  %14271 = vmatmul.mubr.msk.bf16.vlgmr.msra.gmra.mxu0 %vm922_vm6, %v8768_v59 }
0x3454   : > { %14282 = vmatprep.mubr.msk.bf16.mxu0 %vm15694_vm1, %v15693_v22 }
0x3456   : > { %v9115_v8 = vpop.xlane.xlu1 %9114 }
0x3457   : > { %v9117_v47 = vsub.f32 %v9107_v6, %v9115_v8 }
0x3458   : > { %v15527_v18 = vpop.eup %15526 }
0x3459   : > { %v9120_v32 = vmul.f32 1.442695, %v9117_v47  ;;  %v8882_v19 = vsel %vm922_vm6, %v15527_v18, 0.0 }
0x345a   : > { %v9230_v26 = vpop.xlane.xlu1 %9229  ;;  %8883 = vadd.xlane.f32.xlu1 %v8882_v19 }
0x345b   : > { %15530 = vpow2.f32 %v9120_v32 }
0x345e   : > { %v9233_v13 = vpop.xlane.xlu1 %9232 }
0x345f   : > { %v9235_v20 = vsub.f32 %v9225_v40, %v9233_v13  ;;  %v9234_v40 = vsub.f32 %v18101_v46, %v9230_v26  ;;  %v15120_v26 = vld [vmem:[%s18959_s8 + $0xe8] sm:$0xff]  }
0x3460   : > { %v15529_v62 = vpop.eup %15528  ;;  %14323 = vmatpush3.bf16.msra.mxu1 %v15120_v26 }
0x3461   : > { %v9238_v53 = vmul.f32 1.442695, %v9235_v20  ;;  %v9003_v49 = vsel %vm922_vm6, %v15529_v62, 0.0  ;;  %v9236_v43 = vmul.f32 1.442695, %v9234_v40  ;;  %14324 = vmatprep.subr.bf16.mxu1 %v15693_v22 }
0x3462   : > { %9004 = vadd.xlane.f32.xlu1 %v9003_v49  ;;  %v8889_v23 = vpop.permute.xlu1 %8888 }
0x3463   : > { %15532 = vpow2.f32 %v9238_v53  ;;  %14281 = vmatpush3.bf16.msra.mxu0 %v8889_v23 }
0x3464   : > { %14292 = vmatprep.subr.bf16.mxu0 %v15693_v22 }
0x3468   : > { %v15531_v10 = vpop.eup %15530 }
0x3469   : > { %v9125_v17 = vsel %vm922_vm6, %v15531_v10, 0.0 }
0x346a   : > { %9126 = vadd.xlane.f32.xlu1 %v9125_v17 }
0x3470   : > { %v15533_v25 = vpop.eup %15532 }
0x3471   : > { %v9243_v6 = vsel %vm922_vm6, %v15533_v25, 0.0 }
0x3472   : > { %9244 = vadd.xlane.f32.xlu1 %v9243_v6  ;;  %v15121_v6 = vld [vmem:[%s18959_s8 + $0xe0] sm:$0xff]  }
0x3473   : > { %v8869_v27 = vpop.xlane.xlu0 %8868  ;;  %14325 = vmatpush3.bf16.msra.mxu1 %v15121_v6 }
0x3474   : > { %v8873_v45 = vsub.f32 %v18108_v28, %v8869_v27  ;;  %14326 = vmatprep.subr.bf16.mxu1 %v15693_v22 }
0x3476   : > { %v8875_v39 = vmul.f32 1.442695, %v8873_v45  ;;  %8641 = vadd.xlane.f32.xlu1 %v8640_v37  ;;  %v15122_v37 = vld [vmem:[%s18959_s8 + $0xd8] sm:$0xff]  }
0x3477   : > { %v8990_v5 = vpop.xlane.xlu0 %8989  ;;  %14327 = vmatpush3.bf16.msra.mxu1 %v15122_v37 }
0x3478   : > { %15534 = vpow2.f32 %v8875_v39  ;;  %v8994_v61 = vsub.f32 %v18113_v36, %v8990_v5  ;;  %14328 = vmatprep.subr.bf16.mxu1 %v15693_v22 }
0x347a   : > { %v8996_v12 = vmul.f32 1.442695, %v8994_v61 }
0x347b   : > { %v9112_v41 = vpop.xlane.xlu0 %9111 }
0x347c   : > { %15536 = vpow2.f32 %v8996_v12  ;;  %v9116_v21 = vsub.f32 %v18118_v42, %v9112_v41 }
0x347e   : > { %v9118_v44 = vmul.f32 1.442695, %v9116_v21 }
0x347f   : > { %v9010_v50 = vpop.permute.xlu0 %9009 }
0x3480   : > { %15538 = vpow2.f32 %v9118_v44 }
0x3481   : > { %15540 = vpow2.f32 %v9236_v43 }
0x3483   : > { %v9251_v1 = vpop.permute.xlu0 %9250 }
0x3485   : > { %v15535_v28 = vpop.eup %15534 }
0x3486   : > { %v8887_v48 = vpack.c.bf16 %v15527_v18, %v15535_v28  ;;  %v8879_v33 = vsel %vm922_vm6, %v15535_v28, 0.0  ;;  %v15123_v28 = vld [vmem:[%s18959_s8 + $0xd0] sm:$0xff]  }
0x3487   : > { %8880 = vadd.xlane.f32.xlu0 %v8879_v33  ;;  %14329 = vmatpush3.bf16.msra.mxu1 %v15123_v28  ;;  %v12749_v28 = vld [vmem:[%s18960_s9 + $0x4] ss:$0 sm:$0xff] }
0x3488   : > { %14283 = vmatmul.mubr.msk.bf16.vlgmr.msra.gmra.mxu0 %vm922_vm6, %v8887_v48  ;;  %14330 = vmatprep.subr.bf16.mxu1 %v15693_v22 }
0x3489   : > { %v15537_v36 = vpop.eup %15536  ;;  %14293 = vmatpush3.bf16.msra.mxu0 %v9010_v50  ;;  %14294 = vmatprep.mubr.msk.bf16.mxu0 %vm15694_vm1, %v15693_v22  ;;  %v15124_v50 = vld [vmem:[%s18959_s8 + $0xc8] sm:$0xff]  }
0x348a   : > { %v9000_v46 = vsel %vm922_vm6, %v15537_v36, 0.0  ;;  %14304 = vmatprep.subr.bf16.mxu0 %v15693_v22  ;;  %v9008_v9 = vpack.c.bf16 %v15529_v62, %v15537_v36 }
0x348b   : > { %9001 = vadd.xlane.f32.xlu0 %v9000_v46  ;;  %14331 = vmatpush3.bf16.msra.mxu1 %v15124_v50 }
0x348c   : > { %14332 = vmatprep.subr.bf16.mxu1 %v15693_v22 }
0x348d   : > { %v15539_v42 = vpop.eup %15538 }
0x348e   : > { %v9122_v52 = vsel %vm922_vm6, %v15539_v42, 0.0  ;;  %v15541_v24 = vpop.eup %15540  ;;  %v9130_v34 = vpack.c.bf16 %v15531_v10, %v15539_v42 }
0x348f   : > { %9123 = vadd.xlane.f32.xlu0 %v9122_v52  ;;  %v9240_v56 = vsel %vm922_vm6, %v15541_v24, 0.0 }
0x3490   : > { %14295 = vmatmul.mubr.msk.bf16.vlgmr.msra.gmra.mxu0 %vm922_vm6, %v9008_v9 }
0x3491   : > { %14305 = vmatpush3.bf16.msra.mxu0 %v18020_v11  ;;  %14306 = vmatprep.mubr.msk.bf16.mxu0 %vm15694_vm1, %v15693_v22  ;;  %v9248_v11 = vpack.c.bf16 %v15533_v25, %v15541_v24 }
0x3492   : > { %14316 = vmatprep.subr.bf16.mxu0 %v15693_v22 }
0x3493   : > { %9241 = vadd.xlane.f32.xlu0 %v9240_v56 }
0x3497   : > { %8638 = vadd.xlane.f32.xlu0 %v8637_v54 }
0x3498   : > { %14307 = vmatmul.mubr.msk.bf16.vlgmr.msra.gmra.mxu0 %vm922_vm6, %v9130_v34  ;;  %v15125_v34 = vld [vmem:[%s18959_s8 + $0xc0] sm:$0xff]  }
0x3499   : > { %14317 = vmatpush3.bf16.msra.mxu0 %v9251_v1  ;;  %14318 = vmatprep.mubr.msk.bf16.mxu0 %vm15694_vm1, %v15693_v22 }
0x349a   : > { %14333 = vmatpush3.bf16.msra.mxu1 %v15125_v34 }
0x349b   : > { %14338 = vmatprep.subr.bf16.mxu1 %v15693_v22 }
0x34a0   : > { %14319 = vmatmul.mubr.msk.bf16.vlgmr.msra.gmra.mxu0 %vm922_vm6, %v9248_v11 }
0x34a1   : > { %9659 = vmatprep.mubr.bf16.mxu0 %v15692_v2 }
0x34d7   : > { %v8762_v3 = vpop.xlane.xlu1 %8761 }
0x34d8   : > { %15542 = vrcp.f32 %v8762_v3 }
0x34db   : > { %v8765_v31 = vpop.xlane.xlu0 %8764 }
0x34dc   : > { %15544 = vrcp.f32 %v8765_v31 }
0x34e3   : > { %v8884_v47 = vpop.xlane.xlu1 %8883 }
0x34e4   : > { %15546 = vrcp.f32 %v8884_v47 }
0x34e5   : > { %v15543_v35 = vpop.eup %15542 }
0x34e9   : > { %v15545_v15 = vpop.eup %15544 }
0x34eb   : > { %v9005_v32 = vpop.xlane.xlu1 %9004 }
0x34f1   : > { %v15547_v62 = vpop.eup %15546 }
0x34f3   : > { %v9127_v53 = vpop.xlane.xlu1 %9126 }
0x34fb   : > { %v9245_v40 = vpop.xlane.xlu1 %9244 }
0x3510   : > { %v8881_v18 = vpop.xlane.xlu0 %8880 }
0x3511   : > { %15548 = vrcp.f32 %v8881_v18 }
0x3512   : > { %15550 = vrcp.f32 %v9005_v32 }
0x3513   : > { %v8809_v4 = vpop.f32.mrf.mxu0 }
0x3514   : > { %v8816_v59 = vmul.f32 %v15543_v35, %v8809_v4  ;;  %v9002_v19 = vpop.xlane.xlu0 %9001 }
0x3515   : > { %v14272_v51 = vpop.f32.mrf.mxu0  ;;  %15552 = vrcp.f32 %v9002_v19 }
0x3516   : > { %15554 = vrcp.f32 %v9127_v53 }
0x3517   : > { %v8812_v30 = vpop.f32.mrf.mxu0 }
0x3518   : > { %v8817_v7 = vmul.f32 %v15545_v15, %v8812_v30  ;;  %v9124_v23 = vpop.xlane.xlu0 %9123 }
0x3519   : > { %v14273_v63 = vpop.f32.mrf.mxu0  ;;  %15556 = vrcp.f32 %v9124_v23 }
0x351a   : > { %v14704_v8 = vpack.i.bf16 %v8817_v7, %v8816_v59  ;;  %15558 = vrcp.f32 %v9245_v40  ;;  %v8642_v7 = vpop.xlane.xlu1 %8641 }
0x351c   : > { %14705 = vrot.lane.b32.xlu0 %v14704_v8, %s19031_s19  ;;  %v9242_v41 = vpop.xlane.xlu0 %9241 }
0x351d   : > { %15560 = vrcp.f32 %v9242_v41 }
0x351e   : > { %v15549_v49 = vpop.eup %15548  ;;  %15562 = vrcp.f32 %v8642_v7  ;;  %v15130_v7 = vld [vmem:[%s18963_s12 + $0x2a0] ss:$12 sps:$4 sm:$0xff]  }
0x351f   : > { %v15551_v61 = vpop.eup %15550 }
0x3520   : > { %v8639_v63 = vpop.xlane.xlu0 %8638 }
0x3521   : > { %15564 = vrcp.f32 %v8639_v63  ;;  %v15133_v63 = vld [vmem:[%s18963_s12 + $0x2a8] ss:$12 sps:$4 sm:$0xff]  }
0x3522   : > { %v15553_v12 = vpop.eup %15552 }
0x3523   : > { %v15555_v42 = vpop.eup %15554 }
0x3526   : > { %v15557_v9 = vpop.eup %15556 }
0x3527   : > { %v15559_v31 = vpop.eup %15558 }
0x352a   : > { %v15561_v4 = vpop.eup %15560 }
0x352b   : > { %v15563_v18 = vpop.eup %15562 }
0x352c   : > { %v8695_v23 = vmul.f32 %v15563_v18, %v18086_v55  ;;  %v15137_v18 = vld [vmem:[%s18963_s12 + $0x290] ss:$12 sps:$4 sm:$0xff]  }
0x352e   : > { %v15565_v32 = vpop.eup %15564 }
0x3548   : > { %v8928_v13 = vpop.f32.mrf.mxu0 }
0x3549   : > { %v8935_v17 = vmul.f32 %v15549_v49, %v8928_v13  ;;  %v8694_v49 = vmul.f32 %v15565_v32, %v18084_v58  ;;  %v15140_v32 = vld [vmem:[%s18963_s12 + $0x274] ss:$12 sps:$4 sm:$0xff]  }
0x354a   : > { %v14284_v20 = vpop.f32.mrf.mxu0 }
0x354c   : > { %v8931_v10 = vpop.f32.mrf.mxu0 }
0x354d   : > { %v8936_v25 = vmul.f32 %v15547_v62, %v8931_v10 }
0x354e   : > { %v14285_v27 = vpop.f32.mrf.mxu0 }
0x354f   : > { %v14709_v45 = vpack.i.bf16 %v8936_v25, %v8935_v17 }
0x3550   : > { %v9049_v39 = vpop.f32.mrf.mxu0 }
0x3551   : > { %14710 = vrot.lane.b32.xlu1 %v14709_v45, %s19030_s30  ;;  %v9056_v43 = vmul.f32 %v15553_v12, %v9049_v39 }
0x3552   : > { %v14296_v5 = vpop.f32.mrf.mxu0 }
0x3554   : > { %v9052_v21 = vpop.f32.mrf.mxu0 }
0x3555   : > { %v9057_v44 = vmul.f32 %v15551_v61, %v9052_v21 }
0x3556   : > { %v14297_v48 = vpop.f32.mrf.mxu0 }
0x3557   : > { %v14714_v33 = vpack.i.bf16 %v9057_v44, %v9056_v43 }
0x3558   : > { %v9168_v36 = vpop.f32.mrf.mxu0 }
0x3559   : > { %14715 = vrot.lane.b32.xlu1 %v14714_v33, %s19029_s4  ;;  %v9175_v24 = vmul.f32 %v15557_v9, %v9168_v36 }
0x355a   : > { %v14308_v46 = vpop.f32.mrf.mxu0 }
0x355c   : > { %v9171_v52 = vpop.f32.mrf.mxu0 }
0x355d   : > { %v9176_v56 = vmul.f32 %v15555_v42, %v9171_v52 }
0x355e   : > { %v14309_v54 = vpop.f32.mrf.mxu0 }
0x355f   : > { %v14719_v1 = vpack.i.bf16 %v9176_v56, %v9175_v24 }
0x3560   : > { %v9290_v11 = vpop.f32.mrf.mxu0 }
0x3561   : > { %14720 = vrot.lane.b32.xlu0 %v14719_v1, %s19028_s17  ;;  %v9297_v35 = vmul.f32 %v15561_v4, %v9290_v11 }
0x3562   : > { %v14320_v3 = vpop.f32.mrf.mxu0 }
0x3564   : > { %v9293_v51 = vpop.f32.mrf.mxu0 }
0x3565   : > { %v9298_v15 = vmul.f32 %v15559_v31, %v9293_v51 }
0x3566   : > { %v14321_v30 = vpop.f32.mrf.mxu0 }
0x3567   : > { %v14724_v59 = vpack.i.bf16 %v9298_v15, %v9297_v35  ;;  %v15128_v35 = vld [vmem:[%s18963_s12 + $0x2bc] ss:$12 sps:$4 sm:$0xff]   ;;  %v15126_v15 = vld [vmem:[%s18963_s12 + $0x2b8] ss:$12 sps:$4 sm:$0xff]   ;;  %v15129_v30 = vld [vmem:[%s18963_s12 + $0x2c0] ss:$12 sps:$4 sm:$0xff]  }
0x3568   : > { %9631 = vmatprep.subr.bf16.mxu0 %v15128_v35  ;;  %v15170_v35 = vld [vmem:[%s18965_s14 + $0x308] sm:$0xff]  }
0x3569   : > { %14725 = vrot.lane.b32.xlu1 %v14724_v59, %s19027_s20  ;;  %9632 = vmatpush1.bf16.msra.mxu0 %v15126_v15  ;;  %v15132_v59 = vld [vmem:[%s18963_s12 + $0x2a4] ss:$12 sps:$4 sm:$0xff]  }
0x356a   : > { %9633 = vmatprep.subr.bf16.mxu0 %v15132_v59  ;;  %v15171_v15 = vld [vmem:[%s18965_s14 + $0x380] sm:$0xff]  }
0x356b   : > { %v15173_v59 = vld [vmem:[%s18965_s14 + $0x300] sm:$0xff]  }
0x356d   : > { %9634 = vmatpush1.bf16.msra.mxu0 %v15130_v7  ;;  %v12785_v7 = vld [vmem:[%s18964_s13 + $0xc] sm:$0x7] }
0x358e   : > { %v14706_v47 = vpop.permute.xlu0 %14705 }
0x358f   : > { %v14708_v26 = vunpack.i.h.bf16 %v14706_v47  ;;  %v14707_v13 = vunpack.i.l.bf16 %v14706_v47  ;;  %v15134_v47 = vld [vmem:[%s18963_s12 + $0x288] ss:$12 sps:$4 sm:$0xff]  }
0x3591   : > { %v9340_v27 = vsel %vm922_vm6, %v8695_v23, %v14708_v26  ;;  %v9339_v45 = vsel %vm922_vm6, %v8694_v49, %v14707_v13  ;;  %v15141_v26 = vld [vmem:[%s18963_s12 + $0x278] ss:$12 sps:$4 sm:$0xff]   ;;  %v15144_v13 = vld [vmem:[%s18963_s12 + $0x25c] ss:$12 sps:$4 sm:$0xff]  }
0x3592   : > { %v15148_v49 = vld [vmem:[%s18963_s12 + $0x244] ss:$12 sps:$4 sm:$0xff]   ;;  %v15149_v23 = vld [vmem:[%s18963_s12 + $0x248] ss:$12 sps:$4 sm:$0xff]  }
0x35c3   : > { %v14711_v8 = vpop.permute.xlu1 %14710 }
0x35c4   : > { %v14713_v62 = vunpack.i.h.bf16 %v14711_v8  ;;  %v14712_v53 = vunpack.i.l.bf16 %v14711_v8  ;;  %v15136_v8 = vld [vmem:[%s18963_s12 + $0x28c] ss:$12 sps:$4 sm:$0xff]  }
0x35c5   : > { %9635 = vmatprep.subr.bf16.mxu0 %v15136_v8 }
0x35c6   : > { %v9342_v37 = vsel %vm2524_vm9, %v9340_v27, %v14713_v62  ;;  %v9341_v39 = vsel %vm2524_vm9, %v9339_v45, %v14712_v53  ;;  %9636 = vmatpush1.bf16.msra.mxu0 %v15134_v47  ;;  %v15145_v62 = vld [vmem:[%s18963_s12 + $0x260] ss:$12 sps:$4 sm:$0xff]  }
0x35c7   : > { %9637 = vmatprep.subr.bf16.mxu0 %v15140_v32  ;;  %v15146_v53 = vld [vmem:[%s18963_s12 + $0x240] ss:$12 sps:$4 sm:$0xff]   ;;  %v9516_v32 = vrot.slane %v12785_v7, %v16532_v16 }
0x35cb   : > { %v14716_v19 = vpop.permute.xlu1 %14715 }
0x35cc   : > { %v14718_v10 = vunpack.i.h.bf16 %v14716_v19  ;;  %v14717_v17 = vunpack.i.l.bf16 %v14716_v19  ;;  %v15138_v19 = vld [vmem:[%s18963_s12 + $0x270] ss:$12 sps:$4 sm:$0xff]  }
0x35cd   : > { %9638 = vmatpush1.bf16.msra.mxu0 %v15138_v19 }
0x35ce   : > { %v9344_v61 = vsel %vm1394_vm7, %v9342_v37, %v14718_v10  ;;  %v9343_v40 = vsel %vm1394_vm7, %v9341_v39, %v14717_v17  ;;  %9639 = vmatprep.subr.bf16.mxu0 %v15144_v13  ;;  %v15151_v10 = vld [vmem:[%s18965_s14 + $0x378] sm:$0xff]  }
0x35d3   : > { %v14721_v20 = vpop.permute.xlu0 %14720 }
0x35d4   : > { %v14723_v25 = vunpack.i.h.bf16 %v14721_v20  ;;  %v14722_v6 = vunpack.i.l.bf16 %v14721_v20  ;;  %v15142_v20 = vld [vmem:[%s18963_s12 + $0x258] ss:$12 sps:$4 sm:$0xff]  }
0x35d5   : > { %9640 = vmatpush1.bf16.msra.mxu0 %v15142_v20 }
0x35d6   : > { %v9346_v55 = vsel %vm2529_vm10, %v9344_v61, %v14723_v25  ;;  %v9345_v41 = vsel %vm2529_vm10, %v9343_v40, %v14722_v6  ;;  %9641 = vmatprep.subr.bf16.mxu0 %v15148_v49  ;;  %v12759_v61 = vld [vmem:[%s18961_s10 + $0x4] ss:$0 sm:$0xff] }
0x35d9   : > { %9642 = vmatpush1.bf16.msra.mxu0 %v15146_v53 }
0x35da   : > { %13480 = vmatprep.subr.bf16.mxu0 %v15151_v10 }
0x35db   : > { %v14726_v5 = vpop.permute.xlu1 %14725 }
0x35dc   : > { %v14728_v58 = vunpack.i.h.bf16 %v14726_v5  ;;  %v14727_v12 = vunpack.i.l.bf16 %v14726_v5 }
0x35de   : > { %v9348_v21 = vsel %vm2532_vm11, %v9346_v55, %v14728_v58  ;;  %v9347_v43 = vsel %vm2532_vm11, %v9345_v41, %v14727_v12  ;;  %v12760_v55 = vld [vmem:[%s18962_s11 + $0x4] ss:$0 sm:$0xff] }
0x35df   : > { %v9349_v44 = vpack.c.bf16 %v9348_v21, %v9347_v43 }
0x35e1   : > { %14335 = vmatmul.mubr.msk.bf16.vlgmr.msra.gmra.mxu1 %vm778_vm0, %v9349_v44  ;;  %v15150_v44 = vld [vmem:[%s18965_s14 + $0x3b8] sm:$0xff]  }
0x35e2   : > { %14350 = vmatprep.mubr.msk.bf16.mxu1 %vm15694_vm1, %v15693_v22  ;;  %14339 = vmatpush3.bf16.msra.mxu1 %v15129_v30  ;;  %v15172_v30 = vld [vmem:[%s18965_s14 + $0x340] sm:$0xff]  }
0x35e3   : > { %14340 = vmatprep.subr.bf16.mxu1 %v15693_v22 }
0x35e6   : > { %14341 = vmatpush3.bf16.msra.mxu1 %v15133_v63  ;;  %v9524_v63 = vrot.slane %v12785_v7, %v16523_v14 }
0x35e7   : > { %14342 = vmatprep.subr.bf16.mxu1 %v15693_v22 }
0x35ea   : > { %14343 = vmatpush3.bf16.msra.mxu1 %v15137_v18  ;;  %v9520_v18 = vrot.slane %v12785_v7, %v16529_v38  ;;  %v15174_v7 = vld [vmem:[%s18958_s7 + $0x348] ss:$12 sps:$4 sm:$0xff]  }
0x35eb   : > { %14344 = vmatprep.subr.bf16.mxu1 %v15693_v22 }
0x35ee   : > { %14345 = vmatpush3.bf16.msra.mxu1 %v15141_v26 }
0x35ef   : > { %14346 = vmatprep.subr.bf16.mxu1 %v15693_v22 }
0x35f2   : > { %14347 = vmatpush3.bf16.msra.mxu1 %v15145_v62 }
0x35f3   : > { %14348 = vmatprep.subr.bf16.mxu1 %v15693_v22 }
0x35f6   : > { %14349 = vmatpush3.bf16.msra.mxu1 %v15149_v23 }
0x35f7   : > { %14354 = vmatprep.subr.bf16.mxu1 %v15693_v22 }
0x36a1   : > { %v9429_v48 = vpop.f32.mrf.mxu1 }
0x36a2   : > { %v9430_v33 = vadd.f32 %v12749_v28, %v9429_v48 }
0x36a3   : > { %v14336_v50 = vpop.f32.mrf.mxu1 }
0x36a4   : > { %v18213_v36 = vadd.f32 %v9430_v33, %v17934_v57  ;;  %v15154_v33 = vld [vmem:[%s18965_s14 + $0x370] sm:$0xff]  }
0x36a5   : > { %v9432_v46 = vpop.f32.mrf.mxu1  ;;  %v15153_v50 = vld [vmem:[%s18965_s14 + $0x3b0] sm:$0xff]  }
0x36a6   : > { %v9433_v42 = vadd.f32 %v12749_v28, %v9432_v46  ;;  %v9442_v9 = vsel %vm778_vm0, %v18213_v36, 0.0  ;;  %v15152_v28 = vld [vmem:[%s18965_s14 + $0x338] sm:$0xff]   ;;  %v15155_v46 = vld [vmem:[%s18965_s14 + $0x330] sm:$0xff]  }
0x36a7   : > { %9443 = vadd.xlane.f32.xlu0 %v9442_v9  ;;  %v14337_v52 = vpop.f32.mrf.mxu1  ;;  %v15156_v9 = vld [vmem:[%s18965_s14 + $0x3a8] sm:$0xff]  }
0x36a8   : > { %v18218_v24 = vadd.f32 %v9433_v42, %v17939_v29  ;;  %v15157_v42 = vld [vmem:[%s18965_s14 + $0x368] sm:$0xff]  }
0x36a9   : > { %v15158_v52 = vld [vmem:[%s18965_s14 + $0x328] sm:$0xff]  }
0x36aa   : > { %v9445_v56 = vsel %vm778_vm0, %v18218_v24, 0.0 }
0x36ab   : > { %9446 = vadd.xlane.f32.xlu1 %v9445_v56  ;;  %v15160_v56 = vld [vmem:[%s18965_s14 + $0x360] sm:$0xff]  }
0x3730   : > { %v9444_v34 = vpop.xlane.xlu0 %9443 }
0x3731   : > { %v9448_v54 = vmul.f32 0.010416667, %v9444_v34  ;;  %v15159_v34 = vld [vmem:[%s18965_s14 + $0x3a0] sm:$0xff]  }
0x3733   : > { %v18223_v1 = vsub.f32 %v18213_v36, %v9448_v54  ;;  %v15161_v54 = vld [vmem:[%s18965_s14 + $0x320] sm:$0xff]  }
0x3734   : > { %v9447_v57 = vpop.xlane.xlu1 %9446 }
0x3735   : > { %v9449_v11 = vmul.f32 0.010416667, %v9447_v57  ;;  %v9452_v3 = vmul.f32 %v18223_v1, %v18223_v1  ;;  %v15162_v57 = vld [vmem:[%s18965_s14 + $0x398] sm:$0xff]  }
0x3737   : > { %v18228_v31 = vsub.f32 %v18218_v24, %v9449_v11  ;;  %v9454_v29 = vsel %vm778_vm0, %v9452_v3, 0.0  ;;  %v15164_v11 = vld [vmem:[%s18965_s14 + $0x318] sm:$0xff]   ;;  %v15165_v3 = vld [vmem:[%s18965_s14 + $0x390] sm:$0xff]  }
0x3738   : > { %9455 = vadd.xlane.f32.xlu0 %v9454_v29  ;;  %v15167_v29 = vld [vmem:[%s18965_s14 + $0x310] sm:$0xff]  }
0x3739   : > { %v9453_v4 = vmul.f32 %v18228_v31, %v18228_v31 }
0x373b   : > { %v9457_v51 = vsel %vm778_vm0, %v9453_v4, 0.0  ;;  %v15168_v4 = vld [vmem:[%s18965_s14 + $0x388] sm:$0xff]  }
0x373c   : > { %9458 = vadd.xlane.f32.xlu0 %v9457_v51  ;;  %v15169_v51 = vld [vmem:[%s18965_s14 + $0x348] sm:$0xff]  }
0x37c1   : > { %v9456_v17 = vpop.xlane.xlu0 %9455 }
0x37c2   : > { %v9460_v25 = vmul.f32 0.010416667, %v9456_v17 }
0x37c4   : > { %v9462_v6 = vadd.f32 1e-05, %v9460_v25 }
0x37c5   : > { %v9459_v27 = vpop.xlane.xlu0 %9458 }
0x37c6   : > { %15566 = vrsqrt.f32 %v9462_v6  ;;  %v9461_v45 = vmul.f32 0.010416667, %v9459_v27 }
0x37c8   : > { %v9463_v37 = vadd.f32 1e-05, %v9461_v45 }
0x37ca   : > { %15568 = vrsqrt.f32 %v9463_v37 }
0x37d3   : > { %v15567_v39 = vpop.eup %15566 }
0x37d4   : > { %v9466_v5 = vmul.f32 %v15567_v39, %v18223_v1  ;;  %v15163_v1 = vld [vmem:[%s18965_s14 + $0x358] sm:$0xff]  }
0x37d6   : > { %v9474_v58 = vmul.f32 %v12759_v61, %v9466_v5 }
0x37d7   : > { %v15569_v40 = vpop.eup %15568 }
0x37d8   : > { %v9467_v12 = vmul.f32 %v15569_v40, %v18228_v31  ;;  %v9482_v21 = vadd.f32 %v12760_v55, %v9474_v58  ;;  %v15166_v31 = vld [vmem:[%s18965_s14 + $0x350] sm:$0xff]  }
0x37da   : > { %v9475_v41 = vmul.f32 %v12759_v61, %v9467_v12 }
0x37dc   : > { %v9483_v43 = vadd.f32 %v12760_v55, %v9475_v41 }
0x37de   : > { %v9484_v48 = vpack.c.bf16 %v9483_v43, %v9482_v21 }
0x37e0   : > { %12804 = vmatmul.mubr.msk.bf16.vlgmr.msra.gmra.mxu0 %vm778_vm0, %v9484_v48  ;;  %14351 = vmatmul.mubr.msk.bf16.vlgmr.msra.gmra.mxu1 %vm778_vm0, %v9484_v48 }
0x37e1   : > { %14355 = vmatpush3.bf16.msra.mxu1 %v15150_v44  ;;  %13481 = vmatpush3.bf16.msra.mxu0 %v15152_v28  ;;  %v12855_v44 = vld [vmem:[%s18966_s15 + $0x4] ss:$0 sm:$0xff] }
0x37e2   : > { %14356 = vmatprep.subr.bf16.mxu1 %v15693_v22  ;;  %13482 = vmatprep.subr.bf16.mxu0 %v15154_v33 }
0x37e3   : > { %14370 = vmatprep.mubr.msk.bf16.mxu1 %vm15694_vm1, %v15693_v22 }
0x37e5   : > { %14357 = vmatpush3.bf16.msra.mxu1 %v15153_v50  ;;  %13483 = vmatpush3.bf16.msra.mxu0 %v15155_v46 }
0x37e6   : > { %14358 = vmatprep.subr.bf16.mxu1 %v15693_v22  ;;  %13484 = vmatprep.subr.bf16.mxu0 %v15157_v42 }
0x37e9   : > { %14359 = vmatpush3.bf16.msra.mxu1 %v15156_v9  ;;  %13485 = vmatpush3.bf16.msra.mxu0 %v15158_v52 }
0x37ea   : > { %14360 = vmatprep.subr.bf16.mxu1 %v15693_v22  ;;  %13486 = vmatprep.subr.bf16.mxu0 %v15160_v56 }
0x37ed   : > { %14361 = vmatpush3.bf16.msra.mxu1 %v15159_v34  ;;  %13487 = vmatpush3.bf16.msra.mxu0 %v15161_v54 }
0x37ee   : > { %14362 = vmatprep.subr.bf16.mxu1 %v15693_v22  ;;  %13488 = vmatprep.subr.bf16.mxu0 %v15163_v1 }
0x37f1   : > { %14363 = vmatpush3.bf16.msra.mxu1 %v15162_v57  ;;  %13489 = vmatpush3.bf16.msra.mxu0 %v15164_v11 }
0x37f2   : > { %14364 = vmatprep.subr.bf16.mxu1 %v15693_v22  ;;  %13490 = vmatprep.subr.bf16.mxu0 %v15166_v31 }
0x37f5   : > { %14365 = vmatpush3.bf16.msra.mxu1 %v15165_v3  ;;  %13491 = vmatpush3.bf16.msra.mxu0 %v15167_v29 }
0x37f6   : > { %14366 = vmatprep.subr.bf16.mxu1 %v15693_v22  ;;  %13492 = vmatprep.subr.bf16.mxu0 %v15169_v51 }
0x37f9   : > { %14367 = vmatpush3.bf16.msra.mxu1 %v15168_v4  ;;  %13493 = vmatpush3.bf16.msra.mxu0 %v15170_v35 }
0x37fa   : > { %14368 = vmatprep.subr.bf16.mxu1 %v15693_v22  ;;  %13494 = vmatprep.subr.bf16.mxu0 %v15172_v30 }
0x37fd   : > { %14369 = vmatpush3.bf16.msra.mxu1 %v15171_v15  ;;  %13495 = vmatpush3.bf16.msra.mxu0 %v15173_v59  ;;  %v15176_v59 = vld [vmem:[%s18958_s7 + $0x34c] ss:$12 sps:$4 sm:$0xff]  }
0x37fe   : > { %14374 = vmatprep.subr.bf16.mxu1 %v15693_v22  ;;  %10195 = vmatprep.subr.bf16.mxu0 %v15176_v59 }
0x38a0   : > { %v9661_v8 = vpop.f32.mrf.mxu0  ;;  %v9704_v47 = vpop.f32.mrf.mxu1 }
0x38a1   : > { %v9705_v13 = vadd.f32 %v9704_v47, %v9524_v63  ;;  %v9662_v10 = vadd.f32 %v9661_v8, %v9516_v32  ;;  %v15180_v8 = vld [vmem:[%s18958_s7 + $0x334] ss:$12 sps:$4 sm:$0xff]   ;;  %v15178_v47 = vld [vmem:[%s18958_s7 + $0x330] ss:$12 sps:$4 sm:$0xff]  }
0x38a2   : > { %v9663_v19 = vpop.f32.mrf.mxu0  ;;  %v14352_v26 = vpop.f32.mrf.mxu1 }
0x38a3   : > { %v9664_v53 = vadd.f32 %v9663_v19, %v9520_v18  ;;  %v9713_v6 = vmax.f32 %v9705_v13, 0.0  ;;  %v9711_v40 = vmax.f32 %v9662_v10, 0.0  ;;  %v15182_v19 = vld [vmem:[%s18958_s7 + $0x318] ss:$12 sps:$4 sm:$0xff]   ;;  %v15185_v26 = vld [vmem:[%s18958_s7 + $0x320] ss:$12 sps:$4 sm:$0xff]  }
0x38a4   : > { %v9665_v20 = vpop.f32.mrf.mxu0  ;;  %v9707_v62 = vpop.f32.mrf.mxu1  ;;  %v15188_v13 = vld [vmem:[%s18958_s7 + $0x304] ss:$12 sps:$4 sm:$0xff]  }
0x38a5   : > { %v9666_v49 = vadd.f32 %v9665_v20, %v9516_v32  ;;  %v9708_v23 = vadd.f32 %v9707_v62, %v9524_v63  ;;  %v9712_v39 = vmax.f32 %v9664_v53, 0.0  ;;  %v15177_v63 = vld [vmem:[%s18958_s7 + $0x350] ss:$12 sps:$4 sm:$0xff]   ;;  %v15186_v20 = vld [vmem:[%s18958_s7 + $0x300] ss:$12 sps:$4 sm:$0xff]  }
0x38a6   : > { %v9667_v17 = vpop.f32.mrf.mxu0  ;;  %v14353_v25 = vpop.f32.mrf.mxu1  ;;  %v15184_v32 = vld [vmem:[%s18958_s7 + $0x31c] ss:$12 sps:$4 sm:$0xff]   ;;  %v15192_v53 = vld [vmem:[%s18958_s7 + $0x2ec] ss:$12 sps:$4 sm:$0xff]  }
0x38a7   : > { %v9716_v27 = vmax.f32 %v9708_v23, 0.0  ;;  %v9668_v45 = vadd.f32 %v9667_v17, %v9520_v18  ;;  %v9714_v37 = vmax.f32 %v9666_v49, 0.0  ;;  %v15181_v18 = vld [vmem:[%s18958_s7 + $0x338] ss:$12 sps:$4 sm:$0xff]   ;;  %v15189_v62 = vld [vmem:[%s18958_s7 + $0x308] ss:$12 sps:$4 sm:$0xff]  }
0x38a8   : > { %v15190_v49 = vld [vmem:[%s18958_s7 + $0x2e8] ss:$12 sps:$4 sm:$0xff]   ;;  %v15193_v23 = vld [vmem:[%s18958_s7 + $0x2f0] ss:$12 sps:$4 sm:$0xff]   ;;  %v15197_v25 = vld [vmem:[%s18958_s7 + $0x2d8] ss:$12 sps:$4 sm:$0xff]  }
0x38a9   : > { %v9719_v5 = vpack.c.bf16 %v9716_v27, %v9713_v6  ;;  %v9715_v61 = vmax.f32 %v9668_v45, 0.0  ;;  %v9717_v12 = vpack.c.bf16 %v9714_v37, %v9711_v40  ;;  %v15194_v10 = vld [vmem:[%s18958_s7 + $0x2d0] ss:$12 sps:$4 sm:$0xff]   ;;  %v15196_v17 = vld [vmem:[%s18958_s7 + $0x2d4] ss:$12 sps:$4 sm:$0xff]  }
0x38ab   : > { %v9718_v58 = vpack.c.bf16 %v9715_v61, %v9712_v39  ;;  %14371 = vmatmul.mubr.bf16.vlgmr.msra.gmra.mxu1 %v9719_v5 }
0x38ac   : > { %14386 = vmatprep.mubr.msk.bf16.mxu1 %vm15694_vm1, %v15693_v22  ;;  %14375 = vmatpush3.bf16.msra.mxu1 %v15177_v63 }
0x38ad   : > { %9953 = vmatprep.mubr.bf16.mxu0 %v9718_v58  ;;  %14376 = vmatprep.subr.bf16.mxu1 %v15693_v22  ;;  %v12882_v58 = vld [vmem:[%s18956_s5 + $0x5] ss:$0 sm:$0xff] }
0x38ae   : > { %9954 = vmatmul.mubr.bf16.vlgmr.msra.gmra.mxu0 %v9717_v12 }
0x38af   : > { %10223 = vmatprep.mubr.bf16.mxu0 %v15692_v2  ;;  %10196 = vmatpush1.bf16.msra.mxu0 %v15174_v7 }
0x38b0   : > { %10197 = vmatprep.subr.bf16.mxu0 %v15180_v8  ;;  %14377 = vmatpush3.bf16.msra.mxu1 %v15181_v18 }
0x38b1   : > { %14378 = vmatprep.subr.bf16.mxu1 %v15693_v22 }
0x38b3   : > { %10198 = vmatpush1.bf16.msra.mxu0 %v15178_v47 }
0x38b4   : > { %10199 = vmatprep.subr.bf16.mxu0 %v15184_v32  ;;  %14379 = vmatpush3.bf16.msra.mxu1 %v15185_v26 }
0x38b5   : > { %14380 = vmatprep.subr.bf16.mxu1 %v15693_v22 }
0x38b7   : > { %10200 = vmatpush1.bf16.msra.mxu0 %v15182_v19 }
0x38b8   : > { %10201 = vmatprep.subr.bf16.mxu0 %v15188_v13  ;;  %14381 = vmatpush3.bf16.msra.mxu1 %v15189_v62 }
0x38b9   : > { %14382 = vmatprep.subr.bf16.mxu1 %v15693_v22 }
0x38bb   : > { %10202 = vmatpush1.bf16.msra.mxu0 %v15186_v20 }
0x38bc   : > { %10203 = vmatprep.subr.bf16.mxu0 %v15192_v53  ;;  %14383 = vmatpush3.bf16.msra.mxu1 %v15193_v23 }
0x38bd   : > { %14384 = vmatprep.subr.bf16.mxu1 %v15693_v22 }
0x38bf   : > { %10204 = vmatpush1.bf16.msra.mxu0 %v15190_v49 }
0x38c0   : > { %10205 = vmatprep.subr.bf16.mxu0 %v15196_v17  ;;  %14385 = vmatpush3.bf16.msra.mxu1 %v15197_v25 }
0x38c1   : > { %14408 = vmatprep.subr.bf16.mxu1 %v15693_v22 }
0x38c3   : > { %10206 = vmatpush1.bf16.msra.mxu0 %v15194_v10 }
0x38c4   : > { %14390 = vmatprep.subr.bf16.mxu0 %v15693_v22 }
0x396b   : > { %v9996_v55 = vpop.f32.mrf.mxu1 }
0x396d   : > { %v14372_v41 = vpop.f32.mrf.mxu1 }
0x396e   : > { %v13496_v21 = vpop.f32.mrf.mxu0 }
0x396f   : > { %v9999_v43 = vpop.f32.mrf.mxu1 }
0x3970   : > { %v13497_v28 = vpop.f32.mrf.mxu0 }
0x3971   : > { %v13498_v48 = vadd.f32 %v13497_v28, %v13496_v21  ;;  %v14373_v33 = vpop.f32.mrf.mxu1  ;;  %v12883_v21 = vld [vmem:[%s18957_s6 + $0x5] ss:$0 sm:$0xff] }
0x3972   : > { %v13499_v50 = vpop.f32.mrf.mxu0 }
0x3973   : > { %v9956_v46 = vadd.f32 %v13498_v48, %v12855_v44 }
0x3974   : > { %v13500_v42 = vpop.f32.mrf.mxu0 }
0x3975   : > { %v9997_v9 = vadd.f32 %v9996_v55, %v9956_v46  ;;  %v13501_v52 = vadd.f32 %v13500_v42, %v13499_v50 }
0x3977   : > { %v9959_v56 = vadd.f32 %v13501_v52, %v12855_v44  ;;  %v18399_v34 = vadd.f32 %v9997_v9, %v18213_v36 }
0x3979   : > { %v10000_v54 = vadd.f32 %v9999_v43, %v9959_v56  ;;  %v10009_v1 = vsel %vm778_vm0, %v18399_v34, 0.0 }
0x397a   : > { %10010 = vadd.xlane.f32.xlu1 %v10009_v1 }
0x397b   : > { %v18404_v57 = vadd.f32 %v10000_v54, %v18218_v24 }
0x397d   : > { %v10012_v11 = vsel %vm778_vm0, %v18404_v57, 0.0 }
0x397e   : > { %10013 = vadd.xlane.f32.xlu0 %v10012_v11 }
0x3a03   : > { %v10011_v3 = vpop.xlane.xlu1 %10010 }
0x3a04   : > { %v10015_v31 = vmul.f32 0.010416667, %v10011_v3 }
0x3a06   : > { %v10017_v29 = vsub.f32 %v18399_v34, %v10015_v31 }
0x3a07   : > { %v10014_v4 = vpop.xlane.xlu0 %10013 }
0x3a08   : > { %v10016_v51 = vmul.f32 0.010416667, %v10014_v4  ;;  %v10019_v36 = vmul.f32 %v10017_v29, %v10017_v29 }
0x3a0a   : > { %v10018_v35 = vsub.f32 %v18404_v57, %v10016_v51  ;;  %v10021_v15 = vsel %vm778_vm0, %v10019_v36, 0.0 }
0x3a0b   : > { %10022 = vadd.xlane.f32.xlu1 %v10021_v15 }
0x3a0c   : > { %v10020_v30 = vmul.f32 %v10018_v35, %v10018_v35 }
0x3a0e   : > { %v10024_v24 = vsel %vm778_vm0, %v10020_v30, 0.0 }
0x3a0f   : > { %10025 = vadd.xlane.f32.xlu0 %v10024_v24 }
0x3a94   : > { %v10023_v6 = vpop.xlane.xlu1 %10022 }
0x3a95   : > { %v10027_v27 = vmul.f32 0.010416667, %v10023_v6 }
0x3a97   : > { %v10029_v45 = vadd.f32 1e-05, %v10027_v27 }
0x3a98   : > { %v10026_v37 = vpop.xlane.xlu0 %10025 }
0x3a99   : > { %15570 = vrsqrt.f32 %v10029_v45  ;;  %v10028_v39 = vmul.f32 0.010416667, %v10026_v37 }
0x3a9b   : > { %v10030_v5 = vadd.f32 1e-05, %v10028_v39 }
0x3a9d   : > { %15572 = vrsqrt.f32 %v10030_v5 }
0x3aa6   : > { %v15571_v61 = vpop.eup %15570 }
0x3aa7   : > { %v10033_v40 = vmul.f32 %v15571_v61, %v10017_v29 }
0x3aa9   : > { %v10041_v55 = vmul.f32 %v12882_v58, %v10033_v40 }
0x3aaa   : > { %v15573_v12 = vpop.eup %15572 }
0x3aab   : > { %v10034_v41 = vmul.f32 %v15573_v12, %v10018_v35  ;;  %v10049_v44 = vadd.f32 %v12883_v21, %v10041_v55 }
0x3aad   : > { %v10042_v43 = vmul.f32 %v12882_v58, %v10034_v41 }
0x3aaf   : > { %v10050_v28 = vadd.f32 %v12883_v21, %v10042_v43 }
0x3ab1   : > { %v10091_v48 = vpack.c.bf16 %v10050_v28, %v10049_v44 }
0x3ab3   : > { %12939 = vmatmul.mubr.msk.bf16.vlgmr.msra.gmra.mxu0 %vm778_vm0, %v10091_v48  ;;  %14387 = vmatmul.mubr.msk.bf16.vlgmr.msra.gmra.mxu1 %vm778_vm0, %v10091_v48 }
0x3ab4   : > { %14392 = vmatprep.mubr.msk.bf16.mxu0 %vm15694_vm1, %v15693_v22  ;;  %14410 = vmatprep.mubr.msk.bf16.mxu1 %vm15694_vm1, %v15693_v22 }
0x3b73   : > { %v10225_v33 = vpop.f32.mrf.mxu0  ;;  %v10268_v50 = vpop.f32.mrf.mxu1 }
0x3b74   : > { %v10275_v3 = vmul.f32 0.10206208, %v10225_v33 }
0x3b75   : > { %v10227_v46 = vpop.f32.mrf.mxu0  ;;  %v14388_v42 = vpop.f32.mrf.mxu1 }
0x3b77   : > { %v10229_v9 = vpop.f32.mrf.mxu0  ;;  %v10271_v52 = vpop.f32.mrf.mxu1 }
0x3b78   : > { %v10278_v56 = vpack.c.bf16 %v10229_v9, %v10225_v33  ;;  %v18485_v54 = vpack.c.bf16 %v10271_v52, %v10268_v50  ;;  %v10276_v11 = vmul.f32 0.10206208, %v10229_v9 }
0x3b79   : > { %v14389_v1 = vpop.f32.mrf.mxu1  ;;  %v10231_v29 = vpop.f32.mrf.mxu0 }
0x3b7a   : > { %10281 = vrot.lane.b32.xlu1 %v10278_v56, %s19030_s30  ;;  %v10277_v31 = vpack.c.bf16 %v10276_v11, %v10275_v3  ;;  %v18491_v4 = vpack.c.bf16 %v10231_v29, %v10227_v46 }
0x3b7c   : > { %v10529_v6 = vsel %vm922_vm6, %v18491_v4, 0 }
0x3b7e   : > { %10404 = vrot.lane.b32.xlu1 %v10278_v56, %s19031_s19 }
0x3b82   : > { %10402 = vrot.lane.b32.xlu1 %v10277_v31, %s19032_s23 }
0x3b86   : > { %10523 = vrot.lane.b32.xlu1 %v10277_v31, %s19033_s0 }
0x3b8a   : > { %10644 = vrot.lane.b32.xlu1 %v18491_v4, %s19032_s23 }
0x3b8e   : > { %10766 = vrot.lane.b32.xlu1 %v18491_v4, %s19033_s0  ;;  %s19034_s0 = sld [smem:[#allocation8_spill]] }
0x3b92   : > { %10884 = vrot.lane.b32.xlu1 %v18491_v4, %s19027_s20 }
0x3bec   : > { %v10282_v51 = vpop.permute.xlu1 %10281 }
0x3bed   : > { %v10287_v36 = vsel %vm922_vm6, %v10282_v51, 0 }
0x3bee   : > { %14391 = vmatpush3.bf16.xpose.msra.mxu0 %v10287_v36 }
0x3bef   : > { %14396 = vmatprep.subr.bf16.mxu0 %v15693_v22 }
0x3bf0   : > { %v10405_v62 = vpop.permute.xlu1 %10404 }
0x3bf1   : > { %v10410_v10 = vsel %vm922_vm6, %v10405_v62, 0 }
0x3bf4   : > { %v10403_v17 = vpop.permute.xlu1 %10402 }
0x3bf5   : > { %14393 = vmatmul.mubr.msk.bf16.vlgmr.msra.gmra.mxu0 %vm922_vm6, %v10277_v31 }
0x3bf6   : > { %14398 = vmatprep.mubr.msk.bf16.mxu0 %vm15694_vm1, %v15693_v22 }
0x3bf8   : > { %v10524_v25 = vpop.permute.xlu1 %10523 }
0x3bfc   : > { %v10645_v27 = vpop.permute.xlu1 %10644 }
0x3bfd   : > { %v10650_v45 = vsel %vm922_vm6, %v10645_v27, 0 }
0x3c00   : > { %v10767_v37 = vpop.permute.xlu1 %10766 }
0x3c01   : > { %v10772_v5 = vsel %vm922_vm6, %v10767_v37, 0 }
0x3c04   : > { %v10885_v61 = vpop.permute.xlu1 %10884 }
0x3c05   : > { %v10890_v58 = vsel %vm922_vm6, %v10885_v61, 0 }
0x3cb5   : > { %v10323_v35 = vpop.f32.mrf.mxu0 }
0x3cb6   : > { %v10324_v15 = vadd.f32 %v10323_v35, %v15985_v60 }
0x3cb7   : > { %v14394_v30 = vpop.f32.mrf.mxu0 }
0x3cb8   : > { %v10330_v24 = vsel %vm922_vm6, %v10324_v15, -inf }
0x3cb9   : > { %10331 = vmax.xlane.f32.xlu0 %v10330_v24  ;;  %v10326_v59 = vpop.f32.mrf.mxu0 }
0x3cba   : > { %v10327_v7 = vadd.f32 %v10326_v59, %v15988_v0 }
0x3cbb   : > { %v14395_v63 = vpop.f32.mrf.mxu0 }
0x3cbc   : > { %v10333_v8 = vsel %vm922_vm6, %v10327_v7, -inf }
0x3cbd   : > { %10334 = vmax.xlane.f32.xlu0 %v10333_v8 }
0x3cd3   : > { %10352 = vrot.lane.b32.xlu0 %v18491_v4, %s19028_s17 }
0x3cd7   : > { %10642 = vrot.lane.b32.xlu0 %v10277_v31, %s19027_s20 }
0x3cdb   : > { %10764 = vrot.lane.b32.xlu0 %v10277_v31, %s19028_s17 }
0x3cdf   : > { %10882 = vrot.lane.b32.xlu0 %v10277_v31, %s19029_s4 }
0x3d42   : > { %v10332_v47 = vpop.xlane.xlu0 %10331 }
0x3d43   : > { %v10336_v18 = vsub.f32 %v10324_v15, %v10332_v47 }
0x3d45   : > { %v10338_v32 = vmul.f32 1.442695, %v10336_v18 }
0x3d46   : > { %v10335_v19 = vpop.xlane.xlu0 %10334 }
0x3d47   : > { %v10337_v26 = vsub.f32 %v10327_v7, %v10335_v19  ;;  %15574 = vpow2.f32 %v10338_v32 }
0x3d49   : > { %v10340_v13 = vmul.f32 1.442695, %v10337_v26 }
0x3d4a   : > { %v10353_v20 = vpop.permute.xlu0 %10352 }
0x3d4b   : > { %15576 = vpow2.f32 %v10340_v13  ;;  %14397 = vmatpush3.bf16.msra.mxu0 %v10353_v20 }
0x3d4c   : > { %14402 = vmatprep.subr.bf16.mxu0 %v15693_v22 }
0x3d4e   : > { %v10643_v39 = vpop.permute.xlu0 %10642 }
0x3d52   : > { %v10765_v40 = vpop.permute.xlu0 %10764 }
0x3d54   : > { %v18514_v53 = vpop.eup %15574 }
0x3d56   : > { %v10883_v12 = vpop.permute.xlu0 %10882 }
0x3d58   : > { %v18516_v49 = vpop.eup %15576 }
0x3d59   : > { %v10350_v23 = vpack.c.bf16 %v18516_v49, %v18514_v53 }
0x3d5b   : > { %14399 = vmatmul.mubr.msk.bf16.vlgmr.msra.gmra.mxu0 %vm922_vm6, %v10350_v23 }
0x3d5c   : > { %14403 = vmatpush3.bf16.xpose.msra.mxu0 %v10410_v10  ;;  %14404 = vmatprep.mubr.msk.bf16.mxu0 %vm15694_vm1, %v15693_v22 }
0x3d5d   : > { %14414 = vmatprep.subr.bf16.mxu0 %v15693_v22 }
0x3d63   : > { %14405 = vmatmul.mubr.msk.bf16.vlgmr.msra.gmra.mxu0 %vm922_vm6, %v10403_v17 }
0x3d64   : > { %14415 = vmatpush3.bf16.xpose.msra.mxu0 %v10529_v6  ;;  %14416 = vmatprep.mubr.msk.bf16.mxu0 %vm15694_vm1, %v15693_v22 }
0x3d65   : > { %14426 = vmatprep.subr.bf16.mxu0 %v15693_v22 }
0x3d6b   : > { %14417 = vmatmul.mubr.msk.bf16.vlgmr.msra.gmra.mxu0 %vm922_vm6, %v10524_v25 }
0x3d6c   : > { %14427 = vmatpush3.bf16.xpose.msra.mxu0 %v10650_v45  ;;  %14428 = vmatprep.mubr.msk.bf16.mxu0 %vm15694_vm1, %v15693_v22 }
0x3d6d   : > { %14438 = vmatprep.subr.bf16.mxu0 %v15693_v22 }
0x3d73   : > { %14429 = vmatmul.mubr.msk.bf16.vlgmr.msra.gmra.mxu0 %vm922_vm6, %v10643_v39 }
0x3d74   : > { %14439 = vmatpush3.bf16.xpose.msra.mxu0 %v10772_v5  ;;  %14440 = vmatprep.mubr.msk.bf16.mxu0 %vm15694_vm1, %v15693_v22 }
0x3d75   : > { %14450 = vmatprep.subr.bf16.mxu0 %v15693_v22 }
0x3d7b   : > { %14441 = vmatmul.mubr.msk.bf16.vlgmr.msra.gmra.mxu0 %vm922_vm6, %v10765_v40 }
0x3d7c   : > { %14451 = vmatpush3.bf16.xpose.msra.mxu0 %v10890_v58  ;;  %14452 = vmatprep.mubr.msk.bf16.mxu0 %vm15694_vm1, %v15693_v22 }
0x3d7d   : > { %14462 = vmatprep.subr.bf16.mxu0 %v15693_v22 }
0x3d83   : > { %14453 = vmatmul.mubr.msk.bf16.vlgmr.msra.gmra.mxu0 %vm922_vm6, %v10883_v12 }
0x3d84   : > { %14474 = vmatprep.mubr.msk.bf16.mxu0 %vm15694_vm1, %v15693_v22 }
0x3e1b   : > { %v18549_v55 = vpop.f32.mrf.mxu0 }
0x3e1d   : > { %v14400_v41 = vpop.f32.mrf.mxu0 }
0x3e1f   : > { %v18551_v21 = vpop.f32.mrf.mxu0 }
0x3e21   : > { %v14401_v43 = vpop.f32.mrf.mxu0 }
0x3e23   : > { %v10446_v44 = vpop.f32.mrf.mxu0 }
0x3e24   : > { %v10447_v28 = vadd.f32 %v10446_v44, %v15985_v60 }
0x3e25   : > { %v14406_v48 = vpop.f32.mrf.mxu0 }
0x3e26   : > { %v10453_v33 = vsel %vm922_vm6, %v10447_v28, -inf }
0x3e27   : > { %10454 = vmax.xlane.f32.xlu1 %v10453_v33  ;;  %v10449_v50 = vpop.f32.mrf.mxu0 }
0x3e28   : > { %v10450_v46 = vadd.f32 %v10449_v50, %v15988_v0 }
0x3e29   : > { %v14407_v42 = vpop.f32.mrf.mxu0 }
0x3e2a   : > { %v10456_v9 = vsel %vm922_vm6, %v10450_v46, -inf }
0x3e2b   : > { %10457 = vmax.xlane.f32.xlu0 %v10456_v9  ;;  %v10565_v52 = vpop.f32.mrf.mxu0 }
0x3e2c   : > { %v18573_v10 = vadd.f32 %v10565_v52, %v15985_v60 }
0x3e2d   : > { %v14418_v56 = vpop.f32.mrf.mxu0 }
0x3e2e   : > { %v10572_v25 = vsel %vm922_vm6, %v18573_v10, -inf }
0x3e2f   : > { %v10568_v1 = vpop.f32.mrf.mxu0 }
0x3e30   : > { %v10569_v11 = vadd.f32 %v10568_v1, %v15988_v0 }
0x3e31   : > { %v14419_v3 = vpop.f32.mrf.mxu0 }
0x3e32   : > { %v10575_v31 = vsel %vm922_vm6, %v10569_v11, -inf }
0x3e33   : > { %10576 = vmax.xlane.f32.xlu1 %v10575_v31  ;;  %v10686_v29 = vpop.f32.mrf.mxu0 }
0x3e34   : > { %v18578_v17 = vadd.f32 %v10686_v29, %v15985_v60 }
0x3e35   : > { %v14430_v51 = vpop.f32.mrf.mxu0 }
0x3e37   : > { %v10689_v36 = vpop.f32.mrf.mxu0 }
0x3e38   : > { %v10690_v35 = vadd.f32 %v10689_v36, %v15988_v0 }
0x3e39   : > { %v14431_v15 = vpop.f32.mrf.mxu0 }
0x3e3a   : > { %v10696_v30 = vsel %vm922_vm6, %v10690_v35, -inf }
0x3e3b   : > { %10697 = vmax.xlane.f32.xlu1 %v10696_v30  ;;  %v10808_v24 = vpop.f32.mrf.mxu0 }
0x3e3c   : > { %v18583_v6 = vadd.f32 %v10808_v24, %v15985_v60 }
0x3e3d   : > { %v14442_v59 = vpop.f32.mrf.mxu0 }
0x3e3e   : > { %v10815_v27 = vsel %vm922_vm6, %v18583_v6, -inf }
0x3e3f   : > { %v10811_v7 = vpop.f32.mrf.mxu0 }
0x3e40   : > { %v10812_v63 = vadd.f32 %v10811_v7, %v15988_v0 }
0x3e41   : > { %10474 = vrot.lane.b32.xlu0 %v18491_v4, %s19029_s4  ;;  %v14443_v8 = vpop.f32.mrf.mxu0 }
0x3e42   : > { %v10818_v47 = vsel %vm922_vm6, %v10812_v63, -inf  ;;  %v10345_v8 = vsel %vm922_vm6, %v18516_v49, 0.0 }
0x3e43   : > { %10819 = vmax.xlane.f32.xlu1 %v10818_v47  ;;  %v10926_v18 = vpop.f32.mrf.mxu0 }
0x3e44   : > { %v18566_v32 = vadd.f32 %v10926_v18, %v15985_v60 }
0x3e45   : > { %v14454_v19 = vpop.f32.mrf.mxu0 }
0x3e46   : > { %v10933_v26 = vsel %vm922_vm6, %v18566_v32, -inf }
0x3e47   : > { %10934 = vmax.xlane.f32.xlu1 %v10933_v26  ;;  %v10929_v13 = vpop.f32.mrf.mxu0 }
0x3e48   : > { %v10930_v20 = vadd.f32 %v10929_v13, %v15988_v0  ;;  %v10693_v0 = vsel %vm922_vm6, %v18578_v17, -inf }
0x3e49   : > { %v14455_v62 = vpop.f32.mrf.mxu0 }
0x3e4a   : > { %v10936_v23 = vsel %vm922_vm6, %v10930_v20, -inf }
0x3e4b   : > { %10937 = vmax.xlane.f32.xlu1 %v10936_v23 }
0x3e5c   : > { %10593 = vrot.lane.b32.xlu1 %v18491_v4, %s19030_s30 }
0x3e60   : > { %10573 = vmax.xlane.f32.xlu0 %v10572_v25 }
0x3e64   : > { %10694 = vmax.xlane.f32.xlu0 %v10693_v0 }
0x3e68   : > { %10816 = vmax.xlane.f32.xlu0 %v10815_v27 }
0x3e7e   : > { %10714 = vrot.lane.b32.xlu0 %v18491_v4, %s19031_s19 }
0x3e82   : > { %10955 = vrot.lane.b32.xlu0 %v18485_v54, %s19032_s23 }
0x3eb0   : > { %v10455_v45 = vpop.xlane.xlu1 %10454 }
0x3eb1   : > { %v10459_v37 = vsub.f32 %v10447_v28, %v10455_v45 }
0x3eb3   : > { %v10461_v39 = vmul.f32 1.442695, %v10459_v37 }
0x3eb4   : > { %v10458_v5 = vpop.xlane.xlu0 %10457 }
0x3eb5   : > { %15578 = vpow2.f32 %v10461_v39  ;;  %v10460_v60 = vsub.f32 %v10450_v46, %v10458_v5 }
0x3eb7   : > { %v10463_v61 = vmul.f32 1.442695, %v10460_v60 }
0x3eb8   : > { %v10475_v40 = vpop.permute.xlu0 %10474 }
0x3eb9   : > { %15580 = vpow2.f32 %v10463_v61  ;;  %14409 = vmatpush3.bf16.msra.mxu1 %v10475_v40  ;;  %v10342_v61 = vsel %vm922_vm6, %v18514_v53, 0.0 }
0x3eba   : > { %14420 = vmatprep.subr.bf16.mxu1 %v15693_v22 }
0x3ebc   : > { %v10577_v58 = vpop.xlane.xlu1 %10576 }
0x3ebd   : > { %v10579_v12 = vsub.f32 %v10569_v11, %v10577_v58 }
0x3ebf   : > { %v10582_v41 = vmul.f32 1.442695, %v10579_v12 }
0x3ec1   : > { %15582 = vpow2.f32 %v10582_v41 }
0x3ec2   : > { %v15579_v4 = vpop.eup %15578 }
0x3ec3   : > { %v10465_v43 = vsel %vm922_vm6, %v15579_v4, 0.0 }
0x3ec4   : > { %v10698_v44 = vpop.xlane.xlu1 %10697  ;;  %10466 = vadd.xlane.f32.xlu1 %v10465_v43 }
0x3ec5   : > { %v10700_v28 = vsub.f32 %v10690_v35, %v10698_v44 }
0x3ec6   : > { %v15581_v48 = vpop.eup %15580 }
0x3ec7   : > { %v10473_v33 = vpack.c.bf16 %v15581_v48, %v15579_v4  ;;  %v10703_v50 = vmul.f32 1.442695, %v10700_v28  ;;  %v10468_v46 = vsel %vm922_vm6, %v15581_v48, 0.0 }
0x3ec8   : > { %10469 = vadd.xlane.f32.xlu0 %v10468_v46 }
0x3ec9   : > { %15584 = vpow2.f32 %v10703_v50  ;;  %14411 = vmatmul.mubr.msk.bf16.vlgmr.msra.gmra.mxu1 %vm922_vm6, %v10473_v33 }
0x3eca   : > { %14422 = vmatprep.mubr.msk.bf16.mxu1 %vm15694_vm1, %v15693_v22 }
0x3ecc   : > { %v10820_v42 = vpop.xlane.xlu1 %10819 }
0x3ecd   : > { %v10822_v9 = vsub.f32 %v10812_v63, %v10820_v42 }
0x3ece   : > { %v15583_v52 = vpop.eup %15582 }
0x3ecf   : > { %v10825_v56 = vmul.f32 1.442695, %v10822_v9  ;;  %v10587_v1 = vsel %vm922_vm6, %v15583_v52, 0.0 }
0x3ed0   : > { %v10935_v11 = vpop.xlane.xlu1 %10934  ;;  %10588 = vadd.xlane.f32.xlu1 %v10587_v1 }
0x3ed1   : > { %15586 = vpow2.f32 %v10825_v56  ;;  %v10939_v26 = vsub.f32 %v18566_v32, %v10935_v11 }
0x3ed3   : > { %v10941_v23 = vmul.f32 1.442695, %v10939_v26 }
0x3ed4   : > { %v10938_v3 = vpop.xlane.xlu1 %10937 }
0x3ed5   : > { %v10940_v31 = vsub.f32 %v10930_v20, %v10938_v3 }
0x3ed6   : > { %v15585_v29 = vpop.eup %15584 }
0x3ed7   : > { %v10943_v51 = vmul.f32 1.442695, %v10940_v31  ;;  %v10708_v36 = vsel %vm922_vm6, %v15585_v29, 0.0 }
0x3ed8   : > { %10709 = vadd.xlane.f32.xlu1 %v10708_v36  ;;  %v10594_v35 = vpop.permute.xlu1 %10593 }
0x3ed9   : > { %15588 = vpow2.f32 %v10943_v51  ;;  %14421 = vmatpush3.bf16.msra.mxu1 %v10594_v35 }
0x3eda   : > { %14432 = vmatprep.subr.bf16.mxu1 %v15693_v22 }
0x3ede   : > { %v15587_v15 = vpop.eup %15586 }
0x3edf   : > { %v10830_v30 = vsel %vm922_vm6, %v15587_v15, 0.0 }
0x3ee0   : > { %10831 = vadd.xlane.f32.xlu1 %v10830_v30 }
0x3ee6   : > { %v15589_v24 = vpop.eup %15588 }
0x3ee7   : > { %v10948_v59 = vsel %vm922_vm6, %v15589_v24, 0.0 }
0x3ee8   : > { %10949 = vadd.xlane.f32.xlu1 %v10948_v59  ;;  %v15200_v59 = vld [vmem:[%s18959_s8 + $0x108] sm:$0xff]  }
0x3ee9   : > { %v10574_v7 = vpop.xlane.xlu0 %10573 }
0x3eea   : > { %v10578_v63 = vsub.f32 %v18573_v10, %v10574_v7 }
0x3eec   : > { %v10580_v47 = vmul.f32 1.442695, %v10578_v63  ;;  %10346 = vadd.xlane.f32.xlu1 %v10345_v8 }
0x3eed   : > { %v10695_v18 = vpop.xlane.xlu0 %10694 }
0x3eee   : > { %15590 = vpow2.f32 %v10580_v47  ;;  %v10699_v19 = vsub.f32 %v18578_v17, %v10695_v18 }
0x3ef0   : > { %v10701_v13 = vmul.f32 1.442695, %v10699_v19 }
0x3ef1   : > { %v10817_v20 = vpop.xlane.xlu0 %10816 }
0x3ef2   : > { %15592 = vpow2.f32 %v10701_v13  ;;  %v10821_v62 = vsub.f32 %v18583_v6, %v10817_v20 }
0x3ef4   : > { %v10823_v25 = vmul.f32 1.442695, %v10821_v62  ;;  %v15201_v62 = vld [vmem:[%s18959_s8 + $0x100] sm:$0xff]  }
0x3ef5   : > { %v10715_v27 = vpop.permute.xlu0 %10714 }
0x3ef6   : > { %15594 = vpow2.f32 %v10823_v25 }
0x3ef7   : > { %15596 = vpow2.f32 %v10941_v23 }
0x3ef9   : > { %v10956_v40 = vpop.permute.xlu0 %10955 }
0x3efb   : > { %v15591_v10 = vpop.eup %15590 }
0x3efc   : > { %v10592_v0 = vpack.c.bf16 %v15583_v52, %v15591_v10  ;;  %v10584_v49 = vsel %vm922_vm6, %v15591_v10, 0.0  ;;  %v15198_v52 = vld [vmem:[%s18959_s8 + $0x118] sm:$0xff]  }
0x3efd   : > { %10585 = vadd.xlane.f32.xlu0 %v10584_v49  ;;  %14463 = vmatpush3.bf16.msra.mxu0 %v15198_v52  ;;  %v15202_v10 = vld [vmem:[%s18959_s8 + $0xf8] sm:$0xff]  }
0x3efe   : > { %14423 = vmatmul.mubr.msk.bf16.vlgmr.msra.gmra.mxu1 %vm922_vm6, %v10592_v0  ;;  %14464 = vmatprep.subr.bf16.mxu0 %v15693_v22 }
0x3eff   : > { %v15593_v17 = vpop.eup %15592  ;;  %14433 = vmatpush3.bf16.msra.mxu1 %v10715_v27  ;;  %14434 = vmatprep.mubr.msk.bf16.mxu1 %vm15694_vm1, %v15693_v22 }
0x3f00   : > { %v10705_v32 = vsel %vm922_vm6, %v15593_v17, 0.0  ;;  %14444 = vmatprep.subr.bf16.mxu1 %v15693_v22  ;;  %v10713_v45 = vpack.c.bf16 %v15585_v29, %v15593_v17 }
0x3f01   : > { %10706 = vadd.xlane.f32.xlu0 %v10705_v32 }
0x3f03   : > { %v15595_v6 = vpop.eup %15594 }
0x3f04   : > { %v10827_v37 = vsel %vm922_vm6, %v15595_v6, 0.0  ;;  %v15597_v39 = vpop.eup %15596  ;;  %v10835_v60 = vpack.c.bf16 %v15587_v15, %v15595_v6  ;;  %v15199_v15 = vld [vmem:[%s18959_s8 + $0x110] sm:$0xff]  }
0x3f05   : > { %10828 = vadd.xlane.f32.xlu0 %v10827_v37  ;;  %v10945_v5 = vsel %vm922_vm6, %v15597_v39, 0.0  ;;  %14465 = vmatpush3.bf16.msra.mxu0 %v15199_v15  ;;  %v15203_v37 = vld [vmem:[%s18959_s8 + $0xf0] sm:$0xff]  }
0x3f06   : > { %14435 = vmatmul.mubr.msk.bf16.vlgmr.msra.gmra.mxu1 %vm922_vm6, %v10713_v45  ;;  %14466 = vmatprep.subr.bf16.mxu0 %v15693_v22 }
0x3f07   : > { %14445 = vmatpush3.bf16.msra.mxu1 %v18485_v54  ;;  %14446 = vmatprep.mubr.msk.bf16.mxu1 %vm15694_vm1, %v15693_v22  ;;  %v10953_v54 = vpack.c.bf16 %v15589_v24, %v15597_v39 }
0x3f08   : > { %14456 = vmatprep.subr.bf16.mxu1 %v15693_v22 }
0x3f09   : > { %10946 = vadd.xlane.f32.xlu0 %v10945_v5  ;;  %14467 = vmatpush3.bf16.msra.mxu0 %v15200_v59 }
0x3f0a   : > { %14468 = vmatprep.subr.bf16.mxu0 %v15693_v22 }
0x3f0d   : > { %10343 = vadd.xlane.f32.xlu0 %v10342_v61  ;;  %14469 = vmatpush3.bf16.msra.mxu0 %v15201_v62 }
0x3f0e   : > { %14447 = vmatmul.mubr.msk.bf16.vlgmr.msra.gmra.mxu1 %vm922_vm6, %v10835_v60  ;;  %14470 = vmatprep.subr.bf16.mxu0 %v15693_v22 }
0x3f0f   : > { %14457 = vmatpush3.bf16.msra.mxu1 %v10956_v40  ;;  %14458 = vmatprep.mubr.msk.bf16.mxu1 %vm15694_vm1, %v15693_v22 }
0x3f11   : > { %14471 = vmatpush3.bf16.msra.mxu0 %v15202_v10 }
0x3f12   : > { %14472 = vmatprep.subr.bf16.mxu0 %v15693_v22 }
0x3f15   : > { %14473 = vmatpush3.bf16.msra.mxu0 %v15203_v37 }
0x3f16   : > { %14459 = vmatmul.mubr.msk.bf16.vlgmr.msra.gmra.mxu1 %vm922_vm6, %v10953_v54  ;;  %14478 = vmatprep.subr.bf16.mxu0 %v15693_v22 }
0x3f17   : > { %11364 = vmatprep.mubr.bf16.mxu1 %v15692_v2 }
0x3f4d   : > { %v10467_v58 = vpop.xlane.xlu1 %10466 }
0x3f4e   : > { %15598 = vrcp.f32 %v10467_v58 }
0x3f51   : > { %v10470_v12 = vpop.xlane.xlu0 %10469 }
0x3f52   : > { %15600 = vrcp.f32 %v10470_v12 }
0x3f59   : > { %v10589_v46 = vpop.xlane.xlu1 %10588 }
0x3f5a   : > { %15602 = vrcp.f32 %v10589_v46 }
0x3f5b   : > { %v15599_v53 = vpop.eup %15598 }
0x3f5f   : > { %v15601_v43 = vpop.eup %15600 }
0x3f61   : > { %v10710_v2 = vpop.xlane.xlu1 %10709 }
0x3f67   : > { %v15603_v11 = vpop.eup %15602 }
0x3f69   : > { %v10832_v3 = vpop.xlane.xlu1 %10831 }
0x3f71   : > { %v10950_v47 = vpop.xlane.xlu1 %10949 }
0x3f86   : > { %v10586_v42 = vpop.xlane.xlu0 %10585 }
0x3f87   : > { %15604 = vrcp.f32 %v10586_v42 }
0x3f88   : > { %15606 = vrcp.f32 %v10710_v2 }
0x3f89   : > { %v10514_v41 = vpop.f32.mrf.mxu1 }
0x3f8a   : > { %v10521_v28 = vmul.f32 %v15599_v53, %v10514_v41  ;;  %v10707_v9 = vpop.xlane.xlu0 %10706 }
0x3f8b   : > { %v14412_v4 = vpop.f32.mrf.mxu1  ;;  %15608 = vrcp.f32 %v10707_v9 }
0x3f8c   : > { %15610 = vrcp.f32 %v10832_v3 }
0x3f8d   : > { %v10517_v44 = vpop.f32.mrf.mxu1 }
0x3f8e   : > { %v10522_v48 = vmul.f32 %v15601_v43, %v10517_v44  ;;  %v10829_v29 = vpop.xlane.xlu0 %10828  ;;  %v10347_v43 = vpop.xlane.xlu1 %10346 }
0x3f8f   : > { %v14413_v33 = vpop.f32.mrf.mxu1  ;;  %15612 = vrcp.f32 %v10829_v29 }
0x3f90   : > { %v14729_v50 = vpack.i.bf16 %v10522_v48, %v10521_v28  ;;  %15614 = vrcp.f32 %v10950_v47 }
0x3f92   : > { %14730 = vrot.lane.b32.xlu0 %v14729_v50, %s19031_s19  ;;  %v10947_v19 = vpop.xlane.xlu0 %10946  ;;  %s18910_s19 = scalar_lea.sflag [#allocation3], %s620_s26 }
0x3f93   : > { %15616 = vrcp.f32 %v10947_v19 }
0x3f94   : > { %v15605_v31 = vpop.eup %15604  ;;  %15618 = vrcp.f32 %v10347_v43  ;;  %v15212_v43 = vld [vmem:[%s18963_s12 + $0x318] ss:$12 sps:$4 sm:$0xff]  }
0x3f95   : > { %v15607_v8 = vpop.eup %15606 }
0x3f96   : > { %v10344_v44 = vpop.xlane.xlu0 %10343 }
0x3f97   : > { %15620 = vrcp.f32 %v10344_v44  ;;  %v15215_v44 = vld [vmem:[%s18963_s12 + $0x320] ss:$12 sps:$4 sm:$0xff]  }
0x3f98   : > { %v15609_v18 = vpop.eup %15608 }
0x3f99   : > { %v15611_v27 = vpop.eup %15610 }
0x3f9c   : > { %v15613_v17 = vpop.eup %15612 }
0x3f9d   : > { %v15615_v40 = vpop.eup %15614 }
0x3fa0   : > { %v15617_v54 = vpop.eup %15616 }
0x3fa1   : > { %v15619_v33 = vpop.eup %15618 }
0x3fa4   : > { %v15621_v50 = vpop.eup %15620 }
0x3fbe   : > { %v10633_v56 = vpop.f32.mrf.mxu1 }
0x3fbf   : > { %v10640_v36 = vmul.f32 %v15605_v31, %v10633_v56 }
0x3fc0   : > { %v14424_v1 = vpop.f32.mrf.mxu1 }
0x3fc1   : > { %v10399_v1 = vmul.f32 %v15621_v50, %v18549_v55  ;;  %v15222_v50 = vld [vmem:[%s18963_s12 + $0x2ec] ss:$12 sps:$4 sm:$0xff]  }
0x3fc2   : > { %v10636_v51 = vpop.f32.mrf.mxu1 }
0x3fc3   : > { %v10641_v35 = vmul.f32 %v15603_v11, %v10636_v51  ;;  %v10400_v11 = vmul.f32 %v15619_v33, %v18551_v21  ;;  %v15219_v33 = vld [vmem:[%s18963_s12 + $0x308] ss:$12 sps:$4 sm:$0xff]  }
0x3fc4   : > { %v14425_v30 = vpop.f32.mrf.mxu1 }
0x3fc5   : > { %v14734_v24 = vpack.i.bf16 %v10641_v35, %v10640_v36 }
0x3fc6   : > { %v10754_v7 = vpop.f32.mrf.mxu1 }
0x3fc7   : > { %14735 = vrot.lane.b32.xlu1 %v14734_v24, %s19030_s30  ;;  %v10761_v13 = vmul.f32 %v15609_v18, %v10754_v7 }
0x3fc8   : > { %v14436_v63 = vpop.f32.mrf.mxu1 }
0x3fca   : > { %v10757_v26 = vpop.f32.mrf.mxu1 }
0x3fcb   : > { %v10762_v20 = vmul.f32 %v15607_v8, %v10757_v26  ;;  %v12953_v26 = vld [vmem:[%s18960_s9 + $0x5] ss:$0 sm:$0xff] }
0x3fcc   : > { %v14437_v23 = vpop.f32.mrf.mxu1 }
0x3fcd   : > { %v14739_v25 = vpack.i.bf16 %v10762_v20, %v10761_v13 }
0x3fce   : > { %v10873_v0 = vpop.f32.mrf.mxu1 }
0x3fcf   : > { %14740 = vrot.lane.b32.xlu1 %v14739_v25, %s19029_s4  ;;  %v10880_v6 = vmul.f32 %v15613_v17, %v10873_v0 }
0x3fd0   : > { %v14448_v49 = vpop.f32.mrf.mxu1 }
0x3fd2   : > { %v10876_v32 = vpop.f32.mrf.mxu1 }
0x3fd3   : > { %v10881_v45 = vmul.f32 %v15611_v27, %v10876_v32 }
0x3fd4   : > { %v14449_v39 = vpop.f32.mrf.mxu1 }
0x3fd5   : > { %v14744_v5 = vpack.i.bf16 %v10881_v45, %v10880_v6 }
0x3fd6   : > { %v10995_v60 = vpop.f32.mrf.mxu1 }
0x3fd7   : > { %14745 = vrot.lane.b32.xlu0 %v14744_v5, %s19028_s17  ;;  %v11002_v12 = vmul.f32 %v15617_v54, %v10995_v60  ;;  %v15204_v54 = vld [vmem:[%s18963_s12 + $0x348] ss:$12 sps:$4 sm:$0xff]   ;;  %s13100_s17 = sshll.u32 %s19034_s0, 8  ;;  %s15711_s0 = smov [#allocation2]  }
0x3fd8   : > { %v14460_v61 = vpop.f32.mrf.mxu1  ;;  %s18908_s23 = scalar_lea.hbm %s19038_s25, %s13100_s17 }
0x3fda   : > { %v10998_v58 = vpop.f32.mrf.mxu1 }
0x3fdb   : > { %v11003_v41 = vmul.f32 %v15615_v40, %v10998_v58  ;;  %v15206_v40 = vld [vmem:[%s18963_s12 + $0x34c] ss:$12 sps:$4 sm:$0xff]   ;;  %v15207_v58 = vld [vmem:[%s18963_s12 + $0x350] ss:$12 sps:$4 sm:$0xff]  }
0x3fdc   : > { %v14461_v4 = vpop.f32.mrf.mxu1  ;;  %11336 = vmatprep.subr.bf16.mxu1 %v15206_v40  ;;  %v15251_v40 = vld [vmem:[%s18965_s14 + $0x3c0] sm:$0xff]  }
0x3fdd   : > { %v14749_v53 = vpack.i.bf16 %v11003_v41, %v11002_v12  ;;  %11337 = vmatpush1.bf16.msra.mxu1 %v15204_v54  ;;  %v15210_v12 = vld [vmem:[%s18963_s12 + $0x334] ss:$12 sps:$4 sm:$0xff]   ;;  %v15208_v41 = vld [vmem:[%s18963_s12 + $0x330] ss:$12 sps:$4 sm:$0xff]   ;;  %v15211_v4 = vld [vmem:[%s18963_s12 + $0x338] ss:$12 sps:$4 sm:$0xff]  }
0x3fde   : > { %11338 = vmatprep.subr.bf16.mxu1 %v15210_v12  ;;  %v12989_v54 = vld [vmem:[%s18964_s13 + $0xf] sm:$0x7] }
0x3fdf   : > { %14750 = vrot.lane.b32.xlu1 %v14749_v53, %s19027_s20  ;;  %v15214_v53 = vld [vmem:[%s18963_s12 + $0x31c] ss:$12 sps:$4 sm:$0xff]   ;;  %s11870_s20 = sshll.u32 %s622_s1, 4  ;;  %s18903_s20 = int_to_ptr.vmem [resolvable:$true] %s11870_s20 }
0x3fe0   : > { %s15630_s28 = scalar_lea.vmem %s18903_s20, 256 }
0x3fe1   : > { %11339 = vmatpush1.bf16.msra.mxu1 %v15208_v41  ;;  %p15631_p11 = scmp.ne.s32.totalorder %s18903_s20, %s15630_s28 }
0x3fe2   : > { %11340 = vmatprep.subr.bf16.mxu1 %v15214_v53  ;;  %v11221_v53 = vrot.slane %v12989_v54, %v16532_v16 }
0x3fe3   : > { %p15632_p12 = pnand %p15631_p11, %p15856_p5 }
0x3fe5   : > { %11341 = vmatpush1.bf16.msra.mxu1 %v15212_v43  ;;  %p15633_p13 = pneg %p15632_p12 }
0x4004   : > { %v14731_v48 = vpop.permute.xlu0 %14730 }
0x4005   : > { %v14733_v42 = vunpack.i.h.bf16 %v14731_v48  ;;  %v14732_v2 = vunpack.i.l.bf16 %v14731_v48  ;;  %v15216_v48 = vld [vmem:[%s18963_s12 + $0x300] ss:$12 sps:$4 sm:$0xff]  }
0x4007   : > { %v11044_v36 = vsel %vm922_vm6, %v10399_v1, %v14732_v2  ;;  %v11045_v35 = vsel %vm922_vm6, %v10400_v11, %v14733_v42  ;;  %v15223_v42 = vld [vmem:[%s18963_s12 + $0x2f0] ss:$12 sps:$4 sm:$0xff]  }
0x4008   : > { %v15224_v2 = vld [vmem:[%s18963_s12 + $0x2d0] ss:$12 sps:$4 sm:$0xff]  }
0x4039   : > { %v14736_v28 = vpop.permute.xlu1 %14735 }
0x403a   : > { %v14738_v52 = vunpack.i.h.bf16 %v14736_v28  ;;  %v14737_v56 = vunpack.i.l.bf16 %v14736_v28  ;;  %v15218_v28 = vld [vmem:[%s18963_s12 + $0x304] ss:$12 sps:$4 sm:$0xff]  }
0x403b   : > { %11342 = vmatprep.subr.bf16.mxu1 %v15218_v28 }
0x403c   : > { %v11047_v15 = vsel %vm2524_vm9, %v11045_v35, %v14738_v52  ;;  %v11046_v30 = vsel %vm2524_vm9, %v11044_v36, %v14737_v56  ;;  %11343 = vmatpush1.bf16.msra.mxu1 %v15216_v48  ;;  %v15227_v52 = vld [vmem:[%s18963_s12 + $0x2d8] ss:$12 sps:$4 sm:$0xff]  }
0x403d   : > { %11344 = vmatprep.subr.bf16.mxu1 %v15222_v50  ;;  %v15229_v56 = vld [vmem:[%s18965_s14 + $0x438] sm:$0xff]  }
0x4041   : > { %v14741_v46 = vpop.permute.xlu1 %14740 }
0x4042   : > { %v14743_v3 = vunpack.i.h.bf16 %v14741_v46  ;;  %v14742_v31 = vunpack.i.l.bf16 %v14741_v46  ;;  %v15220_v46 = vld [vmem:[%s18963_s12 + $0x2e8] ss:$12 sps:$4 sm:$0xff]  }
0x4043   : > { %11345 = vmatpush1.bf16.msra.mxu1 %v15220_v46 }
0x4044   : > { %v11048_v59 = vsel %vm1394_vm7, %v11046_v30, %v14742_v31  ;;  %v11049_v7 = vsel %vm1394_vm7, %v11047_v15, %v14743_v3  ;;  %v12963_v15 = vld [vmem:[%s18961_s10 + $0x5] ss:$0 sm:$0xff] }
0x4049   : > { %v14746_v9 = vpop.permute.xlu0 %14745 }
0x404a   : > { %v14748_v29 = vunpack.i.h.bf16 %v14746_v9  ;;  %v14747_v51 = vunpack.i.l.bf16 %v14746_v9  ;;  %v15226_v9 = vld [vmem:[%s18963_s12 + $0x2d4] ss:$12 sps:$4 sm:$0xff]  }
0x404b   : > { %11346 = vmatprep.subr.bf16.mxu1 %v15226_v9 }
0x404c   : > { %v11050_v21 = vsel %vm2529_vm10, %v11048_v59, %v14747_v51  ;;  %v11051_v8 = vsel %vm2529_vm10, %v11049_v7, %v14748_v29  ;;  %11347 = vmatpush1.bf16.msra.mxu1 %v15224_v2  ;;  %v12964_v7 = vld [vmem:[%s18962_s11 + $0x5] ss:$0 sm:$0xff] }
0x404d   : > { %13556 = vmatprep.subr.bf16.mxu1 %v15229_v56 }
0x4051   : > { %v14751_v24 = vpop.permute.xlu1 %14750 }
0x4052   : > { %v14753_v55 = vunpack.i.h.bf16 %v14751_v24  ;;  %v14752_v63 = vunpack.i.l.bf16 %v14751_v24 }
0x4054   : > { %v11052_v47 = vsel %vm2532_vm11, %v11050_v21, %v14752_v63  ;;  %v11053_v18 = vsel %vm2532_vm11, %v11051_v8, %v14753_v55  ;;  %v15228_v8 = vld [vmem:[%s18965_s14 + $0x478] sm:$0xff]  }
0x4055   : > { %v11054_v19 = vpack.c.bf16 %v11053_v18, %v11052_v47  ;;  %v15230_v47 = vld [vmem:[%s18965_s14 + $0x3f8] sm:$0xff]  }
0x4057   : > { %14475 = vmatmul.mubr.msk.bf16.vlgmr.msra.gmra.mxu0 %vm778_vm0, %v11054_v19  ;;  %v15232_v19 = vld [vmem:[%s18965_s14 + $0x430] sm:$0xff]  }
0x4058   : > { %14490 = vmatprep.mubr.msk.bf16.mxu0 %vm15694_vm1, %v15693_v22  ;;  %14479 = vmatpush3.bf16.msra.mxu0 %v15207_v58  ;;  %v11229_v58 = vrot.slane %v12989_v54, %v16523_v14 }
0x4059   : > { %14480 = vmatprep.subr.bf16.mxu0 %v15693_v22 }
0x405c   : > { %14481 = vmatpush3.bf16.msra.mxu0 %v15211_v4  ;;  %v11225_v4 = vrot.slane %v12989_v54, %v16529_v38 }
0x405d   : > { %14482 = vmatprep.subr.bf16.mxu0 %v15693_v22 }
0x4060   : > { %14483 = vmatpush3.bf16.msra.mxu0 %v15215_v44 }
0x4061   : > { %14484 = vmatprep.subr.bf16.mxu0 %v15693_v22 }
0x4064   : > { %14485 = vmatpush3.bf16.msra.mxu0 %v15219_v33 }
0x4065   : > { %14486 = vmatprep.subr.bf16.mxu0 %v15693_v22 }
0x4068   : > { %14487 = vmatpush3.bf16.msra.mxu0 %v15223_v42 }
0x4069   : > { %14488 = vmatprep.subr.bf16.mxu0 %v15693_v22 }
0x406c   : > { %14489 = vmatpush3.bf16.msra.mxu0 %v15227_v52 }
0x406d   : > { %14494 = vmatprep.subr.bf16.mxu0 %v15693_v22 }
0x4117   : > { %v11134_v13 = vpop.f32.mrf.mxu0 }
0x4118   : > { %v11135_v20 = vadd.f32 %v12953_v26, %v11134_v13  ;;  %v15233_v13 = vld [vmem:[%s18965_s14 + $0x3f0] sm:$0xff]  }
0x4119   : > { %v14476_v62 = vpop.f32.mrf.mxu0 }
0x411a   : > { %v18678_v23 = vadd.f32 %v11135_v20, %v18399_v34  ;;  %v15235_v20 = vld [vmem:[%s18965_s14 + $0x428] sm:$0xff]  }
0x411b   : > { %v11137_v25 = vpop.f32.mrf.mxu0  ;;  %v15234_v62 = vld [vmem:[%s18965_s14 + $0x468] sm:$0xff]  }
0x411c   : > { %v11138_v10 = vadd.f32 %v12953_v26, %v11137_v25  ;;  %v11147_v0 = vsel %vm778_vm0, %v18678_v23, 0.0  ;;  %v15231_v26 = vld [vmem:[%s18965_s14 + $0x470] sm:$0xff]   ;;  %v15236_v25 = vld [vmem:[%s18965_s14 + $0x3e8] sm:$0xff]  }
0x411d   : > { %11148 = vadd.xlane.f32.xlu0 %v11147_v0  ;;  %v14477_v49 = vpop.f32.mrf.mxu0  ;;  %v15237_v0 = vld [vmem:[%s18965_s14 + $0x460] sm:$0xff]  }
0x411e   : > { %v18683_v27 = vadd.f32 %v11138_v10, %v18404_v57  ;;  %v15238_v10 = vld [vmem:[%s18965_s14 + $0x420] sm:$0xff]  }
0x411f   : > { %v15239_v49 = vld [vmem:[%s18965_s14 + $0x3e0] sm:$0xff]  }
0x4120   : > { %v11150_v17 = vsel %vm778_vm0, %v18683_v27, 0.0 }
0x4121   : > { %11151 = vadd.xlane.f32.xlu1 %v11150_v17  ;;  %v15241_v17 = vld [vmem:[%s18965_s14 + $0x418] sm:$0xff]  }
0x41a6   : > { %v11149_v32 = vpop.xlane.xlu0 %11148 }
0x41a7   : > { %v11153_v6 = vmul.f32 0.010416667, %v11149_v32  ;;  %v15240_v32 = vld [vmem:[%s18965_s14 + $0x458] sm:$0xff]  }
0x41a9   : > { %v18688_v45 = vsub.f32 %v18678_v23, %v11153_v6  ;;  %v15242_v6 = vld [vmem:[%s18965_s14 + $0x3d8] sm:$0xff]  }
0x41aa   : > { %v11152_v34 = vpop.xlane.xlu1 %11151 }
0x41ab   : > { %v11154_v37 = vmul.f32 0.010416667, %v11152_v34  ;;  %v11157_v39 = vmul.f32 %v18688_v45, %v18688_v45  ;;  %v15244_v34 = vld [vmem:[%s18965_s14 + $0x410] sm:$0xff]  }
0x41ad   : > { %v18693_v5 = vsub.f32 %v18683_v27, %v11154_v37  ;;  %v11159_v57 = vsel %vm778_vm0, %v11157_v39, 0.0  ;;  %v15245_v37 = vld [vmem:[%s18965_s14 + $0x3d0] sm:$0xff]   ;;  %v15246_v39 = vld [vmem:[%s18965_s14 + $0x448] sm:$0xff]  }
0x41ae   : > { %11160 = vadd.xlane.f32.xlu0 %v11159_v57  ;;  %v15248_v57 = vld [vmem:[%s18965_s14 + $0x3c8] sm:$0xff]  }
0x41af   : > { %v11158_v60 = vmul.f32 %v18693_v5, %v18693_v5 }
0x41b1   : > { %v11162_v61 = vsel %vm778_vm0, %v11158_v60, 0.0  ;;  %v15249_v60 = vld [vmem:[%s18965_s14 + $0x440] sm:$0xff]  }
0x41b2   : > { %11163 = vadd.xlane.f32.xlu0 %v11162_v61  ;;  %v15250_v61 = vld [vmem:[%s18965_s14 + $0x400] sm:$0xff]  }
0x4237   : > { %v11161_v1 = vpop.xlane.xlu0 %11160 }
0x4238   : > { %v11165_v11 = vmul.f32 0.010416667, %v11161_v1 }
0x423a   : > { %v11167_v3 = vadd.f32 1e-05, %v11165_v11 }
0x423b   : > { %v11164_v31 = vpop.xlane.xlu0 %11163 }
0x423c   : > { %15622 = vrsqrt.f32 %v11167_v3  ;;  %v11166_v29 = vmul.f32 0.010416667, %v11164_v31 }
0x423e   : > { %v11168_v51 = vadd.f32 1e-05, %v11166_v29 }
0x4240   : > { %15624 = vrsqrt.f32 %v11168_v51 }
0x4249   : > { %v15623_v36 = vpop.eup %15622 }
0x424a   : > { %v11171_v35 = vmul.f32 %v15623_v36, %v18688_v45  ;;  %v15243_v45 = vld [vmem:[%s18965_s14 + $0x450] sm:$0xff]  }
0x424c   : > { %v11179_v24 = vmul.f32 %v12963_v15, %v11171_v35 }
0x424d   : > { %v15625_v30 = vpop.eup %15624 }
0x424e   : > { %v11172_v59 = vmul.f32 %v15625_v30, %v18693_v5  ;;  %v11187_v63 = vadd.f32 %v12964_v7, %v11179_v24  ;;  %v15247_v5 = vld [vmem:[%s18965_s14 + $0x408] sm:$0xff]   ;;  %v13059_v24 = vld [vmem:[%s18966_s15 + $0x5] ss:$0 sm:$0xff] }
0x4250   : > { %v11180_v55 = vmul.f32 %v12963_v15, %v11172_v59 }
0x4252   : > { %v11188_v21 = vadd.f32 %v12964_v7, %v11180_v55 }
0x4254   : > { %v11189_v18 = vpack.c.bf16 %v11188_v21, %v11187_v63 }
0x4256   : > { %13008 = vmatmul.mubr.msk.bf16.vlgmr.msra.gmra.mxu1 %vm778_vm0, %v11189_v18  ;;  %14491 = vmatmul.mubr.msk.bf16.vlgmr.msra.gmra.mxu0 %vm778_vm0, %v11189_v18 }
0x4257   : > { %14495 = vmatpush3.bf16.msra.mxu0 %v15228_v8  ;;  %13557 = vmatpush3.bf16.msra.mxu1 %v15230_v47 }
0x4258   : > { %14496 = vmatprep.subr.bf16.mxu0 %v15693_v22  ;;  %13558 = vmatprep.subr.bf16.mxu1 %v15232_v19 }
0x4259   : > { %14510 = vmatprep.mubr.msk.bf16.mxu0 %vm15694_vm1, %v15693_v22 }
0x425b   : > { %14497 = vmatpush3.bf16.msra.mxu0 %v15231_v26  ;;  %13559 = vmatpush3.bf16.msra.mxu1 %v15233_v13 }
0x425c   : > { %14498 = vmatprep.subr.bf16.mxu0 %v15693_v22  ;;  %13560 = vmatprep.subr.bf16.mxu1 %v15235_v20 }
0x425f   : > { %14499 = vmatpush3.bf16.msra.mxu0 %v15234_v62  ;;  %13561 = vmatpush3.bf16.msra.mxu1 %v15236_v25 }
0x4260   : > { %14500 = vmatprep.subr.bf16.mxu0 %v15693_v22  ;;  %13562 = vmatprep.subr.bf16.mxu1 %v15238_v10 }
0x4263   : > { %14501 = vmatpush3.bf16.msra.mxu0 %v15237_v0  ;;  %13563 = vmatpush3.bf16.msra.mxu1 %v15239_v49 }
0x4264   : > { %14502 = vmatprep.subr.bf16.mxu0 %v15693_v22  ;;  %13564 = vmatprep.subr.bf16.mxu1 %v15241_v17 }
0x4267   : > { %14503 = vmatpush3.bf16.msra.mxu0 %v15240_v32  ;;  %13565 = vmatpush3.bf16.msra.mxu1 %v15242_v6 }
0x4268   : > { %14504 = vmatprep.subr.bf16.mxu0 %v15693_v22  ;;  %13566 = vmatprep.subr.bf16.mxu1 %v15244_v34 }
0x426b   : > { %14505 = vmatpush3.bf16.msra.mxu0 %v15243_v45  ;;  %13567 = vmatpush3.bf16.msra.mxu1 %v15245_v37 }
0x426c   : > { %14506 = vmatprep.subr.bf16.mxu0 %v15693_v22  ;;  %13568 = vmatprep.subr.bf16.mxu1 %v15247_v5  ;;  %v15254_v5 = vld [vmem:[%s18969_s18 + $0x18] sm:$0xff]  }
0x426f   : > { %14507 = vmatpush3.bf16.msra.mxu0 %v15246_v39  ;;  %13569 = vmatpush3.bf16.msra.mxu1 %v15248_v57  ;;  %v15253_v39 = vld [vmem:[%s18969_s18 + $0x20] sm:$0xff]   ;;  %v15255_v57 = vld [vmem:[%s18969_s18 + $0x10] sm:$0xff]  }
0x4270   : > { %14508 = vmatprep.subr.bf16.mxu0 %v15693_v22  ;;  %13570 = vmatprep.subr.bf16.mxu1 %v15250_v61  ;;  %v15257_v61 = vld [vmem:[%s18969_s18] sm:$0xff]  }
0x4273   : > { %14509 = vmatpush3.bf16.msra.mxu0 %v15249_v60  ;;  %13571 = vmatpush3.bf16.msra.mxu1 %v15251_v40  ;;  %v15256_v60 = vld [vmem:[%s18969_s18 + $0x8] sm:$0xff]  }
0x4274   : > { %14514 = vmatprep.subr.bf16.mxu1 %v15693_v22 }
0x4316   : > { %v11366_v12 = vpop.f32.mrf.mxu1  ;;  %v11409_v41 = vpop.f32.mrf.mxu0 }
0x4317   : > { %v11410_v28 = vadd.f32 %v11409_v41, %v11229_v58  ;;  %v11367_v2 = vadd.f32 %v11366_v12, %v11221_v53 }
0x4318   : > { %v11368_v43 = vpop.f32.mrf.mxu1  ;;  %v14492_v44 = vpop.f32.mrf.mxu0 }
0x4319   : > { %v11369_v50 = vadd.f32 %v11368_v43, %v11225_v4  ;;  %v11418_v56 = vmax.f32 %v11410_v28, 0.0  ;;  %v11416_v29 = vmax.f32 %v11367_v2, 0.0 }
0x431a   : > { %v11370_v48 = vpop.f32.mrf.mxu1  ;;  %v11412_v33 = vpop.f32.mrf.mxu0 }
0x431b   : > { %v11371_v46 = vadd.f32 %v11370_v48, %v11221_v53  ;;  %v11413_v42 = vadd.f32 %v11412_v33, %v11229_v58  ;;  %v11417_v3 = vmax.f32 %v11369_v50, 0.0  ;;  %v13085_v33 = vld [vmem:[%s19035_s24] ss:$0 sm:$0xff]  ;;  %s15634_s24 = sshll.u32 %s15711_s0, 4  ;;  %s15635_s24 = int_to_ptr.vmem [resolvable:$false] %s15634_s24 }
0x431c   : > { %v11372_v9 = vpop.f32.mrf.mxu1  ;;  %v14493_v52 = vpop.f32.mrf.mxu0  ;;  %s15636_s21 = scalar_lea.vmem %s15635_s24, 512  ;;  %p15637_p0 = scmp.lt.s32.totalorder %s18903_s20, %s15635_s24 }
0x431d   : > { %v11421_v1 = vmax.f32 %v11413_v42, 0.0  ;;  %v11373_v14 = vadd.f32 %v11372_v9, %v11225_v4  ;;  %v11419_v11 = vmax.f32 %v11371_v46, 0.0  ;;  %v13086_v9 = vld [vmem:[%s19036_s29] ss:$0 sm:$0xff]  ;;  %p15638_p1 = scmp.lt.s32.totalorder %s15636_s21, %s15630_s28 }
0x431f   : > { %v11424_v31 = vpack.c.bf16 %v11421_v1, %v11418_v56  ;;  %v11420_v38 = vmax.f32 %v11373_v14, 0.0  ;;  %v11422_v51 = vpack.c.bf16 %v11419_v11, %v11416_v29  ;;  %p15639_p2 = por %p15638_p1, %p15637_p0 }
0x4321   : > { %v11423_v16 = vpack.c.bf16 %v11420_v38, %v11417_v3  ;;  %14511 = vmatmul.mubr.bf16.vlgmr.msra.gmra.mxu0 %v11424_v31  ;;  %p15640_p3 = pnand %p15639_p2, %p15633_p13 }
0x4323   : > { %11658 = vmatprep.mubr.bf16.mxu1 %v11423_v16 }
0x4324   : > { %11659 = vmatmul.mubr.bf16.vlgmr.msra.gmra.mxu1 %v11422_v51 }
0x4325   : > { %14526 = vmatprep.mubr.msk.bf16.mxu1 %vm15694_vm1, %v15693_v22 }
0x43e1   : > { %v11701_v36 = vpop.f32.mrf.mxu0 }
0x43e3   : > { %v14512_v35 = vpop.f32.mrf.mxu0 }
0x43e4   : > { %v13572_v15 = vpop.f32.mrf.mxu1 }
0x43e5   : > { %v11704_v30 = vpop.f32.mrf.mxu0 }
0x43e6   : > { %v13573_v59 = vpop.f32.mrf.mxu1 }
0x43e7   : > { %v13574_v7 = vadd.f32 %v13573_v59, %v13572_v15  ;;  %v14513_v55 = vpop.f32.mrf.mxu0 }
0x43e8   : > { %v13575_v63 = vpop.f32.mrf.mxu1 }
0x43e9   : > { %v11661_v21 = vadd.f32 %v13574_v7, %v13059_v24 }
0x43ea   : > { %v13576_v8 = vpop.f32.mrf.mxu1 }
0x43eb   : > { %v11702_v47 = vadd.f32 %v11701_v36, %v11661_v21  ;;  %v13577_v18 = vadd.f32 %v13576_v8, %v13575_v63 }
0x43ed   : > { %v11664_v19 = vadd.f32 %v13577_v18, %v13059_v24  ;;  %v11708_v26 = vadd.f32 %v11702_v47, %v18678_v23 }
0x43ef   : > { %v11705_v13 = vadd.f32 %v11704_v30, %v11664_v19  ;;  %v11712_v20 = vsel %vm778_vm0, %v11708_v26, 0.0 }
0x43f0   : > { %11713 = vadd.xlane.f32.xlu1 %v11712_v20 }
0x43f1   : > { %v11709_v62 = vadd.f32 %v11705_v13, %v18683_v27  ;;  %v15252_v27 = vld [vmem:[%s18969_s18 + $0x28] sm:$0xff]  }
0x43f2   : > { %14515 = vmatpush3.bf16.msra.mxu1 %v15252_v27 }
0x43f3   : > { %v11715_v25 = vsel %vm778_vm0, %v11709_v62, 0.0  ;;  %14516 = vmatprep.subr.bf16.mxu1 %v15693_v22 }
0x43f4   : > { %11716 = vadd.xlane.f32.xlu0 %v11715_v25 }
0x43f6   : > { %14517 = vmatpush3.bf16.msra.mxu1 %v15253_v39 }
0x43f7   : > { %14518 = vmatprep.subr.bf16.mxu1 %v15693_v22 }
0x43fa   : > { %14519 = vmatpush3.bf16.msra.mxu1 %v15254_v5 }
0x43fb   : > { %14520 = vmatprep.subr.bf16.mxu1 %v15693_v22 }
0x43fe   : > { %14521 = vmatpush3.bf16.msra.mxu1 %v15255_v57 }
0x43ff   : > { %14522 = vmatprep.subr.bf16.mxu1 %v15693_v22 }
0x4402   : > { %14523 = vmatpush3.bf16.msra.mxu1 %v15256_v60 }
0x4403   : > { %14524 = vmatprep.subr.bf16.mxu1 %v15693_v22  ;;  %v13084_v22 = vld [vmem:[%s18967_s16] ss:$0 sm:$0xff] }
0x4406   : > { %14525 = vmatpush3.bf16.msra.mxu1 %v15257_v61 }
0x4479   : > { %v11714_v10 = vpop.xlane.xlu1 %11713 }
0x447a   : > { %v11718_v0 = vmul.f32 0.010416667, %v11714_v10 }
0x447c   : > { %v11720_v49 = vsub.f32 %v11708_v26, %v11718_v0 }
0x447d   : > { %v11717_v17 = vpop.xlane.xlu0 %11716 }
0x447e   : > { %v11719_v32 = vmul.f32 0.010416667, %v11717_v17  ;;  %v11722_v6 = vmul.f32 %v11720_v49, %v11720_v49 }
0x4480   : > { %v11721_v45 = vsub.f32 %v11709_v62, %v11719_v32  ;;  %v11724_v34 = vsel %vm778_vm0, %v11722_v6, 0.0 }
0x4481   : > { %11725 = vadd.xlane.f32.xlu1 %v11724_v34 }
0x4482   : > { %v11723_v23 = vmul.f32 %v11721_v45, %v11721_v45 }
0x4484   : > { %v11727_v37 = vsel %vm778_vm0, %v11723_v23, 0.0 }
0x4485   : > { %11728 = vadd.xlane.f32.xlu0 %v11727_v37 }
0x450a   : > { %v11726_v40 = vpop.xlane.xlu1 %11725 }
0x450b   : > { %v11730_v54 = vmul.f32 0.010416667, %v11726_v40 }
0x450d   : > { %v11732_v58 = vadd.f32 1e-05, %v11730_v54 }
0x450e   : > { %v11729_v12 = vpop.xlane.xlu0 %11728 }
0x450f   : > { %15626 = vrsqrt.f32 %v11732_v58  ;;  %v11731_v41 = vmul.f32 0.010416667, %v11729_v12 }
0x4511   : > { %v11733_v4 = vadd.f32 1e-05, %v11731_v41 }
0x4513   : > { %15628 = vrsqrt.f32 %v11733_v4 }
0x451c   : > { %v15627_v53 = vpop.eup %15626 }
0x451d   : > { %v11736_v43 = vmul.f32 %v15627_v53, %v11720_v49 }
0x451f   : > { %v11744_v28 = vmul.f32 %v13084_v22, %v11736_v43 }
0x4520   : > { %v15629_v44 = vpop.eup %15628 }
0x4521   : > { %v11737_v48 = vmul.f32 %v15629_v44, %v11721_v45  ;;  %v11752_v46 = vadd.f32 %v13085_v33, %v11744_v28 }
0x4523   : > { %v11745_v50 = vmul.f32 %v13084_v22, %v11737_v48 }
0x4525   : > { %v11753_v42 = vadd.f32 %v13085_v33, %v11745_v50 }
0x4527   : > { %v11754_v2 = vpack.c.bf16 %v11753_v42, %v11752_v46 }
0x4529   : > { %14527 = vmatmul.mubr.msk.bf16.vlgmr.msra.gmra.mxu1 %vm778_vm0, %v11754_v2 }
0x45e9   : > { %v11847_v52 = vpop.f32.mrf.mxu1 }
0x45ea   : > { %v11848_v56 = vadd.f32 %v13086_v9, %v11847_v52 }
0x45eb   : > { %v14528_v1 = vpop.f32.mrf.mxu1 }
0x45ec   : > { %11854 = vst [vmem:[%s622_s1] sm:$0xff] %v11848_v56 }
0x45ed   : > { %v11850_v14 = vpop.f32.mrf.mxu1 }
0x45ee   : > { %v11851_v11 = vadd.f32 %v13086_v9, %v11850_v14 }
0x45ef   : > { %v14529_v3 = vpop.f32.mrf.mxu1 }
0x45f0   : > { %11855 = vst [vmem:[%s622_s1 + $0x8] sm:$0xff] %v11851_v11 }
0x45f1   : > { %15643 = shalt.err (!%p15640_p3)
}
0x45f2   : > { %s15644_s26 = scalar_lea.hbm %s18908_s23, 256  ;;  %s15648_s29 = scalar_lea.hbm %s19038_s25, 512 }
0x45f3   : > { %p15645_p4 = scmp.ne.s32.totalorder %s18908_s23, %s15644_s26  ;;  %p15649_p9 = scmp.lt.s32.totalorder %s18908_s23, %s19038_s25 }
0x45f4   : > { %p15650_p10 = scmp.lt.s32.totalorder %s15648_s29, %s15644_s26 }
0x45f5   : > { %p15646_p7 = pnand %p15645_p4, %p15856_p5 }
0x45f6   : > { %p15651_p11 = por %p15650_p10, %p15649_p9 }
0x45f7   : > { %p15647_p8 = pneg %p15646_p7 }
0x45f9   : > { %p15652_p12 = pnand %p15651_p11, %p15647_p8 }
0x45fb   : > { %15655 = shalt.err (!%p15652_p12)
}
0x45fc   : > { %s15712_s4 = smov 128   ;;  %s19039_s2 = smov 8  }
0x45fd   : > { %14530 = dma.vmem_to_hbm [thread:$0]  (%p15856_p5), %s18903_s20, 256, %s18908_s23, %s18910_s19, %s15712_s4, %s15712_s4, %s19039_s2  }
0x45fe PF: > { %s19040_s28 = sld [smem:[#allocation7_spill]] }
0x45ff   : > { %s19041_s0 = sld [smem:[#allocation5_spill]] }
0x4604   : > { %p14536_p13 = scmp.ge.s32.totalorder %s19040_s28, 2 }
0x4605   : > { %s11885_s21 = sand.u32 1, %s19041_s0  }
0x4606   : > { %p14533_p0 = pnand %p14536_p13, %p15860_p6  ;;  %s11886_s26 = scalar_lea.sflag [#allocation3], %s11885_s21 }
0x4608   : > { %p14534_p1 = pneg %p14533_p0 }
0x460a   : > { %15673 = dma.done.wait (%p14534_p1), %s11886_s26, 256  }
0x460b   : > { %15675 = vsyncadd (%p14534_p1), %s11886_s26, 4294967040  ;;  %s19043_s24 = sld [smem:[#allocation9_spill]]  ;;  %s19046_s1 = smov %s15682_s22 }
0x460c   : > { %s19044_s27 = sld [smem:[#allocation6_spill]] }
0x460d   : > { %s19045_s23 = sld [smem:[#allocation10_spill]] }
0x4611   : > { %p30_p2 = scmp.ge.s32.totalorder %s19043_s24, 4  }
0x4612   : > { %s19047_s22 = smov %s19044_s27 }
0x4613   :  { %32 = sbr.rel (!%p30_p2) target bundleno = 12 (0xc), region = 190 }
0x4618   :  { %11891 = vsyncpa [#allocation3], 1 }
0x4619   :  { %11893 = vsyncpa [#allocation3 + $0x1], 1 }

</bundles_post_ra>
